<compile_context>
chip_gen: v5e
topology: v5e:2x2
jax: 0.10.0
libtpu: 0.0.40
codegen_flags: <defaults>
</compile_context>

<pallas_src>
import numpy as np

import jax
import jax.numpy as jnp
from jax import lax
from jax.experimental import pallas as pl
from jax.experimental.pallas import tpu as pltpu

_EPS = 1e-5                      # BatchNorm2d default eps
_POOL_DTYPE = jnp.bfloat16       # use jnp.float32 on v5e (no bf16 VALU)


def _hardswish(x):
    # x * relu6(x + 3) / 6
    return x * jnp.clip(x + 3.0, 0.0, 6.0) * (1.0 / 6.0)


# --------------------------- fused SPPF Pallas kernel ------------------------

def _sppf_kernel(x_ref, w1_ref, s1_ref, b1_ref, w2_ref, s2_ref, b2_ref,
                 o_ref, rbuf, cbuf, *opt_scratch):
    # x_ref : (1, H, W, C1) bf16        input slab for one batch element
    # w1_ref: (C1, Cm) bf16             cv1 1x1 conv weight
    # s1/b1 : (1, Cm) f32               folded BN scale / bias for cv1
    # w2_ref: (4*Cm, C2) bf16           cv2 weight (concat row order x0,p1,p2,p3)
    # s2/b2 : (1, C2) f32               folded BN scale / bias for cv2
    # o_ref : (1, H, W, C2) f32
    # rbuf  : VMEM (H, W + 10, Cm)      row-pass halo buffer (pool dtype)
    # cbuf  : VMEM (H + 4, W, Cm)       column-pass halo buffer (pool dtype)
    # opt_scratch[0] (if present): VMEM (H*W, 4*Cm) bf16 concat buffer (Cm<128)
    cat = opt_scratch[0] if opt_scratch else None
    _, H, W, C1 = x_ref.shape
    Cm = w1_ref.shape[1]
    C2 = o_ref.shape[-1]
    pool_dt = rbuf.dtype

    # ---- -inf halo strips only (interior is fully overwritten every pool) --
    # Written per grid step (cheap) so it is correct even when the batch axis
    # is core-sharded; columns [0,6) of rbuf are never read and stay untouched.
    rbuf[:, 6:8, :] = jnp.full((H, 2, Cm), -jnp.inf, pool_dt)
    rbuf[:, 8 + W:10 + W, :] = jnp.full((H, 2, Cm), -jnp.inf, pool_dt)
    cbuf[0:2, :, :] = jnp.full((2, W, Cm), -jnp.inf, pool_dt)
    cbuf[2 + H:4 + H, :, :] = jnp.full((2, W, Cm), -jnp.inf, pool_dt)

    # ---- cv1: 1x1 conv (bf16 MXU, f32 acc) + BN + hardswish ----------------
    x = x_ref[0].reshape(H * W, C1)                              # bf16
    y = jnp.dot(x, w1_ref[...], preferred_element_type=jnp.float32)
    x0 = _hardswish(y * s1_ref[...] + b1_ref[...])               # (H*W, Cm) f32

    def pool5(a):
        # stride-1 "same" 5x5 max pool, separable: 1x5 row max then 5x1 column
        # max; -inf halos so padding never wins (matches nn.MaxPool2d(5,1,2)).
        rbuf[:, 8:8 + W, :] = a                                  # aligned store
        r = rbuf[:, 6:6 + W, :]
        for dx in (7, 8, 9, 10):                                 # 5-wide window
            r = jnp.maximum(r, rbuf[:, dx:dx + W, :])
        cbuf[2:2 + H, :, :] = r
        c = cbuf[0:H, :, :]
        for dy in (1, 2, 3, 4):                                  # 5-tall window
            c = jnp.maximum(c, cbuf[dy:dy + H, :, :])
        return c                                                 # (H, W, Cm)

    x0p = x0.astype(pool_dt).reshape(H, W, Cm)

    if cat is not None:
        # concat([x0,p1,p2,p3]) built in VMEM -> single K = 4*Cm MXU matmul.
        cat[:, 0:Cm] = x0.astype(jnp.bfloat16)
        cur = x0p
        for i in range(3):                                       # cascaded pools
            cur = pool5(cur)
            cat[:, (i + 1) * Cm:(i + 2) * Cm] = (
                cur.reshape(H * W, Cm).astype(jnp.bfloat16))
        acc = jnp.dot(cat[...], w2_ref[...],
                      preferred_element_type=jnp.float32)        # (H*W, C2) f32
    else:
        # production path (Cm >= 128): concat eliminated algebraically as a
        # sum of 4 matmuls against the row-chunks of w2.
        acc = jnp.dot(x0.astype(jnp.bfloat16), w2_ref[0:Cm, :],
                      preferred_element_type=jnp.float32)
        cur = x0p
        for i in range(3):
            cur = pool5(cur)
            acc = acc + jnp.dot(cur.reshape(H * W, Cm).astype(jnp.bfloat16),
                                w2_ref[(i + 1) * Cm:(i + 2) * Cm, :],
                                preferred_element_type=jnp.float32)

    out = _hardswish(acc * s2_ref[...] + b2_ref[...])
    o_ref[0] = out.reshape(H, W, C2).astype(o_ref.dtype)


@jax.jit
def sppf_forward(x_nchw, p):
    # bf16 cast fuses into the transpose under jit -> only bf16 crosses HBM.
    x = jnp.transpose(x_nchw, (0, 2, 3, 1)).astype(jnp.bfloat16)  # NCHW->NHWC
    N, H, W, C1 = x.shape
    Cm = p['w1'].shape[1]
    C2 = p['w2'].shape[-1]

    scratch = [
        pltpu.VMEM((H, W + 10, Cm), _POOL_DTYPE),   # row-pass halo buffer
        pltpu.VMEM((H + 4, W, Cm), _POOL_DTYPE),    # column-pass halo buffer
    ]
    use_concat = Cm < 128                           # single K=4*Cm matmul path
    if use_concat:
        scratch.append(pltpu.VMEM((H * W, 4 * Cm), jnp.bfloat16))

    out = pl.pallas_call(
        _sppf_kernel,
        out_shape=jax.ShapeDtypeStruct((N, H, W, C2), jnp.float32),
        grid=(N,),
        in_specs=[
            pl.BlockSpec((1, H, W, C1), lambda n: (n, 0, 0, 0)),
            pl.BlockSpec((C1, Cm), lambda n: (0, 0)),
            pl.BlockSpec((1, Cm), lambda n: (0, 0)),
            pl.BlockSpec((1, Cm), lambda n: (0, 0)),
            pl.BlockSpec((4 * Cm, C2), lambda n: (0, 0)),
            pl.BlockSpec((1, C2), lambda n: (0, 0)),
            pl.BlockSpec((1, C2), lambda n: (0, 0)),
        ],
        out_specs=pl.BlockSpec((1, H, W, C2), lambda n: (n, 0, 0, 0)),
        scratch_shapes=scratch,
        compiler_params=pltpu.CompilerParams(
            dimension_semantics=("parallel",),
            # Plenty for these tiles; intentionally <= v7x's 64 MiB physical.
            vmem_limit_bytes=32 * 1024 * 1024,
        ),
    )(x,
      p['w1'].astype(jnp.bfloat16),
      p['s1'].reshape(1, Cm), p['b1'].reshape(1, Cm),
      p['w2'].astype(jnp.bfloat16),
      p['s2'].reshape(1, C2), p['b2'].reshape(1, C2))

    return jnp.transpose(out, (0, 3, 1, 2))                       # NHWC->NCHW


# --------------------------- parameters (deterministic, synthetic) -----------

def _fold_bn(gamma, beta, mean, var):
    scale = gamma / jnp.sqrt(var + _EPS)
    return scale, beta - mean * scale


def make_params(key, c1, c2):
    assert c1 % 2 == 0
    c_ = c1 // 2
    keys = iter(jax.random.split(key, 16))

    def conv_w(cin, cout):
        return 0.1 * jax.random.normal(next(keys), (cin, cout), jnp.float32)

    def bn(c):
        gamma = 0.5 + jax.random.uniform(next(keys), (c,), jnp.float32)
        beta = 0.1 * jax.random.normal(next(keys), (c,), jnp.float32)
        mean = 0.1 * jax.random.normal(next(keys), (c,), jnp.float32)
        var = 0.5 + jax.random.uniform(next(keys), (c,), jnp.float32)
        return _fold_bn(gamma, beta, mean, var)     # eval-mode BN -> scale/bias

    p = {}
    p['w1'] = conv_w(c1, c_)                        # cv1: Conv 1x1, c1 -> c_
    p['s1'], p['b1'] = bn(c_)
    p['w2'] = conv_w(4 * c_, c2)                    # cv2: Conv 1x1, 4*c_ -> c2
    p['s2'], p['b2'] = bn(c2)
    return p


# --------------------------- pure-JAX reference (for validation) -------------

def _ref_forward(x_nchw, p):
    x = jnp.transpose(x_nchw, (0, 2, 3, 1)).astype(jnp.float32)

    def c1x1(v, w, s, b):
        y = jnp.einsum('nhwc,cd->nhwd', v, w, precision=jax.lax.Precision.HIGHEST)
        return _hardswish(y * s + b)

    def mp5(v):
        return lax.reduce_window(v, -jnp.inf, lax.max, (1, 5, 5, 1), (1, 1, 1, 1),
                                 [(0, 0), (2, 2), (2, 2), (0, 0)])

    x0 = c1x1(x, p['w1'], p['s1'], p['b1'])
    p1 = mp5(x0)
    p2 = mp5(p1)
    p3 = mp5(p2)
    cat = jnp.concatenate([x0, p1, p2, p3], axis=-1)
    out = c1x1(cat, p['w2'], p['s2'], p['b2'])
    return jnp.transpose(out, (0, 3, 1, 2))


if __name__ == "__main__":
    key = jax.random.PRNGKey(0)
    kx, kp = jax.random.split(key)

    # Small, lane-friendly demo shapes (c2 = 128 keeps output stores unmasked;
    # c_ = 32 exercises the single K=4*c_=128 concat-matmul path).  The kernel
    # is correct for arbitrary H/W/channels; non-(8,128)-friendly sizes just
    # pad vregs.
    N, c1, H, W = 2, 64, 16, 16
    c2 = 128
    x = jax.random.normal(kx, (N, c1, H, W), jnp.float32)
    params = make_params(kp, c1, c2)

    out = jax.block_until_ready(sppf_forward(x, params))
    assert out.shape == (N, c2, H, W), out.shape

    ref = jax.block_until_ready(_ref_forward(x, params))
    np.testing.assert_allclose(np.asarray(out), np.asarray(ref),
                               rtol=2e-2, atol=2e-2)

    print("KERNEL_OK")
</pallas_src>

<mosaic_0001>
module attributes {stable_mosaic.version = 11 : i64} {
  func.func @_sppf_kernel(%arg0: i32, %arg1: memref<1x16x16x64xbf16, #tpu.memory_space<vmem>>, %arg2: memref<64x32xbf16, #tpu.memory_space<vmem>>, %arg3: memref<1x32xf32, #tpu.memory_space<vmem>>, %arg4: memref<1x32xf32, #tpu.memory_space<vmem>>, %arg5: memref<128x128xbf16, #tpu.memory_space<vmem>>, %arg6: memref<1x128xf32, #tpu.memory_space<vmem>>, %arg7: memref<1x128xf32, #tpu.memory_space<vmem>>, %arg8: memref<1x16x16x128xf32, #tpu.memory_space<vmem>>, %arg9: memref<16x26x32xbf16, #tpu.memory_space<vmem>>, %arg10: memref<20x16x32xbf16, #tpu.memory_space<vmem>>, %arg11: memref<256x128xbf16, #tpu.memory_space<vmem>>) attributes {dimension_semantics = [#tpu.dimension_semantics<parallel>], iteration_bounds = array<i64: 2>, scalar_prefetch = 0 : i64, scratch_operands = 3 : i64, tpu.core_type = #tpu.core_type<tc>, window_params = [{transform_indices = @transform_0, window_bounds = array<i64: 1, 16, 16, 64>}, {pipeline_mode = #tpu.pipeline_mode<synchronous>, transform_indices = @transform_1, window_bounds = array<i64: 64, 32>}, {pipeline_mode = #tpu.pipeline_mode<synchronous>, transform_indices = @transform_2, window_bounds = array<i64: 1, 32>}, {pipeline_mode = #tpu.pipeline_mode<synchronous>, transform_indices = @transform_3, window_bounds = array<i64: 1, 32>}, {pipeline_mode = #tpu.pipeline_mode<synchronous>, transform_indices = @transform_4, window_bounds = array<i64: 128, 128>}, {pipeline_mode = #tpu.pipeline_mode<synchronous>, transform_indices = @transform_5, window_bounds = array<i64: 1, 128>}, {pipeline_mode = #tpu.pipeline_mode<synchronous>, transform_indices = @transform_6, window_bounds = array<i64: 1, 128>}, {transform_indices = @transform_7, window_bounds = array<i64: 1, 16, 16, 128>}]} {
    %cst = arith.constant 0xFF80 : bf16
    %0 = vector.broadcast %cst : bf16 to vector<16x2x32xbf16>
    %c0 = arith.constant 0 : index
    %c6 = arith.constant 6 : index
    %c0_0 = arith.constant 0 : index
    %1 = vector.load %arg9[%c0, %c6, %c0_0] : memref<16x26x32xbf16, #tpu.memory_space<vmem>>, vector<16x2x32xbf16>
    tpu.vector_store %arg9[%c0, %c6, %c0_0], %0 {strides = array<i32>} : memref<16x26x32xbf16, #tpu.memory_space<vmem>>, vector<16x2x32xbf16>,
    %cst_1 = arith.constant 0xFF80 : bf16
    %2 = vector.broadcast %cst_1 : bf16 to vector<16x2x32xbf16>
    %c0_2 = arith.constant 0 : index
    %c24 = arith.constant 24 : index
    %c0_3 = arith.constant 0 : index
    %3 = vector.load %arg9[%c0_2, %c24, %c0_3] : memref<16x26x32xbf16, #tpu.memory_space<vmem>>, vector<16x2x32xbf16>
    tpu.vector_store %arg9[%c0_2, %c24, %c0_3], %2 {strides = array<i32>} : memref<16x26x32xbf16, #tpu.memory_space<vmem>>, vector<16x2x32xbf16>,
    %cst_4 = arith.constant 0xFF80 : bf16
    %4 = vector.broadcast %cst_4 : bf16 to vector<2x16x32xbf16>
    %c0_5 = arith.constant 0 : index
    %c0_6 = arith.constant 0 : index
    %c0_7 = arith.constant 0 : index
    %5 = vector.load %arg10[%c0_5, %c0_6, %c0_7] : memref<20x16x32xbf16, #tpu.memory_space<vmem>>, vector<2x16x32xbf16>
    tpu.vector_store %arg10[%c0_5, %c0_6, %c0_7], %4 {strides = array<i32>} : memref<20x16x32xbf16, #tpu.memory_space<vmem>>, vector<2x16x32xbf16>,
    %cst_8 = arith.constant 0xFF80 : bf16
    %6 = vector.broadcast %cst_8 : bf16 to vector<2x16x32xbf16>
    %c18 = arith.constant 18 : index
    %c0_9 = arith.constant 0 : index
    %c0_10 = arith.constant 0 : index
    %7 = vector.load %arg10[%c18, %c0_9, %c0_10] : memref<20x16x32xbf16, #tpu.memory_space<vmem>>, vector<2x16x32xbf16>
    tpu.vector_store %arg10[%c18, %c0_9, %c0_10], %6 {strides = array<i32>} : memref<20x16x32xbf16, #tpu.memory_space<vmem>>, vector<2x16x32xbf16>,
    %c0_11 = arith.constant 0 : index
    %c0_12 = arith.constant 0 : index
    %c0_13 = arith.constant 0 : index
    %c0_14 = arith.constant 0 : index
    %8 = vector.load %arg1[%c0_11, %c0_12, %c0_13, %c0_14] : memref<1x16x16x64xbf16, #tpu.memory_space<vmem>>, vector<1x16x16x64xbf16>
    %9 = vector.shape_cast %8 : vector<1x16x16x64xbf16> to vector<16x16x64xbf16>
    %10 = vector.shape_cast %9 : vector<16x16x64xbf16> to vector<256x64xbf16>
    %c0_15 = arith.constant 0 : index
    %c0_16 = arith.constant 0 : index
    %11 = vector.load %arg2[%c0_15, %c0_16] : memref<64x32xbf16, #tpu.memory_space<vmem>>, vector<64x32xbf16>
    %cst_17 = arith.constant dense<0.000000e+00> : vector<256x32xf32>
    %12 = tpu.matmul %10, %11, %cst_17 {dimension_numbers = #tpu.dot_dimension_numbers<[1], [0], [0], [1], [0, 0, 1, 1], [], []>} : vector<256x64xbf16>, vector<64x32xbf16>, vector<256x32xf32> -> vector<256x32xf32>
    %c0_18 = arith.constant 0 : index
    %c0_19 = arith.constant 0 : index
    %13 = vector.load %arg3[%c0_18, %c0_19] : memref<1x32xf32, #tpu.memory_space<vmem>>, vector<1x32xf32>
    %14 = vector.broadcast %13 : vector<1x32xf32> to vector<256x32xf32>
    %15 = arith.mulf %12, %14 : vector<256x32xf32>
    %c0_20 = arith.constant 0 : index
    %c0_21 = arith.constant 0 : index
    %16 = vector.load %arg4[%c0_20, %c0_21] : memref<1x32xf32, #tpu.memory_space<vmem>>, vector<1x32xf32>
    %17 = vector.broadcast %16 : vector<1x32xf32> to vector<256x32xf32>
    %18 = arith.addf %15, %17 : vector<256x32xf32>
    %cst_22 = arith.constant 3.000000e+00 : f32
    %19 = vector.broadcast %cst_22 : f32 to vector<256x32xf32>
    %20 = arith.addf %18, %19 : vector<256x32xf32>
    %cst_23 = arith.constant 0.000000e+00 : f32
    %cst_24 = arith.constant 6.000000e+00 : f32
    %21 = vector.broadcast %cst_23 : f32 to vector<256x32xf32>
    %22 = arith.maximumf %21, %20 : vector<256x32xf32>
    %23 = vector.broadcast %cst_24 : f32 to vector<256x32xf32>
    %24 = arith.minimumf %23, %22 : vector<256x32xf32>
    %25 = arith.mulf %18, %24 : vector<256x32xf32>
    %cst_25 = arith.constant 0.166666672 : f32
    %26 = vector.broadcast %cst_25 : f32 to vector<256x32xf32>
    %27 = arith.mulf %25, %26 : vector<256x32xf32>
    %28 = arith.truncf %27 : vector<256x32xf32> to vector<256x32xbf16>
    %29 = vector.shape_cast %28 : vector<256x32xbf16> to vector<16x16x32xbf16>
    %30 = arith.truncf %27 : vector<256x32xf32> to vector<256x32xbf16>
    %c0_26 = arith.constant 0 : index
    %c0_27 = arith.constant 0 : index
    %31 = vector.load %arg11[%c0_26, %c0_27] : memref<256x128xbf16, #tpu.memory_space<vmem>>, vector<256x32xbf16>
    tpu.vector_store %arg11[%c0_26, %c0_27], %30 {strides = array<i32>} : memref<256x128xbf16, #tpu.memory_space<vmem>>, vector<256x32xbf16>,
    %c0_28 = arith.constant 0 : index
    %c8 = arith.constant 8 : index
    %c0_29 = arith.constant 0 : index
    %32 = vector.load %arg9[%c0_28, %c8, %c0_29] : memref<16x26x32xbf16, #tpu.memory_space<vmem>>, vector<16x16x32xbf16>
    tpu.vector_store %arg9[%c0_28, %c8, %c0_29], %29 {strides = array<i32>} : memref<16x26x32xbf16, #tpu.memory_space<vmem>>, vector<16x16x32xbf16>,
    %c0_30 = arith.constant 0 : index
    %c6_31 = arith.constant 6 : index
    %c0_32 = arith.constant 0 : index
    %33 = vector.load %arg9[%c0_30, %c6_31, %c0_32] : memref<16x26x32xbf16, #tpu.memory_space<vmem>>, vector<16x16x32xbf16>
    %c0_33 = arith.constant 0 : index
    %c7 = arith.constant 7 : index
    %c0_34 = arith.constant 0 : index
    %34 = vector.load %arg9[%c0_33, %c7, %c0_34] : memref<16x26x32xbf16, #tpu.memory_space<vmem>>, vector<16x16x32xbf16>
    %35 = arith.maximumf %33, %34 : vector<16x16x32xbf16>
    %c0_35 = arith.constant 0 : index
    %c8_36 = arith.constant 8 : index
    %c0_37 = arith.constant 0 : index
    %36 = vector.load %arg9[%c0_35, %c8_36, %c0_37] : memref<16x26x32xbf16, #tpu.memory_space<vmem>>, vector<16x16x32xbf16>
    %37 = arith.maximumf %35, %36 : vector<16x16x32xbf16>
    %c0_38 = arith.constant 0 : index
    %c9 = arith.constant 9 : index
    %c0_39 = arith.constant 0 : index
    %38 = vector.load %arg9[%c0_38, %c9, %c0_39] : memref<16x26x32xbf16, #tpu.memory_space<vmem>>, vector<16x16x32xbf16>
    %39 = arith.maximumf %37, %38 : vector<16x16x32xbf16>
    %c0_40 = arith.constant 0 : index
    %c10 = arith.constant 10 : index
    %c0_41 = arith.constant 0 : index
    %40 = vector.load %arg9[%c0_40, %c10, %c0_41] : memref<16x26x32xbf16, #tpu.memory_space<vmem>>, vector<16x16x32xbf16>
    %41 = arith.maximumf %39, %40 : vector<16x16x32xbf16>
    %c2 = arith.constant 2 : index
    %c0_42 = arith.constant 0 : index
    %c0_43 = arith.constant 0 : index
    %42 = vector.load %arg10[%c2, %c0_42, %c0_43] : memref<20x16x32xbf16, #tpu.memory_space<vmem>>, vector<16x16x32xbf16>
    tpu.vector_store %arg10[%c2, %c0_42, %c0_43], %41 {strides = array<i32>} : memref<20x16x32xbf16, #tpu.memory_space<vmem>>, vector<16x16x32xbf16>,
    %c0_44 = arith.constant 0 : index
    %c0_45 = arith.constant 0 : index
    %c0_46 = arith.constant 0 : index
    %43 = vector.load %arg10[%c0_44, %c0_45, %c0_46] : memref<20x16x32xbf16, #tpu.memory_space<vmem>>, vector<16x16x32xbf16>
    %c1 = arith.constant 1 : index
    %c0_47 = arith.constant 0 : index
    %c0_48 = arith.constant 0 : index
    %44 = vector.load %arg10[%c1, %c0_47, %c0_48] : memref<20x16x32xbf16, #tpu.memory_space<vmem>>, vector<16x16x32xbf16>
    %45 = arith.maximumf %43, %44 : vector<16x16x32xbf16>
    %c2_49 = arith.constant 2 : index
    %c0_50 = arith.constant 0 : index
    %c0_51 = arith.constant 0 : index
    %46 = vector.load %arg10[%c2_49, %c0_50, %c0_51] : memref<20x16x32xbf16, #tpu.memory_space<vmem>>, vector<16x16x32xbf16>
    %47 = arith.maximumf %45, %46 : vector<16x16x32xbf16>
    %c3 = arith.constant 3 : index
    %c0_52 = arith.constant 0 : index
    %c0_53 = arith.constant 0 : index
    %48 = vector.load %arg10[%c3, %c0_52, %c0_53] : memref<20x16x32xbf16, #tpu.memory_space<vmem>>, vector<16x16x32xbf16>
    %49 = arith.maximumf %47, %48 : vector<16x16x32xbf16>
    %c4 = arith.constant 4 : index
    %c0_54 = arith.constant 0 : index
    %c0_55 = arith.constant 0 : index
    %50 = vector.load %arg10[%c4, %c0_54, %c0_55] : memref<20x16x32xbf16, #tpu.memory_space<vmem>>, vector<16x16x32xbf16>
    %51 = arith.maximumf %49, %50 : vector<16x16x32xbf16>
    %52 = vector.shape_cast %51 : vector<16x16x32xbf16> to vector<256x32xbf16>
    %c0_56 = arith.constant 0 : index
    %c32 = arith.constant 32 : index
    %53 = vector.load %arg11[%c0_56, %c32] : memref<256x128xbf16, #tpu.memory_space<vmem>>, vector<256x32xbf16>
    tpu.vector_store %arg11[%c0_56, %c32], %52 {strides = array<i32>} : memref<256x128xbf16, #tpu.memory_space<vmem>>, vector<256x32xbf16>,
    %c0_57 = arith.constant 0 : index
    %c8_58 = arith.constant 8 : index
    %c0_59 = arith.constant 0 : index
    %54 = vector.load %arg9[%c0_57, %c8_58, %c0_59] : memref<16x26x32xbf16, #tpu.memory_space<vmem>>, vector<16x16x32xbf16>
    tpu.vector_store %arg9[%c0_57, %c8_58, %c0_59], %51 {strides = array<i32>} : memref<16x26x32xbf16, #tpu.memory_space<vmem>>, vector<16x16x32xbf16>,
    %c0_60 = arith.constant 0 : index
    %c6_61 = arith.constant 6 : index
    %c0_62 = arith.constant 0 : index
    %55 = vector.load %arg9[%c0_60, %c6_61, %c0_62] : memref<16x26x32xbf16, #tpu.memory_space<vmem>>, vector<16x16x32xbf16>
    %c0_63 = arith.constant 0 : index
    %c7_64 = arith.constant 7 : index
    %c0_65 = arith.constant 0 : index
    %56 = vector.load %arg9[%c0_63, %c7_64, %c0_65] : memref<16x26x32xbf16, #tpu.memory_space<vmem>>, vector<16x16x32xbf16>
    %57 = arith.maximumf %55, %56 : vector<16x16x32xbf16>
    %c0_66 = arith.constant 0 : index
    %c8_67 = arith.constant 8 : index
    %c0_68 = arith.constant 0 : index
    %58 = vector.load %arg9[%c0_66, %c8_67, %c0_68] : memref<16x26x32xbf16, #tpu.memory_space<vmem>>, vector<16x16x32xbf16>
    %59 = arith.maximumf %57, %58 : vector<16x16x32xbf16>
    %c0_69 = arith.constant 0 : index
    %c9_70 = arith.constant 9 : index
    %c0_71 = arith.constant 0 : index
    %60 = vector.load %arg9[%c0_69, %c9_70, %c0_71] : memref<16x26x32xbf16, #tpu.memory_space<vmem>>, vector<16x16x32xbf16>
    %61 = arith.maximumf %59, %60 : vector<16x16x32xbf16>
    %c0_72 = arith.constant 0 : index
    %c10_73 = arith.constant 10 : index
    %c0_74 = arith.constant 0 : index
    %62 = vector.load %arg9[%c0_72, %c10_73, %c0_74] : memref<16x26x32xbf16, #tpu.memory_space<vmem>>, vector<16x16x32xbf16>
    %63 = arith.maximumf %61, %62 : vector<16x16x32xbf16>
    %c2_75 = arith.constant 2 : index
    %c0_76 = arith.constant 0 : index
    %c0_77 = arith.constant 0 : index
    %64 = vector.load %arg10[%c2_75, %c0_76, %c0_77] : memref<20x16x32xbf16, #tpu.memory_space<vmem>>, vector<16x16x32xbf16>
    tpu.vector_store %arg10[%c2_75, %c0_76, %c0_77], %63 {strides = array<i32>} : memref<20x16x32xbf16, #tpu.memory_space<vmem>>, vector<16x16x32xbf16>,
    %c0_78 = arith.constant 0 : index
    %c0_79 = arith.constant 0 : index
    %c0_80 = arith.constant 0 : index
    %65 = vector.load %arg10[%c0_78, %c0_79, %c0_80] : memref<20x16x32xbf16, #tpu.memory_space<vmem>>, vector<16x16x32xbf16>
    %c1_81 = arith.constant 1 : index
    %c0_82 = arith.constant 0 : index
    %c0_83 = arith.constant 0 : index
    %66 = vector.load %arg10[%c1_81, %c0_82, %c0_83] : memref<20x16x32xbf16, #tpu.memory_space<vmem>>, vector<16x16x32xbf16>
    %67 = arith.maximumf %65, %66 : vector<16x16x32xbf16>
    %c2_84 = arith.constant 2 : index
    %c0_85 = arith.constant 0 : index
    %c0_86 = arith.constant 0 : index
    %68 = vector.load %arg10[%c2_84, %c0_85, %c0_86] : memref<20x16x32xbf16, #tpu.memory_space<vmem>>, vector<16x16x32xbf16>
    %69 = arith.maximumf %67, %68 : vector<16x16x32xbf16>
    %c3_87 = arith.constant 3 : index
    %c0_88 = arith.constant 0 : index
    %c0_89 = arith.constant 0 : index
    %70 = vector.load %arg10[%c3_87, %c0_88, %c0_89] : memref<20x16x32xbf16, #tpu.memory_space<vmem>>, vector<16x16x32xbf16>
    %71 = arith.maximumf %69, %70 : vector<16x16x32xbf16>
    %c4_90 = arith.constant 4 : index
    %c0_91 = arith.constant 0 : index
    %c0_92 = arith.constant 0 : index
    %72 = vector.load %arg10[%c4_90, %c0_91, %c0_92] : memref<20x16x32xbf16, #tpu.memory_space<vmem>>, vector<16x16x32xbf16>
    %73 = arith.maximumf %71, %72 : vector<16x16x32xbf16>
    %74 = vector.shape_cast %73 : vector<16x16x32xbf16> to vector<256x32xbf16>
    %c0_93 = arith.constant 0 : index
    %c64 = arith.constant 64 : index
    %75 = vector.load %arg11[%c0_93, %c64] : memref<256x128xbf16, #tpu.memory_space<vmem>>, vector<256x32xbf16>
    tpu.vector_store %arg11[%c0_93, %c64], %74 {strides = array<i32>} : memref<256x128xbf16, #tpu.memory_space<vmem>>, vector<256x32xbf16>,
    %c0_94 = arith.constant 0 : index
    %c8_95 = arith.constant 8 : index
    %c0_96 = arith.constant 0 : index
    %76 = vector.load %arg9[%c0_94, %c8_95, %c0_96] : memref<16x26x32xbf16, #tpu.memory_space<vmem>>, vector<16x16x32xbf16>
    tpu.vector_store %arg9[%c0_94, %c8_95, %c0_96], %73 {strides = array<i32>} : memref<16x26x32xbf16, #tpu.memory_space<vmem>>, vector<16x16x32xbf16>,
    %c0_97 = arith.constant 0 : index
    %c6_98 = arith.constant 6 : index
    %c0_99 = arith.constant 0 : index
    %77 = vector.load %arg9[%c0_97, %c6_98, %c0_99] : memref<16x26x32xbf16, #tpu.memory_space<vmem>>, vector<16x16x32xbf16>
    %c0_100 = arith.constant 0 : index
    %c7_101 = arith.constant 7 : index
    %c0_102 = arith.constant 0 : index
    %78 = vector.load %arg9[%c0_100, %c7_101, %c0_102] : memref<16x26x32xbf16, #tpu.memory_space<vmem>>, vector<16x16x32xbf16>
    %79 = arith.maximumf %77, %78 : vector<16x16x32xbf16>
    %c0_103 = arith.constant 0 : index
    %c8_104 = arith.constant 8 : index
    %c0_105 = arith.constant 0 : index
    %80 = vector.load %arg9[%c0_103, %c8_104, %c0_105] : memref<16x26x32xbf16, #tpu.memory_space<vmem>>, vector<16x16x32xbf16>
    %81 = arith.maximumf %79, %80 : vector<16x16x32xbf16>
    %c0_106 = arith.constant 0 : index
    %c9_107 = arith.constant 9 : index
    %c0_108 = arith.constant 0 : index
    %82 = vector.load %arg9[%c0_106, %c9_107, %c0_108] : memref<16x26x32xbf16, #tpu.memory_space<vmem>>, vector<16x16x32xbf16>
    %83 = arith.maximumf %81, %82 : vector<16x16x32xbf16>
    %c0_109 = arith.constant 0 : index
    %c10_110 = arith.constant 10 : index
    %c0_111 = arith.constant 0 : index
    %84 = vector.load %arg9[%c0_109, %c10_110, %c0_111] : memref<16x26x32xbf16, #tpu.memory_space<vmem>>, vector<16x16x32xbf16>
    %85 = arith.maximumf %83, %84 : vector<16x16x32xbf16>
    %c2_112 = arith.constant 2 : index
    %c0_113 = arith.constant 0 : index
    %c0_114 = arith.constant 0 : index
    %86 = vector.load %arg10[%c2_112, %c0_113, %c0_114] : memref<20x16x32xbf16, #tpu.memory_space<vmem>>, vector<16x16x32xbf16>
    tpu.vector_store %arg10[%c2_112, %c0_113, %c0_114], %85 {strides = array<i32>} : memref<20x16x32xbf16, #tpu.memory_space<vmem>>, vector<16x16x32xbf16>,
    %c0_115 = arith.constant 0 : index
    %c0_116 = arith.constant 0 : index
    %c0_117 = arith.constant 0 : index
    %87 = vector.load %arg10[%c0_115, %c0_116, %c0_117] : memref<20x16x32xbf16, #tpu.memory_space<vmem>>, vector<16x16x32xbf16>
    %c1_118 = arith.constant 1 : index
    %c0_119 = arith.constant 0 : index
    %c0_120 = arith.constant 0 : index
    %88 = vector.load %arg10[%c1_118, %c0_119, %c0_120] : memref<20x16x32xbf16, #tpu.memory_space<vmem>>, vector<16x16x32xbf16>
    %89 = arith.maximumf %87, %88 : vector<16x16x32xbf16>
    %c2_121 = arith.constant 2 : index
    %c0_122 = arith.constant 0 : index
    %c0_123 = arith.constant 0 : index
    %90 = vector.load %arg10[%c2_121, %c0_122, %c0_123] : memref<20x16x32xbf16, #tpu.memory_space<vmem>>, vector<16x16x32xbf16>
    %91 = arith.maximumf %89, %90 : vector<16x16x32xbf16>
    %c3_124 = arith.constant 3 : index
    %c0_125 = arith.constant 0 : index
    %c0_126 = arith.constant 0 : index
    %92 = vector.load %arg10[%c3_124, %c0_125, %c0_126] : memref<20x16x32xbf16, #tpu.memory_space<vmem>>, vector<16x16x32xbf16>
    %93 = arith.maximumf %91, %92 : vector<16x16x32xbf16>
    %c4_127 = arith.constant 4 : index
    %c0_128 = arith.constant 0 : index
    %c0_129 = arith.constant 0 : index
    %94 = vector.load %arg10[%c4_127, %c0_128, %c0_129] : memref<20x16x32xbf16, #tpu.memory_space<vmem>>, vector<16x16x32xbf16>
    %95 = arith.maximumf %93, %94 : vector<16x16x32xbf16>
    %96 = vector.shape_cast %95 : vector<16x16x32xbf16> to vector<256x32xbf16>
    %c0_130 = arith.constant 0 : index
    %c96 = arith.constant 96 : index
    %97 = vector.load %arg11[%c0_130, %c96] : memref<256x128xbf16, #tpu.memory_space<vmem>>, vector<256x32xbf16>
    tpu.vector_store %arg11[%c0_130, %c96], %96 {strides = array<i32>} : memref<256x128xbf16, #tpu.memory_space<vmem>>, vector<256x32xbf16>,
    %c0_131 = arith.constant 0 : index
    %c0_132 = arith.constant 0 : index
    %98 = vector.load %arg11[%c0_131, %c0_132] : memref<256x128xbf16, #tpu.memory_space<vmem>>, vector<256x128xbf16>
    %c0_133 = arith.constant 0 : index
    %c0_134 = arith.constant 0 : index
    %99 = vector.load %arg5[%c0_133, %c0_134] : memref<128x128xbf16, #tpu.memory_space<vmem>>, vector<128x128xbf16>
    %cst_135 = arith.constant dense<0.000000e+00> : vector<256x128xf32>
    %100 = tpu.matmul %98, %99, %cst_135 {dimension_numbers = #tpu.dot_dimension_numbers<[1], [0], [0], [1], [0, 0, 1, 1], [], []>} : vector<256x128xbf16>, vector<128x128xbf16>, vector<256x128xf32> -> vector<256x128xf32>
    %c0_136 = arith.constant 0 : index
    %c0_137 = arith.constant 0 : index
    %101 = vector.load %arg6[%c0_136, %c0_137] : memref<1x128xf32, #tpu.memory_space<vmem>>, vector<1x128xf32>
    %102 = vector.broadcast %101 : vector<1x128xf32> to vector<256x128xf32>
    %103 = arith.mulf %100, %102 : vector<256x128xf32>
    %c0_138 = arith.constant 0 : index
    %c0_139 = arith.constant 0 : index
    %104 = vector.load %arg7[%c0_138, %c0_139] : memref<1x128xf32, #tpu.memory_space<vmem>>, vector<1x128xf32>
    %105 = vector.broadcast %104 : vector<1x128xf32> to vector<256x128xf32>
    %106 = arith.addf %103, %105 : vector<256x128xf32>
    %cst_140 = arith.constant 3.000000e+00 : f32
    %107 = vector.broadcast %cst_140 : f32 to vector<256x128xf32>
    %108 = arith.addf %106, %107 : vector<256x128xf32>
    %cst_141 = arith.constant 0.000000e+00 : f32
    %cst_142 = arith.constant 6.000000e+00 : f32
    %109 = vector.broadcast %cst_141 : f32 to vector<256x128xf32>
    %110 = arith.maximumf %109, %108 : vector<256x128xf32>
    %111 = vector.broadcast %cst_142 : f32 to vector<256x128xf32>
    %112 = arith.minimumf %111, %110 : vector<256x128xf32>
    %113 = arith.mulf %106, %112 : vector<256x128xf32>
    %cst_143 = arith.constant 0.166666672 : f32
    %114 = vector.broadcast %cst_143 : f32 to vector<256x128xf32>
    %115 = arith.mulf %113, %114 : vector<256x128xf32>
    %116 = vector.shape_cast %115 : vector<256x128xf32> to vector<16x16x128xf32>
    %c0_144 = arith.constant 0 : index
    %c0_145 = arith.constant 0 : index
    %c0_146 = arith.constant 0 : index
    %c0_147 = arith.constant 0 : index
    %117 = vector.load %arg8[%c0_144, %c0_145, %c0_146, %c0_147] : memref<1x16x16x128xf32, #tpu.memory_space<vmem>>, vector<1x16x16x128xf32>
    %118 = vector.shape_cast %117 : vector<1x16x16x128xf32> to vector<16x16x128xf32>
    %119 = vector.shape_cast %116 : vector<16x16x128xf32> to vector<1x16x16x128xf32>
    tpu.vector_store %arg8[%c0_144, %c0_145, %c0_146, %c0_147], %119 {strides = array<i32>} : memref<1x16x16x128xf32, #tpu.memory_space<vmem>>, vector<1x16x16x128xf32>,
    return
  }
  func.func @transform_0(%arg0: i32) -> (i32, i32, i32, i32) {
    %c0_i32 = arith.constant 0 : i32
    %c0_i32_0 = arith.constant 0 : i32
    %c0_i32_1 = arith.constant 0 : i32
    %c0_i32_2 = arith.constant 0 : i32
    return %arg0, %c0_i32, %c0_i32_0, %c0_i32_1 : i32, i32, i32, i32
  }
  func.func @transform_1(%arg0: i32) -> (i32, i32) {
    %c0_i32 = arith.constant 0 : i32
    %c0_i32_0 = arith.constant 0 : i32
    %c0_i32_1 = arith.constant 0 : i32
    return %c0_i32, %c0_i32_0 : i32, i32
  }
  func.func @transform_2(%arg0: i32) -> (i32, i32) {
    %c0_i32 = arith.constant 0 : i32
    %c0_i32_0 = arith.constant 0 : i32
    %c0_i32_1 = arith.constant 0 : i32
    return %c0_i32, %c0_i32_0 : i32, i32
  }
  func.func @transform_3(%arg0: i32) -> (i32, i32) {
    %c0_i32 = arith.constant 0 : i32
    %c0_i32_0 = arith.constant 0 : i32
    %c0_i32_1 = arith.constant 0 : i32
    return %c0_i32, %c0_i32_0 : i32, i32
  }
  func.func @transform_4(%arg0: i32) -> (i32, i32) {
    %c0_i32 = arith.constant 0 : i32
    %c0_i32_0 = arith.constant 0 : i32
    %c0_i32_1 = arith.constant 0 : i32
    return %c0_i32, %c0_i32_0 : i32, i32
  }
  func.func @transform_5(%arg0: i32) -> (i32, i32) {
    %c0_i32 = arith.constant 0 : i32
    %c0_i32_0 = arith.constant 0 : i32
    %c0_i32_1 = arith.constant 0 : i32
    return %c0_i32, %c0_i32_0 : i32, i32
  }
  func.func @transform_6(%arg0: i32) -> (i32, i32) {
    %c0_i32 = arith.constant 0 : i32
    %c0_i32_0 = arith.constant 0 : i32
    %c0_i32_1 = arith.constant 0 : i32
    return %c0_i32, %c0_i32_0 : i32, i32
  }
  func.func @transform_7(%arg0: i32) -> (i32, i32, i32, i32) {
    %c0_i32 = arith.constant 0 : i32
    %c0_i32_0 = arith.constant 0 : i32
    %c0_i32_1 = arith.constant 0 : i32
    %c0_i32_2 = arith.constant 0 : i32
    return %arg0, %c0_i32, %c0_i32_0, %c0_i32_1 : i32, i32, i32, i32
  }
}

</mosaic_0001>

<bundles_post_ra>
// kernel: sppf_forward.1
= control target key start
LH: loop header
LB: loop body
LE: loop exit
PB: predicated region body
PF: predicated region fallthrough
CT: control target
= control target key end

     0   :  { %12 = vsyncpa [#allocation6], 0  ;;  %s14450_s0 = inlined_call_operand.vmem [shape: bf16[2,16,16,64], index: 0, kind: input, shape index: {}]   ;;  %s14451_s1 = inlined_call_operand.vmem [shape: bf16[64,32], index: 1, kind: input, shape index: {}]   ;;  %s14452_s2 = inlined_call_operand.vmem [shape: f32[1,32], index: 2, kind: input, shape index: {}]   ;;  %s14453_s3 = inlined_call_operand.vmem [shape: f32[1,32], index: 3, kind: input, shape index: {}]   ;;  %s14454_s4 = inlined_call_operand.vmem [shape: bf16[128,128], index: 4, kind: input, shape index: {}]   ;;  %s14455_s5 = inlined_call_operand.vmem [shape: f32[1,128], index: 5, kind: input, shape index: {}]   ;;  %s14456_s6 = inlined_call_operand.vmem [shape: f32[1,128], index: 6, kind: input, shape index: {}]   ;;  %s14457_s7 = inlined_call_operand.hbm [shape: f32[2,16,16,128], index: 7, kind: output, shape index: {}]  }
   0x1   :  { %14 = vsyncpa [#allocation6 + $0x1], 0  ;;  %s10305_s24 = smov 0   ;;  %s10307_s25 = smov 0  }
   0x2   :  { %s10309_s26 = smov 0   ;;  %s10311_s27 = smov 0  }
   0x3 LB: > { %s10326_s28 = sadd.s32 4294967295, %s10257_s27   ;;  %s8642_s29 = sadd.s32 4294967294, %s10257_s27   ;;  %s10257_s27 = sphi %s10311_s27, %s14866_s27   ;;  %s10253_s26 = sphi %s10309_s26, %s14865_s26   ;;  %s10249_s25 = sphi %s10307_s25, %s14864_s25   ;;  %s10245_s24 = sphi %s10305_s24, %s14863_s24  }
   0x4   : > { %s10330_s30 = sadd.s32 1, %s10257_s27   ;;  %s179_s8 = sadd.s32 1, %s10253_s26 }
   0x5   : > { %s176_s9 = ssub.s32 %s10257_s27, %s10330_s30  ;;  %p189_p0 = scmp.ne.s32.totalorder %s10253_s26, %s10249_s25 }
   0x6   : > { %p177_p1 = scmp.eq.s32.totalorder %s176_s9, 0  ;;  %p190_p2 = scmp.eq.s32.totalorder %s10326_s28, 1 }
   0x7   : > { %p195_p3 = scmp.ne.s32.totalorder %s10249_s25, %s10245_s24  ;;  %p196_p4 = scmp.eq.s32.totalorder %s8642_s29, 1 }
   0x8   : > { %s10341_s10 = scalar_select %p177_p1, %s10253_s26, %s179_s8  }
   0x9   : > { %p10343_p5 = por %p190_p2, %p189_p0  ;;  %p10347_p6 = por %p196_p4, %p195_p3 }
   0xa   : > { %p8645_p7 = scmp.ge.s32.totalorder %s10257_s27, 1  ;;  %p240_p8 = scmp.lt.s32.totalorder %s10257_s27, 3 }
   0xc   : > { %p241_p9 = pnand %p8645_p7, %p240_p8 }
   0xe   : > { %244 = sbr.rel (%p241_p9) target bundleno = 1327 (0x52f), region = 48 }
  0x13   : > { %v8914_v0 = vld [vmem:[%s14451_s1 + $0x18] sm:$0xff]  ;;  %p272_p10 = scmp.lt.s32.totalorder %s10326_s28, 1  ;;  %v8913_v1 = vld [vmem:[%s14451_s1 + $0x10] sm:$0xff]  ;;  %v8912_v2 = vld [vmem:[%s14451_s1 + $0x8] sm:$0xff]  ;;  %vm467_vm0 = vcmask 523264   ;;  %vm279_vm1 = vcmask 257027  }
  0x14   : > { %520 = vmatpush.bf16.msra.mxu0 %v8914_v0  ;;  %10125 = vmatpush.bf16.msra.mxu3 %v8914_v0  ;;  %v8911_v3 = vld [vmem:[%s14451_s1] sm:$0xff]  ;;  %v10259_v19 = vmov 4286644096   ;;  %vm313_vm2 = vcmask 257024   ;;  %vm296_vm3 = vcmask 253952   ;;  %vm1109_vm4 = vcmask 1046528  }
  0x15   : > { %s273_s17 = scalar_select %p272_p10, %s10326_s28, 1  ;;  %289 = vst.msk [vmem:[#allocation2 + $0x90] sm:$0x8] %vm279_vm1, %v10259_v19  ;;  %v10427_v20 = vld [vmem:[%s14452_s2] ss:$0 sm:$0xff]  ;;  %vm1382_vm5 = vcmask 1045504  }
  0x16   : > { %280 = vst.msk [vmem:[#allocation2] sm:$0x8] %vm279_vm1, %v10259_v19  ;;  %v10436_v21 = vld [vmem:[%s14453_s3] ss:$0 sm:$0xff]  ;;  %vm1671_vm6 = vcmask 1044480   ;;  %vm1992_vm7 = vcmask 1043456  }
  0x17   : > { %s8894_s20 = sshll.u32 %s273_s17, 7  ;;  %281 = vst.msk [vmem:[#allocation2 + $0x10] sm:$0x8] %vm279_vm1, %v10259_v19  ;;  %vm2265_vm8 = vcmask 1040384   ;;  %vm2266_vm9 = vcmask 1044484   ;;  %vm3248_vm11 = vcmask 519424  }
  0x18   : > { %521 = vmatpush.bf16.msra.mxu0 %v8913_v1  ;;  %10126 = vmatpush.bf16.msra.mxu3 %v8913_v1  ;;  %s10370_s8 = scalar_lea.vmem %s14450_s0, %s8894_s20  ;;  %282 = vst.msk [vmem:[#allocation2 + $0x20] sm:$0x8] %vm279_vm1, %v10259_v19  ;;  %vm11012_vm10 = vmor %vm2265_vm8, %vm2266_vm9  ;;  %s10260_s20 = smov 32   ;;  %vm5617_vm12 = vcmask 781824   ;;  %vm7986_vm13 = vcmask 1044224  }
  0x19   : > { %v8895_v4 = vld [vmem:[%s10370_s8] sm:$0xff]  ;;  %v8904_v5 = vld [vmem:[%s10370_s8 + $0x48] sm:$0xff]  ;;  %v8905_v7 = vld [vmem:[%s10370_s8 + $0x50] sm:$0xff]  ;;  %283 = vst.msk [vmem:[#allocation2 + $0x30] sm:$0x8] %vm279_vm1, %v10259_v19  ;;  %s10262_s9 = smov 96  }
  0x1a   : > { %v8896_v6 = vld [vmem:[%s10370_s8 + $0x8] sm:$0xff]  ;;  %v8897_v8 = vld [vmem:[%s10370_s8 + $0x10] sm:$0xff]  ;;  %v8906_v9 = vld [vmem:[%s10370_s8 + $0x58] sm:$0xff]  ;;  %284 = vst.msk [vmem:[#allocation2 + $0x40] sm:$0x8] %vm279_vm1, %v10259_v19  ;;  %s269_s19 = sand.u32 1, %s10249_s25  }
  0x1b   : > { %v8898_v10 = vld [vmem:[%s10370_s8 + $0x18] sm:$0xff]  ;;  %v8907_v11 = vld [vmem:[%s10370_s8 + $0x60] sm:$0xff]  ;;  %v8908_v13 = vld [vmem:[%s10370_s8 + $0x68] sm:$0xff]  ;;  %285 = vst.msk [vmem:[#allocation2 + $0x50] sm:$0x8] %vm279_vm1, %v10259_v19  ;;  %s8646_s21 = sshll.u32 %s269_s19, 8 }
  0x1c   : > { %522 = vmatpush.bf16.msra.mxu0 %v8912_v2  ;;  %10127 = vmatpush.bf16.msra.mxu3 %v8912_v2  ;;  %v8899_v12 = vld [vmem:[%s10370_s8 + $0x20] sm:$0xff]  ;;  %v8900_v14 = vld [vmem:[%s10370_s8 + $0x28] sm:$0xff]  ;;  %v8909_v15 = vld [vmem:[%s10370_s8 + $0x70] sm:$0xff]  ;;  %286 = vst.msk [vmem:[#allocation2 + $0x60] sm:$0x8] %vm279_vm1, %v10259_v19  ;;  %s14309_s22 = scalar_lea.vmem [#allocation5], %s8646_s21 }
  0x1d   : > { %v8901_v16 = vld [vmem:[%s10370_s8 + $0x30] sm:$0xff]  ;;  %v8910_v17 = vld [vmem:[%s10370_s8 + $0x78] sm:$0xff]  ;;  %287 = vst.msk [vmem:[#allocation2 + $0x70] sm:$0x8] %vm279_vm1, %v10259_v19  ;;  %v8903_v22 = vld [vmem:[%s10370_s8 + $0x40] sm:$0xff]  ;;  %s8939_s23 = sshll.u32 %s10326_s28, 8 }
  0x1e   : > { %v8902_v18 = vld [vmem:[%s10370_s8 + $0x38] sm:$0xff]  ;;  %288 = vst.msk [vmem:[#allocation2 + $0x80] sm:$0x8] %vm279_vm1, %v10259_v19  ;;  %s10261_s8 = smov 64   ;;  %s8576_s14 = scalar_lea.hbm %s14457_s7, %s8939_s23 }
  0x1f   : > { %290 = vst.msk [vmem:[#allocation2 + $0xa0] sm:$0x8] %vm279_vm1, %v10259_v19  ;;  %s8577_s15 = sshll.u32 %s14309_s22, 4  ;;  %s8579_s16 = sshll.u32 %s8576_s14, 4  ;;  %s8578_s15 = int_to_ptr.vmem [resolvable:$true] %s8577_s15  ;;  %s8580_s16 = int_to_ptr.hbm [resolvable:$true] %s8579_s16 }
  0x20   : > { %523 = vmatpush.bf16.msra.mxu0 %v8911_v3  ;;  %10128 = vmatpush.bf16.msra.mxu3 %v8911_v3  ;;  %291 = vst.msk [vmem:[#allocation2 + $0xb0] sm:$0x8] %vm279_vm1, %v10259_v19  ;;  %s8565_s28 = scalar_lea.sflag [#allocation6], %s269_s19  ;;  %s10209_s17 = sshra.s32 %s8580_s16, 4  ;;  %s10210_s17 = int_to_ptr.hbm [resolvable:$true] %s10209_s17 }
  0x21   : > { %292 = vst.msk [vmem:[#allocation2 + $0xc0] sm:$0x8] %vm279_vm1, %v10259_v19  ;;  %s10215_s18 = scalar_lea.hbm %s14457_s7, 512  ;;  %p10216_p0 = scmp.lt.s32.totalorder %s10210_s17, %s14457_s7 }
  0x22   : > { %293 = vst.msk [vmem:[#allocation2 + $0xd0] sm:$0x8] %vm279_vm1, %v10259_v19 }
  0x23   : > { %8729 = vmatmul.msk.bf16.vlgmr.msra.gmra.mxu0 %vm467_vm0, %v8895_v4  ;;  %8738 = vmatmul.msk.bf16.vlgmr.msra.gmra.mxu3 %vm467_vm0, %v8904_v5  ;;  %294 = vst.msk [vmem:[#allocation2 + $0xe0] sm:$0x8] %vm279_vm1, %v10259_v19 }
  0x24   : > { %295 = vst.msk [vmem:[#allocation2 + $0xf0] sm:$0x8] %vm279_vm1, %v10259_v19 }
  0x25   : > { %314 = vst.msk [vmem:[#allocation3] sm:$0xf] %vm313_vm2, %v10259_v19 }
  0x26   : > { %315 = vst.msk [vmem:[#allocation3 + $0x4] sm:$0xf] %vm313_vm2, %v10259_v19 }
  0x27   : > { %316 = vst.msk [vmem:[#allocation3 + $0x8] sm:$0xf] %vm313_vm2, %v10259_v19 }
  0x28   : > { %317 = vst.msk [vmem:[#allocation3 + $0xc] sm:$0xf] %vm313_vm2, %v10259_v19 }
  0x29   : > { %319 = vst.msk [vmem:[#allocation3 + $0x90] sm:$0xf] %vm313_vm2, %v10259_v19 }
  0x2a   : > { %320 = vst.msk [vmem:[#allocation3 + $0x94] sm:$0xf] %vm313_vm2, %v10259_v19 }
  0x2b   : > { %321 = vst.msk [vmem:[#allocation3 + $0x98] sm:$0xf] %vm313_vm2, %v10259_v19 }
  0x2c   : > { %322 = vst.msk [vmem:[#allocation3 + $0x9c] sm:$0xf] %vm313_vm2, %v10259_v19 }
  0x2d   : > { %306 = vst.msk [vmem:[#allocation2 + $0x9c] sm:$0x1] %vm296_vm3, %v10259_v19 }
  0x2e   : > { %297 = vst.msk [vmem:[#allocation2 + $0xc] sm:$0x1] %vm296_vm3, %v10259_v19 }
  0x2f   : > { %298 = vst.msk [vmem:[#allocation2 + $0x1c] sm:$0x1] %vm296_vm3, %v10259_v19 }
  0x30   : > { %299 = vst.msk [vmem:[#allocation2 + $0x2c] sm:$0x1] %vm296_vm3, %v10259_v19 }
  0x31   : > { %300 = vst.msk [vmem:[#allocation2 + $0x3c] sm:$0x1] %vm296_vm3, %v10259_v19 }
  0x32   : > { %301 = vst.msk [vmem:[#allocation2 + $0x4c] sm:$0x1] %vm296_vm3, %v10259_v19 }
  0x33   : > { %8730 = vmatmul.msk.bf16.gmra.mxu0 %vm467_vm0, %v8896_v6  ;;  %8739 = vmatmul.msk.bf16.gmra.mxu3 %vm467_vm0, %v8905_v7  ;;  %302 = vst.msk [vmem:[#allocation2 + $0x5c] sm:$0x1] %vm296_vm3, %v10259_v19 }
  0x34   : > { %303 = vst.msk [vmem:[#allocation2 + $0x6c] sm:$0x1] %vm296_vm3, %v10259_v19 }
  0x35   : > { %304 = vst.msk [vmem:[#allocation2 + $0x7c] sm:$0x1] %vm296_vm3, %v10259_v19 }
  0x36   : > { %305 = vst.msk [vmem:[#allocation2 + $0x8c] sm:$0x1] %vm296_vm3, %v10259_v19 }
  0x37   : > { %307 = vst.msk [vmem:[#allocation2 + $0xac] sm:$0x1] %vm296_vm3, %v10259_v19 }
  0x38   : > { %308 = vst.msk [vmem:[#allocation2 + $0xbc] sm:$0x1] %vm296_vm3, %v10259_v19 }
  0x39   : > { %309 = vst.msk [vmem:[#allocation2 + $0xcc] sm:$0x1] %vm296_vm3, %v10259_v19 }
  0x3a   : > { %310 = vst.msk [vmem:[#allocation2 + $0xdc] sm:$0x1] %vm296_vm3, %v10259_v19 }
  0x3b   : > { %311 = vst.msk [vmem:[#allocation2 + $0xec] sm:$0x1] %vm296_vm3, %v10259_v19 }
  0x3c   : > { %312 = vst.msk [vmem:[#allocation2 + $0xfc] sm:$0x1] %vm296_vm3, %v10259_v19 }
  0x43   : > { %8731 = vmatmul.msk.bf16.gmra.mxu0 %vm467_vm0, %v8897_v8  ;;  %8740 = vmatmul.msk.bf16.gmra.mxu3 %vm467_vm0, %v8906_v9 }
  0x53   : > { %8732 = vmatmul.msk.bf16.gmra.mxu0 %vm467_vm0, %v8898_v10  ;;  %8741 = vmatmul.msk.bf16.gmra.mxu3 %vm467_vm0, %v8907_v11 }
  0x63   : > { %8733 = vmatmul.msk.bf16.gmra.mxu0 %vm467_vm0, %v8899_v12  ;;  %8742 = vmatmul.msk.bf16.gmra.mxu3 %vm467_vm0, %v8908_v13 }
  0x73   : > { %8734 = vmatmul.msk.bf16.gmra.mxu0 %vm467_vm0, %v8900_v14  ;;  %8743 = vmatmul.msk.bf16.gmra.mxu3 %vm467_vm0, %v8909_v15 }
  0x83   : > { %8735 = vmatmul.msk.bf16.gmra.mxu0 %vm467_vm0, %v8901_v16  ;;  %8744 = vmatmul.msk.bf16.gmra.mxu3 %vm467_vm0, %v8910_v17  ;;  %v960_v16 = vld [vmem:[#allocation2 + $0x90] sm:$0x8] }
  0x84   : > { %v1024_v19 = vunpack.c.l.bf16 %v960_v16 }
  0x93   : > { %8736 = vmatmul.msk.bf16.gmra.mxu0 %vm467_vm0, %v8902_v18 }
  0xa0   : > { %v525_v23 = vpop.f32.mrf.mxu0 }
  0xa1   : > { %v609_v24 = vmul.f32 %v10427_v20, %v525_v23 }
  0xa3   : > { %v645_v25 = vadd.f32 %v10436_v21, %v609_v24  ;;  %8737 = vmatmul.msk.bf16.gmra.mxu0 %vm467_vm0, %v8903_v22 }
  0xa5   : > { %v677_v26 = vadd.f32 3.0, %v645_v25 }
  0xa6   : > { %v570_v27 = vpop.f32.mrf.mxu3 }
  0xa7   : > { %v709_v28 = vmax.f32 %v677_v26, 0.0  ;;  %v627_v29 = vmul.f32 %v10427_v20, %v570_v27 }
  0xa8   : > { %v527_v30 = vpop.f32.mrf.mxu0 }
  0xa9   : > { %v741_v31 = vmin.f32 %v709_v28, 6.0  ;;  %v663_v32 = vadd.f32 %v10436_v21, %v627_v29  ;;  %v610_v33 = vmul.f32 %v10427_v20, %v527_v30 }
  0xab   : > { %v773_v34 = vmul.f32 %v741_v31, %v645_v25  ;;  %v695_v35 = vadd.f32 3.0, %v663_v32  ;;  %v646_v36 = vadd.f32 %v10436_v21, %v610_v33 }
  0xad   : > { %v805_v37 = vmul.f32 0.16666667, %v773_v34  ;;  %v727_v38 = vmax.f32 %v695_v35, 0.0  ;;  %v678_v39 = vadd.f32 3.0, %v646_v36 }
  0xae   : > { %v572_v40 = vpop.f32.mrf.mxu3 }
  0xaf   : > { %v837_v41 = vpack.c.bf16 %v805_v37, %v805_v37  ;;  %v759_v42 = vmin.f32 %v727_v38, 6.0  ;;  %v710_v43 = vmax.f32 %v678_v39, 0.0  ;;  %v628_v44 = vmul.f32 %v10427_v20, %v572_v40 }
  0xb0   : > { %v530_v45 = vpop.f32.mrf.mxu0 }
  0xb1   : > { %901 = vst.msk [vmem:[#allocation2 + $0x4] sm:$0xf] %vm313_vm2, %v837_v41  ;;  %v791_v46 = vmul.f32 %v759_v42, %v663_v32  ;;  %v742_v47 = vmin.f32 %v710_v43, 6.0  ;;  %v664_v48 = vadd.f32 %v10436_v21, %v628_v44  ;;  %v611_v49 = vmul.f32 %v10427_v20, %v530_v45 }
  0xb2   : > { %869 = vst.msk [vmem:[#allocation4] sm:$0xf] %vm313_vm2, %v837_v41 }
  0xb3   : > { %v823_v50 = vmul.f32 0.16666667, %v791_v46  ;;  %v774_v51 = vmul.f32 %v742_v47, %v646_v36  ;;  %v696_v52 = vadd.f32 3.0, %v664_v48  ;;  %v647_v53 = vadd.f32 %v10436_v21, %v611_v49 }
  0xb4   : > { %v1155_v36 = vrot.slane %v1024_v19, 1 }
  0xb5   : > { %v855_v54 = vpack.c.bf16 %v823_v50, %v823_v50  ;;  %v806_v55 = vmul.f32 0.16666667, %v774_v51  ;;  %v728_v56 = vmax.f32 %v696_v52, 0.0  ;;  %v679_v57 = vadd.f32 3.0, %v647_v53  ;;  %v1584_v52 = vld [vmem:[#allocation2 + $0x9c] sm:$0x1] }
  0xb6   : > { %v575_v58 = vpop.f32.mrf.mxu3 }
  0xb7   : > { %919 = vst.msk [vmem:[#allocation2 + $0x94] sm:$0xf] %vm313_vm2, %v855_v54  ;;  %v838_v59 = vpack.c.bf16 %v806_v55, %v806_v55  ;;  %v760_v60 = vmin.f32 %v728_v56, 6.0  ;;  %v711_v61 = vmax.f32 %v679_v57, 0.0  ;;  %v629_v62 = vmul.f32 %v10427_v20, %v575_v58 }
  0xb8   : > { %887 = vst.msk [vmem:[#allocation4 + $0x48] sm:$0xf] %vm313_vm2, %v855_v54  ;;  %v532_v63 = vpop.f32.mrf.mxu0 }
  0xb9   : > { %902 = vst.msk [vmem:[#allocation2 + $0x8] sm:$0xf] %vm313_vm2, %v838_v59  ;;  %v792_v0 = vmul.f32 %v760_v60, %v664_v48  ;;  %v743_v1 = vmin.f32 %v711_v61, 6.0  ;;  %v665_v2 = vadd.f32 %v10436_v21, %v629_v62  ;;  %v612_v3 = vmul.f32 %v10427_v20, %v532_v63 }
  0xba   : > { %870 = vst.msk [vmem:[#allocation4 + $0x4] sm:$0xf] %vm313_vm2, %v838_v59 }
  0xbb   : > { %v824_v4 = vmul.f32 0.16666667, %v792_v0  ;;  %v775_v5 = vmul.f32 %v743_v1, %v647_v53  ;;  %v697_v6 = vadd.f32 3.0, %v665_v2  ;;  %v648_v7 = vadd.f32 %v10436_v21, %v612_v3  ;;  %v10534_v53 = vld [vmem:[#allocation2 + $0x10] sm:$0x8] }
  0xbc   : > { %v1000_v61 = vunpack.c.l.bf16 %v10534_v53  ;;  %v1648_v3 = vunpack.c.l.bf16 %v1584_v52 }
  0xbd   : > { %v856_v8 = vpack.c.bf16 %v824_v4, %v824_v4  ;;  %v807_v9 = vmul.f32 0.16666667, %v775_v5  ;;  %v729_v10 = vmax.f32 %v697_v6, 0.0  ;;  %v680_v14 = vadd.f32 3.0, %v648_v7  ;;  %v10547_v4 = vld [vmem:[#allocation2 + $0xa0] sm:$0x8] }
  0xbe   : > { %v577_v11 = vpop.f32.mrf.mxu3  ;;  %v961_v24 = vld [vmem:[#allocation2 + $0x94] sm:$0xf]  ;;  %v1576_v5 = vld [vmem:[#allocation2 + $0x1c] sm:$0x1] }
  0xbf   : > { %920 = vst.msk [vmem:[#allocation2 + $0x98] sm:$0xf] %vm313_vm2, %v856_v8  ;;  %v839_v12 = vpack.c.bf16 %v807_v9, %v807_v9  ;;  %v761_v13 = vmin.f32 %v729_v10, 6.0  ;;  %v630_v15 = vmul.f32 %v10427_v20, %v577_v11  ;;  %v712_v18 = vmax.f32 %v680_v14, 0.0  ;;  %v1905_v54 = vld [vmem:[#allocation2 + $0x94] sm:$0xe] }
  0xc0   : > { %888 = vst.msk [vmem:[#allocation4 + $0x4c] sm:$0xf] %vm313_vm2, %v856_v8  ;;  %v535_v23 = vpop.f32.mrf.mxu0  ;;  %v10521_v29 = vunpack.c.l.bf16 %v961_v24  ;;  %v1969_v0 = vunpack.c.l.bf16 %v1905_v54  ;;  %v1585_v9 = vld [vmem:[#allocation2 + $0xac] sm:$0x1] }
  0xc1   : > { %903 = vst.msk [vmem:[#allocation2 + $0x14] sm:$0xf] %vm313_vm2, %v839_v12  ;;  %v793_v17 = vmul.f32 %v761_v13, %v665_v2  ;;  %v666_v22 = vadd.f32 %v10436_v21, %v630_v15  ;;  %v744_v26 = vmin.f32 %v712_v18, 6.0  ;;  %v613_v28 = vmul.f32 %v10427_v20, %v535_v23 }
  0xc2   : > { %871 = vst.msk [vmem:[#allocation4 + $0x8] sm:$0xf] %vm313_vm2, %v839_v12  ;;  %v1156_v37 = vrot.slane %v10521_v29, 1  ;;  %v1410_v48 = vrot.slane %v10521_v29, 2  ;;  %v1717_v63 = vrot.slane %v10521_v29, 3  ;;  %v1115_v12 = vrot.slane %v1000_v61, 1 }
  0xc3   : > { %v825_v25 = vmul.f32 0.16666667, %v793_v17  ;;  %v698_v27 = vadd.f32 3.0, %v666_v22  ;;  %v776_v31 = vmul.f32 %v744_v26, %v648_v7  ;;  %v649_v35 = vadd.f32 %v10436_v21, %v613_v28 }
  0xc4   : > { %v1157_v43 = vsel %vm1109_vm4, %v1155_v36, %v1156_v37  ;;  %v2038_v15 = vrot.slane %v1969_v0, 4  ;;  %v1027_v17 = vunpack.c.l.bf16 %v10547_v4  ;;  %v1640_v18 = vunpack.c.l.bf16 %v1576_v5 }
  0xc5   : > { %v857_v30 = vpack.c.bf16 %v825_v25, %v825_v25  ;;  %v730_v32 = vmax.f32 %v698_v27, 0.0  ;;  %v808_v33 = vmul.f32 0.16666667, %v776_v31  ;;  %v681_v42 = vadd.f32 3.0, %v649_v35 }
  0xc6   : > { %v580_v40 = vpop.f32.mrf.mxu3  ;;  %v990_v41 = vld [vmem:[#allocation2 + $0x98] sm:$0xf]  ;;  %v1265_v47 = vmax.f32 %v1024_v19, %v1157_v43  ;;  %v1720_v23 = vrot.slane %v1648_v3, 3  ;;  %v1649_v24 = vunpack.c.l.bf16 %v1585_v9  ;;  %v2041_v19 = vrot.slane %v1648_v3, 4 }
  0xc7   : > { %921 = vst.msk [vmem:[#allocation2 + $0xa4] sm:$0xf] %vm313_vm2, %v857_v30  ;;  %v762_v34 = vmin.f32 %v730_v32, 6.0  ;;  %v840_v38 = vpack.c.bf16 %v808_v33, %v808_v33  ;;  %v10530_v45 = vunpack.c.l.bf16 %v990_v41  ;;  %v713_v50 = vmax.f32 %v681_v42, 0.0  ;;  %v962_v57 = vld [vmem:[#allocation2 + $0x98] sm:$0x7] }
  0xc8   : > { %889 = vst.msk [vmem:[#allocation4 + $0x50] sm:$0xf] %vm313_vm2, %v857_v30  ;;  %v537_v46 = vpop.f32.mrf.mxu0  ;;  %v631_v51 = vmul.f32 %v10427_v20, %v580_v40  ;;  %v1506_v56 = vmax.f32 %v1265_v47, %v1410_v48  ;;  %v937_v60 = vld [vmem:[#allocation2 + $0x14] sm:$0xf]  ;;  %v1026_v1 = vunpack.c.l.bf16 %v962_v57  ;;  %v10565_v40 = vrot.slane %v1640_v18, 4 }
  0xc9   : > { %v794_v39 = vmul.f32 %v762_v34, %v666_v22  ;;  %904 = vst.msk [vmem:[#allocation2 + $0x18] sm:$0xf] %vm313_vm2, %v840_v38  ;;  %v1158_v55 = vrot.slane %v10530_v45, 1  ;;  %v745_v58 = vmin.f32 %v713_v50, 6.0  ;;  %v10549_v8 = vunpack.c.l.bf16 %v937_v60  ;;  %v10585_v57 = vld [vmem:[#allocation2 + $0x20] sm:$0x8] }
  0xca   : > { %872 = vst.msk [vmem:[#allocation4 + $0xc] sm:$0xf] %vm313_vm2, %v840_v38  ;;  %v10543_v62 = vadd.f32 %v10436_v21, %v631_v51  ;;  %v1827_v7 = vmax.f32 %v1506_v56, %v1717_v63  ;;  %v1411_v11 = vrot.slane %v10530_v45, 2  ;;  %v1718_v22 = vrot.slane %v10530_v45, 3 }
  0xcb   : > { %v826_v44 = vmul.f32 0.16666667, %v794_v39  ;;  %v1159_v2 = vsel %vm1109_vm4, %v1156_v37, %v1158_v55  ;;  %v777_v6 = vmul.f32 %v745_v58, %v649_v35  ;;  %v1267_v10 = vmax.f32 %v1026_v1, %v1158_v55 }
  0xcc   : > { %v699_v13 = vadd.f32 3.0, %v10543_v62  ;;  %v1266_v16 = vmax.f32 %v10521_v29, %v1159_v2  ;;  %v2148_v26 = vmax.f32 %v1827_v7, %v2038_v15  ;;  %v2039_v27 = vrot.slane %v10530_v45, 4 }
  0xcd   : > { %v858_v49 = vpack.c.bf16 %v826_v44, %v826_v44  ;;  %v809_v25 = vmul.f32 0.16666667, %v777_v6  ;;  %v1116_v28 = vrot.slane %v10549_v8, 1  ;;  %v1412_v30 = vsel %vm1382_vm5, %v1410_v48, %v1411_v11 }
  0xce   : > { %v10539_v59 = vpop.f32.mrf.mxu3  ;;  %v1508_v31 = vmax.f32 %v1267_v10, %v1411_v11  ;;  %v731_v32 = vmax.f32 %v699_v13, 0.0  ;;  %v614_v29 = vmul.f32 %v10427_v20, %v537_v46  ;;  %v1507_v33 = vmax.f32 %v1266_v16, %v1412_v30  ;;  %v964_v39 = vld [vmem:[#allocation2 + $0xa4] sm:$0xf] }
  0xcf   : > { %922 = vst.msk [vmem:[#allocation2 + $0xa8] sm:$0xf] %vm313_vm2, %v858_v49  ;;  %v1160_v34 = vrot.slane %v1027_v17, 1  ;;  %v10562_v35 = vrot.slane %v1640_v18, 3  ;;  %v841_v36 = vpack.c.bf16 %v809_v25, %v809_v25  ;;  %v1719_v38 = vsel %vm1671_vm6, %v1717_v63, %v1718_v22  ;;  %v1906_v7 = vld [vmem:[#allocation2 + $0xa4] sm:$0xe] }
  0xd0   : > { %890 = vst.msk [vmem:[#allocation4 + $0x54] sm:$0xf] %vm313_vm2, %v858_v49  ;;  %v540_v14 = vpop.f32.mrf.mxu0  ;;  %v10567_v41 = vrot.slane %v1649_v24, 3  ;;  %v10569_v42 = vrot.slane %v1649_v24, 4  ;;  %v2196_v43 = vpack.c.bf16 %v2148_v26, %v2148_v26  ;;  %v1721_v44 = vsel %vm1671_vm6, %v1718_v22, %v1720_v23  ;;  %v1897_v49 = vld [vmem:[#allocation2 + $0x14] sm:$0xe] }
  0xd1   : > { %v2040_v45 = vsel %vm1992_vm7, %v2038_v15, %v2039_v27  ;;  %v1117_v46 = vsel %vm1109_vm4, %v1115_v12, %v1116_v28  ;;  %905 = vst.msk [vmem:[#allocation2 + $0x24] sm:$0xf] %vm313_vm2, %v841_v36  ;;  %v1829_v47 = vmax.f32 %v1508_v31, %v1721_v44  ;;  %v2042_v48 = vsel %vm1992_vm7, %v2039_v27, %v2041_v19  ;;  %v938_v24 = vld [vmem:[#allocation2 + $0x18] sm:$0x7] }
  0xd2   : > { %873 = vst.msk [vmem:[#allocation4 + $0x10] sm:$0xf] %vm313_vm2, %v841_v36  ;;  %v763_v50 = vmin.f32 %v731_v32, 6.0  ;;  %v650_v51 = vadd.f32 %v10436_v21, %v614_v29  ;;  %v1828_v52 = vmax.f32 %v1507_v33, %v1719_v38  ;;  %v1386_v53 = vrot.slane %v10549_v8, 2 }
  0xd3   : > { %v10581_v54 = vunpack.c.l.bf16 %v964_v39  ;;  %v632_v55 = vmul.f32 %v10427_v20, %v10539_v59  ;;  %v1241_v56 = vmax.f32 %v1000_v61, %v1117_v46  ;;  %v615_v63 = vmul.f32 %v10427_v20, %v540_v14  ;;  %v982_v14 = vld [vmem:[#allocation2 + $0x18] sm:$0xf] }
  0xd4   : > { %v795_v58 = vmul.f32 %v763_v50, %v10543_v62  ;;  %v682_v60 = vadd.f32 3.0, %v650_v51  ;;  %v10589_v1 = vrot.slane %v2196_v43, 11  ;;  %v1677_v2 = vrot.slane %v10549_v8, 3 }
  0xd5   : > { %v1961_v3 = vunpack.c.l.bf16 %v1897_v49  ;;  %v668_v5 = vadd.f32 %v10436_v21, %v632_v55  ;;  %v2150_v6 = vmax.f32 %v1829_v47, %v2042_v48  ;;  %v651_v61 = vadd.f32 %v10436_v21, %v615_v63 }
  0xd6   : > { %v585_v37 = vpop.f32.mrf.mxu3  ;;  %14591 = vst [vmem:[#allocation8_spill] sm:$0xff] %v10589_v1  ;;  %v827_v9 = vmul.f32 0.16666667, %v795_v58  ;;  %v714_v59 = vmax.f32 %v682_v60, 0.0  ;;  %v2149_v10 = vmax.f32 %v1828_v52, %v2040_v45  ;;  %v1161_v62 = vrot.slane %v10581_v54, 1 }
  0xd7   : > { %v1003_v11 = vunpack.c.l.bf16 %v10585_v57  ;;  %v700_v12 = vadd.f32 3.0, %v668_v5  ;;  %v1482_v13 = vmax.f32 %v1241_v56, %v1386_v53  ;;  %v683_v18 = vadd.f32 3.0, %v651_v61  ;;  %v991_v31 = vld [vmem:[#allocation2 + $0xa8] sm:$0xf]  ;;  %v10722_v57 = vld [vmem:[#allocation2 + $0xc0] sm:$0x8] }
  0xd8   : > { %v542_v0 = vpop.f32.mrf.mxu0  ;;  %v859_v15 = vpack.c.bf16 %v827_v9, %v827_v9  ;;  %v746_v16 = vmin.f32 %v714_v59, 6.0  ;;  %v10598_v22 = vrot.slane %v1961_v3, 4  ;;  %v1970_v23 = vunpack.c.l.bf16 %v1906_v7 }
  0xd9   : > { %v732_v25 = vmax.f32 %v700_v12, 0.0  ;;  %v633_v26 = vmul.f32 %v10427_v20, %v585_v37  ;;  %v2198_v19 = vpack.c.bf16 %v2150_v6, %v2150_v6  ;;  %v1413_v30 = vrot.slane %v10581_v54, 2 }
  0xda   : > { %923 = vst.msk [vmem:[#allocation2 + $0xb4] sm:$0xf] %vm313_vm2, %v859_v15  ;;  %v778_v32 = vmul.f32 %v746_v16, %v650_v51  ;;  %v715_v29 = vmax.f32 %v683_v18, 0.0  ;;  %v2197_v33 = vpack.c.bf16 %v2149_v10, %v2149_v10  ;;  %v1162_v36 = vsel %vm1109_vm4, %v1160_v34, %v1161_v62 }
  0xdb   : > { %v1722_v38 = vrot.slane %v10581_v54, 3  ;;  %v10607_v39 = vunpack.c.l.bf16 %v982_v14  ;;  %891 = vst.msk [vmem:[#allocation4 + $0x58] sm:$0xf] %vm313_vm2, %v859_v15  ;;  %v1803_v37 = vmax.f32 %v1482_v13, %v1677_v2  ;;  %v764_v44 = vmin.f32 %v732_v25, 6.0 }
  0xdc   : > { %v810_v43 = vmul.f32 0.16666667, %v778_v32  ;;  %v747_v45 = vmin.f32 %v715_v29, 6.0  ;;  %v10612_v46 = vrot.slane %v1970_v23, 4  ;;  %v1002_v47 = vunpack.c.l.bf16 %v938_v24 }
  0xdd   : > { %v10614_v48 = vunpack.c.l.bf16 %v991_v31  ;;  %v669_v49 = vadd.f32 %v10436_v21, %v633_v26  ;;  %v1268_v34 = vmax.f32 %v1027_v17, %v1162_v36  ;;  %v796_v51 = vmul.f32 %v764_v44, %v668_v5  ;;  %v965_v26 = vld [vmem:[#allocation2 + $0xa8] sm:$0x7]  ;;  %v940_v31 = vld [vmem:[#allocation2 + $0x24] sm:$0xf] }
  0xde   : > { %v587_v27 = vpop.f32.mrf.mxu3  ;;  %v842_v50 = vpack.c.bf16 %v810_v43, %v810_v43  ;;  %v779_v52 = vmul.f32 %v747_v45, %v651_v61  ;;  %v10619_v56 = vrot.slane %v2197_v33, 7  ;;  %v1118_v58 = vrot.slane %v10607_v39, 1 }
  0xdf   : > { %v701_v60 = vadd.f32 3.0, %v669_v49  ;;  %v616_v63 = vmul.f32 %v10427_v20, %v542_v0  ;;  %v2124_v3 = vmax.f32 %v1803_v37, %v10598_v22  ;;  %v828_v6 = vmul.f32 0.16666667, %v796_v51 }
  0xe0   : > { %v545_v55 = vpop.f32.mrf.mxu0  ;;  %14592 = vst [vmem:[#allocation9_spill] sm:$0xff] %v10619_v56  ;;  %v811_v7 = vmul.f32 0.16666667, %v779_v52  ;;  %v634_v4 = vmul.f32 %v10427_v20, %v587_v27  ;;  %v10626_v17 = vrot.slane %v2198_v19, 7  ;;  %v1163_v5 = vrot.slane %v10614_v48, 1 }
  0xe1   : > { %906 = vst.msk [vmem:[#allocation2 + $0x28] sm:$0xf] %vm313_vm2, %v842_v50  ;;  %v652_v9 = vadd.f32 %v10436_v21, %v616_v63  ;;  %v617_v59 = vmul.f32 %v10427_v20, %v545_v55  ;;  %v1509_v0 = vmax.f32 %v1268_v34, %v1413_v30  ;;  %v1387_v61 = vrot.slane %v10607_v39, 2 }
  0xe2   : > { %14593 = vst [vmem:[#allocation10_spill] sm:$0xff] %v10626_v17  ;;  %v10637_v10 = vrot.slane %v1003_v11, 1  ;;  %v860_v12 = vpack.c.bf16 %v828_v6, %v828_v6  ;;  %v1243_v13 = vmax.f32 %v1002_v47, %v1118_v58  ;;  %v843_v14 = vpack.c.bf16 %v811_v7, %v811_v7 }
  0xe3   : > { %874 = vst.msk [vmem:[#allocation4 + $0x14] sm:$0xf] %vm313_vm2, %v842_v50  ;;  %v733_v15 = vmax.f32 %v701_v60, 0.0  ;;  %v684_v16 = vadd.f32 3.0, %v652_v9  ;;  %v2172_v24 = vpack.c.bf16 %v2124_v3, %v2124_v3  ;;  %v1678_v25 = vrot.slane %v10607_v39, 3 }
  0xe4   : > { %924 = vst.msk [vmem:[#allocation2 + $0xb8] sm:$0xf] %vm313_vm2, %v860_v12  ;;  %v670_v27 = vadd.f32 %v10436_v21, %v634_v4  ;;  %v1164_v19 = vsel %vm1109_vm4, %v1161_v62, %v1163_v5  ;;  %v653_v33 = vadd.f32 %v10436_v21, %v617_v59  ;;  %v1999_v36 = vrot.slane %v10607_v39, 4 }
  0xe5   : > { %892 = vst.msk [vmem:[#allocation4 + $0x5c] sm:$0xf] %vm313_vm2, %v860_v12  ;;  %v765_v32 = vmin.f32 %v733_v15, 6.0  ;;  %v716_v29 = vmax.f32 %v684_v16, 0.0  ;;  %v1414_v37 = vrot.slane %v10614_v48, 2  ;;  %v1830_v45 = vmax.f32 %v1509_v0, %v1722_v38 }
  0xe6   : > { %v590_v18 = vpop.f32.mrf.mxu3  ;;  %907 = vst.msk [vmem:[#allocation2 + $0x34] sm:$0xf] %vm313_vm2, %v843_v14  ;;  %v702_v43 = vadd.f32 3.0, %v670_v27  ;;  %v10657_v62 = vsel %vm1109_vm4, %v1116_v28, %v1118_v58  ;;  %v1484_v47 = vmax.f32 %v1243_v13, %v1387_v61  ;;  %v1029_v50 = vunpack.c.l.bf16 %v965_v26 }
  0xe7   : > { %v635_v44 = vmul.f32 %v10427_v20, %v590_v18  ;;  %875 = vst.msk [vmem:[#allocation4 + $0x18] sm:$0xf] %vm313_vm2, %v843_v14  ;;  %v797_v34 = vmul.f32 %v765_v32, %v669_v49  ;;  %v1269_v51 = vmax.f32 %v10581_v54, %v1164_v19  ;;  %v10661_v52 = vunpack.c.l.bf16 %v940_v31  ;;  %v10693_v31 = vld [vmem:[#allocation2 + $0x30] sm:$0x8] }
  0xe8   : > { %v748_v55 = vmin.f32 %v716_v29, 6.0  ;;  %v1681_v60 = vsel %vm1671_vm6, %v1678_v25, %v10562_v35  ;;  %v734_v3 = vmax.f32 %v702_v43, 0.0  ;;  %v685_v6 = vadd.f32 3.0, %v653_v33  ;;  %v547_v18 = vpop.f32.mrf.mxu0 }
  0xe9   : > { %v829_v63 = vmul.f32 0.16666667, %v797_v34  ;;  %v1270_v28 = vmax.f32 %v1029_v50, %v1163_v5  ;;  %v1415_v58 = vsel %vm1382_vm5, %v1413_v30, %v1414_v37  ;;  %v1723_v49 = vrot.slane %v10614_v48, 3 }
  0xea   : > { %v10672_v7 = vadd.f32 %v10436_v21, %v635_v44  ;;  %v780_v59 = vmul.f32 %v748_v55, %v652_v9  ;;  %v766_v0 = vmin.f32 %v734_v3, 6.0  ;;  %v717_v12 = vmax.f32 %v685_v6, 0.0 }
  0xeb   : > { %v861_v4 = vpack.c.bf16 %v829_v63, %v829_v63  ;;  %v1388_v35 = vsel %vm1382_vm5, %v1386_v53, %v1387_v61  ;;  %v1805_v13 = vmax.f32 %v1484_v47, %v1681_v60  ;;  %v1510_v14 = vmax.f32 %v1269_v51, %v1415_v58  ;;  %v10710_v63 = vld [vmem:[#allocation2 + $0x2c] sm:$0x1] }
  0xec   : > { %v1121_v5 = vrot.slane %v10661_v52, 1  ;;  %v10678_v15 = vrot.slane %v2172_v24, 11  ;;  %v2151_v30 = vmax.f32 %v1830_v45, %v10612_v46  ;;  %v1242_v16 = vmax.f32 %v10549_v8, %v10657_v62 }
  0xed   : > { %925 = vst.msk [vmem:[#allocation2 + $0xc4] sm:$0xf] %vm313_vm2, %v861_v4  ;;  %v798_v9 = vmul.f32 %v766_v0, %v670_v27  ;;  %v2002_v53 = vsel %vm1992_vm7, %v1999_v36, %v10565_v40  ;;  %v1511_v61 = vmax.f32 %v1270_v28, %v1414_v37  ;;  %v2044_v26 = vrot.slane %v10614_v48, 4  ;;  %v983_v48 = vld [vmem:[#allocation2 + $0x28] sm:$0xf] }
  0xee   : > { %893 = vst.msk [vmem:[#allocation4 + $0x60] sm:$0xf] %vm313_vm2, %v861_v4  ;;  %v812_v24 = vmul.f32 0.16666667, %v780_v59  ;;  %v1724_v19 = vsel %vm1671_vm6, %v1722_v38, %v1723_v49  ;;  %v749_v27 = vmin.f32 %v717_v12, 6.0  ;;  %v703_v29 = vadd.f32 3.0, %v10672_v7 }
  0xef   : > { %v830_v32 = vmul.f32 0.16666667, %v798_v9  ;;  %v2126_v43 = vmax.f32 %v1805_v13, %v2002_v53  ;;  %v1831_v44 = vmax.f32 %v1510_v14, %v1724_v19  ;;  %v1122_v40 = vsel %vm1109_vm4, %v10637_v10, %v1121_v5  ;;  %v943_v37 = vld [vmem:[#allocation2 + $0x34] sm:$0xf]  ;;  %v1898_v4 = vld [vmem:[#allocation2 + $0x24] sm:$0xe] }
  0xf0   : > { %v618_v45 = vmul.f32 %v10427_v20, %v547_v18  ;;  %v1726_v54 = vsel %vm1671_vm6, %v1723_v49, %v10567_v41  ;;  %v844_v38 = vpack.c.bf16 %v812_v24, %v812_v24  ;;  %v781_v47 = vmul.f32 %v749_v27, %v653_v33 }
  0xf1   : > { %v862_v62 = vpack.c.bf16 %v830_v32, %v830_v32  ;;  %v1832_v34 = vmax.f32 %v1511_v61, %v1726_v54  ;;  %v2045_v50 = vsel %vm1992_vm7, %v10612_v46, %v2044_v26  ;;  %v1006_v51 = vunpack.c.l.bf16 %v10693_v31  ;;  %v592_v31 = vpop.f32.mrf.mxu3 }
  0xf2   : > { %v735_v55 = vmax.f32 %v703_v29, 0.0  ;;  %v1244_v10 = vmax.f32 %v1003_v11, %v1122_v40  ;;  %v10708_v60 = vunpack.c.l.bf16 %v983_v48  ;;  %v10712_v3 = vunpack.c.l.bf16 %v943_v37  ;;  %908 = vst.msk [vmem:[#allocation2 + $0x38] sm:$0xf] %vm313_vm2, %v844_v38 }
  0xf3   : > { %v813_v41 = vmul.f32 0.16666667, %v781_v47  ;;  %v2199_v33 = vpack.c.bf16 %v2151_v30, %v2151_v30  ;;  %v10720_v46 = vsel %vm1671_vm6, %v1677_v2, %v1678_v25  ;;  %v2152_v6 = vmax.f32 %v1831_v44, %v2045_v50  ;;  %876 = vst.msk [vmem:[#allocation4 + $0x1c] sm:$0xf] %vm313_vm2, %v844_v38  ;;  %v941_v25 = vld [vmem:[#allocation2 + $0x28] sm:$0x7] }
  0xf4   : > { %v10726_v11 = vadd.f32 %v10436_v21, %v618_v45  ;;  %v10728_v28 = vmax.f32 %v1242_v16, %v1388_v35  ;;  %v2174_v58 = vpack.c.bf16 %v2126_v43, %v2126_v43  ;;  %v1389_v49 = vrot.slane %v10661_v52, 2  ;;  %926 = vst.msk [vmem:[#allocation2 + $0xc8] sm:$0xf] %vm313_vm2, %v862_v62  ;;  %v970_v16 = vld [vmem:[#allocation2 + $0xc4] sm:$0xf] }
  0xf5   : > { %v845_v8 = vpack.c.bf16 %v813_v41, %v813_v41  ;;  %v2047_v2 = vsel %vm1992_vm7, %v2044_v26, %v10569_v42  ;;  %v1641_v59 = vunpack.c.l.bf16 %v10710_v63  ;;  %v1125_v0 = vrot.slane %v1006_v51, 1  ;;  %894 = vst.msk [vmem:[#allocation4 + $0x64] sm:$0xf] %vm313_vm2, %v862_v62  ;;  %v1578_v43 = vld [vmem:[#allocation2 + $0x3c] sm:$0x1] }
  0xf6   : > { %v767_v12 = vmin.f32 %v735_v55, 6.0  ;;  %v2153_v13 = vmax.f32 %v1832_v34, %v2047_v2  ;;  %v1485_v35 = vmax.f32 %v1244_v10, %v1389_v49  ;;  %v1123_v14 = vrot.slane %v10708_v60, 1  ;;  %v967_v63 = vld [vmem:[#allocation2 + $0xb4] sm:$0xf] }
  0xf7   : > { %v1126_v30 = vrot.slane %v10712_v3, 1  ;;  %909 = vst.msk [vmem:[#allocation2 + $0x44] sm:$0xf] %vm313_vm2, %v845_v8  ;;  %v10741_v9 = vrot.slane %v2199_v33, 11  ;;  %v2200_v42 = vpack.c.bf16 %v2152_v6, %v2152_v6  ;;  %v686_v53 = vadd.f32 3.0, %v10726_v11 }
  0xf8   : > { %877 = vst.msk [vmem:[#allocation4 + $0x20] sm:$0xf] %vm313_vm2, %v845_v8  ;;  %v799_v18 = vmul.f32 %v767_v12, %v10672_v7  ;;  %v1682_v61 = vrot.slane %v10661_v52, 3  ;;  %v1962_v26 = vunpack.c.l.bf16 %v1898_v4  ;;  %v1005_v24 = vunpack.c.l.bf16 %v941_v25 }
  0xf9   : > { %14594 = vst [vmem:[#allocation11_spill] sm:$0xff] %v10741_v9  ;;  %v1033_v19 = vunpack.c.l.bf16 %v10722_v57  ;;  %v10748_v32 = vrot.slane %v2174_v58, 7  ;;  %v1685_v27 = vrot.slane %v1641_v59, 3  ;;  %v10750_v29 = vunpack.c.l.bf16 %v970_v16  ;;  %v1587_v57 = vld [vmem:[#allocation2 + $0xcc] sm:$0x1] }
  0xfa   : > { %v831_v44 = vmul.f32 0.16666667, %v799_v18  ;;  %v2201_v40 = vpack.c.bf16 %v2153_v13, %v2153_v13  ;;  %v1806_v7 = vmax.f32 %v1485_v35, %v1682_v61  ;;  %v1246_v48 = vmax.f32 %v1005_v24, %v1123_v14 }
  0xfb   : > { %v1127_v37 = vsel %vm1109_vm4, %v1125_v0, %v1126_v30  ;;  %v10757_v45 = vrot.slane %v2200_v42, 7  ;;  %v718_v38 = vmax.f32 %v686_v53, 0.0  ;;  %v636_v62 = vmul.f32 %v10427_v20, %v592_v31 }
  0xfc   : > { %v863_v54 = vpack.c.bf16 %v831_v44, %v831_v44  ;;  %v10760_v47 = vrot.slane %v1962_v26, 4  ;;  %v1390_v34 = vrot.slane %v10708_v60, 2  ;;  %v1170_v50 = vrot.slane %v1033_v19, 1 }
  0xfd   : > { %14595 = vst [vmem:[#allocation12_spill] sm:$0xff] %v10757_v45  ;;  %v1642_v55 = vunpack.c.l.bf16 %v1578_v43  ;;  %v10767_v10 = vsel %vm1992_vm7, %v10598_v22, %v1999_v36  ;;  %v1683_v41 = vrot.slane %v10708_v60, 3  ;;  %v1247_v33 = vmax.f32 %v1006_v51, %v1127_v37  ;;  %v10778_v36 = vld [vmem:[#allocation2 + $0x40] sm:$0x8]  ;;  %v984_v43 = vld [vmem:[#allocation2 + $0x38] sm:$0xf] }
  0xfe   : > { %v14462_v6 = vrot.slane %v10750_v29, 1  ;;  %v10771_v20 = vrot.slane %v2201_v40, 7  ;;  %v2127_v58 = vmax.f32 %v1806_v7, %v10760_v47  ;;  %v1487_v4 = vmax.f32 %v1246_v48, %v1390_v34  ;;  %927 = vst.msk [vmem:[#allocation2 + $0xd4] sm:$0xf] %vm313_vm2, %v863_v54  ;;  %v10803_v7 = vld [vmem:[#allocation2 + $0xb4] sm:$0xe] }
  0xff   : > { %v2006_v8 = vrot.slane %v1641_v59, 4  ;;  %v1392_v22 = vrot.slane %v10712_v3, 2  ;;  %895 = vst.msk [vmem:[#allocation4 + $0x68] sm:$0xf] %vm313_vm2, %v863_v54  ;;  %v750_v51 = vmin.f32 %v718_v38, 6.0  ;;  %v10782_v2 = vadd.f32 %v10436_v21, %v636_v62 }
 0x100   : > { %14596 = vst [vmem:[#allocation13_spill] sm:$0xff] %v10771_v20  ;;  %v10785_v0 = vunpack.c.l.bf16 %v967_v63  ;;  %v1899_v59 = vld [vmem:[#allocation2 + $0x34] sm:$0xe]  ;;  %v10787_v12 = vrot.slane %v1642_v55, 3  ;;  %v1651_v13 = vunpack.c.l.bf16 %v1587_v57  ;;  %v1686_v35 = vsel %vm1671_vm6, %v1683_v41, %v1685_v27  ;;  %v1588_v20 = vld [vmem:[#allocation2 + $0xdc] sm:$0x1] }
 0x101   : > { %v14458_v16 = vrot.slane %v10708_v60, 4  ;;  %v1488_v42 = vmax.f32 %v1247_v33, %v1392_v22  ;;  %v1172_v21 = vsel %vm1109_vm4, %v1170_v50, %v14462_v6  ;;  %v2175_v18 = vpack.c.bf16 %v2127_v58, %v2127_v58  ;;  %14598 = vst [vmem:[#allocation15_spill] sm:$0xff] %v10803_v7  ;;  %v10818_v50 = vld [vmem:[#allocation2 + $0xd0] sm:$0x8]  ;;  %v1579_v58 = vld [vmem:[#allocation2 + $0x4c] sm:$0x1] }
 0x102   : > { %14597 = vst [vmem:[#allocation14_spill] sm:$0xff] %v10785_v0  ;;  %v1124_v53 = vsel %vm1109_vm4, %v1121_v5, %v1123_v14  ;;  %v1808_v26 = vmax.f32 %v1487_v4, %v1686_v35  ;;  %v14459_v24 = vunpack.c.l.bf16 %v10778_v36  ;;  %v14464_v31 = vrot.slane %v10712_v3, 3  ;;  %v934_v35 = vld [vmem:[#allocation2 + $0x4] sm:$0xf]  ;;  %v550_v4 = vpop.f32.mrf.mxu0 }
 0x103   : > { %v1963_v27 = vunpack.c.l.bf16 %v1899_v59  ;;  %v782_v44 = vmul.f32 %v750_v51, %v10726_v11  ;;  %v704_v40 = vadd.f32 3.0, %v10782_v2  ;;  %v1274_v48 = vmax.f32 %v1033_v19, %v1172_v21 }
 0x104   : > { %v14461_v37 = vrot.slane %v10750_v29, 2  ;;  %v10806_v54 = vrot.slane %v1642_v55, 4  ;;  %v10808_v38 = vrot.slane %v1651_v13, 3  ;;  %v1245_v5 = vmax.f32 %v10661_v52, %v1124_v53  ;;  %v1908_v55 = vld [vmem:[#allocation2 + $0xc4] sm:$0xe] }
 0x105   : > { %v2007_v14 = vsel %vm1992_vm7, %v14458_v16, %v2006_v8  ;;  %v1809_v11 = vmax.f32 %v1488_v42, %v14464_v31  ;;  %v10816_v62 = vrot.slane %v1651_v13, 4  ;;  %v10820_v19 = vrot.slane %v2175_v18, 11  ;;  %v973_v51 = vld [vmem:[#allocation2 + $0xd4] sm:$0xf]  ;;  %v595_v31 = vpop.f32.mrf.mxu3 }
 0x106   : > { %v10822_v63 = vmax.f32 %v1808_v26, %v2007_v14  ;;  %v10824_v33 = vunpack.c.l.bf16 %v984_v43  ;;  %v10828_v57 = vrot.slane %v14459_v24, 1  ;;  %v10831_v8 = vrot.slane %v1963_v27, 4  ;;  %v10844_v26 = vld [vmem:[#allocation2] sm:$0x8] }
 0x107   : > { %v814_v59 = vmul.f32 0.16666667, %v782_v44  ;;  %v736_v13 = vmax.f32 %v704_v40, 0.0  ;;  %v1391_v42 = vsel %vm1382_vm5, %v1389_v49, %v1390_v34  ;;  %v10839_v21 = vsel %vm1671_vm6, %v1682_v61, %v1683_v41  ;;  %v944_v40 = vld [vmem:[#allocation2 + $0x38] sm:$0x7] }
 0x108   : > { %v1515_v18 = vmax.f32 %v1274_v48, %v14461_v37  ;;  %v14463_v53 = vunpack.c.l.bf16 %v10818_v50  ;;  %v10846_v27 = vmax.f32 %v1245_v5, %v1391_v42  ;;  %v2130_v43 = vmax.f32 %v1809_v11, %v10831_v8  ;;  %v10849_v49 = vld [vmem:[#allocation2 + $0x8] sm:$0x7] }
 0x109   : > { %v1972_v44 = vunpack.c.l.bf16 %v1908_v55  ;;  %v1643_v14 = vunpack.c.l.bf16 %v1579_v58  ;;  %v14460_v61 = vrot.slane %v10750_v29, 3  ;;  %v1128_v34 = vrot.slane %v10824_v33, 1  ;;  %v993_v58 = vld [vmem:[#allocation2 + $0xc8] sm:$0xf] }
 0x10a   : > { %v10855_v41 = vunpack.c.l.bf16 %v973_v51  ;;  %v846_v48 = vpack.c.bf16 %v814_v59, %v814_v59  ;;  %v768_v25 = vmin.f32 %v736_v13, 6.0  ;;  %v10858_v42 = vunpack.c.l.bf16 %v934_v35  ;;  %v981_v35 = vld [vmem:[#allocation2 + $0x8] sm:$0xf] }
 0x10b   : > { %v1836_v11 = vmax.f32 %v1515_v18, %v14460_v61  ;;  %v1008_v55 = vunpack.c.l.bf16 %v944_v40  ;;  %v1175_v23 = vrot.slane %v14463_v53, 1  ;;  %v2178_v39 = vpack.c.bf16 %v2130_v43, %v2130_v43  ;;  %v10879_v43 = vld [vmem:[%s14452_s2] ss:$0 sm:$0xff] }
 0x10c   : > { %v10865_v51 = vrot.slane %v1972_v44, 4  ;;  %910 = vst.msk [vmem:[#allocation2 + $0x48] sm:$0xf] %vm313_vm2, %v846_v48  ;;  %v10868_v59 = vrot.slane %v1643_v14, 3  ;;  %v800_v13 = vmul.f32 %v768_v25, %v10782_v2  ;;  %v1129_v18 = vsel %vm1109_vm4, %v1126_v30, %v1128_v34  ;;  %v971_v25 = vld [vmem:[#allocation2 + $0xc8] sm:$0x7] }
 0x10d   : > { %v1249_v40 = vmax.f32 %v1008_v55, %v1128_v34  ;;  %v14465_v16 = vrot.slane %v10855_v41, 1  ;;  %878 = vst.msk [vmem:[#allocation4 + $0x24] sm:$0xf] %vm313_vm2, %v846_v48  ;;  %v619_v44 = vmul.f32 %v10879_v43, %v550_v4  ;;  %v1393_v52 = vrot.slane %v10824_v33, 2  ;;  %v10892_v48 = vld [vmem:[%s14453_s3] ss:$0 sm:$0xff] }
 0x10e   : > { %v1688_v2 = vrot.slane %v10824_v33, 3  ;;  %v10884_v5 = vunpack.c.l.bf16 %v993_v58  ;;  %v832_v30 = vmul.f32 0.16666667, %v800_v13  ;;  %v2157_v34 = vmax.f32 %v1836_v11, %v10865_v51 }
 0x10f   : > { %v10887_v55 = vrot.slane %v1643_v14, 4  ;;  %v655_v24 = vadd.f32 %v10892_v48, %v619_v44  ;;  %v10895_v4 = vunpack.c.l.bf16 %v981_v35  ;;  %v10897_v61 = vrot.slane %v2178_v39, 11 }
 0x110   : > { %v1248_v37 = vmax.f32 %v10712_v3, %v1129_v18  ;;  %v2009_v58 = vrot.slane %v10824_v33, 4  ;;  %v864_v13 = vpack.c.bf16 %v832_v30, %v832_v30  ;;  %v1490_v6 = vmax.f32 %v1249_v40, %v1393_v52 }
 0x111   : > { %14599 = vst [vmem:[#allocation16_spill] sm:$0xff] %v10897_v61  ;;  %v1035_v11 = vunpack.c.l.bf16 %v971_v25  ;;  %v1177_v14 = vsel %vm1109_vm4, %v1175_v23, %v14465_v16  ;;  %v687_v53 = vadd.f32 3.0, %v655_v24  ;;  %v1394_v35 = vsel %vm1382_vm5, %v1392_v22, %v1393_v52  ;;  %v552_v16 = vpop.f32.mrf.mxu0 }
 0x112   : > { %v14600_v39 = vrot.slane %v10712_v3, 3  ;;  %v1173_v33 = vrot.slane %v10884_v5, 1  ;;  %928 = vst.msk [vmem:[#allocation2 + $0xd8] sm:$0xf] %vm313_vm2, %v864_v13  ;;  %v637_v18 = vmul.f32 %v10879_v43, %v595_v31  ;;  %v2205_v40 = vpack.c.bf16 %v2157_v34, %v2157_v34 }
 0x113   : > { %v1691_v23 = vsel %vm1671_vm6, %v1688_v2, %v10787_v12  ;;  %v1420_v25 = vrot.slane %v10884_v5, 2  ;;  %v719_v30 = vmax.f32 %v687_v53, 0.0  ;;  %v10918_v22 = vmax.f32 %v1248_v37, %v1394_v35  ;;  %896 = vst.msk [vmem:[#allocation4 + $0x6c] sm:$0xf] %vm313_vm2, %v864_v13  ;;  %v1909_v35 = vld [vmem:[#allocation2 + $0xd4] sm:$0xe] }
 0x114   : > { %v10910_v44 = vsel %vm1671_vm6, %v14600_v39, %v1688_v2  ;;  %v14603_v3 = vunpack.c.l.bf16 %v10818_v50  ;;  %v1422_v39 = vrot.slane %v10855_v41, 2  ;;  %v673_v31 = vadd.f32 %v10892_v48, %v637_v18 }
 0x115   : > { %14601 = vst [vmem:[#allocation17_spill] sm:$0xff] %v10910_v44  ;;  %v1811_v34 = vmax.f32 %v1490_v6, %v1691_v23  ;;  %v1733_v9 = vrot.slane %v10884_v5, 3  ;;  %v751_v12 = vmin.f32 %v719_v30, 6.0  ;;  %v620_v2 = vmul.f32 %v10879_v43, %v552_v16 }
 0x116   : > { %14602 = vst [vmem:[#allocation18_spill] sm:$0xff] %v10918_v22  ;;  %v1277_v52 = vmax.f32 %v14603_v3, %v1177_v14  ;;  %v10929_v37 = vsel %vm1992_vm7, %v10831_v8, %v2009_v58  ;;  %v2012_v50 = vsel %vm1992_vm7, %v2009_v58, %v10806_v54  ;;  %v14604_v53 = vrot.slane %v10750_v29, 1  ;;  %v946_v58 = vld [vmem:[#allocation2 + $0x44] sm:$0xf] }
 0x117   : > { %v1276_v6 = vmax.f32 %v1035_v11, %v1173_v33  ;;  %v1652_v18 = vunpack.c.l.bf16 %v1588_v20  ;;  %v783_v23 = vmul.f32 %v751_v12, %v655_v24  ;;  %v705_v30 = vadd.f32 3.0, %v673_v31 }
 0x118   : > { %v10936_v14 = vsel %vm1109_vm4, %v14604_v53, %v1173_v33  ;;  %v10939_v16 = vrot.slane %v2205_v40, 11  ;;  %v14606_v3 = vrot.slane %v10750_v29, 2  ;;  %v1518_v53 = vmax.f32 %v1277_v52, %v1422_v39 }
 0x119   : > { %v10948_v45 = vmax.f32 %v1811_v34, %v2012_v50  ;;  %v14607_v20 = vrot.slane %v10750_v29, 3  ;;  %v974_v33 = vld [vmem:[#allocation2 + $0xd8] sm:$0x7]  ;;  %v656_v12 = vadd.f32 %v10892_v48, %v620_v2  ;;  %v1737_v8 = vrot.slane %v10855_v41, 3 }
 0x11a   : > { %14605 = vst [vmem:[#allocation19_spill] sm:$0xff] %v10939_v16  ;;  %v10946_v54 = vsel %vm1382_vm5, %v14606_v3, %v1420_v25  ;;  %v994_v40 = vld [vmem:[#allocation2 + $0xd8] sm:$0xf]  ;;  %v1973_v3 = vunpack.c.l.bf16 %v1909_v35  ;;  %v815_v16 = vmul.f32 0.16666667, %v783_v23  ;;  %v10959_v52 = vmax.f32 %v1276_v6, %v1420_v25 }
 0x11b   : > { %v10955_v24 = vsel %vm1671_vm6, %v14607_v20, %v1733_v9  ;;  %v1058_v13 = vunpack.c.l.bf16 %v994_v40  ;;  %v10961_v34 = vunpack.c.l.bf16 %v946_v58  ;;  %v1740_v50 = vrot.slane %v1652_v18, 3  ;;  %v597_v58 = vpop.f32.mrf.mxu3 }
 0x11c   : > { %v737_v11 = vmax.f32 %v705_v30, 0.0  ;;  %v1839_v17 = vmax.f32 %v1518_v53, %v1737_v8  ;;  %v1038_v7 = vunpack.c.l.bf16 %v974_v33  ;;  %v847_v0 = vpack.c.bf16 %v815_v16, %v815_v16  ;;  %v555_v16 = vpop.f32.mrf.mxu0 }
 0x11d   : > { %v1178_v1 = vrot.slane %v1058_v13, 1  ;;  %v1423_v20 = vrot.slane %v1058_v13, 2  ;;  %v1738_v56 = vrot.slane %v1058_v13, 3  ;;  %v688_v44 = vadd.f32 3.0, %v656_v12 }
 0x11e   : > { %v769_v61 = vmin.f32 %v737_v11, 6.0  ;;  %v10965_v2 = vsel %vm1671_vm6, %v1733_v9, %v10808_v38  ;;  %v2058_v35 = vrot.slane %v1973_v3, 4  ;;  %v14608_v25 = vrot.slane %v10855_v41, 1  ;;  %911 = vst.msk [vmem:[#allocation2 + $0x54] sm:$0xf] %vm313_vm2, %v847_v0 }
 0x11f   : > { %v1279_v23 = vmax.f32 %v1038_v7, %v1178_v1  ;;  %v1131_v30 = vrot.slane %v10961_v34, 1  ;;  %v2059_v33 = vrot.slane %v1058_v13, 4  ;;  %v2061_v40 = vrot.slane %v1652_v18, 4  ;;  %879 = vst.msk [vmem:[#allocation4 + $0x28] sm:$0xf] %vm313_vm2, %v847_v0 }
 0x120   : > { %v1179_v6 = vsel %vm1109_vm4, %v14608_v25, %v1178_v1  ;;  %v2160_v11 = vmax.f32 %v1839_v17, %v2058_v35  ;;  %v1424_v9 = vsel %vm1382_vm5, %v1422_v39, %v1423_v20  ;;  %v801_v3 = vmul.f32 %v769_v61, %v673_v31 }
 0x121   : > { %v1278_v53 = vmax.f32 %v10855_v41, %v1179_v6  ;;  %v1520_v38 = vmax.f32 %v1279_v23, %v1423_v20  ;;  %v1741_v1 = vsel %vm1671_vm6, %v1738_v56, %v1740_v50  ;;  %v720_v7 = vmax.f32 %v688_v44, 0.0 }
 0x122   : > { %v638_v25 = vmul.f32 %v10879_v43, %v597_v58  ;;  %v1739_v41 = vsel %vm1671_vm6, %v1737_v8, %v1738_v56  ;;  %v833_v18 = vmul.f32 0.16666667, %v801_v3  ;;  %v621_v6 = vmul.f32 %v10879_v43, %v555_v16 }
 0x123   : > { %v1519_v22 = vmax.f32 %v1278_v53, %v1424_v9  ;;  %v1841_v13 = vmax.f32 %v1520_v38, %v1741_v1  ;;  %v1132_v17 = vsel %vm1109_vm4, %v10828_v57, %v1131_v30  ;;  %v2062_v0 = vsel %vm1992_vm7, %v2059_v33, %v2061_v40  ;;  %v11000_v9 = vld [vmem:[#allocation2 + $0xe0] sm:$0x8] }
 0x124   : > { %v752_v61 = vmin.f32 %v720_v7, 6.0  ;;  %v2060_v31 = vsel %vm1992_vm7, %v2058_v35, %v2059_v33  ;;  %v865_v50 = vpack.c.bf16 %v833_v18, %v833_v18  ;;  %v674_v20 = vadd.f32 %v10892_v48, %v638_v25 }
 0x125   : > { %v1840_v39 = vmax.f32 %v1519_v22, %v1739_v41  ;;  %v2162_v44 = vmax.f32 %v1841_v13, %v2062_v0  ;;  %v14609_v56 = vrot.slane %v10884_v5, 4  ;;  %v2208_v23 = vpack.c.bf16 %v2160_v11, %v2160_v11 }
 0x126   : > { %v784_v53 = vmul.f32 %v752_v61, %v656_v12  ;;  %929 = vst.msk [vmem:[#allocation2 + $0xe4] sm:$0xf] %vm313_vm2, %v865_v50  ;;  %v657_v35 = vadd.f32 %v10892_v48, %v621_v6  ;;  %v14611_v33 = vunpack.c.l.bf16 %v10778_v36  ;;  %v1838_v5 = vmax.f32 %v10959_v52, %v10965_v2  ;;  %v1900_v36 = vld [vmem:[#allocation2 + $0x44] sm:$0xe] }
 0x127   : > { %v10990_v8 = vsel %vm1992_vm7, %v10865_v51, %v14609_v56  ;;  %v2161_v58 = vmax.f32 %v1840_v39, %v2060_v31  ;;  %v14610_v57 = vmov %v14609_v56  ;;  %v2210_v51 = vpack.c.bf16 %v2162_v44, %v2162_v44  ;;  %897 = vst.msk [vmem:[#allocation4 + $0x70] sm:$0xf] %vm313_vm2, %v865_v50 }
 0x128   : > { %v2057_v22 = vsel %vm1992_vm7, %v14610_v57, %v10816_v62  ;;  %v1250_v40 = vmax.f32 %v14611_v33, %v1132_v17  ;;  %v816_v12 = vmul.f32 0.16666667, %v784_v53  ;;  %v706_v62 = vadd.f32 3.0, %v674_v20 }
 0x129   : > { %v2209_v16 = vpack.c.bf16 %v2161_v58, %v2161_v58  ;;  %v14612_v11 = vunpack.c.l.bf16 %v10844_v26  ;;  %v1111_v3 = vrot.slane %v10858_v42, 1  ;;  %v1395_v1 = vrot.slane %v10961_v34, 2 }
 0x12a   : > { %v8758_v7 = vrot.slane %v2208_v23, 11  ;;  %v1113_v41 = vrot.slane %v10895_v4, 1  ;;  %v1039_v52 = vunpack.c.l.bf16 %v11000_v9  ;;  %v848_v2 = vpack.c.bf16 %v816_v12, %v816_v12 }
 0x12b   : > { %v1110_v38 = vrot.slane %v14612_v11, 1  ;;  %v2361_v25 = vrot.slane %v2209_v16, 7  ;;  %v738_v18 = vmax.f32 %v706_v62, 0.0  ;;  %v689_v6 = vadd.f32 3.0, %v657_v35  ;;  %v1575_v62 = vld [vmem:[#allocation2 + $0xc] sm:$0x1] }
 0x12c   : > { %v1491_v17 = vmax.f32 %v1250_v40, %v1395_v1  ;;  %v2364_v61 = vrot.slane %v2210_v51, 7  ;;  %v1964_v31 = vunpack.c.l.bf16 %v1900_v36  ;;  %v14615_v23 = vmax.f32 %v10750_v29, %v10936_v14  ;;  %912 = vst.msk [vmem:[#allocation2 + $0x58] sm:$0xf] %vm313_vm2, %v848_v2 }
 0x12d   : > { %v2362_v39 = vsel %vm11012_vm10, %v8758_v7, %v2361_v25  ;;  %v2363_v0 = vrot.slane %v2361_v25, 4  ;;  %v770_v44 = vmin.f32 %v738_v18, 6.0  ;;  %v721_v50 = vmax.f32 %v689_v6, 0.0  ;;  %v976_v40 = vld [vmem:[#allocation2 + $0xe4] sm:$0xf] }
 0x12e   : > { %2439 = vst.msk [vmem:[#allocation3 + $0x78] sm:$0xf] %vm313_vm2, %v2362_v39  ;;  %v1112_v56 = vsel %vm1109_vm4, %v1110_v38, %v1111_v3  ;;  %v1516_v58 = vmax.f32 %v14615_v23, %v10946_v54  ;;  %v2159_v53 = vmax.f32 %v1838_v5, %v2057_v22  ;;  %v1692_v57 = vrot.slane %v10961_v34, 3  ;;  %v11049_v6 = vld [vmem:[#allocation2 + $0x50] sm:$0x8] }
 0x12f   : > { %v2365_v33 = vsel %vm11012_vm10, %v2363_v0, %v2364_v61  ;;  %v11032_v16 = vunpack.c.l.bf16 %v976_v40  ;;  %v1180_v51 = vrot.slane %v1039_v52, 1  ;;  %v802_v9 = vmul.f32 %v770_v44, %v674_v20  ;;  %880 = vst.msk [vmem:[#allocation4 + $0x2c] sm:$0xf] %vm313_vm2, %v848_v2  ;;  %v1896_v0 = vld [vmem:[#allocation2 + $0x4] sm:$0xe] }
 0x130   : > { %2440 = vst.msk [vmem:[#allocation3 + $0x7c] sm:$0xf] %vm313_vm2, %v2365_v33  ;;  %v1114_v12 = vsel %vm1109_vm4, %v1111_v3, %v1113_v41  ;;  %v2180_v29 = vpack.c.bf16 %v10948_v45, %v10948_v45  ;;  %v1812_v14 = vmax.f32 %v1491_v17, %v1692_v57  ;;  %v753_v54 = vmin.f32 %v721_v50, 6.0  ;;  %v985_v50 = vld [vmem:[#allocation2 + $0x48] sm:$0xf] }
 0x131   : > { %v14616_v22 = vmov %v14612_v11  ;;  %v11042_v11 = vrot.slane %v1964_v31, 4  ;;  %v1181_v38 = vrot.slane %v11032_v16, 1  ;;  %v1383_v20 = vrot.slane %v10858_v42, 2 }
 0x132   : > { %v1238_v5 = vmax.f32 %v14616_v22, %v1112_v56  ;;  %v1384_v3 = vrot.slane %v10895_v4, 2  ;;  %v834_v36 = vmul.f32 0.16666667, %v802_v9  ;;  %v785_v7 = vmul.f32 %v753_v54, %v657_v35  ;;  %v1910_v22 = vld [vmem:[#allocation2 + $0xe4] sm:$0xe] }
 0x133   : > { %v1239_v45 = vmax.f32 %v10858_v42, %v1114_v12  ;;  %v1639_v25 = vunpack.c.l.bf16 %v1575_v62  ;;  %v1837_v18 = vmax.f32 %v1516_v58, %v10955_v24  ;;  %v2207_v2 = vpack.c.bf16 %v2159_v53, %v2159_v53 }
 0x134   : > { %v1182_v26 = vsel %vm1109_vm4, %v1180_v51, %v1181_v38  ;;  %v14617_v17 = vunpack.c.l.bf16 %v10849_v49  ;;  %v2133_v61 = vmax.f32 %v1812_v14, %v11042_v11  ;;  %v866_v31 = vpack.c.bf16 %v834_v36, %v834_v36  ;;  %v1589_v36 = vld [vmem:[#allocation2 + $0xec] sm:$0x1] }
 0x135   : > { %v817_v35 = vmul.f32 0.16666667, %v785_v7  ;;  %v1479_v44 = vmax.f32 %v1238_v5, %v1383_v20  ;;  %v1280_v56 = vmax.f32 %v1039_v52, %v1182_v26  ;;  %v1425_v24 = vrot.slane %v11032_v16, 2  ;;  %v11074_v5 = vld [vmem:[#allocation2 + $0x48] sm:$0x7] }
 0x136   : > { %v1240_v39 = vmax.f32 %v14617_v17, %v1113_v41  ;;  %v1385_v23 = vsel %vm1382_vm5, %v1383_v20, %v1384_v3  ;;  %v1673_v58 = vrot.slane %v10895_v4, 3  ;;  %v1012_v53 = vunpack.c.l.bf16 %v11049_v6  ;;  %930 = vst.msk [vmem:[#allocation2 + $0xe8] sm:$0xf] %vm313_vm2, %v866_v31 }
 0x137   : > { %v849_v49 = vpack.c.bf16 %v817_v35, %v817_v35  ;;  %v1480_v41 = vmax.f32 %v1239_v45, %v1385_v23  ;;  %v1675_v33 = vrot.slane %v1639_v25, 3  ;;  %v11062_v40 = vrot.slane %v2180_v29, 7  ;;  %898 = vst.msk [vmem:[#allocation4 + $0x74] sm:$0xf] %vm313_vm2, %v866_v31 }
 0x138   : > { %v1481_v51 = vmax.f32 %v1240_v39, %v1384_v3  ;;  %v1672_v52 = vrot.slane %v10858_v42, 3  ;;  %v1960_v9 = vunpack.c.l.bf16 %v1896_v0  ;;  %v11067_v12 = vmax.f32 %v1837_v18, %v10990_v8 }
 0x139   : > { %v11069_v62 = vrot.slane %v2207_v2, 7  ;;  %v2181_v14 = vpack.c.bf16 %v2133_v61, %v2133_v61  ;;  %v11071_v54 = vunpack.c.l.bf16 %v985_v50  ;;  %913 = vst.msk [vmem:[#allocation2 + $0x64] sm:$0xf] %vm313_vm2, %v849_v49  ;;  %v1521_v29 = vmax.f32 %v1280_v56, %v1425_v24 }
 0x13a   : > { %881 = vst.msk [vmem:[#allocation4 + $0x30] sm:$0xf] %vm313_vm2, %v849_v49  ;;  %v1674_v42 = vsel %vm1671_vm6, %v1672_v52, %v1673_v58  ;;  %v1800_v20 = vmax.f32 %v1479_v44, %v1672_v52  ;;  %v1994_v8 = vrot.slane %v10895_v4, 4  ;;  %v11083_v3 = vrot.slane %v1012_v53, 1 }
 0x13b   : > { %14618 = vst [vmem:[#allocation20_spill] sm:$0xff] %v11069_v62  ;;  %v1676_v7 = vsel %vm1671_vm6, %v1673_v58, %v1675_v33  ;;  %v1801_v45 = vmax.f32 %v1480_v41, %v1674_v42  ;;  %v1996_v18 = vrot.slane %v1639_v25, 4  ;;  %v1742_v2 = vrot.slane %v11032_v16, 3 }
 0x13c   : > { %v1974_v26 = vunpack.c.l.bf16 %v1910_v22  ;;  %v1802_v17 = vmax.f32 %v1481_v51, %v1676_v7  ;;  %v1993_v39 = vrot.slane %v1960_v9, 4  ;;  %v11087_v0 = vrot.slane %v2181_v14, 11 }
 0x13d   : > { %v1011_v61 = vunpack.c.l.bf16 %v11074_v5  ;;  %v1133_v4 = vrot.slane %v11071_v54, 1  ;;  %v1807_v31 = vmax.f32 %v10846_v27, %v10839_v21  ;;  %v1842_v35 = vmax.f32 %v1521_v29, %v1742_v2  ;;  %v977_v44 = vld [vmem:[#allocation2 + $0xe8] sm:$0x7] }
 0x13e   : > { %v995_v50 = vld [vmem:[#allocation2 + $0xe8] sm:$0xf]  ;;  %v1653_v56 = vunpack.c.l.bf16 %v1589_v36  ;;  %v1995_v25 = vsel %vm1992_vm7, %v1993_v39, %v1994_v8  ;;  %v2121_v23 = vmax.f32 %v1800_v20, %v1993_v39  ;;  %v1396_v58 = vrot.slane %v11071_v54, 2  ;;  %v949_v36 = vld [vmem:[#allocation2 + $0x54] sm:$0xf] }
 0x13f   : > { %v1059_v49 = vunpack.c.l.bf16 %v995_v50  ;;  %v1997_v41 = vsel %vm1992_vm7, %v1994_v8, %v1996_v18  ;;  %v2122_v33 = vmax.f32 %v1801_v45, %v1995_v25  ;;  %v2063_v51 = vrot.slane %v1974_v26, 4 }
 0x140   : > { %v14619_v52 = vrot.slane %v10708_v60, 4  ;;  %v2123_v21 = vmax.f32 %v1802_v17, %v1997_v41  ;;  %v14620_v27 = vmax.f32 %v10728_v28, %v10720_v46  ;;  %v1041_v22 = vunpack.c.l.bf16 %v977_v44 }
 0x141   : > { %v1183_v29 = vrot.slane %v1059_v49, 1  ;;  %v1426_v42 = vrot.slane %v1059_v49, 2  ;;  %v2163_v7 = vmax.f32 %v1842_v35, %v2063_v51  ;;  %v1743_v8 = vrot.slane %v1059_v49, 3 }
 0x142   : > { %v2005_v9 = vsel %vm1992_vm7, %v10760_v47, %v14619_v52  ;;  %v2125_v14 = vmax.f32 %v14620_v27, %v10767_v10  ;;  %v1745_v45 = vrot.slane %v1653_v56, 3  ;;  %v2169_v18 = vpack.c.bf16 %v2121_v23, %v2121_v23 }
 0x143   : > { %v2128_v20 = vmax.f32 %v1807_v31, %v2005_v9  ;;  %v1184_v60 = vsel %vm1109_vm4, %v1181_v38, %v1183_v29  ;;  %v1282_v47 = vmax.f32 %v1041_v22, %v1183_v29  ;;  %v2064_v26 = vrot.slane %v1059_v49, 4 }
 0x144   : > { %v2170_v17 = vpack.c.bf16 %v2122_v33, %v2122_v33  ;;  %v1281_v39 = vmax.f32 %v11032_v16, %v1184_v60  ;;  %v2066_v46 = vrot.slane %v1653_v56, 4  ;;  %v2171_v28 = vpack.c.bf16 %v2123_v21, %v2123_v21 }
 0x145   : > { %v2173_v10 = vpack.c.bf16 %v2125_v14, %v2125_v14  ;;  %v11108_v44 = vunpack.c.l.bf16 %v949_v36  ;;  %v1427_v31 = vsel %vm1382_vm5, %v1425_v24, %v1426_v42  ;;  %v1523_v35 = vmax.f32 %v1282_v47, %v1426_v42  ;;  %v8941_v36 = vld [vmem:[#allocation3] sm:$0xff]  }
 0x146   : > { %v2176_v50 = vpack.c.bf16 %v2128_v20, %v2128_v20  ;;  %v2211_v25 = vpack.c.bf16 %v2163_v7, %v2163_v7  ;;  %v1522_v23 = vmax.f32 %v1281_v39, %v1427_v31  ;;  %v1744_v38 = vsel %vm1671_vm6, %v1742_v2, %v1743_v8  ;;  %v11124_v7 = vld [vmem:[#allocation3 + $0x8] sm:$0xff]  }
 0x147   : > { %14621 = vst [vmem:[#allocation21_spill] sm:$0xff] %v11108_v44  ;;  %v1746_v49 = vsel %vm1671_vm6, %v1743_v8, %v1745_v45  ;;  %v2065_v33 = vsel %vm1992_vm7, %v2063_v51, %v2064_v26  ;;  %v8745_v56 = vrot.slane %v2169_v18, 11  ;;  %v2270_v52 = vrot.slane %v2170_v17, 7 }
 0x148   : > { %v1844_v41 = vmax.f32 %v1523_v35, %v1746_v49  ;;  %v1843_v9 = vmax.f32 %v1522_v23, %v1744_v38  ;;  %v2067_v21 = vsel %vm1992_vm7, %v2064_v26, %v2066_v46  ;;  %v2273_v27 = vrot.slane %v2171_v28, 7  ;;  %v600_v46 = vpop.f32.mrf.mxu3  ;;  %v557_v28 = vpop.f32.mrf.mxu0 }
 0x149   : > { %v2277_v16 = vrot.slane %v2173_v10, 7  ;;  %v2271_v24 = vsel %vm11012_vm10, %v8745_v56, %v2270_v52  ;;  %v2272_v22 = vrot.slane %v2270_v52, 4  ;;  %v2284_v29 = vrot.slane %v2176_v50, 7 }
 0x14a   : > { %v2165_v14 = vmax.f32 %v1844_v41, %v2067_v21  ;;  %v1693_v2 = vrot.slane %v11071_v54, 3  ;;  %v2164_v42 = vmax.f32 %v1843_v9, %v2065_v33  ;;  %2413 = vst.msk [vmem:[#allocation3 + $0x10] sm:$0xf] %vm313_vm2, %v2271_v24  ;;  %v2014_v8 = vrot.slane %v11071_v54, 4  ;;  %v986_v21 = vld [vmem:[#allocation2 + $0x58] sm:$0xf] }
 0x14b   : > { %v2278_v51 = vsel %vm11012_vm10, %v10678_v15, %v2277_v16  ;;  %v2279_v20 = vrot.slane %v2277_v16, 4  ;;  %v2274_v45 = vsel %vm11012_vm10, %v2272_v22, %v2273_v27  ;;  %v2285_v18 = vsel %vm11012_vm10, %v10820_v19, %v2284_v29  ;;  %v950_v54 = vld [vmem:[#allocation2 + $0x58] sm:$0x7] }
 0x14c   : > { %v2286_v60 = vrot.slane %v2284_v29, 4  ;;  %2415 = vst.msk [vmem:[#allocation3 + $0x18] sm:$0xf] %vm313_vm2, %v2278_v51  ;;  %v2212_v47 = vpack.c.bf16 %v2164_v42, %v2164_v42  ;;  %v2213_v15 = vpack.c.bf16 %v2165_v14, %v2165_v14  ;;  %v14622_v17 = vpack.c.bf16 %v10822_v63, %v10822_v63 }
 0x14d   : > { %v2281_v26 = vsel %vm11012_vm10, %v2279_v20, %v10748_v32  ;;  %2414 = vst.msk [vmem:[#allocation3 + $0x14] sm:$0xf] %vm313_vm2, %v2274_v45  ;;  %v1136_v10 = vrot.slane %v11108_v44, 1  ;;  %v8759_v19 = vrot.slane %v2211_v25, 11  ;;  %v8943_v31 = vunpack.c.h.bf16 %v8941_v36 }
 0x14e   : > { %v2287_v39 = vrot.slane %v14622_v17, 7  ;;  %2416 = vst.msk [vmem:[#allocation3 + $0x1c] sm:$0xf] %vm313_vm2, %v2281_v26  ;;  %v9007_v35 = vunpack.c.h.bf16 %v11124_v7  ;;  %v2368_v50 = vrot.slane %v2212_v47, 7  ;;  %v8942_v63 = vunpack.c.l.bf16 %v8941_v36 }
 0x14f   : > { %2417 = vst.msk [vmem:[#allocation3 + $0x20] sm:$0xf] %vm313_vm2, %v2285_v18  ;;  %v9006_v23 = vunpack.c.l.bf16 %v11124_v7  ;;  %v11152_v25 = vsel %vm1109_vm4, %v1131_v30, %v1133_v4  ;;  %v1252_v38 = vmax.f32 %v1011_v61, %v1133_v4  ;;  %v639_v49 = vmul.f32 %v10879_v43, %v600_v46 }
 0x150   : > { %v2288_v32 = vsel %vm11012_vm10, %v2286_v60, %v2287_v39  ;;  %v622_v41 = vmul.f32 %v10879_v43, %v557_v28  ;;  %v11166_v33 = vsel %vm1382_vm5, %v1395_v1, %v1396_v58  ;;  %v2369_v30 = vsel %vm11012_vm10, %v8759_v19, %v2368_v50 }
 0x151   : > { %2418 = vst.msk [vmem:[#allocation3 + $0x24] sm:$0xf] %vm313_vm2, %v2288_v32  ;;  %v2370_v56 = vrot.slane %v2368_v50, 4  ;;  %v2371_v52 = vrot.slane %v2213_v15, 7  ;;  %v11173_v5 = vsel %vm1671_vm6, %v1692_v57, %v1693_v2  ;;  %v1137_v61 = vsel %vm1109_vm4, %v11083_v3, %v1136_v10  ;;  %v602_v32 = vpop.f32.mrf.mxu3 }
 0x152   : > { %2441 = vst.msk [vmem:[#allocation3 + $0x80] sm:$0xf] %vm313_vm2, %v2369_v30  ;;  %v675_v1 = vadd.f32 %v10892_v48, %v639_v49  ;;  %v658_v4 = vadd.f32 %v10892_v48, %v622_v41  ;;  %v1251_v9 = vmax.f32 %v10961_v34, %v11152_v25  ;;  %v2575_v57 = vmax.f32 %v8943_v31, %v9007_v35  ;;  %v11269_v25 = vld [vmem:[#allocation2 + $0xf0] sm:$0x8] }
 0x153   : > { %v2372_v27 = vsel %vm11012_vm10, %v2370_v56, %v2371_v52  ;;  %v2574_v16 = vmax.f32 %v8942_v63, %v9006_v23  ;;  %v1696_v3 = vsel %vm1671_vm6, %v1693_v2, %v10868_v59  ;;  %v11196_v14 = vsel %vm1992_vm7, %v11042_v11, %v2014_v8 }
 0x154   : > { %2442 = vst.msk [vmem:[#allocation3 + $0x84] sm:$0xf] %vm313_vm2, %v2372_v27  ;;  %v9069_v24 = vld [vmem:[#allocation3 + $0x10] sm:$0xff]   ;;  %v707_v22 = vadd.f32 3.0, %v675_v1  ;;  %v690_v29 = vadd.f32 3.0, %v658_v4  ;;  %v1493_v42 = vmax.f32 %v1252_v38, %v1396_v58  ;;  %v1253_v51 = vmax.f32 %v1012_v53, %v1137_v61 }
 0x155   : > { %v11203_v20 = vunpack.c.h.bf16 %v9069_v24  ;;  %v9133_v59 = vld [vmem:[#allocation3 + $0x18] sm:$0xff]   ;;  %v11205_v2 = vunpack.c.l.bf16 %v9069_v24  ;;  %v1398_v60 = vrot.slane %v11108_v44, 2  ;;  %v11212_v47 = vunpack.c.l.bf16 %v986_v21  ;;  %v1901_v53 = vld [vmem:[#allocation2 + $0x54] sm:$0xe]  ;;  %v11230_v61 = vld [vmem:[#allocation2 + $0x60] sm:$0x8] }
 0x156   : > { %v11207_v36 = vunpack.c.h.bf16 %v9133_v59  ;;  %v11209_v11 = vunpack.c.l.bf16 %v9133_v59  ;;  %v739_v45 = vmax.f32 %v707_v22, 0.0  ;;  %v722_v18 = vmax.f32 %v690_v29, 0.0  ;;  %v1580_v38 = vld [vmem:[#allocation2 + $0x5c] sm:$0x1]  ;;  %v952_v29 = vld [vmem:[#allocation2 + $0x64] sm:$0xf] }
 0x157   : > { %14623 = vst [vmem:[#allocation22_spill] sm:$0xff] %v11212_v47  ;;  %v2735_v58 = vmax.f32 %v2575_v57, %v11203_v20  ;;  %v2734_v6 = vmax.f32 %v2574_v16, %v11205_v2  ;;  %v2017_v28 = vsel %vm1992_vm7, %v2014_v8, %v10887_v55  ;;  %v1494_v19 = vmax.f32 %v1253_v51, %v1398_v60  ;;  %v14624_v59 = vld [vmem:[#allocation18_spill] sm:$0xff] }
 0x158   : > { %v9197_v15 = vld [vmem:[#allocation3 + $0x20] sm:$0xff]   ;;  %v771_v39 = vmin.f32 %v739_v45, 6.0  ;;  %v754_v46 = vmin.f32 %v722_v18, 6.0  ;;  %v1814_v63 = vmax.f32 %v1493_v42, %v1696_v3  ;;  %v640_v30 = vmul.f32 %v10879_v43, %v602_v32  ;;  %v14625_v45 = vld [vmem:[#allocation17_spill] sm:$0xff] }
 0x159   : > { %v11216_v26 = vunpack.c.h.bf16 %v9197_v15  ;;  %v11218_v17 = vunpack.c.l.bf16 %v9197_v15  ;;  %v2896_v31 = vmax.f32 %v2735_v58, %v11207_v36  ;;  %v2895_v50 = vmax.f32 %v2734_v6, %v11209_v11 }
 0x15a   : > { %v803_v49 = vmul.f32 %v771_v39, %v675_v1  ;;  %v786_v41 = vmul.f32 %v754_v46, %v658_v4  ;;  %v14476_v56 = vrot.slane %v11108_v44, 3  ;;  %v1965_v52 = vunpack.c.l.bf16 %v1901_v53 }
 0x15b   : > { %v3057_v55 = vmax.f32 %v2896_v31, %v11216_v26  ;;  %v3056_v8 = vmax.f32 %v2895_v50, %v11218_v17  ;;  %v1138_v21 = vrot.slane %v11212_v47, 1  ;;  %v676_v16 = vadd.f32 %v10892_v48, %v640_v30 }
 0x15c   : > { %v835_v27 = vmul.f32 0.16666667, %v803_v49  ;;  %v818_v57 = vmul.f32 0.16666667, %v786_v41  ;;  %v1815_v1 = vmax.f32 %v1494_v19, %v14476_v56  ;;  %v1644_v4 = vunpack.c.l.bf16 %v1580_v38  ;;  %v11374_v56 = vld [vmem:[#allocation2] sm:$0x8] }
 0x15d   : > { %v3089_v3 = vpack.c.bf16 %v3057_v55, %v3057_v55  ;;  %v3088_v24 = vpack.c.bf16 %v3056_v8, %v3056_v8  ;;  %v1014_v22 = vunpack.c.l.bf16 %v950_v54  ;;  %v708_v51 = vadd.f32 3.0, %v676_v16 }
 0x15e   : > { %v867_v42 = vpack.c.bf16 %v835_v27, %v835_v27  ;;  %v14626_v18 = vmax.f32 %v14624_v59, %v14625_v45  ;;  %v2135_v15 = vmax.f32 %v1814_v63, %v2017_v28  ;;  %v11242_v6 = vrot.slane %v1965_v52, 4  ;;  %v11251_v28 = vld [vmem:[#allocation2 + $0xb0] sm:$0x8]  ;;  %v14628_v27 = vld [vmem:[#allocation16_spill] sm:$0xff] }
 0x15f   : > { %v1015_v53 = vunpack.c.l.bf16 %v11230_v61  ;;  %3154 = vrot.lane.b32.xlu1 %v3089_v3, %s10260_s20  ;;  %3282 = vst.msk [vmem:[#allocation2 + $0x8] sm:$0xf] %vm313_vm2, %v3089_v3  ;;  %3152 = vrot.lane.b32.xlu0 %v3088_v24, %s10260_s20  ;;  %v850_v39 = vpack.c.bf16 %v818_v57, %v818_v57  ;;  %v1255_v46 = vmax.f32 %v1014_v22, %v1138_v21  ;;  %v740_v19 = vmax.f32 %v708_v51, 0.0 }
 0x160   : > { %v2131_v58 = vmax.f32 %v14626_v18, %v10929_v37  ;;  %14627 = vst [vmem:[#allocation18_spill] sm:$0xff] %v11242_v6  ;;  %v2578_v37 = vmax.f32 %v11205_v2, %v11209_v11  ;;  %v11257_v50 = vmax.f32 %v1251_v9, %v11166_v33  ;;  %v2136_v32 = vmax.f32 %v1815_v1, %v11242_v6 }
 0x161   : > { %3281 = vst.msk [vmem:[#allocation2 + $0x4] sm:$0xf] %vm313_vm2, %v3088_v24  ;;  %v1700_v63 = vrot.slane %v1644_v4, 3  ;;  %v11260_v38 = vunpack.c.l.bf16 %v952_v29  ;;  %v1399_v49 = vrot.slane %v11212_v47, 2  ;;  %v2021_v41 = vrot.slane %v1644_v4, 4 }
 0x162   : > { %v2179_v31 = vpack.c.bf16 %v2131_v58, %v2131_v58  ;;  %931 = vst.msk [vmem:[#allocation2 + $0xf4] sm:$0xf] %vm313_vm2, %v867_v42  ;;  %v772_v30 = vmin.f32 %v740_v19, 6.0  ;;  %v2183_v54 = vpack.c.bf16 %v2135_v15, %v2135_v15  ;;  %v14477_v55 = vrot.slane %v11212_v47, 3  ;;  %v992_v29 = vld [vmem:[#allocation2 + $0xb8] sm:$0xf] }
 0x163   : > { %899 = vst.msk [vmem:[#allocation4 + $0x78] sm:$0xf] %vm313_vm2, %v867_v42  ;;  %v1140_v34 = vrot.slane %v1015_v53, 1  ;;  %v1030_v33 = vunpack.c.l.bf16 %v11251_v28  ;;  %v1496_v9 = vmax.f32 %v1255_v46, %v1399_v49  ;;  %v1813_v4 = vmax.f32 %v11257_v50, %v11173_v5  ;;  %v14630_v15 = vld [vmem:[#allocation14_spill] sm:$0xff] }
 0x164   : > { %v2291_v52 = vrot.slane %v2179_v31, 7  ;;  %914 = vst.msk [vmem:[#allocation2 + $0x68] sm:$0xf] %vm313_vm2, %v850_v39  ;;  %v804_v8 = vmul.f32 %v772_v30, %v676_v16  ;;  %v2184_v3 = vpack.c.bf16 %v2136_v32, %v2136_v32  ;;  %v14475_v24 = vrot.slane %v11212_v47, 4  ;;  %v1590_v31 = vld [vmem:[#allocation2 + $0xfc] sm:$0x1] }
 0x165   : > { %882 = vst.msk [vmem:[#allocation4 + $0x34] sm:$0xf] %vm313_vm2, %v850_v39  ;;  %v14474_v22 = vrot.slane %v11260_v38, 1  ;;  %v11284_v16 = vsel %vm1109_vm4, %v1136_v10, %v1138_v21  ;;  %v1042_v51 = vunpack.c.l.bf16 %v11269_v25  ;;  %v1701_v45 = vsel %vm1671_vm6, %v14477_v55, %v1700_v63  ;;  %v11322_v25 = vld [vmem:[#allocation2 + $0xbc] sm:$0x1] }
 0x166   : > { %v2292_v57 = vsel %vm11012_vm10, %v14628_v27, %v2291_v52  ;;  %v2293_v1 = vrot.slane %v2291_v52, 4  ;;  %14629 = vst [vmem:[#allocation17_spill] sm:$0xff] %v11284_v16  ;;  %v836_v42 = vmul.f32 0.16666667, %v804_v8  ;;  %v11294_v18 = vmax.f32 %v2578_v37, %v11218_v17 }
 0x167   : > { %2419 = vst.msk [vmem:[#allocation3 + $0x28] sm:$0xf] %vm313_vm2, %v2292_v57  ;;  %v1165_v58 = vrot.slane %v1030_v33, 1  ;;  %v1166_v39 = vrot.slane %v14630_v15, 1  ;;  %v11297_v46 = vrot.slane %v2183_v54, 7  ;;  %v1817_v10 = vmax.f32 %v1496_v9, %v1701_v45 }
 0x168   : > { %v2295_v59 = vsel %vm11012_vm10, %v2293_v1, %v11062_v40  ;;  %v868_v19 = vpack.c.bf16 %v836_v42, %v836_v42  ;;  %v11299_v28 = vunpack.c.l.bf16 %v992_v29  ;;  %v11301_v32 = vrot.slane %v2184_v3, 11 }
 0x169   : > { %v979_v21 = vld [vmem:[#allocation2 + $0xf4] sm:$0xf]  ;;  %v11306_v40 = vsel %vm1382_vm5, %v1398_v60, %v1399_v49  ;;  %v1142_v37 = vsel %vm1109_vm4, %v1140_v34, %v14474_v22  ;;  %2420 = vst.msk [vmem:[#allocation3 + $0x2c] sm:$0xf] %vm313_vm2, %v2295_v59  ;;  %v2022_v52 = vsel %vm1992_vm7, %v14475_v24, %v2021_v41  ;;  %v1185_v54 = vrot.slane %v1042_v51, 1 }
 0x16a   : > { %14631 = vst [vmem:[#allocation16_spill] sm:$0xff] %v11301_v32  ;;  %v11311_v63 = vunpack.c.l.bf16 %v979_v21  ;;  %v2577_v60 = vmax.f32 %v9007_v35, %v11203_v20  ;;  %v968_v49 = vld [vmem:[#allocation2 + $0xb8] sm:$0x7]  ;;  %v1654_v9 = vunpack.c.l.bf16 %v1590_v31  ;;  %v2576_v8 = vmax.f32 %v9006_v23, %v11205_v2  ;;  %v1911_v21 = vld [vmem:[#allocation2 + $0xf4] sm:$0xe] }
 0x16b   : > { %14632 = vst [vmem:[#allocation14_spill] sm:$0xff] %v11306_v40  ;;  %v1167_v27 = vsel %vm1109_vm4, %v1165_v58, %v1166_v39  ;;  %v11330_v41 = vmax.f32 %v1817_v10, %v2022_v52  ;;  %v11334_v57 = vmax.f32 %v1015_v53, %v1142_v37  ;;  %v1168_v1 = vrot.slane %v11299_v28, 1 }
 0x16c   : > { %932 = vst.msk [vmem:[#allocation2 + $0xf8] sm:$0xf] %vm313_vm2, %v868_v19  ;;  %v1186_v34 = vrot.slane %v11311_v63, 1  ;;  %v2737_v3 = vmax.f32 %v2577_v60, %v11207_v36  ;;  %v2736_v29 = vmax.f32 %v2576_v8, %v11209_v11  ;;  %v1032_v7 = vunpack.c.l.bf16 %v968_v49 }
 0x16d   : > { %900 = vst.msk [vmem:[#allocation4 + $0x7c] sm:$0xf] %vm313_vm2, %v868_v19  ;;  %v14480_v23 = vunpack.c.l.bf16 %v11322_v25  ;;  %v1271_v42 = vmax.f32 %v1030_v33, %v1167_v27  ;;  %v1416_v61 = vrot.slane %v14630_v15, 2  ;;  %v1417_v53 = vrot.slane %v11299_v28, 2  ;;  %v560_v19 = vpop.f32.mrf.mxu0 }
 0x16e   : > { %v1187_v2 = vsel %vm1109_vm4, %v1185_v54, %v1186_v34  ;;  %v1428_v59 = vrot.slane %v11311_v63, 2  ;;  %v1750_v45 = vrot.slane %v1654_v9, 3  ;;  %v2071_v58 = vrot.slane %v1654_v9, 4  ;;  %v3361_v54 = vld [vmem:[#allocation2 + $0x8] sm:$0xf] }
 0x16f   : > { %v2579_v10 = vmax.f32 %v11203_v20, %v11207_v36  ;;  %v2898_v11 = vmax.f32 %v2737_v3, %v11216_v26  ;;  %v2897_v37 = vmax.f32 %v2736_v29, %v11218_v17  ;;  %v11351_v33 = vsel %vm1109_vm4, %v1166_v39, %v1168_v1 }
 0x170   : > { %v9960_v31 = vld [vmem:[#allocation3 + $0x28] sm:$0xff]   ;;  %v1273_v52 = vmax.f32 %v1032_v7, %v1168_v1  ;;  %v1283_v60 = vmax.f32 %v1042_v51, %v1187_v2  ;;  %v623_v49 = vmul.f32 %v10879_v43, %v560_v19  ;;  %v11361_v3 = vsel %vm1382_vm5, %v1416_v61, %v1417_v53  ;;  %v3314_v7 = vld [vmem:[#allocation2 + $0x4] sm:$0xf] }
 0x171   : > { %v11355_v9 = vmax.f32 %v2579_v10, %v11216_v26  ;;  %v11358_v27 = vunpack.c.h.bf16 %v9960_v31  ;;  %v11363_v17 = vmax.f32 %v1271_v42, %v1416_v61  ;;  %v1975_v29 = vunpack.c.l.bf16 %v1911_v21 }
 0x172   : > { %v1524_v51 = vmax.f32 %v1283_v60, %v1428_v59  ;;  %v11368_v26 = vunpack.c.l.bf16 %v3361_v54  ;;  %v1747_v2 = vrot.slane %v11311_v63, 3  ;;  %v659_v10 = vadd.f32 %v10892_v48, %v623_v49 }
 0x173   : > { %v980_v36 = vld [vmem:[#allocation2 + $0xf8] sm:$0x7]  ;;  %14633 = vst [vmem:[#allocation23_spill] sm:$0xff] %v11358_v27  ;;  %v11372_v19 = vmax.f32 %v1273_v52, %v1417_v53  ;;  %v11377_v55 = vunpack.c.l.bf16 %v9960_v31  ;;  %v2068_v20 = vrot.slane %v1975_v29, 4  ;;  %v2134_v48 = vmax.f32 %v1813_v4, %v11196_v14  ;;  %v11395_v4 = vld [vmem:[%s14452_s2] ss:$0 sm:$0xff] }
 0x174   : > { %v996_v8 = vld [vmem:[#allocation2 + $0xf8] sm:$0xf]  ;;  %v1044_v22 = vunpack.c.l.bf16 %v980_v36  ;;  %v1845_v60 = vmax.f32 %v1524_v51, %v1747_v2  ;;  %v691_v21 = vadd.f32 3.0, %v659_v10  ;;  %v11384_v53 = vunpack.c.l.bf16 %v3314_v7  ;;  %v3315_v7 = vld [vmem:[#allocation2 + $0x8] sm:$0x7] }
 0x175   : > { %v1060_v1 = vunpack.c.l.bf16 %v996_v8  ;;  %v3059_v8 = vmax.f32 %v2898_v11, %v11358_v27  ;;  %v562_v36 = vpop.f32.mrf.mxu0  ;;  %v3377_v51 = vunpack.c.l.bf16 %v11374_v56  ;;  %v3058_v5 = vmax.f32 %v2897_v37, %v11377_v55 }
 0x176   : > { %v4049_v35 = vrot.slane %v11384_v53, 3 }
 0x177   : > { %v1188_v42 = vrot.slane %v1060_v1, 1  ;;  %v1429_v61 = vrot.slane %v1060_v1, 2  ;;  %v1748_v24 = vrot.slane %v1060_v1, 3  ;;  %v2069_v49 = vrot.slane %v1060_v1, 4 }
 0x178   : > { %v3091_v39 = vpack.c.bf16 %v3059_v8, %v3059_v8  ;;  %v3090_v37 = vpack.c.bf16 %v3058_v5, %v3058_v5 }
 0x179   : > { %v1189_v54 = vsel %vm1109_vm4, %v1186_v34, %v1188_v42  ;;  %v1285_v30 = vmax.f32 %v1044_v22, %v1188_v42  ;;  %v1430_v11 = vsel %vm1382_vm5, %v1428_v59, %v1429_v61  ;;  %v1751_v34 = vsel %vm1671_vm6, %v1748_v24, %v1750_v45 }
 0x17a   : > { %v1284_v52 = vmax.f32 %v11311_v63, %v1189_v54  ;;  %v2166_v22 = vmax.f32 %v1845_v60, %v2068_v20  ;;  %v723_v42 = vmax.f32 %v691_v21, 0.0  ;;  %v1749_v14 = vsel %vm1671_vm6, %v1747_v2, %v1748_v24  ;;  %3158 = vrot.lane.b32.xlu1 %v3091_v39, %s10260_s20  ;;  %3284 = vst.msk [vmem:[#allocation2 + $0x18] sm:$0xf] %vm313_vm2, %v3091_v39 }
 0x17b   : > { %v1526_v31 = vmax.f32 %v1285_v30, %v1429_v61  ;;  %v624_v63 = vmul.f32 %v11395_v4, %v562_v36  ;;  %v2182_v59 = vpack.c.bf16 %v2134_v48, %v2134_v48  ;;  %v2072_v45 = vsel %vm1992_vm7, %v2069_v49, %v2071_v58  ;;  %v11405_v61 = vld [vmem:[%s14453_s3] ss:$0 sm:$0xff]  ;;  %3156 = vrot.lane.b32.xlu0 %v3090_v37, %s10260_s20 }
 0x17c   : > { %v1525_v29 = vmax.f32 %v1284_v52, %v1430_v11  ;;  %v755_v1 = vmin.f32 %v723_v42, 6.0  ;;  %v2070_v24 = vsel %vm1992_vm7, %v2068_v20, %v2069_v49  ;;  %v2214_v58 = vpack.c.bf16 %v2166_v22, %v2166_v22  ;;  %3283 = vst.msk [vmem:[#allocation2 + $0x14] sm:$0xf] %vm313_vm2, %v3090_v37  ;;  %v9929_v48 = vld [vmem:[#allocation3 + $0x80] sm:$0xff]  }
 0x17d   : > { %v1847_v50 = vmax.f32 %v1526_v31, %v1751_v34  ;;  %v660_v60 = vadd.f32 %v11405_v61, %v624_v63  ;;  %v2298_v21 = vrot.slane %v2182_v59, 7  ;;  %v11412_v39 = vrot.slane %v14480_v23, 3  ;;  %v11420_v34 = vld [vmem:[#allocation3 + $0x78] sm:$0xff]   ;;  %v11425_v63 = vld [vmem:[#allocation2 + $0x4] sm:$0xe] }
 0x17e   : > { %v1846_v30 = vmax.f32 %v1525_v29, %v1749_v14  ;;  %v787_v54 = vmul.f32 %v755_v1, %v659_v10  ;;  %v3490_v20 = vrot.slane %v11384_v53, 1  ;;  %v3489_v36 = vrot.slane %v3377_v51, 1  ;;  %14634 = vst [vmem:[#allocation24_spill] sm:$0xff] %v11420_v34  ;;  %v565_v29 = vpop.f32.mrf.mxu0 }
 0x17f   : > { %v2168_v2 = vmax.f32 %v1847_v50, %v2072_v45  ;;  %v692_v52 = vadd.f32 3.0, %v660_v60  ;;  %v2299_v49 = vsel %vm11012_vm10, %v11087_v0, %v2298_v21  ;;  %v3379_v10 = vunpack.c.l.bf16 %v3315_v7  ;;  %v11428_v7 = vld [vmem:[#allocation2 + $0x70] sm:$0x8] }
 0x180   : > { %v2167_v8 = vmax.f32 %v1846_v30, %v2070_v24  ;;  %v819_v22 = vmul.f32 0.16666667, %v787_v54  ;;  %2421 = vst.msk [vmem:[#allocation3 + $0x30] sm:$0xf] %vm313_vm2, %v2299_v49  ;;  %v3492_v42 = vrot.slane %v11368_v26, 1  ;;  %v625_v14 = vmul.f32 %v11395_v4, %v565_v29  ;;  %v11438_v49 = vld [vmem:[#allocation3 + $0x90] sm:$0xff]  }
 0x181   : > { %v2216_v31 = vpack.c.bf16 %v2168_v2, %v2168_v2  ;;  %v724_v5 = vmax.f32 %v692_v52, 0.0  ;;  %v2300_v50 = vrot.slane %v2298_v21, 4  ;;  %v8760_v0 = vrot.slane %v2214_v58, 11 }
 0x182   : > { %v2215_v11 = vpack.c.bf16 %v2167_v8, %v2167_v8  ;;  %v9066_v30 = vunpack.c.l.bf16 %v9929_v48  ;;  %v851_v45 = vpack.c.bf16 %v819_v22, %v819_v22  ;;  %v14478_v1 = vunpack.c.l.bf16 %v11420_v34  ;;  %v11440_v22 = vld [vmem:[#allocation2 + $0x7c] sm:$0x1] }
 0x183   : > { %v9067_v37 = vunpack.c.h.bf16 %v9929_v48  ;;  %v756_v24 = vmin.f32 %v724_v5, 6.0  ;;  %v3491_v2 = vsel %vm1109_vm4, %v3489_v36, %v3490_v20  ;;  %v2378_v52 = vrot.slane %v2216_v31, 7 }
 0x184   : > { %v2375_v59 = vrot.slane %v2215_v11, 7  ;;  %915 = vst.msk [vmem:[#allocation2 + $0x74] sm:$0xf] %vm313_vm2, %v851_v45  ;;  %v661_v21 = vadd.f32 %v11405_v61, %v625_v14  ;;  %v14479_v48 = vunpack.c.h.bf16 %v11420_v34  ;;  %v2302_v36 = vsel %vm11012_vm10, %v2300_v50, %v11297_v46  ;;  %v11449_v14 = vld [vmem:[#allocation3 + $0x98] sm:$0xff]   ;;  %v11459_v50 = vld [vmem:[#allocation2 + $0xc] sm:$0x1] }
 0x185   : > { %v788_v11 = vmul.f32 %v756_v24, %v660_v60  ;;  %v3619_v31 = vmax.f32 %v3379_v10, %v3492_v42  ;;  %v2604_v5 = vmax.f32 %v14478_v1, %v9066_v30  ;;  %883 = vst.msk [vmem:[#allocation4 + $0x38] sm:$0xf] %vm313_vm2, %v851_v45  ;;  %v3493_v46 = vsel %vm1109_vm4, %v3490_v20, %v3492_v42  ;;  %v14636_v1 = vld [vmem:[#allocation8_spill] sm:$0xff] }
 0x186   : > { %v2376_v8 = vsel %vm11012_vm10, %v8760_v0, %v2375_v59  ;;  %v2377_v54 = vrot.slane %v2375_v59, 4  ;;  %v1018_v0 = vunpack.c.l.bf16 %v11428_v7  ;;  %v2605_v60 = vmax.f32 %v14479_v48, %v9067_v37  ;;  %2422 = vst.msk [vmem:[#allocation3 + $0x34] sm:$0xf] %vm313_vm2, %v2302_v36 }
 0x187   : > { %2443 = vst.msk [vmem:[#allocation3 + $0x88] sm:$0xf] %vm313_vm2, %v2376_v8  ;;  %v820_v59 = vmul.f32 0.16666667, %v788_v11  ;;  %v3617_v10 = vmax.f32 %v3377_v51, %v3491_v2  ;;  %v9194_v30 = vunpack.c.l.bf16 %v11438_v49  ;;  %v9195_v24 = vunpack.c.h.bf16 %v11438_v49 }
 0x188   : > { %v2379_v29 = vsel %vm11012_vm10, %v2377_v54, %v2378_v52  ;;  %v14481_v7 = vunpack.c.l.bf16 %v11440_v22  ;;  %v693_v45 = vadd.f32 3.0, %v661_v21  ;;  %v9258_v8 = vunpack.c.l.bf16 %v11449_v14 }
 0x189   : > { %2444 = vst.msk [vmem:[#allocation3 + $0x8c] sm:$0xf] %vm313_vm2, %v2379_v29  ;;  %v852_v37 = vpack.c.bf16 %v820_v59, %v820_v59  ;;  %v3761_v54 = vrot.slane %v11384_v53, 2  ;;  %v3762_v20 = vrot.slane %v11368_v26, 2  ;;  %v1145_v56 = vrot.slane %v1018_v0, 1  ;;  %v14635_v59 = vld [vmem:[#allocation9_spill] sm:$0xff] }
 0x18a   : > { %v725_v51 = vmax.f32 %v693_v45, 0.0  ;;  %v3618_v42 = vmax.f32 %v11384_v53, %v3493_v46  ;;  %v4017_v2 = vunpack.c.l.bf16 %v11459_v50  ;;  %v9259_v52 = vunpack.c.h.bf16 %v11449_v14 }
 0x18b   : > { %v955_v49 = vld [vmem:[#allocation2 + $0x74] sm:$0xf]  ;;  %916 = vst.msk [vmem:[#allocation2 + $0x78] sm:$0xf] %vm313_vm2, %v852_v37  ;;  %v2900_v36 = vmax.f32 %v11355_v9, %v11358_v27  ;;  %v3857_v29 = vmax.f32 %v3617_v10, %v3761_v54  ;;  %v2334_v48 = vsel %vm11012_vm10, %v14636_v1, %v14635_v59  ;;  %v11482_v46 = vrot.slane %v14481_v7, 3 }
 0x18c   : > { %v1903_v11 = vld [vmem:[#allocation2 + $0x74] sm:$0xe]  ;;  %v11478_v45 = vunpack.c.l.bf16 %v955_v49  ;;  %884 = vst.msk [vmem:[#allocation4 + $0x3c] sm:$0xf] %vm313_vm2, %v852_v37  ;;  %v757_v14 = vmin.f32 %v725_v51, 6.0  ;;  %v3763_v9 = vsel %vm1382_vm5, %v3761_v54, %v3762_v20  ;;  %v11488_v10 = vmax.f32 %v3619_v31, %v3762_v20 }
 0x18d   : > { %v1967_v23 = vunpack.c.l.bf16 %v1903_v11  ;;  %2431 = vst.msk [vmem:[#allocation3 + $0x58] sm:$0xf] %vm313_vm2, %v2334_v48  ;;  %v11493_v43 = vmax.f32 %v3618_v42, %v3763_v9  ;;  %v4050_v37 = vrot.slane %v11368_v26, 3  ;;  %v4052_v51 = vrot.slane %v4017_v2, 3  ;;  %v9961_v11 = vld [vmem:[#allocation3 + $0x30] sm:$0xff]  }
 0x18e   : > { %v1146_v49 = vrot.slane %v11478_v45, 1  ;;  %v789_v50 = vmul.f32 %v757_v14, %v661_v21  ;;  %v4177_v27 = vmax.f32 %v3857_v29, %v4049_v35  ;;  %v1404_v54 = vrot.slane %v11478_v45, 2 }
 0x18f   : > { %v1707_v53 = vrot.slane %v11478_v45, 3  ;;  %v11499_v48 = vunpack.c.h.bf16 %v9961_v11  ;;  %v2028_v34 = vrot.slane %v1967_v23, 4  ;;  %v4051_v21 = vsel %vm1671_vm6, %v4049_v35, %v4050_v37 }
 0x190   : > { %v9944_v1 = vld [vmem:[#allocation3 + $0x88] sm:$0xff]   ;;  %v1147_v31 = vsel %vm1109_vm4, %v1145_v56, %v1146_v49  ;;  %v821_v9 = vmul.f32 0.16666667, %v789_v50  ;;  %v4053_v29 = vsel %vm1671_vm6, %v4050_v37, %v4052_v51  ;;  %v14637_v16 = vunpack.c.l.bf16 %v11425_v63  ;;  %v567_v51 = vpop.f32.mrf.mxu0 }
 0x191   : > { %v9130_v7 = vunpack.c.l.bf16 %v9944_v1  ;;  %v9131_v58 = vunpack.c.h.bf16 %v9944_v1  ;;  %v1259_v42 = vmax.f32 %v1018_v0, %v1147_v31  ;;  %v3061_v6 = vmax.f32 %v2900_v36, %v11499_v48 }
 0x192   : > { %v988_v62 = vld [vmem:[#allocation2 + $0x78] sm:$0xf]  ;;  %v4369_v44 = vrot.slane %v14637_v16, 4  ;;  %v4370_v0 = vrot.slane %v11368_v26, 4  ;;  %v4372_v36 = vrot.slane %v4017_v2, 4 }
 0x193   : > { %v2764_v20 = vmax.f32 %v2604_v5, %v9130_v7  ;;  %v2765_v32 = vmax.f32 %v2605_v60, %v9131_v58  ;;  %v1500_v1 = vmax.f32 %v1259_v42, %v1404_v54  ;;  %v956_v47 = vld [vmem:[#allocation2 + $0x78] sm:$0x7]  ;;  %v1052_v40 = vunpack.c.l.bf16 %v988_v62 }
 0x194   : > { %v853_v5 = vpack.c.bf16 %v821_v9, %v821_v9  ;;  %v3093_v58 = vpack.c.bf16 %v3061_v6, %v3061_v6  ;;  %v1020_v50 = vunpack.c.l.bf16 %v956_v47  ;;  %v4178_v62 = vmax.f32 %v11493_v43, %v4051_v21 }
 0x195   : > { %v2925_v14 = vmax.f32 %v2764_v20, %v9194_v30  ;;  %v2926_v56 = vmax.f32 %v2765_v32, %v9195_v24  ;;  %v1821_v7 = vmax.f32 %v1500_v1, %v1707_v53  ;;  %v1148_v35 = vrot.slane %v1052_v40, 1 }
 0x196   : > { %v1405_v31 = vrot.slane %v1052_v40, 2  ;;  %v1708_v37 = vrot.slane %v1052_v40, 3  ;;  %917 = vst.msk [vmem:[#allocation2 + $0x84] sm:$0xf] %vm313_vm2, %v853_v5  ;;  %3162 = vrot.lane.b32.xlu1 %v3093_v58, %s10260_s20  ;;  %v4179_v6 = vmax.f32 %v11488_v10, %v4053_v29  ;;  %v2029_v63 = vrot.slane %v1052_v40, 4 }
 0x197   : > { %v3086_v23 = vmax.f32 %v2925_v14, %v9258_v8  ;;  %v3087_v60 = vmax.f32 %v2926_v56, %v9259_v52  ;;  %885 = vst.msk [vmem:[#allocation4 + $0x40] sm:$0xf] %vm313_vm2, %v853_v5  ;;  %v1149_v26 = vsel %vm1109_vm4, %v1146_v49, %v1148_v35  ;;  %v1261_v47 = vmax.f32 %v1020_v50, %v1148_v35 }
 0x198   : > { %v14640_v30 = vunpack.c.l.bf16 %v11440_v22  ;;  %3286 = vst.msk [vmem:[#allocation2 + $0x28] sm:$0xf] %vm313_vm2, %v3093_v58  ;;  %v2142_v8 = vmax.f32 %v1821_v7, %v2028_v34  ;;  %v1260_v2 = vmax.f32 %v11478_v45, %v1149_v26  ;;  %v4371_v52 = vsel %vm1992_vm7, %v4369_v44, %v4370_v0 }
 0x199   : > { %v11509_v32 = vpack.c.bf16 %v3086_v23, %v3086_v23  ;;  %v11511_v16 = vpack.c.bf16 %v3087_v60, %v3087_v60  ;;  %v4373_v43 = vsel %vm1992_vm7, %v4370_v0, %v4372_v36  ;;  %v1406_v40 = vsel %vm1382_vm5, %v1404_v54, %v1405_v31 }
 0x19a   : > { %v2031_v24 = vrot.slane %v14640_v30, 4  ;;  %v1502_v10 = vmax.f32 %v1261_v47, %v1405_v31  ;;  %v1709_v22 = vsel %vm1671_vm6, %v1707_v53, %v1708_v37  ;;  %v4497_v49 = vmax.f32 %v4177_v27, %v4369_v44 }
 0x19b   : > { %14638 = vst [vmem:[#allocation9_spill] sm:$0xff] %v11509_v32  ;;  %v1501_v20 = vmax.f32 %v1260_v2, %v1406_v40  ;;  %v1711_v42 = vsel %vm1671_vm6, %v1708_v37, %v11482_v46  ;;  %v4498_v9 = vmax.f32 %v4178_v62, %v4371_v52  ;;  %v4499_v45 = vmax.f32 %v4179_v6, %v4373_v43 }
 0x19c   : > { %14639 = vst [vmem:[#allocation8_spill] sm:$0xff] %v11511_v16  ;;  %v1823_v21 = vmax.f32 %v1502_v10, %v1711_v42  ;;  %v2032_v29 = vsel %vm1992_vm7, %v2029_v63, %v2031_v24  ;;  %v4545_v14 = vpack.c.bf16 %v4497_v49, %v4497_v49  ;;  %v11532_v56 = vunpack.c.l.bf16 %v9961_v11  ;;  %v1902_v24 = vld [vmem:[#allocation2 + $0x64] sm:$0xe] }
 0x19d   : > { %3311 = vst.msk [vmem:[#allocation2 + $0xf4] sm:$0xf] %vm313_vm2, %v11509_v32  ;;  %v1822_v1 = vmax.f32 %v1501_v20, %v1709_v22  ;;  %v4546_v5 = vpack.c.bf16 %v4498_v9, %v4498_v9  ;;  %v4547_v54 = vpack.c.bf16 %v4499_v45, %v4499_v45  ;;  %v626_v58 = vmul.f32 %v11395_v4, %v567_v51  ;;  %v14648_v51 = vld [vmem:[#allocation15_spill] sm:$0xff] }
 0x19e   : > { %3312 = vst.msk [vmem:[#allocation2 + $0xf8] sm:$0xf] %vm313_vm2, %v11511_v16  ;;  %v2030_v44 = vsel %vm1992_vm7, %v2028_v34, %v2029_v63  ;;  %v2144_v27 = vmax.f32 %v1823_v21, %v2032_v29  ;;  %v8761_v53 = vrot.slane %v4545_v14, 11  ;;  %v14641_v46 = vmax.f32 %v11294_v18, %v11377_v55 }
 0x19f   : > { %v2190_v23 = vpack.c.bf16 %v2142_v8, %v2142_v8  ;;  %v2143_v60 = vmax.f32 %v1822_v1, %v2030_v44  ;;  %v4643_v7 = vrot.slane %v4546_v5, 7  ;;  %v662_v11 = vadd.f32 %v11405_v61, %v626_v58  ;;  %v987_v1 = vld [vmem:[#allocation2 + $0x68] sm:$0xf]  ;;  %v3362_v58 = vld [vmem:[#allocation2 + $0x18] sm:$0xf] }
 0x1a0   : > { %v3060_v0 = vmax.f32 %v14641_v46, %v11532_v56  ;;  %v2192_v36 = vpack.c.bf16 %v2144_v27, %v2144_v27  ;;  %v4646_v50 = vrot.slane %v4547_v54, 7  ;;  %v14642_v4 = vmax.f32 %v14630_v15, %v11351_v33 }
 0x1a1   : > { %v2191_v31 = vpack.c.bf16 %v2143_v60, %v2143_v60  ;;  %v4644_v37 = vsel %vm11012_vm10, %v8761_v53, %v4643_v7  ;;  %v4645_v62 = vrot.slane %v4643_v7, 4  ;;  %v694_v18 = vadd.f32 3.0, %v662_v11  ;;  %v14653_v7 = vld [vmem:[#allocation12_spill] sm:$0xff] }
 0x1a2   : > { %v3092_v35 = vpack.c.bf16 %v3060_v0, %v3060_v0  ;;  %v1513_v34 = vmax.f32 %v14642_v4, %v11361_v3  ;;  %v14643_v6 = vrot.slane %v11260_v38, 2  ;;  %v1702_v61 = vrot.slane %v11260_v38, 3  ;;  %4785 = vst.msk [vmem:[#allocation3 + $0x10] sm:$0xf] %vm313_vm2, %v4644_v37  ;;  %v14651_v0 = vld [vmem:[#allocation10_spill] sm:$0xff] }
 0x1a3   : > { %v14644_v47 = vrot.slane %v11299_v28, 3  ;;  %v14645_v33 = vrot.slane %v14630_v15, 3  ;;  %v8752_v8 = vrot.slane %v2190_v23, 11  ;;  %v2319_v2 = vrot.slane %v2191_v31, 7  ;;  %v14655_v31 = vld [vmem:[#allocation13_spill] sm:$0xff] }
 0x1a4   : > { %v1497_v26 = vmax.f32 %v11334_v57, %v14643_v6  ;;  %3160 = vrot.lane.b32.xlu0 %v3092_v35, %s10260_s20  ;;  %v4647_v57 = vsel %vm11012_vm10, %v4645_v62, %v4646_v50  ;;  %3285 = vst.msk [vmem:[#allocation2 + $0x24] sm:$0xf] %vm313_vm2, %v3092_v35  ;;  %v2322_v40 = vrot.slane %v2192_v36, 7  ;;  %v726_v10 = vmax.f32 %v694_v18, 0.0  ;;  %v14654_v36 = vld [vmem:[#allocation11_spill] sm:$0xff] }
 0x1a5   : > { %v1729_v3 = vsel %vm1671_vm6, %v14645_v33, %v14644_v47  ;;  %v14646_v63 = vmov %v14645_v33  ;;  %v14647_v52 = vmov %v14644_v47  ;;  %4786 = vst.msk [vmem:[#allocation3 + $0x14] sm:$0xf] %vm313_vm2, %v4647_v57  ;;  %v2320_v22 = vsel %vm11012_vm10, %v8752_v8, %v2319_v2  ;;  %v1581_v35 = vld [vmem:[#allocation2 + $0x6c] sm:$0x1] }
 0x1a6   : > { %v1833_v30 = vmax.f32 %v11363_v17, %v14646_v63  ;;  %v1731_v43 = vsel %vm1671_vm6, %v14647_v52, %v11412_v39  ;;  %v1834_v15 = vmax.f32 %v1513_v34, %v1729_v3  ;;  %v2321_v49 = vrot.slane %v2319_v2, 4  ;;  %2427 = vst.msk [vmem:[#allocation3 + $0x48] sm:$0xf] %vm313_vm2, %v2320_v22  ;;  %v14657_v63 = vld [vmem:[#allocation14_spill] sm:$0xff]  ;;  %v953_v52 = vld [vmem:[#allocation2 + $0x68] sm:$0x7] }
 0x1a7   : > { %v1835_v17 = vmax.f32 %v11372_v19, %v1731_v43  ;;  %v14649_v20 = vunpack.c.l.bf16 %v14648_v51  ;;  %v2049_v9 = vrot.slane %v11299_v28, 4  ;;  %v2186_v45 = vpack.c.bf16 %v11330_v41, %v11330_v41  ;;  %v14661_v51 = vld [vmem:[#allocation22_spill] sm:$0xff] }
 0x1a8   : > { %v1966_v39 = vunpack.c.l.bf16 %v1902_v24  ;;  %v758_v21 = vmin.f32 %v726_v10, 6.0  ;;  %v14650_v29 = vunpack.c.l.bf16 %v11322_v25  ;;  %v1818_v19 = vmax.f32 %v1497_v26, %v1702_v61  ;;  %v14659_v24 = vld [vmem:[#allocation17_spill] sm:$0xff] }
 0x1a9   : > { %v2048_v42 = vrot.slane %v14649_v20, 4  ;;  %v2323_v5 = vsel %vm11012_vm10, %v2321_v49, %v2322_v40  ;;  %v2206_v25 = vpack.c.bf16 %v11067_v12, %v11067_v12  ;;  %v14652_v23 = vrot.slane %v14635_v59, 4  ;;  %v11622_v40 = vld [vmem:[#allocation2 + $0x20] sm:$0x8] }
 0x1aa   : > { %v2051_v14 = vrot.slane %v14650_v29, 4  ;;  %2428 = vst.msk [vmem:[#allocation3 + $0x4c] sm:$0xf] %vm313_vm2, %v2323_v5  ;;  %v790_v41 = vmul.f32 %v758_v21, %v662_v11  ;;  %v2341_v50 = vsel %vm11012_vm10, %v14654_v36, %v14653_v7  ;;  %v11598_v11 = vunpack.c.l.bf16 %v987_v1  ;;  %v3318_v29 = vld [vmem:[#allocation2 + $0x18] sm:$0x7] }
 0x1ab   : > { %v2050_v54 = vsel %vm1992_vm7, %v2048_v42, %v2049_v9  ;;  %v2154_v28 = vmax.f32 %v1833_v30, %v2048_v42  ;;  %v2337_v60 = vsel %vm11012_vm10, %v14652_v23, %v14651_v0  ;;  %v14656_v12 = vrot.slane %v14653_v7, 4  ;;  %2433 = vst.msk [vmem:[#allocation3 + $0x60] sm:$0xf] %vm313_vm2, %v2341_v50  ;;  %v14658_v30 = vld [vmem:[#allocation21_spill] sm:$0xff]  ;;  %v3320_v10 = vld [vmem:[#allocation2 + $0x24] sm:$0xf] }
 0x1ac   : > { %v2052_v44 = vsel %vm1992_vm7, %v2049_v9, %v2051_v14  ;;  %v2155_v27 = vmax.f32 %v1834_v15, %v2050_v54  ;;  %v822_v4 = vmul.f32 0.16666667, %v790_v41  ;;  %v11605_v59 = vrot.slane %v2186_v45, 7  ;;  %2432 = vst.msk [vmem:[#allocation3 + $0x5c] sm:$0xf] %vm313_vm2, %v2337_v60 }
 0x1ad   : > { %v2156_v53 = vmax.f32 %v1835_v17, %v2052_v44  ;;  %v2202_v46 = vpack.c.bf16 %v2154_v28, %v2154_v28  ;;  %v2344_v37 = vsel %vm11012_vm10, %v14656_v12, %v14655_v31  ;;  %v11607_v62 = vrot.slane %v1966_v39, 4  ;;  %v14665_v39 = vld [vmem:[#allocation18_spill] sm:$0xff]  ;;  %v3363_v54 = vld [vmem:[#allocation2 + $0x28] sm:$0xf] }
 0x1ae   : > { %v2203_v34 = vpack.c.bf16 %v2155_v27, %v2155_v27  ;;  %v11609_v18 = vunpack.c.l.bf16 %v3362_v58  ;;  %v854_v26 = vpack.c.bf16 %v822_v4, %v822_v4  ;;  %v2354_v3 = vrot.slane %v2206_v25, 7  ;;  %2434 = vst.msk [vmem:[#allocation3 + $0x64] sm:$0xf] %vm313_vm2, %v2344_v37  ;;  %v3317_v14 = vld [vmem:[#allocation2 + $0x14] sm:$0xf] }
 0x1af   : > { %v2204_v6 = vpack.c.bf16 %v2156_v53, %v2156_v53  ;;  %v8756_v47 = vrot.slane %v2202_v46, 11  ;;  %v14660_v8 = vmax.f32 %v14658_v30, %v14659_v24  ;;  %v11620_v57 = vmax.f32 %v1818_v19, %v11607_v62  ;;  %v14666_v19 = vld [vmem:[#allocation19_spill] sm:$0xff]  ;;  %v4274_v53 = vld [vmem:[#allocation2 + $0x14] sm:$0xe] }
 0x1b0   : > { %v2347_v33 = vrot.slane %v2203_v34, 7  ;;  %v1645_v43 = vunpack.c.l.bf16 %v1581_v35  ;;  %v1143_v15 = vrot.slane %v11598_v11, 1  ;;  %918 = vst.msk [vmem:[#allocation2 + $0x88] sm:$0xf] %vm313_vm2, %v854_v26  ;;  %v14662_v20 = vrot.slane %v14661_v51, 3  ;;  %v14668_v34 = vld [vmem:[#allocation20_spill] sm:$0xff] }
 0x1b1   : > { %v11617_v2 = vmax.f32 %v14660_v8, %v14657_v63  ;;  %v2350_v49 = vrot.slane %v2204_v6, 7  ;;  %v14663_v42 = vrot.slane %v14658_v30, 3  ;;  %v14664_v45 = vrot.slane %v14661_v51, 4  ;;  %886 = vst.msk [vmem:[#allocation4 + $0x44] sm:$0xf] %vm313_vm2, %v854_v26  ;;  %v14673_v8 = vld [vmem:[#allocation16_spill] sm:$0xff] }
 0x1b2   : > { %v2348_v17 = vsel %vm11012_vm10, %v8756_v47, %v2347_v33  ;;  %v2349_v22 = vrot.slane %v2347_v33, 4  ;;  %v2355_v1 = vsel %vm11012_vm10, %v14666_v19, %v2354_v3  ;;  %v3497_v5 = vrot.slane %v11609_v18, 1 }
 0x1b3   : > { %v11634_v9 = vsel %vm1671_vm6, %v14663_v42, %v14662_v20  ;;  %v11640_v21 = vsel %vm1992_vm7, %v14665_v39, %v14664_v45  ;;  %v3383_v28 = vunpack.c.l.bf16 %v11622_v40  ;;  %v11648_v58 = vunpack.c.l.bf16 %v3320_v10  ;;  %2435 = vst.msk [vmem:[#allocation3 + $0x68] sm:$0xf] %vm313_vm2, %v2348_v17  ;;  %v9910_v47 = vld [vmem:[#allocation3 + $0x58] sm:$0xff]  }
 0x1b4   : > { %v2351_v41 = vsel %vm11012_vm10, %v2349_v22, %v2350_v49  ;;  %v1816_v44 = vmax.f32 %v11617_v2, %v11634_v9  ;;  %v11657_v25 = vrot.slane %v1645_v43, 3  ;;  %v2356_v46 = vrot.slane %v2354_v3, 4  ;;  %2437 = vst.msk [vmem:[#allocation3 + $0x70] sm:$0xf] %vm313_vm2, %v2355_v1  ;;  %v11701_v22 = vld [vmem:[#allocation2 + $0x24] sm:$0xe] }
 0x1b5   : > { %2436 = vst.msk [vmem:[#allocation3 + $0x6c] sm:$0xf] %vm313_vm2, %v2351_v41  ;;  %v1017_v0 = vunpack.c.l.bf16 %v953_v52  ;;  %v1402_v23 = vrot.slane %v11598_v11, 2  ;;  %v11661_v60 = vrot.slane %v1645_v43, 4  ;;  %v3382_v7 = vunpack.c.l.bf16 %v3318_v29  ;;  %v11680_v33 = vld [vmem:[#allocation3 + $0x60] sm:$0xff]  }
 0x1b6   : > { %v14667_v36 = vrot.slane %v11260_v38, 1  ;;  %v11669_v35 = vunpack.c.l.bf16 %v3317_v14  ;;  %v11671_v4 = vunpack.c.l.bf16 %v3363_v54  ;;  %v2358_v31 = vsel %vm11012_vm10, %v2356_v46, %v14668_v34 }
 0x1b7   : > { %v3622_v12 = vmax.f32 %v3382_v7, %v3497_v5  ;;  %v4338_v37 = vunpack.c.l.bf16 %v4274_v53  ;;  %v3499_v6 = vrot.slane %v3383_v28, 1  ;;  %v3500_v26 = vrot.slane %v11648_v58, 1  ;;  %2438 = vst.msk [vmem:[#allocation3 + $0x74] sm:$0xf] %vm313_vm2, %v2358_v31 }
 0x1b8   : > { %v11667_v50 = vsel %vm1109_vm4, %v14667_v36, %v1143_v15  ;;  %v11682_v3 = vmax.f32 %v1017_v0, %v1143_v15  ;;  %v1703_v63 = vrot.slane %v11598_v11, 3  ;;  %v14492_v24 = vunpack.c.h.bf16 %v11680_v33 }
 0x1b9   : > { %v14669_v2 = vrot.slane %v11260_v38, 2  ;;  %v3765_v43 = vrot.slane %v11609_v18, 2  ;;  %v14491_v40 = vunpack.c.l.bf16 %v11680_v33  ;;  %v4055_v10 = vrot.slane %v11609_v18, 3 }
 0x1ba   : > { %v3495_v15 = vrot.slane %v11669_v35, 1  ;;  %v14494_v17 = vrot.slane %v11671_v4, 1  ;;  %v8987_v49 = vunpack.c.h.bf16 %v9910_v47  ;;  %v11705_v20 = vrot.slane %v4338_v37, 4 }
 0x1bb   : > { %v11694_v52 = vsel %vm1382_vm5, %v14669_v2, %v1402_v23  ;;  %v11703_v51 = vmax.f32 %v3622_v12, %v3765_v43  ;;  %v3501_v42 = vsel %vm1109_vm4, %v3499_v6, %v3500_v26  ;;  %v8986_v45 = vunpack.c.l.bf16 %v9910_v47  ;;  %v3316_v47 = vld [vmem:[#allocation2 + $0x10] sm:$0x8]  ;;  %v3954_v2 = vld [vmem:[#allocation2 + $0x1c] sm:$0x1] }
 0x1bc   : > { %v9940_v9 = vld [vmem:[#allocation3 + $0x68] sm:$0xff]   ;;  %v14493_v39 = vrot.slane %v11671_v4, 2  ;;  %v2597_v29 = vmax.f32 %v8987_v49, %v14492_v24  ;;  %v4060_v1 = vrot.slane %v11671_v4, 3  ;;  %v3767_v54 = vrot.slane %v11648_v58, 2 }
 0x1bd   : > { %v11711_v14 = vunpack.c.h.bf16 %v9940_v9  ;;  %v11713_v19 = vunpack.c.l.bf16 %v9940_v9  ;;  %v4339_v41 = vunpack.c.l.bf16 %v11701_v22  ;;  %v2596_v53 = vmax.f32 %v8986_v45, %v14491_v40 }
 0x1be   : > { %v3503_v46 = vsel %vm1109_vm4, %v3500_v26, %v14494_v17  ;;  %v3623_v0 = vmax.f32 %v3383_v28, %v3501_v42  ;;  %v4059_v7 = vrot.slane %v11648_v58, 3  ;;  %v9955_v34 = vld [vmem:[#allocation3 + $0x70] sm:$0xff]   ;;  %v2137_v6 = vmax.f32 %v1816_v44, %v11640_v21 }
 0x1bf   : > { %v2757_v36 = vmax.f32 %v2597_v29, %v11711_v14  ;;  %v11725_v31 = vunpack.c.h.bf16 %v9955_v34  ;;  %v2756_v12 = vmax.f32 %v2596_v53, %v11713_v19  ;;  %v11728_v37 = vunpack.c.l.bf16 %v9955_v34 }
 0x1c0   : > { %v3380_v22 = vunpack.c.l.bf16 %v3316_v47  ;;  %v3498_v28 = vsel %vm1109_vm4, %v3495_v15, %v3497_v5  ;;  %v3764_v26 = vrot.slane %v11669_v35, 2  ;;  %v4018_v49 = vunpack.c.l.bf16 %v3954_v2  ;;  %v14670_v5 = vld [vmem:[#allocation24_spill] sm:$0xff] }
 0x1c1   : > { %v3769_v42 = vsel %vm1382_vm5, %v3767_v54, %v14493_v39  ;;  %v2918_v9 = vmax.f32 %v2757_v36, %v11725_v31  ;;  %v2917_v45 = vmax.f32 %v2756_v12, %v11728_v37  ;;  %v2185_v29 = vpack.c.bf16 %v2137_v6, %v2137_v6 }
 0x1c2   : > { %v3624_v21 = vmax.f32 %v11648_v58, %v3503_v46  ;;  %v3494_v44 = vrot.slane %v3380_v22, 1  ;;  %v3621_v53 = vmax.f32 %v11669_v35, %v3498_v28  ;;  %v3766_v34 = vsel %vm1382_vm5, %v3764_v26, %v3765_v43 }
 0x1c3   : > { %v14671_v47 = vunpack.c.h.bf16 %v14670_v5  ;;  %v14672_v2 = vunpack.c.l.bf16 %v14670_v5  ;;  %v2305_v24 = vrot.slane %v2185_v29, 7  ;;  %v4054_v39 = vrot.slane %v11669_v35, 3 }
 0x1c4   : > { %v3863_v36 = vmax.f32 %v3623_v0, %v3767_v54  ;;  %v3496_v12 = vsel %vm1109_vm4, %v3494_v44, %v3495_v15  ;;  %v3861_v6 = vmax.f32 %v3621_v53, %v3766_v34  ;;  %v4057_v17 = vrot.slane %v4018_v49, 3  ;;  %v11764_v15 = vld [vmem:[#allocation3 + $0x20] sm:$0xff]   ;;  %v3321_v0 = vld [vmem:[#allocation2 + $0x28] sm:$0x7] }
 0x1c5   : > { %v3079_v27 = vmax.f32 %v2918_v9, %v14671_v47  ;;  %v3078_v40 = vmax.f32 %v2917_v45, %v14672_v2  ;;  %v2306_v43 = vsel %vm11012_vm10, %v14673_v8, %v2305_v24  ;;  %v2307_v28 = vrot.slane %v2305_v24, 4 }
 0x1c6   : > { %2423 = vst.msk [vmem:[#allocation3 + $0x38] sm:$0xf] %vm313_vm2, %v2306_v43  ;;  %v3620_v9 = vmax.f32 %v3380_v22, %v3496_v12  ;;  %v4056_v45 = vsel %vm1671_vm6, %v4054_v39, %v4055_v10  ;;  %v4058_v29 = vsel %vm1671_vm6, %v4055_v10, %v4057_v17  ;;  %v4375_v35 = vrot.slane %v11609_v18, 4  ;;  %v9902_v22 = vld [vmem:[#allocation3 + $0x18] sm:$0xff]  }
 0x1c7   : > { %v3111_v46 = vpack.c.bf16 %v3079_v27, %v3079_v27  ;;  %v3110_v30 = vpack.c.bf16 %v3078_v40, %v3078_v40  ;;  %v2309_v27 = vsel %vm11012_vm10, %v2307_v28, %v11605_v59  ;;  %v4181_v24 = vmax.f32 %v3861_v6, %v4056_v45 }
 0x1c8   : > { %v4182_v8 = vmax.f32 %v11703_v51, %v4058_v29  ;;  %v3864_v40 = vmax.f32 %v3624_v21, %v3769_v42  ;;  %v3860_v10 = vmax.f32 %v3620_v9, %v3764_v26  ;;  %v4376_v18 = vsel %vm1992_vm7, %v11705_v20, %v4375_v35  ;;  %2424 = vst.msk [vmem:[#allocation3 + $0x3c] sm:$0xf] %vm313_vm2, %v2309_v27  ;;  %v3955_v42 = vld [vmem:[#allocation2 + $0x2c] sm:$0x1] }
 0x1c9   : > { %3304 = vst.msk [vmem:[#allocation2 + $0xb8] sm:$0xf] %vm313_vm2, %v3111_v46  ;;  %3198 = vrot.lane.b32.xlu1 %v3111_v46, %s10260_s20  ;;  %3196 = vrot.lane.b32.xlu0 %v3110_v30, %s10260_s20  ;;  %v4377_v17 = vrot.slane %v4018_v49, 4  ;;  %v11771_v54 = vmax.f32 %v11682_v3, %v1402_v23  ;;  %v11778_v59 = vsel %vm1671_vm6, %v1702_v61, %v1703_v63  ;;  %v4380_v23 = vrot.slane %v11671_v4, 4 }
 0x1ca   : > { %3303 = vst.msk [vmem:[#allocation2 + $0xb4] sm:$0xf] %vm313_vm2, %v3110_v30  ;;  %v11784_v30 = vsel %vm1671_vm6, %v1703_v63, %v11657_v25  ;;  %v4501_v51 = vmax.f32 %v4181_v24, %v4376_v18  ;;  %v4379_v3 = vrot.slane %v4339_v41, 4  ;;  %v4180_v26 = vmax.f32 %v3860_v10, %v4054_v39  ;;  %v14677_v24 = vld [vmem:[#allocation23_spill] sm:$0xff] }
 0x1cb   : > { %v4378_v49 = vsel %vm1992_vm7, %v4375_v35, %v4377_v17  ;;  %v4061_v61 = vsel %vm1671_vm6, %v4059_v7, %v4060_v1  ;;  %v9019_v25 = vunpack.c.h.bf16 %v11764_v15  ;;  %v14674_v44 = vmax.f32 %v11260_v38, %v11667_v50 }
 0x1cc   : > { %v4502_v63 = vmax.f32 %v4182_v8, %v4378_v49  ;;  %v4549_v21 = vpack.c.bf16 %v4501_v51, %v4501_v51  ;;  %v4183_v39 = vmax.f32 %v3863_v36, %v4059_v7  ;;  %v4184_v53 = vmax.f32 %v3864_v40, %v4061_v61  ;;  %v9971_v49 = vld [vmem:[#allocation3 + $0x80] sm:$0xff]  }
 0x1cd   : > { %v11799_v41 = vmax.f32 %v14674_v44, %v11694_v52  ;;  %v4500_v34 = vmax.f32 %v4180_v26, %v11705_v20  ;;  %v3385_v5 = vunpack.c.l.bf16 %v3321_v0  ;;  %v8955_v47 = vunpack.c.h.bf16 %v9902_v22  ;;  %v9956_v26 = vld [vmem:[#allocation3 + $0x78] sm:$0xff]  }
 0x1ce   : > { %v4650_v2 = vrot.slane %v4549_v21, 7  ;;  %v9018_v12 = vunpack.c.l.bf16 %v11764_v15  ;;  %v14675_v6 = vrot.slane %v11598_v11, 4  ;;  %v4019_v43 = vunpack.c.l.bf16 %v3955_v42 }
 0x1cf   : > { %v4548_v38 = vpack.c.bf16 %v4500_v34, %v4500_v34  ;;  %v4550_v50 = vpack.c.bf16 %v4502_v63, %v4502_v63  ;;  %v14676_v52 = vrot.slane %v11671_v4, 1  ;;  %v4381_v20 = vsel %vm1992_vm7, %v4379_v3, %v4380_v23  ;;  %v9962_v45 = vld [vmem:[#allocation3 + $0x38] sm:$0xff]  }
 0x1d0   : > { %v2027_v46 = vsel %vm1992_vm7, %v14675_v6, %v11661_v60  ;;  %v2581_v7 = vmax.f32 %v8955_v47, %v9019_v25  ;;  %v8954_v36 = vunpack.c.l.bf16 %v9902_v22  ;;  %v4503_v28 = vmax.f32 %v4183_v39, %v4379_v3 }
 0x1d1   : > { %v3625_v58 = vmax.f32 %v3385_v5, %v14676_v52  ;;  %v4504_v9 = vmax.f32 %v4184_v53, %v4381_v20  ;;  %v8762_v29 = vrot.slane %v4548_v38, 11  ;;  %v4652_v35 = vrot.slane %v4650_v2, 4 }
 0x1d2   : > { %v1819_v60 = vmax.f32 %v11799_v41, %v11778_v59  ;;  %v1820_v27 = vmax.f32 %v11771_v54, %v11784_v30  ;;  %v2741_v8 = vmax.f32 %v2581_v7, %v14677_v24  ;;  %v2580_v40 = vmax.f32 %v8954_v36, %v9018_v12 }
 0x1d3   : > { %v4062_v10 = vrot.slane %v4019_v43, 3  ;;  %v4653_v18 = vrot.slane %v4550_v50, 7  ;;  %v14678_v17 = vunpack.c.h.bf16 %v11680_v33  ;;  %v14679_v0 = vunpack.c.l.bf16 %v11680_v33 }
 0x1d4   : > { %v2902_v59 = vmax.f32 %v2741_v8, %v11499_v48  ;;  %v11830_v22 = vunpack.c.h.bf16 %v9962_v45  ;;  %v4651_v54 = vsel %vm11012_vm10, %v8762_v29, %v4650_v2  ;;  %v2740_v30 = vmax.f32 %v2580_v40, %v11377_v55 }
 0x1d5   : > { %v2599_v51 = vmax.f32 %v14678_v17, %v11711_v14  ;;  %v2598_v3 = vmax.f32 %v14679_v0, %v11713_v19  ;;  %v14680_v42 = vrot.slane %v11671_v4, 2  ;;  %v4551_v63 = vpack.c.bf16 %v4503_v28, %v4503_v28  ;;  %4787 = vst.msk [vmem:[#allocation3 + $0x18] sm:$0xf] %vm313_vm2, %v4651_v54 }
 0x1d6   : > { %v4552_v21 = vpack.c.bf16 %v4504_v9, %v4504_v9  ;;  %v4654_v33 = vsel %vm11012_vm10, %v4652_v35, %v4653_v18  ;;  %v3063_v44 = vmax.f32 %v2902_v59, %v11830_v22  ;;  %v2901_v41 = vmax.f32 %v2740_v30, %v11532_v56  ;;  %v3322_v18 = vld [vmem:[#allocation2 + $0x30] sm:$0x8]  ;;  %v9904_v59 = vld [vmem:[#allocation3 + $0x28] sm:$0xff]  }
 0x1d7   : > { %v3865_v61 = vmax.f32 %v3625_v58, %v14680_v42  ;;  %4788 = vst.msk [vmem:[#allocation3 + $0x1c] sm:$0xf] %vm313_vm2, %v4654_v33  ;;  %v2759_v55 = vmax.f32 %v2599_v51, %v11725_v31  ;;  %v2758_v39 = vmax.f32 %v2598_v3, %v11728_v37  ;;  %v11845_v53 = vunpack.c.l.bf16 %v9962_v45 }
 0x1d8   : > { %v11847_v34 = vunpack.c.h.bf16 %v9956_v26  ;;  %v11849_v5 = vunpack.c.h.bf16 %v9971_v49  ;;  %v11851_v47 = vunpack.c.l.bf16 %v9956_v26  ;;  %v14681_v2 = vmov %v14675_v6 }
 0x1d9   : > { %v2025_v6 = vsel %vm1992_vm7, %v11607_v62, %v14681_v2  ;;  %v2141_v38 = vmax.f32 %v1820_v27, %v2027_v46  ;;  %v3095_v50 = vpack.c.bf16 %v3063_v44, %v3063_v44  ;;  %v11857_v52 = vunpack.c.l.bf16 %v9971_v49 }
 0x1da   : > { %v4063_v58 = vsel %vm1671_vm6, %v4060_v1, %v4062_v10  ;;  %v3062_v20 = vmax.f32 %v2901_v41, %v11845_v53  ;;  %v2920_v7 = vmax.f32 %v2759_v55, %v11847_v34  ;;  %v2919_v36 = vmax.f32 %v2758_v39, %v11851_v47  ;;  %v3956_v10 = vld [vmem:[#allocation2 + $0x3c] sm:$0x1] }
 0x1db   : > { %v4382_v28 = vrot.slane %v4019_v43, 4  ;;  %v4185_v9 = vmax.f32 %v3865_v61, %v4063_v58  ;;  %v8763_v11 = vrot.slane %v4551_v63, 11  ;;  %3166 = vrot.lane.b32.xlu1 %v3095_v50, %s10260_s20  ;;  %3288 = vst.msk [vmem:[#allocation2 + $0x38] sm:$0xf] %vm313_vm2, %v3095_v50  ;;  %v2140_v62 = vmax.f32 %v1819_v60, %v2025_v6 }
 0x1dc   : > { %v11867_v46 = vrot.slane %v4552_v21, 7  ;;  %v3094_v45 = vpack.c.bf16 %v3062_v20, %v3062_v20  ;;  %v3081_v29 = vmax.f32 %v2920_v7, %v11849_v5  ;;  %v3080_v1 = vmax.f32 %v2919_v36, %v11857_v52 }
 0x1dd   : > { %v2189_v35 = vpack.c.bf16 %v2141_v38, %v2141_v38  ;;  %v2188_v27 = vpack.c.bf16 %v2140_v62, %v2140_v62  ;;  %v14682_v8 = vpack.c.bf16 %v11620_v57, %v11620_v57  ;;  %v4383_v60 = vsel %vm1992_vm7, %v4380_v23, %v4382_v28 }
 0x1de   : > { %3164 = vrot.lane.b32.xlu0 %v3094_v45, %s10260_s20  ;;  %3287 = vst.msk [vmem:[#allocation2 + $0x34] sm:$0xf] %vm313_vm2, %v3094_v45  ;;  %v3113_v43 = vpack.c.bf16 %v3081_v29, %v3081_v29  ;;  %v3112_v24 = vpack.c.bf16 %v3080_v1, %v3080_v1  ;;  %v11879_v51 = vmax.f32 %v4185_v9, %v4383_v60  ;;  %v4020_v23 = vunpack.c.l.bf16 %v3956_v10  ;;  %v11901_v29 = vld [vmem:[#allocation2 + $0x50] sm:$0x8] }
 0x1df   : > { %v8751_v40 = vrot.slane %v14682_v8, 11  ;;  %v2312_v17 = vrot.slane %v2188_v27, 7  ;;  %v4658_v0 = vsel %vm11012_vm10, %v8763_v11, %v11867_v46  ;;  %v2315_v3 = vrot.slane %v2189_v35, 7 }
 0x1e0   : > { %3306 = vst.msk [vmem:[#allocation2 + $0xc8] sm:$0xf] %vm313_vm2, %v3113_v43  ;;  %v3386_v26 = vunpack.c.l.bf16 %v3322_v18  ;;  %v4553_v61 = vpack.c.bf16 %v11879_v51, %v11879_v51  ;;  %v8963_v63 = vunpack.c.h.bf16 %v9904_v59  ;;  %v8962_v41 = vunpack.c.l.bf16 %v9904_v59 }
 0x1e1   : > { %3305 = vst.msk [vmem:[#allocation2 + $0xc4] sm:$0xf] %vm313_vm2, %v3112_v24  ;;  %v2313_v57 = vsel %vm11012_vm10, %v8751_v40, %v2312_v17  ;;  %v2314_v4 = vrot.slane %v2312_v17, 4  ;;  %v4067_v55 = vrot.slane %v4020_v23, 3  ;;  %v4387_v50 = vrot.slane %v4020_v23, 4 }
 0x1e2   : > { %v3324_v54 = vld [vmem:[#allocation2 + $0x38] sm:$0x7]  ;;  %2425 = vst.msk [vmem:[#allocation3 + $0x40] sm:$0xf] %vm313_vm2, %v2313_v57  ;;  %v3504_v2 = vrot.slane %v3386_v26, 1  ;;  %v2601_v7 = vmax.f32 %v11711_v14, %v11725_v31  ;;  %v2583_v11 = vmax.f32 %v9019_v25, %v8963_v63  ;;  %v2582_v1 = vmax.f32 %v9018_v12, %v8962_v41 }
 0x1e3   : > { %v3364_v30 = vld [vmem:[#allocation2 + $0x38] sm:$0xf]  ;;  %3202 = vrot.lane.b32.xlu1 %v3113_v43, %s10260_s20  ;;  %v2316_v42 = vsel %vm11012_vm10, %v2314_v4, %v2315_v3  ;;  %4789 = vst.msk [vmem:[#allocation3 + $0x20] sm:$0xf] %vm313_vm2, %v4658_v0  ;;  %v3388_v21 = vunpack.c.l.bf16 %v3324_v54  ;;  %v2600_v35 = vmax.f32 %v11713_v19, %v11728_v37  ;;  %v2584_v60 = vmax.f32 %v8962_v41, %v11532_v56 }
 0x1e4   : > { %v3428_v49 = vunpack.c.l.bf16 %v3364_v30  ;;  %2426 = vst.msk [vmem:[#allocation3 + $0x44] sm:$0xf] %vm313_vm2, %v2316_v42  ;;  %v2585_v15 = vmax.f32 %v8963_v63, %v11499_v48  ;;  %v3392_v12 = vunpack.c.l.bf16 %v11901_v29  ;;  %v2743_v3 = vmax.f32 %v2583_v11, %v11499_v48  ;;  %v9964_v30 = vld [vmem:[#allocation3 + $0x48] sm:$0xff]  }
 0x1e5   : > { %v3323_v44 = vld [vmem:[#allocation2 + $0x34] sm:$0xf]  ;;  %v2744_v59 = vmax.f32 %v2584_v60, %v11845_v53  ;;  %v4659_v54 = vrot.slane %v11867_v46, 4  ;;  %v2603_v11 = vmax.f32 %v11725_v31, %v11847_v34 }
 0x1e6   : > { %v3507_v33 = vrot.slane %v3428_v49, 1  ;;  %v4065_v39 = vrot.slane %v3428_v49, 3  ;;  %v3387_v6 = vunpack.c.l.bf16 %v3323_v44  ;;  %v4276_v38 = vld [vmem:[#allocation2 + $0x34] sm:$0xe]  ;;  %3200 = vrot.lane.b32.xlu0 %v3112_v24, %s10260_s20  ;;  %v3771_v20 = vrot.slane %v3428_v49, 2 }
 0x1e7   : > { %v4340_v9 = vunpack.c.l.bf16 %v4276_v38  ;;  %v4385_v45 = vrot.slane %v3428_v49, 4  ;;  %v2745_v42 = vmax.f32 %v2585_v15, %v11830_v22  ;;  %v2904_v63 = vmax.f32 %v2743_v3, %v11830_v22 }
 0x1e8   : > { %v3628_v58 = vmax.f32 %v3388_v21, %v3507_v33  ;;  %v3505_v36 = vrot.slane %v3387_v6, 1  ;;  %v3770_v28 = vrot.slane %v3387_v6, 2  ;;  %v4068_v27 = vsel %vm1671_vm6, %v4065_v39, %v4067_v55 }
 0x1e9   : > { %v4064_v24 = vrot.slane %v3387_v6, 3  ;;  %v4384_v18 = vrot.slane %v4340_v9, 4  ;;  %v4388_v17 = vsel %vm1992_vm7, %v4385_v45, %v4387_v50  ;;  %v2602_v44 = vmax.f32 %v11728_v37, %v11851_v47  ;;  %v989_v37 = vld [vmem:[#allocation2 + $0x88] sm:$0xf] }
 0x1ea   : > { %v3868_v62 = vmax.f32 %v3628_v58, %v3771_v20  ;;  %v3506_v14 = vsel %vm1109_vm4, %v3504_v2, %v3505_v36  ;;  %v3508_v43 = vsel %vm1109_vm4, %v3505_v36, %v3507_v33  ;;  %v3772_v10 = vsel %vm1382_vm5, %v3770_v28, %v3771_v20 }
 0x1eb   : > { %v3626_v40 = vmax.f32 %v3386_v26, %v3506_v14  ;;  %v3627_v25 = vmax.f32 %v3387_v6, %v3508_v43  ;;  %v4066_v4 = vsel %vm1671_vm6, %v4064_v24, %v4065_v39  ;;  %v9963_v23 = vld [vmem:[#allocation3 + $0x40] sm:$0xff]   ;;  %v4386_v21 = vsel %vm1992_vm7, %v4384_v18, %v4385_v45 }
 0x1ec   : > { %v4188_v8 = vmax.f32 %v3868_v62, %v4068_v27  ;;  %v4660_v33 = vrot.slane %v4553_v61, 7  ;;  %v9215_v39 = vunpack.c.h.bf16 %v9963_v23  ;;  %v11924_v2 = vunpack.c.h.bf16 %v9964_v30 }
 0x1ed   : > { %v3866_v51 = vmax.f32 %v3626_v40, %v3770_v28  ;;  %v3867_v0 = vmax.f32 %v3627_v25, %v3772_v10  ;;  %v9154_v38 = vunpack.c.l.bf16 %v9963_v23  ;;  %v11928_v50 = vunpack.c.l.bf16 %v9964_v30 }
 0x1ee   : > { %v4508_v57 = vmax.f32 %v4188_v8, %v4388_v17  ;;  %14683 = vst [vmem:[#allocation15_spill] sm:$0xff] %v11924_v2  ;;  %v4661_v46 = vsel %vm11012_vm10, %v4659_v54, %v4660_v33  ;;  %v3065_v36 = vmax.f32 %v2904_v63, %v9215_v39  ;;  %v2906_v61 = vmax.f32 %v2745_v42, %v9215_v39  ;;  %v11959_v42 = vld [vmem:[#allocation2 + $0xf8] sm:$0x7] }
 0x1ef   : > { %v4186_v26 = vmax.f32 %v3866_v51, %v4064_v24  ;;  %v4187_v49 = vmax.f32 %v3867_v0, %v4066_v4  ;;  %4790 = vst.msk [vmem:[#allocation3 + $0x24] sm:$0xf] %vm313_vm2, %v4661_v46  ;;  %v2905_v28 = vmax.f32 %v2744_v59, %v9154_v38  ;;  %v2742_v9 = vmax.f32 %v2582_v1, %v11532_v56  ;;  %v3957_v24 = vld [vmem:[#allocation2 + $0x4c] sm:$0x1]  ;;  %v9973_v59 = vld [vmem:[#allocation3 + $0x90] sm:$0xff]  }
 0x1f0   : > { %v4556_v6 = vpack.c.bf16 %v4508_v57, %v4508_v57  ;;  %v2761_v62 = vmax.f32 %v2601_v7, %v11847_v34  ;;  %v3097_v14 = vpack.c.bf16 %v3065_v36, %v3065_v36  ;;  %v3067_v43 = vmax.f32 %v2906_v61, %v11924_v2  ;;  %v9958_v7 = vld [vmem:[#allocation3 + $0x88] sm:$0xff]   ;;  %v3376_v63 = vld [vmem:[#allocation2 + $0xf8] sm:$0xf] }
 0x1f1   : > { %v4506_v41 = vmax.f32 %v4186_v26, %v4384_v18  ;;  %v4507_v55 = vmax.f32 %v4187_v49, %v4386_v21  ;;  %v3066_v40 = vmax.f32 %v2905_v28, %v11928_v50  ;;  %v2903_v25 = vmax.f32 %v2742_v9, %v11845_v53  ;;  %v3958_v18 = vld [vmem:[#allocation2 + $0x5c] sm:$0x1]  ;;  %v11977_v28 = vld [vmem:[#allocation2 + $0x40] sm:$0x8] }
 0x1f2   : > { %v4667_v8 = vrot.slane %v4556_v6, 7  ;;  %v2762_v60 = vmax.f32 %v2602_v44, %v11857_v52  ;;  %3170 = vrot.lane.b32.xlu1 %v3097_v14, %s10260_s20  ;;  %v11942_v31 = vpack.c.bf16 %v3067_v43, %v3067_v43  ;;  %3290 = vst.msk [vmem:[#allocation2 + $0x48] sm:$0xf] %vm313_vm2, %v3097_v14  ;;  %v2763_v34 = vmax.f32 %v2603_v11, %v11849_v5 }
 0x1f3   : > { %v4554_v58 = vpack.c.bf16 %v4506_v41, %v4506_v41  ;;  %v4555_v20 = vpack.c.bf16 %v4507_v55, %v4507_v55  ;;  %v11947_v15 = vpack.c.bf16 %v3066_v40, %v3066_v40  ;;  %v3064_v17 = vmax.f32 %v2903_v25, %v9154_v38 }
 0x1f4   : > { %14684 = vst [vmem:[#allocation10_spill] sm:$0xff] %v11942_v31  ;;  %v9190_v51 = vunpack.c.l.bf16 %v9958_v7  ;;  %v9191_v0 = vunpack.c.h.bf16 %v9958_v7  ;;  %v4021_v3 = vunpack.c.l.bf16 %v3957_v24  ;;  %v2922_v4 = vmax.f32 %v2761_v62, %v11849_v5 }
 0x1f5   : > { %v8764_v45 = vrot.slane %v4554_v58, 11  ;;  %v4664_v27 = vrot.slane %v4555_v20, 7  ;;  %14685 = vst [vmem:[#allocation12_spill] sm:$0xff] %v11947_v15  ;;  %v2760_v23 = vmax.f32 %v2600_v35, %v11851_v47  ;;  %v3096_v54 = vpack.c.bf16 %v3064_v17, %v3064_v17 }
 0x1f6   : > { %3292 = vst.msk [vmem:[#allocation2 + $0x58] sm:$0xf] %vm313_vm2, %v11942_v31  ;;  %v2923_v30 = vmax.f32 %v2762_v60, %v9190_v51  ;;  %v2924_v26 = vmax.f32 %v2763_v34, %v9191_v0  ;;  %v9254_v49 = vunpack.c.l.bf16 %v9973_v59  ;;  %v4022_v21 = vunpack.c.l.bf16 %v3958_v18 }
 0x1f7   : > { %v4665_v1 = vsel %vm11012_vm10, %v8764_v45, %v4664_v27  ;;  %v4666_v10 = vrot.slane %v4664_v27, 4  ;;  %3291 = vst.msk [vmem:[#allocation2 + $0x54] sm:$0xf] %vm313_vm2, %v11947_v15  ;;  %v9255_v5 = vunpack.c.h.bf16 %v9973_v59  ;;  %v3083_v33 = vmax.f32 %v2922_v4, %v9191_v0  ;;  %3168 = vrot.lane.b32.xlu0 %v3096_v54, %s10260_s20 }
 0x1f8   : > { %4791 = vst.msk [vmem:[#allocation3 + $0x28] sm:$0xf] %vm313_vm2, %v4665_v1  ;;  %v2921_v44 = vmax.f32 %v2760_v23, %v11857_v52  ;;  %v3084_v19 = vmax.f32 %v2923_v30, %v9254_v49  ;;  %v3424_v55 = vunpack.c.l.bf16 %v11959_v42  ;;  %v11967_v39 = vunpack.c.l.bf16 %v3376_v63  ;;  %v11973_v52 = vld [vmem:[#allocation3] sm:$0xff]  }
 0x1f9   : > { %v4668_v57 = vsel %vm11012_vm10, %v4666_v10, %v4667_v8  ;;  %3289 = vst.msk [vmem:[#allocation2 + $0x44] sm:$0xf] %vm313_vm2, %v3096_v54  ;;  %v3085_v47 = vmax.f32 %v2924_v26, %v9255_v5  ;;  %v3115_v35 = vpack.c.bf16 %v3083_v33, %v3083_v33  ;;  %v3514_v6 = vrot.slane %v3392_v12, 1  ;;  %v3327_v46 = vld [vmem:[#allocation2 + $0x48] sm:$0x7] }
 0x1fa   : > { %4792 = vst.msk [vmem:[#allocation3 + $0x2c] sm:$0xf] %vm313_vm2, %v4668_v57  ;;  %v3082_v41 = vmax.f32 %v2921_v44, %v9190_v51  ;;  %v3365_v38 = vld [vmem:[#allocation2 + $0x48] sm:$0xf]  ;;  %v11971_v58 = vpack.c.bf16 %v3084_v19, %v3084_v19  ;;  %v4072_v20 = vrot.slane %v4021_v3, 3  ;;  %v4077_v36 = vrot.slane %v4022_v21, 3 }
 0x1fb   : > { %v11975_v61 = vunpack.c.l.bf16 %v3365_v38  ;;  %v11979_v9 = vpack.c.bf16 %v3085_v47, %v3085_v47  ;;  %3308 = vst.msk [vmem:[#allocation2 + $0xd8] sm:$0xf] %vm313_vm2, %v3115_v35  ;;  %3206 = vrot.lane.b32.xlu1 %v3115_v35, %s10260_s20  ;;  %v11983_v11 = vunpack.c.l.bf16 %v989_v37  ;;  %v4392_v62 = vrot.slane %v4021_v3, 4 }
 0x1fc   : > { %14686 = vst [vmem:[#allocation11_spill] sm:$0xff] %v11971_v58  ;;  %v4397_v45 = vrot.slane %v4022_v21, 4  ;;  %v3389_v14 = vunpack.c.l.bf16 %v11977_v28  ;;  %v3391_v43 = vunpack.c.l.bf16 %v3327_v46  ;;  %v3114_v40 = vpack.c.bf16 %v3082_v41, %v3082_v41 }
 0x1fd   : > { %14687 = vst [vmem:[#allocation13_spill] sm:$0xff] %v11979_v9  ;;  %v3330_v27 = vld [vmem:[#allocation2 + $0x58] sm:$0x7]  ;;  %v3512_v24 = vrot.slane %v11975_v61, 1  ;;  %v4070_v8 = vrot.slane %v11975_v61, 3  ;;  %v3774_v1 = vrot.slane %v11975_v61, 2  ;;  %v9262_v7 = vunpack.c.l.bf16 %v11973_v52 }
 0x1fe   : > { %3309 = vst.msk [vmem:[#allocation2 + $0xe4] sm:$0xf] %vm313_vm2, %v11971_v58  ;;  %v3329_v25 = vld [vmem:[#allocation2 + $0x54] sm:$0xff]   ;;  %v3394_v60 = vunpack.c.l.bf16 %v3330_v27  ;;  %v4390_v34 = vrot.slane %v11975_v61, 4  ;;  %v3509_v0 = vrot.slane %v3389_v14, 1 }
 0x1ff   : > { %3310 = vst.msk [vmem:[#allocation2 + $0xe8] sm:$0xf] %vm313_vm2, %v11979_v9  ;;  %v4278_v10 = vld [vmem:[#allocation2 + $0x54] sm:$0xe]  ;;  %v3393_v18 = vunpack.c.l.bf16 %v3329_v25  ;;  %v3430_v17 = vunpack.c.h.bf16 %v3329_v25  ;;  %v3631_v51 = vmax.f32 %v3391_v43, %v3512_v24  ;;  %v4073_v4 = vsel %vm1671_vm6, %v4070_v8, %v4072_v20  ;;  %3204 = vrot.lane.b32.xlu0 %v3114_v40, %s10260_s20 }
 0x200   : > { %v3326_v3 = vld [vmem:[#allocation2 + $0x44] sm:$0xf]  ;;  %v4342_v59 = vunpack.c.l.bf16 %v4278_v10  ;;  %v4393_v23 = vsel %vm1992_vm7, %v4390_v34, %v4392_v62  ;;  %3307 = vst.msk [vmem:[#allocation2 + $0xd4] sm:$0xf] %vm313_vm2, %v3114_v40 }
 0x201   : > { %v4277_v57 = vld [vmem:[#allocation2 + $0x44] sm:$0xe]  ;;  %v3390_v54 = vunpack.c.l.bf16 %v3326_v3  ;;  %v3515_v30 = vrot.slane %v3393_v18, 1  ;;  %v3517_v26 = vrot.slane %v3430_v17, 1  ;;  %v3776_v49 = vrot.slane %v3393_v18, 2 }
 0x202   : > { %v3777_v63 = vrot.slane %v3430_v17, 2  ;;  %v3871_v21 = vmax.f32 %v3631_v51, %v3774_v1  ;;  %v4074_v5 = vrot.slane %v3393_v18, 3  ;;  %v4075_v33 = vrot.slane %v3430_v17, 3 }
 0x203   : > { %v4341_v44 = vunpack.c.l.bf16 %v4277_v57  ;;  %v3516_v19 = vsel %vm1109_vm4, %v3514_v6, %v3515_v30  ;;  %v3518_v37 = vsel %vm1109_vm4, %v3515_v30, %v3517_v26  ;;  %v3634_v47 = vmax.f32 %v3394_v60, %v3517_v26 }
 0x204   : > { %v4394_v35 = vrot.slane %v4342_v59, 4  ;;  %v3632_v41 = vmax.f32 %v3392_v12, %v3516_v19  ;;  %v3633_v46 = vmax.f32 %v3393_v18, %v3518_v37  ;;  %v3778_v38 = vsel %vm1382_vm5, %v3776_v49, %v3777_v63 }
 0x205   : > { %v4076_v20 = vsel %vm1671_vm6, %v4074_v5, %v4075_v33  ;;  %v3874_v28 = vmax.f32 %v3634_v47, %v3777_v63  ;;  %v4191_v62 = vmax.f32 %v3871_v21, %v4073_v4  ;;  %v4395_v27 = vrot.slane %v3430_v17, 4  ;;  %v12015_v4 = vld [vmem:[#allocation3 + $0x8] sm:$0xff]  }
 0x206   : > { %v3510_v43 = vrot.slane %v3390_v54, 1  ;;  %v3872_v40 = vmax.f32 %v3632_v41, %v3776_v49  ;;  %v3873_v25 = vmax.f32 %v3633_v46, %v3778_v38  ;;  %v4078_v6 = vsel %vm1671_vm6, %v4075_v33, %v4077_v36  ;;  %v3356_v21 = vld [vmem:[#allocation2 + $0xe4] sm:$0xff]   ;;  %v3359_v41 = vld [vmem:[#allocation2 + $0xf4] sm:$0xf] }
 0x207   : > { %v3773_v10 = vrot.slane %v3390_v54, 2  ;;  %v4194_v51 = vmax.f32 %v3874_v28, %v4078_v6  ;;  %v4398_v60 = vsel %vm1992_vm7, %v4395_v27, %v4397_v45  ;;  %v12011_v3 = vmax.f32 %v4191_v62, %v4393_v23  ;;  %v3355_v23 = vld [vmem:[#allocation2 + $0xe0] sm:$0x8] }
 0x208   : > { %v4069_v29 = vrot.slane %v3390_v54, 3  ;;  %v4192_v12 = vmax.f32 %v3872_v40, %v4074_v5  ;;  %v4193_v18 = vmax.f32 %v3873_v25, %v4076_v20  ;;  %v3511_v57 = vsel %vm1109_vm4, %v3509_v0, %v3510_v43 }
 0x209   : > { %v3513_v59 = vsel %vm1109_vm4, %v3510_v43, %v3512_v24  ;;  %v4396_v17 = vsel %vm1992_vm7, %v4394_v35, %v4395_v27  ;;  %v4514_v30 = vmax.f32 %v4194_v51, %v4398_v60  ;;  %v3629_v26 = vmax.f32 %v3389_v14, %v3511_v57 }
 0x20a   : > { %v3630_v36 = vmax.f32 %v3390_v54, %v3513_v59  ;;  %v4512_v49 = vmax.f32 %v4192_v12, %v4394_v35  ;;  %v4513_v63 = vmax.f32 %v4193_v18, %v4396_v17  ;;  %v3775_v45 = vsel %vm1382_vm5, %v3773_v10, %v3774_v1  ;;  %v3358_v35 = vld [vmem:[#allocation2 + $0xf0] sm:$0x8]  ;;  %v12036_v12 = vld [vmem:[#allocation3 + $0x18] sm:$0xff]   ;;  %v3357_v18 = vld [vmem:[#allocation2 + $0xe8] sm:$0x7] }
 0x20b   : > { %v9263_v5 = vunpack.c.h.bf16 %v11973_v52  ;;  %v3869_v33 = vmax.f32 %v3629_v26, %v3773_v10  ;;  %v4071_v24 = vsel %vm1671_vm6, %v4069_v29, %v4070_v8  ;;  %v9326_v0 = vunpack.c.l.bf16 %v12015_v4 }
 0x20c   : > { %v3870_v19 = vmax.f32 %v3630_v36, %v3775_v45  ;;  %v4560_v37 = vpack.c.bf16 %v4512_v49, %v4512_v49  ;;  %v4561_v47 = vpack.c.bf16 %v4513_v63, %v4513_v63  ;;  %v4562_v14 = vpack.c.bf16 %v4514_v30, %v4514_v30 }
 0x20d   : > { %v4389_v54 = vrot.slane %v4341_v44, 4  ;;  %v4189_v46 = vmax.f32 %v3869_v33, %v4069_v29  ;;  %v3419_v38 = vunpack.c.l.bf16 %v3355_v23  ;;  %v12024_v20 = vunpack.c.l.bf16 %v3356_v21  ;;  %v9389_v44 = vld [vmem:[#allocation3 + $0x10] sm:$0xff]  }
 0x20e   : > { %v4190_v1 = vmax.f32 %v3870_v19, %v4071_v24  ;;  %v8766_v28 = vrot.slane %v4560_v37, 11  ;;  %v4678_v62 = vrot.slane %v4561_v47, 7  ;;  %v9327_v8 = vunpack.c.h.bf16 %v12015_v4 }
 0x20f   : > { %v4391_v27 = vsel %vm1992_vm7, %v4389_v54, %v4390_v34  ;;  %v4509_v43 = vmax.f32 %v4189_v46, %v4389_v54  ;;  %v3422_v25 = vunpack.c.l.bf16 %v3358_v35  ;;  %v12030_v6 = vunpack.c.l.bf16 %v3359_v41  ;;  %v3967_v54 = vld [vmem:[#allocation2 + $0xec] sm:$0x1] }
 0x210   : > { %v4510_v40 = vmax.f32 %v4190_v1, %v4391_v27  ;;  %v4679_v10 = vsel %vm11012_vm10, %v8766_v28, %v4678_v62  ;;  %v4680_v51 = vrot.slane %v4678_v62, 4  ;;  %v4681_v60 = vrot.slane %v4562_v14, 7  ;;  %v3968_v62 = vld [vmem:[#allocation2 + $0xfc] sm:$0x1] }
 0x211   : > { %v12034_v29 = vunpack.c.h.bf16 %v3356_v21  ;;  %4795 = vst.msk [vmem:[#allocation3 + $0x38] sm:$0xf] %vm313_vm2, %v4679_v10  ;;  %v4557_v61 = vpack.c.bf16 %v4509_v43, %v4509_v43  ;;  %v3559_v57 = vrot.slane %v3419_v38, 1  ;;  %v3560_v59 = vrot.slane %v12024_v20, 1 }
 0x212   : > { %v4558_v34 = vpack.c.bf16 %v4510_v40, %v4510_v40  ;;  %v4682_v17 = vsel %vm11012_vm10, %v4680_v51, %v4681_v60  ;;  %v3564_v26 = vrot.slane %v3422_v25, 1  ;;  %v12043_v36 = vunpack.c.l.bf16 %v9389_v44 }
 0x213   : > { %v3562_v30 = vrot.slane %v12034_v29, 1  ;;  %4796 = vst.msk [vmem:[#allocation3 + $0x3c] sm:$0xf] %vm313_vm2, %v4682_v17  ;;  %v8765_v49 = vrot.slane %v4557_v61, 11  ;;  %v3561_v45 = vsel %vm1109_vm4, %v3559_v57, %v3560_v59  ;;  %v3565_v23 = vrot.slane %v12030_v6, 1 }
 0x214   : > { %v12046_v63 = vrot.slane %v4558_v34, 7  ;;  %v3421_v21 = vunpack.c.l.bf16 %v3357_v18  ;;  %v3567_v19 = vrot.slane %v11967_v39, 1  ;;  %v12053_v24 = vunpack.c.l.bf16 %v12036_v12  ;;  %v4287_v17 = vld [vmem:[#allocation2 + $0xe4] sm:$0xe] }
 0x215   : > { %v3563_v33 = vsel %vm1109_vm4, %v3560_v59, %v3562_v30  ;;  %v3566_v47 = vsel %vm1109_vm4, %v3564_v26, %v3565_v23  ;;  %v3659_v14 = vmax.f32 %v3419_v38, %v3561_v45  ;;  %v4945_v35 = vmax.f32 %v9262_v7, %v9326_v0 }
 0x216   : > { %v4672_v37 = vsel %vm11012_vm10, %v8765_v49, %v12046_v63  ;;  %v3568_v41 = vsel %vm1109_vm4, %v3565_v23, %v3567_v19  ;;  %v3660_v46 = vmax.f32 %v12024_v20, %v3563_v33  ;;  %v3661_v1 = vmax.f32 %v3421_v21, %v3562_v30  ;;  %v4288_v30 = vld [vmem:[#allocation2 + $0xf4] sm:$0xe] }
 0x217   : > { %4793 = vst.msk [vmem:[#allocation3 + $0x30] sm:$0xf] %vm313_vm2, %v4672_v37  ;;  %v3662_v28 = vmax.f32 %v3422_v25, %v3566_v47  ;;  %v3663_v27 = vmax.f32 %v12030_v6, %v3568_v41  ;;  %v3664_v38 = vmax.f32 %v3424_v55, %v3567_v19  ;;  %v3803_v43 = vrot.slane %v12024_v20, 2 }
 0x218   : > { %v3804_v40 = vrot.slane %v12034_v29, 2  ;;  %v3806_v7 = vrot.slane %v12030_v6, 2  ;;  %v3807_v10 = vrot.slane %v11967_v39, 2  ;;  %v4031_v51 = vunpack.c.l.bf16 %v3967_v54 }
 0x219   : > { %v12077_v25 = vmax.f32 %v9263_v5, %v9327_v8  ;;  %v3899_v60 = vmax.f32 %v3659_v14, %v3803_v43  ;;  %v4032_v61 = vunpack.c.l.bf16 %v3968_v62  ;;  %v5105_v42 = vmax.f32 %v4945_v35, %v12043_v36  ;;  %v12092_v62 = vld [vmem:[#allocation3 + $0x20] sm:$0xff]  }
 0x21a   : > { %v12080_v55 = vunpack.c.h.bf16 %v9389_v44  ;;  %v3805_v34 = vsel %vm1382_vm5, %v3803_v43, %v3804_v40  ;;  %v3808_v18 = vsel %vm1382_vm5, %v3806_v7, %v3807_v10  ;;  %v3901_v57 = vmax.f32 %v3661_v1, %v3804_v40 }
 0x21b   : > { %v3902_v59 = vmax.f32 %v3662_v28, %v3806_v7  ;;  %v3900_v26 = vmax.f32 %v3660_v46, %v3805_v34  ;;  %v3903_v49 = vmax.f32 %v3663_v27, %v3808_v18  ;;  %v3904_v45 = vmax.f32 %v3664_v38, %v3807_v10 }
 0x21c   : > { %14688 = vst [vmem:[#allocation14_spill] sm:$0xff] %v12080_v55  ;;  %v4119_v52 = vrot.slane %v12024_v20, 3  ;;  %v4120_v5 = vrot.slane %v12034_v29, 3  ;;  %v4122_v23 = vrot.slane %v4031_v51, 3  ;;  %v4124_v21 = vrot.slane %v12030_v6, 3 }
 0x21d   : > { %v4125_v44 = vrot.slane %v11967_v39, 3  ;;  %v4127_v33 = vrot.slane %v4032_v61, 3  ;;  %v4351_v37 = vunpack.c.l.bf16 %v4287_v17  ;;  %v4352_v47 = vunpack.c.l.bf16 %v4288_v30 }
 0x21e   : > { %v4219_v19 = vmax.f32 %v3899_v60, %v4119_v52  ;;  %v4121_v14 = vsel %vm1671_vm6, %v4119_v52, %v4120_v5  ;;  %v4123_v54 = vsel %vm1671_vm6, %v4120_v5, %v4122_v23  ;;  %v4222_v41 = vmax.f32 %v3902_v59, %v4124_v21 }
 0x21f   : > { %v4126_v35 = vsel %vm1671_vm6, %v4124_v21, %v4125_v44  ;;  %v4128_v20 = vsel %vm1671_vm6, %v4125_v44, %v4127_v33  ;;  %v4220_v46 = vmax.f32 %v3900_v26, %v4121_v14  ;;  %v4221_v1 = vmax.f32 %v3901_v57, %v4123_v54  ;;  %v12104_v26 = vld [vmem:[#allocation3 + $0x28] sm:$0xff]  }
 0x220   : > { %v4223_v28 = vmax.f32 %v3903_v49, %v4126_v35  ;;  %v4224_v6 = vmax.f32 %v3904_v45, %v4128_v20  ;;  %v4439_v27 = vrot.slane %v4351_v37, 4  ;;  %v4440_v38 = vrot.slane %v12034_v29, 4  ;;  %14690 = vst [vmem:[#allocation17_spill] sm:$0xff] %v12104_v26  ;;  %v12110_v37 = vld [vmem:[#allocation2 + $0xb0] sm:$0x8] }
 0x221   : > { %v4442_v43 = vrot.slane %v4031_v51, 4  ;;  %v4444_v40 = vrot.slane %v4352_v47, 4  ;;  %v4445_v7 = vrot.slane %v11967_v39, 4  ;;  %v4447_v10 = vrot.slane %v4032_v61, 4 }
 0x222   : > { %v5265_v60 = vmax.f32 %v5105_v42, %v12053_v24  ;;  %v4441_v34 = vsel %vm1992_vm7, %v4439_v27, %v4440_v38  ;;  %v4539_v59 = vmax.f32 %v4219_v19, %v4439_v27  ;;  %v12100_v57 = vunpack.c.l.bf16 %v12092_v62 }
 0x223   : > { %v4443_v18 = vsel %vm1992_vm7, %v4440_v38, %v4442_v43  ;;  %v4446_v17 = vsel %vm1992_vm7, %v4444_v40, %v4445_v7  ;;  %v4448_v30 = vsel %vm1992_vm7, %v4445_v7, %v4447_v10  ;;  %v4540_v29 = vmax.f32 %v4220_v46, %v4441_v34  ;;  %v957_v43 = vld [vmem:[#allocation2 + $0x80] sm:$0x8]  ;;  %v958_v10 = vld [vmem:[#allocation2 + $0x84] sm:$0xf] }
 0x224   : > { %14689 = vst [vmem:[#allocation21_spill] sm:$0xff] %v12100_v57  ;;  %v4541_v51 = vmax.f32 %v4221_v1, %v4443_v18  ;;  %v4542_v39 = vmax.f32 %v4222_v41, %v4444_v40  ;;  %v4543_v61 = vmax.f32 %v4223_v28, %v4446_v17  ;;  %v4544_v49 = vmax.f32 %v4224_v6, %v4448_v30  ;;  %v3347_v41 = vld [vmem:[#allocation2 + $0xb4] sm:$0xf] }
 0x225   : > { %v4587_v42 = vpack.c.bf16 %v4539_v59, %v4539_v59  ;;  %v4588_v45 = vpack.c.bf16 %v4540_v29, %v4540_v29  ;;  %v5425_v5 = vmax.f32 %v5265_v60, %v12100_v57  ;;  %v4947_v23 = vmax.f32 %v9326_v0, %v12043_v36 }
 0x226   : > { %v4589_v52 = vpack.c.bf16 %v4541_v51, %v4541_v51  ;;  %v4590_v21 = vpack.c.bf16 %v4542_v39, %v4542_v39  ;;  %v4591_v44 = vpack.c.bf16 %v4543_v61, %v4543_v61  ;;  %v4592_v33 = vpack.c.bf16 %v4544_v49, %v4544_v49 }
 0x227   : > { %v8775_v19 = vrot.slane %v4587_v42, 11  ;;  %v14506_v47 = vunpack.c.l.bf16 %v12104_v26  ;;  %v4741_v14 = vrot.slane %v4588_v45, 7  ;;  %v5457_v54 = vpack.c.bf16 %v5425_v5, %v5425_v5 }
 0x228   : > { %v5106_v35 = vmax.f32 %v12077_v25, %v12080_v55  ;;  %v4744_v20 = vrot.slane %v4589_v52, 7  ;;  %v8776_v46 = vrot.slane %v4590_v21, 11  ;;  %v4748_v1 = vrot.slane %v4591_v44, 7 }
 0x229   : > { %v9455_v28 = vunpack.c.h.bf16 %v12036_v12  ;;  %v4742_v0 = vsel %vm11012_vm10, %v8775_v19, %v4741_v14  ;;  %v4743_v6 = vrot.slane %v4741_v14, 4  ;;  %v4751_v27 = vrot.slane %v4592_v33, 7  ;;  %5521 = vrot.lane.b32.xlu2 %v5457_v54, %s10261_s8  ;;  %5650 = vst.msk [vmem:[#allocation2 + $0x4] sm:$0xf] %vm313_vm2, %v5457_v54  ;;  %v959_v33 = vld [vmem:[#allocation2 + $0x88] sm:$0x7] }
 0x22a   : > { %v9519_v38 = vunpack.c.h.bf16 %v12092_v62  ;;  %v4749_v25 = vsel %vm11012_vm10, %v8776_v46, %v4748_v1  ;;  %v4750_v40 = vrot.slane %v4748_v1, 4  ;;  %4813 = vst.msk [vmem:[#allocation3 + $0x80] sm:$0xf] %vm313_vm2, %v4742_v0  ;;  %v5107_v7 = vmax.f32 %v4947_v23, %v12053_v24  ;;  %v1583_v54 = vld [vmem:[#allocation2 + $0x8c] sm:$0x1] }
 0x22b   : > { %v5266_v12 = vmax.f32 %v5106_v35, %v9455_v28  ;;  %v3410_v60 = vunpack.c.l.bf16 %v12110_v37  ;;  %v4745_v34 = vsel %vm11012_vm10, %v4743_v6, %v4744_v20  ;;  %4815 = vst.msk [vmem:[#allocation3 + $0x88] sm:$0xf] %vm313_vm2, %v4749_v25  ;;  %v4948_v17 = vmax.f32 %v9327_v8, %v12080_v55  ;;  %v3349_v1 = vld [vmem:[#allocation2 + $0xc0] sm:$0x8]  ;;  %v3350_v6 = vld [vmem:[#allocation2 + $0xc4] sm:$0xf] }
 0x22c   : > { %v4752_v62 = vsel %vm11012_vm10, %v4750_v40, %v4751_v27  ;;  %4814 = vst.msk [vmem:[#allocation3 + $0x84] sm:$0xf] %vm313_vm2, %v4745_v34  ;;  %v5267_v59 = vmax.f32 %v5107_v7, %v12100_v57  ;;  %v12136_v30 = vunpack.c.l.bf16 %v3347_v41  ;;  %v14505_v29 = vunpack.c.h.bf16 %v12104_v26  ;;  %v3372_v40 = vld [vmem:[#allocation2 + $0xb8] sm:$0xf] }
 0x22d   : > { %v5426_v18 = vmax.f32 %v5266_v12, %v9519_v38  ;;  %4816 = vst.msk [vmem:[#allocation3 + $0x8c] sm:$0xf] %vm313_vm2, %v4752_v62  ;;  %v1021_v51 = vunpack.c.l.bf16 %v957_v43  ;;  %v1022_v39 = vunpack.c.l.bf16 %v958_v10  ;;  %v5108_v42 = vmax.f32 %v4948_v17, %v9455_v28  ;;  %v12160_v62 = vld [vmem:[#allocation2 + $0xbc] sm:$0x1] }
 0x22e   : > { %14691 = vst [vmem:[#allocation22_spill] sm:$0xff] %v12136_v30  ;;  %v5427_v49 = vmax.f32 %v5267_v59, %v14506_v47  ;;  %v1153_v45 = vrot.slane %v11983_v11, 1  ;;  %v3544_v23 = vrot.slane %v3410_v60, 1  ;;  %v3545_v21 = vrot.slane %v12136_v30, 1  ;;  %v12300_v47 = vld [vmem:[#allocation3 + $0x60] sm:$0xff]  }
 0x22f   : > { %v5458_v61 = vpack.c.bf16 %v5426_v18, %v5426_v18  ;;  %v1150_v52 = vrot.slane %v1021_v51, 1  ;;  %v1151_v5 = vrot.slane %v1022_v39, 1  ;;  %v5268_v8 = vmax.f32 %v5108_v42, %v9519_v38  ;;  %v1904_v38 = vld [vmem:[#allocation2 + $0x84] sm:$0xe]  ;;  %14692 = vst [vmem:[#allocation18_spill] sm:$0xff] %v12160_v62 }
 0x230   : > { %v5459_v4 = vpack.c.bf16 %v5427_v49, %v5427_v49  ;;  %v1408_v41 = vrot.slane %v11983_v11, 2  ;;  %v1023_v20 = vunpack.c.l.bf16 %v959_v33  ;;  %v3546_v46 = vsel %vm1109_vm4, %v3544_v23, %v3545_v21 }
 0x231   : > { %5651 = vst.msk [vmem:[#allocation2 + $0x8] sm:$0xf] %vm313_vm2, %v5458_v61  ;;  %5523 = vrot.lane.b32.xlu0 %v5458_v61, %s10261_s8  ;;  %v1152_v44 = vsel %vm1109_vm4, %v1150_v52, %v1151_v5  ;;  %v5428_v19 = vmax.f32 %v5268_v8, %v14505_v29  ;;  %v1154_v37 = vsel %vm1109_vm4, %v1151_v5, %v1153_v45  ;;  %v1407_v0 = vrot.slane %v1022_v39, 2 }
 0x232   : > { %5525 = vrot.lane.b32.xlu2 %v5459_v4, %s10261_s8  ;;  %5652 = vst.msk [vmem:[#allocation2 + $0x14] sm:$0xf] %vm313_vm2, %v5459_v4  ;;  %v1262_v14 = vmax.f32 %v1021_v51, %v1152_v44  ;;  %v1263_v28 = vmax.f32 %v1022_v39, %v1154_v37  ;;  %v1647_v27 = vunpack.c.l.bf16 %v1583_v54  ;;  %v1264_v43 = vmax.f32 %v1023_v20, %v1153_v45  ;;  %v3348_v37 = vld [vmem:[#allocation2 + $0xb8] sm:$0x7] }
 0x233   : > { %v5460_v35 = vpack.c.bf16 %v5428_v19, %v5428_v19  ;;  %v3650_v12 = vmax.f32 %v3410_v60, %v3546_v46  ;;  %v3413_v7 = vunpack.c.l.bf16 %v3349_v1  ;;  %v1409_v10 = vsel %vm1382_vm5, %v1407_v0, %v1408_v41  ;;  %v4284_v60 = vld [vmem:[#allocation2 + $0xb4] sm:$0xe] }
 0x234   : > { %v1503_v25 = vmax.f32 %v1262_v14, %v1407_v0  ;;  %v1713_v34 = vrot.slane %v11983_v11, 3  ;;  %v12162_v18 = vunpack.c.l.bf16 %v3350_v6  ;;  %v1504_v59 = vmax.f32 %v1263_v28, %v1409_v10 }
 0x235   : > { %5653 = vst.msk [vmem:[#allocation2 + $0x18] sm:$0xf] %vm313_vm2, %v5460_v35  ;;  %v1712_v17 = vrot.slane %v1022_v39, 3  ;;  %v1968_v51 = vunpack.c.l.bf16 %v1904_v38  ;;  %v14502_v61 = vrot.slane %v12136_v30, 2  ;;  %v1715_v49 = vrot.slane %v1647_v27, 3 }
 0x236   : > { %14693 = vst [vmem:[#allocation19_spill] sm:$0xff] %v12162_v18  ;;  %v12165_v42 = vunpack.c.l.bf16 %v3372_v40  ;;  %v1505_v45 = vmax.f32 %v1264_v43, %v1408_v41  ;;  %v14496_v5 = vunpack.c.l.bf16 %v12160_v62  ;;  %v2034_v23 = vrot.slane %v11983_v11, 4  ;;  %v3373_v43 = vld [vmem:[#allocation2 + $0xc8] sm:$0xf] }
 0x237   : > { %v1824_v52 = vmax.f32 %v1503_v25, %v1712_v17  ;;  %v3890_v4 = vmax.f32 %v3650_v12, %v14502_v61  ;;  %v1714_v8 = vsel %vm1671_vm6, %v1712_v17, %v1713_v34  ;;  %v3549_v44 = vrot.slane %v3413_v7, 1  ;;  %v5683_v17 = vld [vmem:[#allocation2 + $0x4] sm:$0xf] }
 0x238   : > { %14694 = vst [vmem:[#allocation20_spill] sm:$0xff] %v12165_v42  ;;  %v3550_v39 = vrot.slane %v12162_v18, 1  ;;  %v1825_v33 = vmax.f32 %v1504_v59, %v1714_v8  ;;  %v2033_v19 = vrot.slane %v1968_v51, 4  ;;  %v14498_v14 = vrot.slane %v12136_v30, 3  ;;  %v12187_v59 = vld [vmem:[#allocation2] sm:$0x8] }
 0x239   : > { %5527 = vrot.lane.b32.xlu0 %v5460_v35, %s10261_s8  ;;  %v4348_v54 = vunpack.c.l.bf16 %v4284_v60  ;;  %v1716_v35 = vsel %vm1671_vm6, %v1713_v34, %v1715_v49  ;;  %v2036_v41 = vrot.slane %v1647_v27, 4  ;;  %v3547_v20 = vrot.slane %v12165_v42, 1  ;;  %v12325_v9 = vld [vmem:[#allocation2 + $0x14] sm:$0xe] }
 0x23a   : > { %v1826_v46 = vmax.f32 %v1505_v45, %v1716_v35  ;;  %v2145_v1 = vmax.f32 %v1824_v52, %v2033_v19  ;;  %v4107_v28 = vrot.slane %v14496_v5, 3  ;;  %v4210_v11 = vmax.f32 %v3890_v4, %v14498_v14 }
 0x23b   : > { %v2035_v0 = vsel %vm1992_vm7, %v2033_v19, %v2034_v23  ;;  %v3412_v6 = vunpack.c.l.bf16 %v3348_v37  ;;  %v14499_v38 = vrot.slane %v12165_v42, 3  ;;  %v3551_v27 = vsel %vm1109_vm4, %v3549_v44, %v3550_v39  ;;  %v3374_v37 = vld [vmem:[#allocation2 + $0xd8] sm:$0xf] }
 0x23c   : > { %v2146_v25 = vmax.f32 %v1825_v33, %v2035_v0  ;;  %v14495_v40 = vrot.slane %v12165_v42, 4  ;;  %v4424_v12 = vrot.slane %v4348_v54, 4  ;;  %v2037_v10 = vsel %vm1992_vm7, %v2034_v23, %v2036_v41  ;;  %v3351_v33 = vld [vmem:[#allocation2 + $0xc8] sm:$0x7] }
 0x23d   : > { %v3652_v34 = vmax.f32 %v3412_v6, %v3547_v20  ;;  %v2147_v51 = vmax.f32 %v1826_v46, %v2037_v10  ;;  %v2193_v49 = vpack.c.bf16 %v2145_v1, %v2145_v1  ;;  %v12189_v52 = vunpack.c.l.bf16 %v3373_v43 }
 0x23e   : > { %v2194_v60 = vpack.c.bf16 %v2146_v25, %v2146_v25  ;;  %v4530_v45 = vmax.f32 %v4210_v11, %v4424_v12  ;;  %v3653_v4 = vmax.f32 %v3413_v7, %v3551_v27  ;;  %v14504_v8 = vrot.slane %v12165_v42, 2 }
 0x23f   : > { %14695 = vst [vmem:[#allocation24_spill] sm:$0xff] %v12189_v52  ;;  %v12195_v44 = vsel %vm1671_vm6, %v14499_v38, %v4107_v28  ;;  %v12200_v23 = vsel %vm1109_vm4, %v3545_v21, %v3547_v20  ;;  %v14500_v19 = vrot.slane %v12162_v18, 2  ;;  %v5746_v54 = vunpack.c.l.bf16 %v12187_v59  ;;  %v4285_v21 = vld [vmem:[#allocation2 + $0xc4] sm:$0xe] }
 0x240   : > { %14696 = vst [vmem:[#allocation16_spill] sm:$0xff] %v12195_v44  ;;  %v12204_v35 = vunpack.c.l.bf16 %v5683_v17  ;;  %v2195_v7 = vpack.c.bf16 %v2147_v51, %v2147_v51  ;;  %v12208_v41 = vmax.f32 %v3652_v34, %v14504_v8  ;;  %v12213_v46 = vsel %vm1992_vm7, %v4424_v12, %v14495_v40  ;;  %v6642_v38 = vld [vmem:[#allocation2 + $0x4] sm:$0xe] }
 0x241   : > { %14697 = vst [vmem:[#allocation23_spill] sm:$0xff] %v12200_v23  ;;  %v8753_v20 = vrot.slane %v2193_v49, 11  ;;  %v2326_v1 = vrot.slane %v2194_v60, 7  ;;  %v4578_v28 = vpack.c.bf16 %v4530_v45, %v4530_v45  ;;  %v3415_v11 = vunpack.c.l.bf16 %v3351_v33 }
 0x242   : > { %14698 = vst [vmem:[#allocation25_spill] sm:$0xff] %v12208_v41  ;;  %v3552_v0 = vrot.slane %v12189_v52, 1  ;;  %v3893_v6 = vmax.f32 %v3653_v4, %v14500_v19  ;;  %v12218_v43 = vunpack.c.l.bf16 %v3374_v37  ;;  %v2329_v10 = vrot.slane %v2195_v7, 7  ;;  %v9907_v4 = vld [vmem:[#allocation3 + $0x40] sm:$0xff]   ;;  %v6323_v19 = vld [vmem:[#allocation2 + $0x1c] sm:$0x1] }
 0x243   : > { %14699 = vst [vmem:[#allocation26_spill] sm:$0xff] %v12213_v46  ;;  %v2327_v27 = vsel %vm11012_vm10, %v8753_v20, %v2326_v1  ;;  %v2328_v25 = vrot.slane %v2326_v1, 4  ;;  %v14497_v12 = vrot.slane %v12162_v18, 3  ;;  %v4349_v34 = vunpack.c.l.bf16 %v4285_v21  ;;  %v3354_v20 = vld [vmem:[#allocation2 + $0xd8] sm:$0x7] }
 0x244   : > { %14700 = vst [vmem:[#allocation27_spill] sm:$0xff] %v12218_v43  ;;  %v5858_v59 = vrot.slane %v5746_v54, 1  ;;  %v14508_v17 = vrot.slane %v12204_v35, 1  ;;  %v2586_v60 = vmax.f32 %v11532_v56, %v11845_v53  ;;  %v3655_v33 = vmax.f32 %v3415_v11, %v3552_v0  ;;  %v12239_v1 = vld [vmem:[#allocation2 + $0x10] sm:$0x8] }
 0x245   : > { %2429 = vst.msk [vmem:[#allocation3 + $0x50] sm:$0xf] %vm313_vm2, %v2327_v27  ;;  %v2330_v45 = vsel %vm11012_vm10, %v2328_v25, %v2329_v10  ;;  %v4213_v37 = vmax.f32 %v3893_v6, %v14497_v12  ;;  %v2587_v7 = vmax.f32 %v11499_v48, %v11830_v22  ;;  %v4559_v21 = vpack.c.bf16 %v12011_v3, %v12011_v3  ;;  %v5686_v25 = vld [vmem:[#allocation2 + $0x14] sm:$0xf]  ;;  %v5730_v12 = vld [vmem:[#allocation2 + $0x8] sm:$0xf] }
 0x246   : > { %2430 = vst.msk [vmem:[#allocation3 + $0x54] sm:$0xf] %vm313_vm2, %v2330_v45  ;;  %v12242_v56 = vrot.slane %v4578_v28, 11  ;;  %v14501_v27 = vrot.slane %v12189_v52, 2  ;;  %v12248_v11 = vsel %vm1109_vm4, %v3550_v39, %v3552_v0  ;;  %v14503_v6 = vrot.slane %v12218_v43, 1 }
 0x247   : > { %14702 = vst [vmem:[#allocation29_spill] sm:$0xff] %v12248_v11  ;;  %v12251_v48 = vrot.slane %v4349_v34, 4  ;;  %v5860_v3 = vsel %vm1109_vm4, %v5858_v59, %v14508_v17  ;;  %v12256_v10 = vunpack.c.l.bf16 %v9907_v4  ;;  %v12258_v28 = vunpack.c.h.bf16 %v9907_v4  ;;  %v6322_v39 = vld [vmem:[#allocation2 + $0xc] sm:$0x1]  ;;  %v5684_v45 = vld [vmem:[#allocation2 + $0x8] sm:$0x7] }
 0x248   : > { %14701 = vst [vmem:[#allocation28_spill] sm:$0xff] %v12242_v56  ;;  %v3418_v40 = vunpack.c.l.bf16 %v3354_v20  ;;  %v14507_v0 = vunpack.c.l.bf16 %v12239_v1  ;;  %v12265_v34 = vmax.f32 %v3655_v33, %v14501_v27  ;;  %v12272_v4 = vrot.slane %v4559_v21, 7 }
 0x249   : > { %14703 = vst [vmem:[#allocation30_spill] sm:$0xff] %v12251_v48  ;;  %v12270_v5 = vmax.f32 %v4213_v37, %v12251_v48  ;;  %v5986_v51 = vmax.f32 %v5746_v54, %v5860_v3  ;;  %v12277_v14 = vunpack.c.l.bf16 %v5686_v25  ;;  %v6386_v49 = vunpack.c.l.bf16 %v6322_v39  ;;  %v12289_v3 = vld [vmem:[#allocation3 + $0x58] sm:$0xff]   ;;  %v12411_v48 = vld [vmem:[#allocation3 + $0x68] sm:$0xff]  }
 0x24a   : > { %14704 = vst [vmem:[#allocation31_spill] sm:$0xff] %v12258_v28  ;;  %v3658_v20 = vmax.f32 %v3418_v40, %v14503_v6  ;;  %v2746_v59 = vmax.f32 %v2586_v60, %v12256_v10  ;;  %v2747_v37 = vmax.f32 %v2587_v7, %v12258_v28  ;;  %v14509_v21 = vrot.slane %v12204_v35, 2 }
 0x24b   : > { %14705 = vst [vmem:[#allocation32_spill] sm:$0xff] %v12265_v34  ;;  %v12283_v27 = vunpack.c.l.bf16 %v5730_v12  ;;  %v5863_v61 = vrot.slane %v14507_v0, 1  ;;  %v2590_v40 = vmax.f32 %v12256_v10, %v11928_v50  ;;  %v6706_v6 = vunpack.c.l.bf16 %v6642_v38 }
 0x24c   : > { %14706 = vst [vmem:[#allocation33_spill] sm:$0xff] %v12270_v5  ;;  %v2907_v39 = vmax.f32 %v2746_v59, %v11928_v50  ;;  %v2908_v60 = vmax.f32 %v2747_v37, %v11924_v2  ;;  %v6226_v12 = vmax.f32 %v5986_v51, %v14509_v21  ;;  %v6387_v29 = vunpack.c.l.bf16 %v6323_v19  ;;  %v9981_v19 = vld [vmem:[#allocation3 + $0x38] sm:$0xff]  }
 0x24d   : > { %v9937_v54 = vld [vmem:[#allocation3 + $0x50] sm:$0xff]   ;;  %v12304_v17 = vunpack.c.l.bf16 %v12289_v3  ;;  %v5861_v51 = vrot.slane %v12283_v27, 1  ;;  %v6421_v38 = vrot.slane %v6386_v49, 3  ;;  %v12314_v33 = vunpack.c.l.bf16 %v12300_v47 }
 0x24e   : > { %v12291_v25 = vunpack.c.l.bf16 %v9937_v54  ;;  %v12295_v7 = vunpack.c.h.bf16 %v9937_v54  ;;  %v12310_v54 = vrot.slane %v6386_v49, 4  ;;  %v14712_v37 = vrot.slane %v12277_v14, 1  ;;  %v5731_v49 = vld [vmem:[#allocation2 + $0x18] sm:$0xf] }
 0x24f   : > { %14707 = vst [vmem:[#allocation34_spill] sm:$0xff] %v12304_v17  ;;  %v12327_v32 = vrot.slane %v6387_v29, 3  ;;  %v14716_v15 = vrot.slane %v12218_v43, 2  ;;  %v14719_v55 = vunpack.c.l.bf16 %v12239_v1  ;;  %v12399_v1 = vld [vmem:[#allocation3 + $0x48] sm:$0xff]   ;;  %v9235_v26 = vunpack.c.h.bf16 %v12411_v48 }
 0x250   : > { %v2750_v0 = vmax.f32 %v2590_v40, %v12291_v25  ;;  %v3068_v50 = vmax.f32 %v2907_v39, %v12291_v25  ;;  %v3069_v59 = vmax.f32 %v2908_v60, %v12295_v7  ;;  %14708 = vst [vmem:[#allocation35_spill] sm:$0xff] %v12314_v33  ;;  %v12320_v39 = vrot.slane %v6706_v6, 4 }
 0x251   : > { %v5748_v60 = vunpack.c.l.bf16 %v5684_v45  ;;  %v5865_v16 = vsel %vm1109_vm4, %v5863_v61, %v14712_v37  ;;  %v12336_v45 = vld [vmem:[#allocation2 + $0x60] sm:$0x8]  ;;  %v12338_v61 = vunpack.c.l.bf16 %v9981_v19  ;;  %v12340_v37 = vunpack.c.h.bf16 %v9981_v19 }
 0x252   : > { %v2911_v21 = vmax.f32 %v2750_v0, %v12304_v17  ;;  %v12316_v40 = vpack.c.bf16 %v3068_v50, %v3068_v50  ;;  %v12318_v8 = vpack.c.bf16 %v3069_v59, %v3069_v59  ;;  %14711 = vst [vmem:[#allocation38_spill] sm:$0xff] %v12320_v39  ;;  %v14713_v0 = vrot.slane %v12204_v35, 3 }
 0x253   : > { %v6131_v50 = vrot.slane %v12283_v27, 2  ;;  %14714 = vst [vmem:[#allocation39_spill] sm:$0xff] %v12338_v61  ;;  %v12344_v31 = vmax.f32 %v3658_v20, %v14716_v15  ;;  %v14718_v59 = vrot.slane %v12204_v35, 1  ;;  %v5989_v19 = vmax.f32 %v14719_v55, %v5865_v16 }
 0x254   : > { %14709 = vst [vmem:[#allocation36_spill] sm:$0xff] %v12316_v40  ;;  %v6546_v58 = vmax.f32 %v6226_v12, %v14713_v0  ;;  %v3072_v6 = vmax.f32 %v2911_v21, %v12314_v33  ;;  %v5988_v12 = vmax.f32 %v5748_v60, %v5861_v51  ;;  %v12348_v0 = vld [vmem:[#allocation2 + $0x80] sm:$0x8]  ;;  %v3959_v21 = vld [vmem:[#allocation2 + $0x6c] sm:$0x1]  ;;  %v12357_v33 = vunpack.c.l.bf16 %v5731_v49 }
 0x255   : > { %14710 = vst [vmem:[#allocation37_spill] sm:$0xff] %v12318_v8  ;;  %v12361_v60 = vld [vmem:[#allocation2 + $0x18] sm:$0x7]  ;;  %v14529_v16 = vunpack.c.l.bf16 %v12348_v0  ;;  %v4023_v55 = vunpack.c.l.bf16 %v3959_v21  ;;  %v8979_v41 = vunpack.c.h.bf16 %v12399_v1  ;;  %v14722_v57 = vunpack.c.l.bf16 %v12399_v1 }
 0x256   : > { %3293 = vst.msk [vmem:[#allocation2 + $0x64] sm:$0xf] %vm313_vm2, %v12316_v40  ;;  %v12353_v40 = vsel %vm1109_vm4, %v14718_v59, %v5861_v51  ;;  %v3104_v17 = vpack.c.bf16 %v3072_v6, %v3072_v6  ;;  %v12367_v43 = vmax.f32 %v6546_v58, %v12320_v39  ;;  %v14525_v51 = vrot.slane %v12277_v14, 2 }
 0x257   : > { %14715 = vst [vmem:[#allocation40_spill] sm:$0xff] %v12340_v37  ;;  %v12380_v59 = vmax.f32 %v5988_v12, %v6131_v50  ;;  %v14721_v58 = vrot.slane %v12283_v27, 3  ;;  %v5751_v21 = vunpack.c.l.bf16 %v12361_v60  ;;  %v2589_v12 = vmax.f32 %v11830_v22, %v12258_v28  ;;  %v10190_v22 = vld [vmem:[#allocation3 + $0x58] sm:$0xff]  }
 0x258   : > { %14717 = vst [vmem:[#allocation41_spill] sm:$0xff] %v12344_v31  ;;  %v3395_v31 = vunpack.c.l.bf16 %v12336_v45  ;;  %3184 = vrot.lane.b32.xlu0 %v3104_v17, %s10260_s20  ;;  %v12389_v45 = vmax.f32 %v5989_v19, %v14525_v51  ;;  %v3529_v20 = vrot.slane %v14529_v16, 1  ;;  %v4082_v60 = vrot.slane %v4023_v55, 3 }
 0x259   : > { %3294 = vst.msk [vmem:[#allocation2 + $0x68] sm:$0xf] %vm313_vm2, %v12318_v8  ;;  %v12363_v8 = vrot.slane %v6387_v29, 4  ;;  %v14720_v29 = vrot.slane %v12204_v35, 2  ;;  %v12385_v6 = vsel %vm1671_vm6, %v14721_v58, %v6421_v38  ;;  %v4402_v15 = vrot.slane %v4023_v55, 4 }
 0x25a   : > { %3297 = vst.msk [vmem:[#allocation2 + $0x84] sm:$0xf] %vm313_vm2, %v3104_v17  ;;  %v3519_v38 = vrot.slane %v3395_v31, 1  ;;  %v12404_v17 = vunpack.c.h.bf16 %v12289_v3  ;;  %v9226_v56 = vunpack.c.l.bf16 %v10190_v22  ;;  %v9227_v55 = vunpack.c.h.bf16 %v10190_v22 }
 0x25b   : > { %v12378_v49 = vsel %vm1382_vm5, %v14720_v29, %v6131_v50  ;;  %v2588_v50 = vmax.f32 %v11845_v53, %v12256_v10  ;;  %v12407_v29 = vunpack.c.h.bf16 %v12300_v47 }
 0x25d   : > { %v4279_v58 = vld [vmem:[#allocation2 + $0x64] sm:$0xe]  ;;  %v2748_v37 = vmax.f32 %v2588_v50, %v14722_v57 }
 0x25e   : > { %v4343_v44 = vunpack.c.l.bf16 %v4279_v58 }
 0x260   : > { %v3332_v19 = vld [vmem:[#allocation2 + $0x64] sm:$0xff]   ;;  %v4399_v39 = vrot.slane %v4343_v44, 4  ;;  %v2909_v44 = vmax.f32 %v2748_v37, %v12291_v25 }
 0x261   : > { %v3333_v51 = vld [vmem:[#allocation2 + $0x68] sm:$0x7]  ;;  %v3396_v53 = vunpack.c.l.bf16 %v3332_v19  ;;  %v3431_v10 = vunpack.c.h.bf16 %v3332_v19  ;;  %v3338_v11 = vld [vmem:[#allocation2 + $0x84] sm:$0xf]  ;;  %v2593_v19 = vmax.f32 %v8979_v41, %v12295_v7 }
 0x262   : > { %v3397_v5 = vunpack.c.l.bf16 %v3333_v51  ;;  %v12416_v52 = vunpack.c.l.bf16 %v3338_v11 }
 0x263   : > { %v3520_v16 = vrot.slane %v3396_v53, 1  ;;  %v3522_v62 = vrot.slane %v3431_v10, 1  ;;  %v3779_v3 = vrot.slane %v3396_v53, 2  ;;  %v3780_v34 = vrot.slane %v3431_v10, 2 }
 0x264   : > { %v4079_v47 = vrot.slane %v3396_v53, 3  ;;  %v4080_v23 = vrot.slane %v3431_v10, 3  ;;  %v4400_v42 = vrot.slane %v3431_v10, 4 }
 0x265   : > { %v3521_v18 = vsel %vm1109_vm4, %v3519_v38, %v3520_v16  ;;  %v3523_v51 = vsel %vm1109_vm4, %v3520_v16, %v3522_v62  ;;  %v3637_v58 = vmax.f32 %v3397_v5, %v3522_v62  ;;  %v3781_v28 = vsel %vm1382_vm5, %v3779_v3, %v3780_v34 }
 0x266   : > { %v3635_v46 = vmax.f32 %v3395_v31, %v3521_v18  ;;  %v3636_v30 = vmax.f32 %v3396_v53, %v3523_v51  ;;  %v4083_v38 = vsel %vm1671_vm6, %v4080_v23, %v4082_v60  ;;  %v2749_v16 = vmax.f32 %v2589_v12, %v8979_v41 }
 0x267   : > { %v3877_v2 = vmax.f32 %v3637_v58, %v3780_v34  ;;  %v4081_v62 = vsel %vm1671_vm6, %v4079_v47, %v4080_v23  ;;  %v3530_v31 = vrot.slane %v12416_v52, 1  ;;  %v2753_v18 = vmax.f32 %v2593_v19, %v12404_v17 }
 0x268   : > { %v3875_v22 = vmax.f32 %v3635_v46, %v3779_v3  ;;  %v3876_v61 = vmax.f32 %v3636_v30, %v3781_v28  ;;  %v4403_v34 = vsel %vm1992_vm7, %v4400_v42, %v4402_v15  ;;  %v4401_v57 = vsel %vm1992_vm7, %v4399_v39, %v4400_v42 }
 0x269   : > { %v4197_v5 = vmax.f32 %v3877_v2, %v4083_v38  ;;  %v2910_v30 = vmax.f32 %v2749_v16, %v12295_v7  ;;  %v2914_v41 = vmax.f32 %v2753_v18, %v12407_v29  ;;  %v14723_v23 = vrot.slane %v12357_v33, 1 }
 0x26a   : > { %v4195_v11 = vmax.f32 %v3875_v22, %v4079_v47  ;;  %v4196_v53 = vmax.f32 %v3876_v61, %v4081_v62  ;;  %v3070_v12 = vmax.f32 %v2909_v44, %v9226_v56  ;;  %v14725_v61 = vrot.slane %v12277_v14, 1  ;;  %v4281_v44 = vld [vmem:[#allocation2 + $0x84] sm:$0xe] }
 0x26b   : > { %v4517_v46 = vmax.f32 %v4197_v5, %v4403_v34  ;;  %v5991_v2 = vmax.f32 %v5751_v21, %v14723_v23  ;;  %v14724_v60 = vmov %v14723_v23  ;;  %v3531_v42 = vsel %vm1109_vm4, %v3529_v20, %v3530_v31 }
 0x26c   : > { %v4515_v28 = vmax.f32 %v4195_v11, %v4399_v39  ;;  %v4516_v50 = vmax.f32 %v4196_v53, %v4401_v57  ;;  %v5867_v15 = vsel %vm1109_vm4, %v14725_v61, %v14724_v60  ;;  %v3071_v37 = vmax.f32 %v2910_v30, %v9227_v55  ;;  %v3334_v30 = vld [vmem:[#allocation2 + $0x70] sm:$0x8] }
 0x26d   : > { %v3075_v10 = vmax.f32 %v2914_v41, %v9235_v26  ;;  %v4565_v21 = vpack.c.bf16 %v4517_v46, %v4517_v46  ;;  %v12443_v39 = vpack.c.bf16 %v3070_v12, %v3070_v12  ;;  %v14727_v56 = vrot.slane %v12277_v14, 3 }
 0x26e   : > { %v4563_v3 = vpack.c.bf16 %v4515_v28, %v4515_v28  ;;  %v4564_v47 = vpack.c.bf16 %v4516_v50, %v4516_v50  ;;  %v6424_v51 = vrot.slane %v12357_v33, 3  ;;  %v12449_v58 = vpack.c.bf16 %v3071_v37, %v3071_v37 }
 0x26f   : > { %14726 = vst [vmem:[#allocation42_spill] sm:$0xff] %v12443_v39  ;;  %v6549_v19 = vmax.f32 %v12389_v45, %v14727_v56  ;;  %v3107_v22 = vpack.c.bf16 %v3075_v10, %v3075_v10  ;;  %v5990_v20 = vmax.f32 %v12277_v14, %v5867_v15  ;;  %v14729_v55 = vrot.slane %v12357_v33, 2 }
 0x270   : > { %14728 = vst [vmem:[#allocation43_spill] sm:$0xff] %v12449_v58  ;;  %v8767_v16 = vrot.slane %v4563_v3, 11  ;;  %v4685_v62 = vrot.slane %v4564_v47, 7  ;;  %v6914_v5 = vpack.c.bf16 %v12367_v43, %v12367_v43  ;;  %v14730_v45 = vunpack.c.l.bf16 %v12325_v9 }
 0x271   : > { %v6231_v38 = vmax.f32 %v5991_v2, %v14729_v55  ;;  %3295 = vst.msk [vmem:[#allocation2 + $0x74] sm:$0xf] %vm313_vm2, %v12443_v39  ;;  %v6744_v11 = vrot.slane %v12357_v33, 4  ;;  %v14731_v53 = vunpack.c.l.bf16 %v12348_v0  ;;  %3190 = vrot.lane.b32.xlu1 %v3107_v22, %s10260_s20  ;;  %v6548_v57 = vmax.f32 %v12380_v59, %v12385_v6  ;;  %v3960_v6 = vld [vmem:[#allocation2 + $0x7c] sm:$0x1] }
 0x272   : > { %v6743_v18 = vrot.slane %v14730_v45, 4  ;;  %3296 = vst.msk [vmem:[#allocation2 + $0x78] sm:$0xf] %vm313_vm2, %v12449_v58  ;;  %v4686_v43 = vsel %vm11012_vm10, %v8767_v16, %v4685_v62  ;;  %v4687_v46 = vrot.slane %v4685_v62, 4  ;;  %v4688_v9 = vrot.slane %v4565_v21, 7 }
 0x273   : > { %v3641_v34 = vmax.f32 %v14731_v53, %v3531_v42  ;;  %3300 = vst.msk [vmem:[#allocation2 + $0x98] sm:$0xf] %vm313_vm2, %v3107_v22  ;;  %v14732_v0 = vmov %v14729_v55  ;;  %v14733_v23 = vrot.slane %v12277_v14, 2  ;;  %v6427_v28 = vsel %vm1671_vm6, %v6424_v51, %v12327_v32 }
 0x274   : > { %v12471_v41 = vmax.f32 %v6549_v19, %v6743_v18  ;;  %4797 = vst.msk [vmem:[#allocation3 + $0x40] sm:$0xf] %vm313_vm2, %v4686_v43  ;;  %v3785_v59 = vrot.slane %v12416_v52, 2  ;;  %v6551_v12 = vmax.f32 %v6231_v38, %v6427_v28  ;;  %v4689_v60 = vsel %vm11012_vm10, %v4687_v46, %v4688_v9 }
 0x275   : > { %v6135_v2 = vsel %vm1382_vm5, %v14733_v23, %v14732_v0  ;;  %v4345_v61 = vunpack.c.l.bf16 %v4281_v44  ;;  %v14734_v33 = vmax.f32 %v12204_v35, %v12353_v40  ;;  %v14735_v32 = vrot.slane %v12283_v27, 4  ;;  %4798 = vst.msk [vmem:[#allocation3 + $0x44] sm:$0xf] %vm313_vm2, %v4689_v60 }
 0x276   : > { %v12482_v50 = vmax.f32 %v5990_v20, %v6135_v2  ;;  %v3881_v37 = vmax.f32 %v3641_v34, %v3785_v59  ;;  %v3398_v10 = vunpack.c.l.bf16 %v3334_v30  ;;  %v12499_v3 = vrot.slane %v6914_v5, 11 }
 0x277   : > { %v12490_v15 = vmax.f32 %v14734_v33, %v12378_v49  ;;  %v6742_v42 = vsel %vm1992_vm7, %v14735_v32, %v12310_v54  ;;  %v14736_v21 = vmov %v14727_v56  ;;  %v4024_v49 = vunpack.c.l.bf16 %v3960_v6  ;;  %v14738_v32 = vld [vmem:[#allocation39_spill] sm:$0xff] }
 0x278   : > { %v12501_v47 = vmax.f32 %v6548_v57, %v6742_v42  ;;  %v12506_v40 = vsel %vm1671_vm6, %v14736_v21, %v6424_v51  ;;  %v12509_v56 = vsel %vm1992_vm7, %v6743_v18, %v6744_v11  ;;  %v6747_v54 = vsel %vm1992_vm7, %v6744_v11, %v12363_v8  ;;  %v4280_v22 = vld [vmem:[#allocation2 + $0x74] sm:$0xe]  ;;  %v12530_v18 = vld [vmem:[#allocation3 + $0x28] sm:$0xff]  }
 0x279   : > { %v4089_v19 = vrot.slane %v12416_v52, 3  ;;  %v14737_v20 = vrot.slane %v12046_v63, 4  ;;  %v6550_v51 = vmax.f32 %v12482_v50, %v12506_v40  ;;  %v12523_v38 = vmax.f32 %v6551_v12, %v6747_v54  ;;  %v3335_v8 = vld [vmem:[#allocation2 + $0x74] sm:$0xff]  }
 0x27a   : > { %v12525_v16 = vrot.slane %v4345_v61, 4  ;;  %v3336_v63 = vld [vmem:[#allocation2 + $0x78] sm:$0x7]  ;;  %v3399_v5 = vunpack.c.l.bf16 %v3335_v8  ;;  %v3432_v45 = vunpack.c.h.bf16 %v3335_v8  ;;  %v4087_v11 = vrot.slane %v4024_v49, 3 }
 0x27b   : > { %v4675_v55 = vsel %vm11012_vm10, %v14737_v20, %v12272_v4  ;;  %v4201_v62 = vmax.f32 %v3881_v37, %v4089_v19  ;;  %v3524_v4 = vrot.slane %v3398_v10, 1  ;;  %v4344_v53 = vunpack.c.l.bf16 %v4280_v22  ;;  %v14739_v37 = vld [vmem:[#allocation40_spill] sm:$0xff]  ;;  %v3370_v54 = vld [vmem:[#allocation2 + $0x98] sm:$0xf] }
 0x27c   : > { %4794 = vst.msk [vmem:[#allocation3 + $0x34] sm:$0xf] %vm313_vm2, %v4675_v55  ;;  %v4407_v34 = vrot.slane %v4024_v49, 4  ;;  %v4949_v44 = vmax.f32 %v12043_v36, %v12053_v24  ;;  %v3525_v57 = vrot.slane %v3399_v5, 1  ;;  %v3527_v43 = vrot.slane %v3432_v45, 1  ;;  %v9996_v30 = vld [vmem:[#allocation3 + $0x40] sm:$0xff]  }
 0x27d   : > { %v3782_v46 = vrot.slane %v3399_v5, 2  ;;  %v3783_v9 = vrot.slane %v3432_v45, 2  ;;  %v3400_v0 = vunpack.c.l.bf16 %v3336_v63  ;;  %v4084_v23 = vrot.slane %v3399_v5, 3 }
 0x27e   : > { %v4085_v2 = vrot.slane %v3432_v45, 3  ;;  %v12535_v28 = vunpack.c.l.bf16 %v12530_v18  ;;  %v12537_v6 = vunpack.c.l.bf16 %v9996_v30  ;;  %v12539_v50 = vunpack.c.h.bf16 %v9996_v30 }
 0x27f   : > { %v3526_v12 = vsel %vm1109_vm4, %v3524_v4, %v3525_v57  ;;  %v3528_v60 = vsel %vm1109_vm4, %v3525_v57, %v3527_v43  ;;  %v3640_v61 = vmax.f32 %v3400_v0, %v3527_v43  ;;  %v4404_v33 = vrot.slane %v4344_v53, 4  ;;  %v14742_v57 = vld [vmem:[#allocation21_spill] sm:$0xff] }
 0x280   : > { %v3638_v36 = vmax.f32 %v3398_v10, %v3526_v12  ;;  %v3639_v24 = vmax.f32 %v3399_v5, %v3528_v60  ;;  %v4959_v42 = vmax.f32 %v14738_v32, %v12537_v6  ;;  %v4960_v21 = vmax.f32 %v14739_v37, %v12539_v50 }
 0x281   : > { %v3784_v40 = vsel %vm1382_vm5, %v3782_v46, %v3783_v9  ;;  %v4405_v49 = vrot.slane %v3432_v45, 4  ;;  %v3880_v55 = vmax.f32 %v3640_v61, %v3783_v9  ;;  %v14740_v63 = vrot.slane %v12283_v27, 3 }
 0x282   : > { %v3878_v22 = vmax.f32 %v3638_v36, %v3782_v46  ;;  %v3879_v20 = vmax.f32 %v3639_v24, %v3784_v40  ;;  %v14741_v10 = vrot.slane %v12204_v35, 3  ;;  %v4086_v4 = vsel %vm1671_vm6, %v4084_v23, %v4085_v2 }
 0x283   : > { %v10036_v8 = vld [vmem:[#allocation3 + $0x30] sm:$0xff]   ;;  %v4088_v53 = vsel %vm1671_vm6, %v4085_v2, %v4087_v11  ;;  %v5109_v43 = vmax.f32 %v4949_v44, %v14742_v57  ;;  %v12557_v12 = vunpack.c.l.bf16 %v3370_v54  ;;  %v4406_v9 = vsel %vm1992_vm7, %v4404_v33, %v4405_v49  ;;  %v3962_v54 = vld [vmem:[#allocation2 + $0x9c] sm:$0x1] }
 0x284   : > { %v6420_v5 = vsel %vm1671_vm6, %v14741_v10, %v14740_v63  ;;  %v4198_v45 = vmax.f32 %v3878_v22, %v4084_v23  ;;  %v4199_v0 = vmax.f32 %v3879_v20, %v4086_v4  ;;  %v4200_v46 = vmax.f32 %v3880_v55, %v4088_v53  ;;  %v14744_v2 = vld [vmem:[#allocation38_spill] sm:$0xff]  ;;  %v3342_v22 = vld [vmem:[#allocation2 + $0x98] sm:$0x7]  ;;  %v12574_v10 = vld [vmem:[#allocation2 + $0x20] sm:$0x8] }
 0x285   : > { %v6547_v30 = vmax.f32 %v12490_v15, %v6420_v5  ;;  %v4408_v60 = vsel %vm1992_vm7, %v4405_v49, %v4407_v34  ;;  %v5269_v35 = vmax.f32 %v5109_v43, %v12535_v28  ;;  %v12562_v36 = vunpack.c.l.bf16 %v10036_v8 }
 0x286   : > { %v4518_v24 = vmax.f32 %v4198_v45, %v4404_v33  ;;  %v4519_v61 = vmax.f32 %v4199_v0, %v4406_v9  ;;  %v4520_v11 = vmax.f32 %v4200_v46, %v4408_v60  ;;  %v14743_v44 = vrot.slane %v12283_v27, 4  ;;  %v12576_v27 = vld [vmem:[#allocation3 + $0x70] sm:$0xff]  }
 0x287   : > { %v12569_v23 = vmax.f32 %v6550_v51, %v12509_v56  ;;  %v4521_v40 = vmax.f32 %v4201_v62, %v12525_v16  ;;  %v5429_v34 = vmax.f32 %v5269_v35, %v12562_v36  ;;  %v14552_v63 = vrot.slane %v12557_v12, 1 }
 0x288   : > { %v6740_v15 = vsel %vm1992_vm7, %v14744_v2, %v14743_v44  ;;  %v4566_v20 = vpack.c.bf16 %v4518_v24, %v4518_v24  ;;  %v4567_v55 = vpack.c.bf16 %v4519_v61, %v4519_v61  ;;  %v4568_v33 = vpack.c.bf16 %v4520_v11, %v4520_v11 }
 0x289   : > { %v6867_v49 = vmax.f32 %v6547_v30, %v6740_v15  ;;  %v5461_v5 = vpack.c.bf16 %v5429_v34, %v5429_v34  ;;  %v6916_v56 = vpack.c.bf16 %v12501_v47, %v12501_v47  ;;  %v4026_v51 = vunpack.c.l.bf16 %v3962_v54 }
 0x28a   : > { %v8768_v62 = vrot.slane %v4566_v20, 11  ;;  %v4692_v53 = vrot.slane %v4567_v55, 7  ;;  %v3406_v57 = vunpack.c.l.bf16 %v3342_v22  ;;  %v4569_v43 = vpack.c.bf16 %v4521_v40, %v4521_v40  ;;  %v3965_v22 = vld [vmem:[#allocation2 + $0xcc] sm:$0x1]  ;;  %v14745_v55 = vld [vmem:[#allocation15_spill] sm:$0xff] }
 0x28b   : > { %v6915_v4 = vpack.c.bf16 %v6867_v49, %v6867_v49  ;;  %v5752_v30 = vunpack.c.l.bf16 %v12574_v10  ;;  %5529 = vrot.lane.b32.xlu2 %v5461_v5, %s10261_s8  ;;  %5654 = vst.msk [vmem:[#allocation2 + $0x24] sm:$0xf] %vm313_vm2, %v5461_v5  ;;  %v9239_v0 = vunpack.c.h.bf16 %v12576_v27  ;;  %v4695_v60 = vrot.slane %v4568_v33, 7  ;;  %v14746_v33 = vld [vmem:[#allocation31_spill] sm:$0xff] }
 0x28c   : > { %v4693_v46 = vsel %vm11012_vm10, %v8768_v62, %v4692_v53  ;;  %v4694_v9 = vrot.slane %v4692_v53, 4  ;;  %v3646_v47 = vmax.f32 %v3406_v57, %v14552_v63  ;;  %v7015_v61 = vrot.slane %v6916_v56, 7 }
 0x28d   : > { %v7012_v45 = vrot.slane %v6915_v4, 7  ;;  %4799 = vst.msk [vmem:[#allocation3 + $0x48] sm:$0xf] %vm313_vm2, %v4693_v46  ;;  %v12592_v11 = vunpack.c.h.bf16 %v10036_v8  ;;  %v4097_v44 = vrot.slane %v4026_v51, 3  ;;  %v14550_v15 = vrot.slane %v12557_v12, 2  ;;  %v14747_v4 = vld [vmem:[#allocation17_spill] sm:$0xff] }
 0x28e   : > { %v4696_v2 = vsel %vm11012_vm10, %v4694_v9, %v4695_v60  ;;  %v12598_v40 = vrot.slane %v4569_v43, 11  ;;  %v12600_v54 = vrot.slane %v4026_v51, 4  ;;  %v2595_v8 = vmax.f32 %v12295_v7, %v12404_v17  ;;  %v14750_v43 = vld [vmem:[#allocation20_spill] sm:$0xff]  ;;  %v14752_v46 = vld [vmem:[#allocation22_spill] sm:$0xff] }
 0x28f   : > { %v7013_v35 = vsel %vm11012_vm10, %v12499_v3, %v7012_v45  ;;  %v7014_v24 = vrot.slane %v7012_v45, 4  ;;  %4800 = vst.msk [vmem:[#allocation3 + $0x4c] sm:$0xf] %vm313_vm2, %v4696_v2  ;;  %v12609_v34 = vmax.f32 %v3646_v47, %v14550_v15  ;;  %v14549_v49 = vrot.slane %v12557_v12, 3 }
 0x290   : > { %7154 = vst.msk [vmem:[#allocation3 + $0x10] sm:$0xf] %vm313_vm2, %v7013_v35  ;;  %v12614_v20 = vrot.slane %v5752_v30, 1  ;;  %v2591_v5 = vmax.f32 %v14746_v33, %v14745_v55  ;;  %v14748_v56 = vunpack.c.l.bf16 %v14747_v4  ;;  %v14749_v62 = vunpack.c.h.bf16 %v14747_v4  ;;  %v14754_v35 = vld [vmem:[#allocation24_spill] sm:$0xff]  ;;  %v14758_v55 = vld [vmem:[#allocation23_spill] sm:$0xff] }
 0x291   : > { %v7016_v3 = vsel %vm11012_vm10, %v7014_v24, %v7015_v61  ;;  %v2755_v57 = vmax.f32 %v2595_v8, %v12407_v29  ;;  %v14751_v45 = vrot.slane %v14750_v43, 2  ;;  %v14753_v9 = vrot.slane %v14752_v46, 2  ;;  %v14756_v61 = vld [vmem:[#allocation19_spill] sm:$0xff] }
 0x292   : > { %7155 = vst.msk [vmem:[#allocation3 + $0x14] sm:$0xf] %vm313_vm2, %v7016_v3  ;;  %v4955_v51 = vmax.f32 %v14748_v56, %v12562_v36  ;;  %v4956_v53 = vmax.f32 %v14749_v62, %v12592_v11  ;;  %v2751_v47 = vmax.f32 %v2591_v5, %v12295_v7  ;;  %v14755_v24 = vrot.slane %v14754_v35, 2  ;;  %v14760_v7 = vld [vmem:[#allocation29_spill] sm:$0xff] }
 0x293   : > { %v3796_v60 = vsel %vm1382_vm5, %v14753_v9, %v14751_v45  ;;  %v14757_v2 = vrot.slane %v14756_v61, 2  ;;  %v14759_v33 = vmax.f32 %v14752_v46, %v14758_v55  ;;  %v4029_v56 = vunpack.c.l.bf16 %v3965_v22 }
 0x294   : > { %v5115_v8 = vmax.f32 %v4955_v51, %v14738_v32  ;;  %v5116_v62 = vmax.f32 %v4956_v53, %v14739_v37  ;;  %v2916_v45 = vmax.f32 %v2755_v57, %v9235_v26  ;;  %v14761_v5 = vmax.f32 %v14756_v61, %v14760_v7 }
 0x295   : > { %v3799_v3 = vsel %vm1382_vm5, %v14757_v2, %v14755_v24  ;;  %v3891_v4 = vmax.f32 %v14759_v33, %v3796_v60  ;;  %v4098_v24 = vsel %vm1671_vm6, %v14549_v49, %v4097_v44  ;;  %v14551_v2 = vrot.slane %v12557_v12, 4 }
 0x296   : > { %v3894_v9 = vmax.f32 %v14761_v5, %v3799_v3  ;;  %v2912_v60 = vmax.f32 %v2751_v47, %v12404_v17  ;;  %v4112_v22 = vrot.slane %v4029_v56, 3  ;;  %v4206_v51 = vmax.f32 %v12609_v34, %v4098_v24  ;;  %v10011_v33 = vld [vmem:[#allocation3 + $0x48] sm:$0xff]  }
 0x297   : > { %v5275_v53 = vmax.f32 %v5115_v8, %v12537_v6  ;;  %v5276_v55 = vmax.f32 %v5116_v62, %v12539_v50  ;;  %v14762_v26 = vrot.slane %v14750_v43, 3  ;;  %v14763_v57 = vrot.slane %v14752_v46, 3  ;;  %v3961_v24 = vld [vmem:[#allocation2 + $0x8c] sm:$0x1] }
 0x298   : > { %v3073_v44 = vmax.f32 %v2912_v60, %v12407_v29  ;;  %v3077_v7 = vmax.f32 %v2916_v45, %v9239_v0  ;;  %v14764_v5 = vrot.slane %v14754_v35, 3  ;;  %v14765_v17 = vrot.slane %v14756_v61, 3  ;;  %v14767_v0 = vld [vmem:[#allocation32_spill] sm:$0xff]  ;;  %v14768_v60 = vld [vmem:[#allocation18_spill] sm:$0xff] }
 0x299   : > { %v4106_v3 = vsel %vm1671_vm6, %v14763_v57, %v14762_v26  ;;  %v12666_v8 = vunpack.c.l.bf16 %v10011_v33  ;;  %v12668_v62 = vunpack.c.h.bf16 %v10011_v33  ;;  %v14769_v15 = vunpack.c.l.bf16 %v14768_v60  ;;  %v5689_v33 = vld [vmem:[#allocation2 + $0x24] sm:$0xf] }
 0x29a   : > { %v4111_v34 = vsel %vm1671_vm6, %v14765_v17, %v14764_v5  ;;  %v4211_v47 = vmax.f32 %v3891_v4, %v4106_v3  ;;  %v14766_v46 = vmov %v14764_v5  ;;  %v3105_v49 = vpack.c.bf16 %v3073_v44, %v3073_v44  ;;  %v14772_v5 = vld [vmem:[#allocation30_spill] sm:$0xff] }
 0x29b   : > { %v4113_v26 = vsel %vm1671_vm6, %v14766_v46, %v4112_v22  ;;  %v4214_v57 = vmax.f32 %v3894_v9, %v4111_v34  ;;  %v3109_v29 = vpack.c.bf16 %v3077_v7, %v3077_v7  ;;  %v4427_v61 = vrot.slane %v14769_v15, 4 }
 0x29c   : > { %v4215_v45 = vmax.f32 %v14767_v0, %v4113_v26  ;;  %v12680_v4 = vmax.f32 %v4959_v42, %v12666_v8  ;;  %v12686_v3 = vmax.f32 %v4960_v21, %v12668_v62  ;;  %v5435_v9 = vmax.f32 %v5275_v53, %v12666_v8  ;;  %3298 = vst.msk [vmem:[#allocation2 + $0x88] sm:$0xf] %vm313_vm2, %v3105_v49  ;;  %v14775_v26 = vld [vmem:[#allocation25_spill] sm:$0xff] }
 0x29d   : > { %v5436_v22 = vmax.f32 %v5276_v55, %v12668_v62  ;;  %v4025_v15 = vunpack.c.l.bf16 %v3961_v24  ;;  %3186 = vrot.lane.b32.xlu0 %v3105_v49, %s10260_s20  ;;  %v14770_v44 = vrot.slane %v14750_v43, 4  ;;  %v14771_v7 = vrot.slane %v14754_v35, 4  ;;  %v14774_v55 = vld [vmem:[#allocation26_spill] sm:$0xff]  ;;  %v14776_v24 = vld [vmem:[#allocation16_spill] sm:$0xff]  ;;  %3194 = vrot.lane.b32.xlu1 %v3109_v29, %s10260_s20  ;;  %3302 = vst.msk [vmem:[#allocation2 + $0xa8] sm:$0xf] %vm313_vm2, %v3109_v29 }
 0x29e   : > { %v4432_v17 = vrot.slane %v4029_v56, 4  ;;  %v12699_v34 = vpack.c.bf16 %v5435_v9, %v5435_v9  ;;  %v4531_v46 = vmax.f32 %v4211_v47, %v14774_v55  ;;  %v14777_v0 = vmax.f32 %v14775_v26, %v14776_v24  ;;  %v14779_v56 = vld [vmem:[#allocation33_spill] sm:$0xff]  ;;  %v3352_v35 = vld [vmem:[#allocation2 + $0xd0] sm:$0x8] }
 0x29f   : > { %v4428_v42 = vsel %vm1992_vm7, %v14770_v44, %v4427_v61  ;;  %v4431_v21 = vsel %vm1992_vm7, %v14772_v5, %v14771_v7  ;;  %v12701_v53 = vpack.c.bf16 %v5436_v22, %v5436_v22  ;;  %v12708_v43 = vunpack.c.l.bf16 %v5689_v33  ;;  %v12730_v55 = vld [vmem:[#allocation2 + $0xac] sm:$0x1] }
 0x2a0   : > { %14773 = vst [vmem:[#allocation39_spill] sm:$0xff] %v12699_v34  ;;  %v4532_v49 = vmax.f32 %v14777_v0, %v4428_v42  ;;  %v14778_v60 = vmov %v14771_v7  ;;  %v4534_v44 = vmax.f32 %v4214_v57, %v4431_v21  ;;  %v4581_v9 = vpack.c.bf16 %v14779_v56, %v14779_v56  ;;  %v3353_v21 = vld [vmem:[#allocation2 + $0xd4] sm:$0xf] }
 0x2a1   : > { %v4433_v61 = vsel %vm1992_vm7, %v14778_v60, %v4432_v17  ;;  %v4418_v47 = vsel %vm1992_vm7, %v14551_v2, %v12600_v54  ;;  %5660 = vst.msk [vmem:[#allocation2 + $0x54] sm:$0xf] %vm313_vm2, %v12699_v34  ;;  %v4579_v33 = vpack.c.bf16 %v4531_v46, %v4531_v46  ;;  %v4092_v17 = vrot.slane %v4025_v15, 3  ;;  %v12738_v2 = vld [vmem:[#allocation2 + $0x24] sm:$0xe] }
 0x2a2   : > { %v4535_v22 = vmax.f32 %v4215_v45, %v4433_v61  ;;  %v4580_v42 = vpack.c.bf16 %v4532_v49, %v4532_v49  ;;  %v12722_v7 = vmax.f32 %v4206_v51, %v4418_v47  ;;  %5661 = vst.msk [vmem:[#allocation2 + $0x58] sm:$0xf] %vm313_vm2, %v12701_v53  ;;  %v4582_v29 = vpack.c.bf16 %v4534_v44, %v4534_v44  ;;  %v14780_v61 = vld [vmem:[#allocation28_spill] sm:$0xff] }
 0x2a3   : > { %v8773_v5 = vrot.slane %v4581_v9, 11  ;;  %v4720_v46 = vrot.slane %v4579_v33, 7  ;;  %v14553_v51 = vrot.slane %v12708_v43, 1  ;;  %v4412_v26 = vrot.slane %v4025_v15, 4  ;;  %v3339_v49 = vld [vmem:[#allocation2 + $0x88] sm:$0x7] }
 0x2a4   : > { %v4583_v45 = vpack.c.bf16 %v4535_v22, %v4535_v22  ;;  %v4727_v24 = vrot.slane %v4582_v29, 7  ;;  %v3416_v0 = vunpack.c.l.bf16 %v3352_v35  ;;  %v3369_v60 = vld [vmem:[#allocation2 + $0x88] sm:$0xf]  ;;  %v4723_v9 = vrot.slane %v4580_v42, 7 }
 0x2a5   : > { %v4721_v44 = vsel %vm11012_vm10, %v14780_v61, %v4720_v46  ;;  %v4722_v56 = vrot.slane %v4720_v46, 4  ;;  %v12736_v47 = vunpack.c.l.bf16 %v3353_v21  ;;  %v3433_v63 = vunpack.c.l.bf16 %v3369_v60 }
 0x2a6   : > { %v4027_v22 = vunpack.c.l.bf16 %v12730_v55  ;;  %v4728_v15 = vsel %vm11012_vm10, %v8773_v5, %v4727_v24  ;;  %v4730_v33 = vrot.slane %v4583_v45, 7  ;;  %4807 = vst.msk [vmem:[#allocation3 + $0x68] sm:$0xf] %vm313_vm2, %v4721_v44  ;;  %v4729_v29 = vrot.slane %v4727_v24, 4  ;;  %v3371_v24 = vld [vmem:[#allocation2 + $0xa8] sm:$0xf] }
 0x2a7   : > { %v4724_v35 = vsel %vm11012_vm10, %v4722_v56, %v4723_v9  ;;  %4809 = vst.msk [vmem:[#allocation3 + $0x70] sm:$0xf] %vm313_vm2, %v4728_v15  ;;  %v3554_v42 = vrot.slane %v3416_v0, 1  ;;  %v3555_v21 = vrot.slane %v12736_v47, 1  ;;  %v5870_v46 = vsel %vm1109_vm4, %v12614_v20, %v14553_v51  ;;  %v3155_v56 = vpop.permute.xlu1 %3154  ;;  %v3153_v9 = vpop.permute.xlu0 %3152 }
 0x2a8   : > { %v3403_v60 = vunpack.c.l.bf16 %v3339_v49  ;;  %v3532_v61 = vrot.slane %v3433_v63, 1  ;;  %v3786_v5 = vrot.slane %v3433_v63, 2  ;;  %4808 = vst.msk [vmem:[#allocation3 + $0x6c] sm:$0xf] %vm313_vm2, %v4724_v35  ;;  %v4090_v45 = vrot.slane %v3433_v63, 3  ;;  %v14781_v49 = vld [vmem:[#allocation27_spill] sm:$0xff] }
 0x2a9   : > { %v4731_v44 = vsel %vm11012_vm10, %v4729_v29, %v4730_v33  ;;  %v3556_v15 = vsel %vm1109_vm4, %v3554_v42, %v3555_v21  ;;  %v6708_v14 = vunpack.c.l.bf16 %v12738_v2  ;;  %v14782_v35 = vrot.slane %v14781_v49, 1  ;;  %3250 = vst.msk [vmem:[#allocation4 + $0x4] sm:$0xf] %vm3248_vm11, %v3155_v56 }
 0x2aa   : > { %v3643_v54 = vmax.f32 %v3403_v60, %v3532_v61  ;;  %v3533_v20 = vsel %vm1109_vm4, %v3530_v31, %v3532_v61  ;;  %4810 = vst.msk [vmem:[#allocation3 + $0x74] sm:$0xf] %vm313_vm2, %v4731_v44  ;;  %v5992_v33 = vmax.f32 %v5752_v30, %v5870_v46  ;;  %v4410_v29 = vrot.slane %v3433_v63, 4  ;;  %v3966_v60 = vld [vmem:[#allocation2 + $0xdc] sm:$0x1] }
 0x2ab   : > { %v3558_v51 = vsel %vm1109_vm4, %v3555_v21, %v14782_v35  ;;  %v3642_v57 = vmax.f32 %v12416_v52, %v3533_v20  ;;  %v12769_v42 = vrot.slane %v4027_v22, 3  ;;  %v3787_v61 = vsel %vm1382_vm5, %v3785_v59, %v3786_v5  ;;  %3249 = vst.msk [vmem:[#allocation4] sm:$0xf] %vm3248_vm11, %v3153_v9  ;;  %v4286_v9 = vld [vmem:[#allocation2 + $0xd4] sm:$0xe] }
 0x2ac   : > { %v3883_v31 = vmax.f32 %v3643_v54, %v3786_v5  ;;  %v12775_v44 = vunpack.c.l.bf16 %v3371_v24  ;;  %v3656_v10 = vmax.f32 %v3416_v0, %v3556_v15  ;;  %v4093_v63 = vsel %vm1671_vm6, %v4090_v45, %v4092_v17  ;;  %v3345_v17 = vld [vmem:[#allocation2 + $0xa8] sm:$0x7] }
 0x2ad   : > { %v3882_v30 = vmax.f32 %v3642_v57, %v3787_v61  ;;  %v3657_v21 = vmax.f32 %v12736_v47, %v3558_v51  ;;  %v3800_v46 = vrot.slane %v12736_v47, 2  ;;  %v14555_v56 = vrot.slane %v12708_v43, 2 }
 0x2ae   : > { %v4203_v20 = vmax.f32 %v3883_v31, %v4093_v63  ;;  %v4091_v54 = vsel %vm1671_vm6, %v4089_v19, %v4090_v45  ;;  %v4030_v59 = vunpack.c.l.bf16 %v3966_v60  ;;  %v4413_v5 = vsel %vm1992_vm7, %v4410_v29, %v4412_v26 }
 0x2af   : > { %v4202_v24 = vmax.f32 %v3882_v30, %v4091_v54  ;;  %v4411_v0 = vsel %vm1992_vm7, %v12525_v16, %v4410_v29  ;;  %v14783_v57 = vrot.slane %v14781_v49, 2  ;;  %v14562_v35 = vrot.slane %v12775_v44, 1 }
 0x2b0   : > { %v4523_v15 = vmax.f32 %v4203_v20, %v4413_v5  ;;  %v3896_v31 = vmax.f32 %v3656_v10, %v3800_v46  ;;  %v6232_v19 = vmax.f32 %v5992_v33, %v14555_v56  ;;  %v4114_v26 = vrot.slane %v12736_v47, 3 }
 0x2b1   : > { %v3802_v51 = vsel %vm1382_vm5, %v3800_v46, %v14783_v57  ;;  %v4522_v45 = vmax.f32 %v4202_v24, %v4411_v0  ;;  %v4115_v60 = vrot.slane %v14781_v49, 3  ;;  %v3409_v29 = vunpack.c.l.bf16 %v3345_v17  ;;  %v14784_v24 = vld [vmem:[#allocation41_spill] sm:$0xff] }
 0x2b2   : > { %v3897_v52 = vmax.f32 %v3657_v21, %v3802_v51  ;;  %v4571_v16 = vpack.c.bf16 %v4523_v15, %v4523_v15  ;;  %v4117_v61 = vrot.slane %v4030_v59, 3  ;;  %v4350_v63 = vunpack.c.l.bf16 %v4286_v9 }
 0x2b3   : > { %v14554_v30 = vrot.slane %v12708_v43, 3  ;;  %v4570_v54 = vpack.c.bf16 %v4522_v45, %v4522_v45  ;;  %v4116_v20 = vsel %vm1671_vm6, %v4114_v26, %v4115_v60  ;;  %v4435_v10 = vrot.slane %v14781_v49, 4 }
 0x2b4   : > { %v3649_v21 = vmax.f32 %v3409_v29, %v14562_v35  ;;  %v4118_v33 = vsel %vm1671_vm6, %v4115_v60, %v4117_v61  ;;  %v4216_v46 = vmax.f32 %v3896_v31, %v4114_v26  ;;  %v4217_v47 = vmax.f32 %v3897_v52, %v4116_v20 }
 0x2b5   : > { %v4699_v5 = vrot.slane %v4570_v54, 7  ;;  %v4218_v0 = vmax.f32 %v14784_v24, %v4118_v33  ;;  %v4434_v17 = vrot.slane %v4350_v63, 4  ;;  %v4437_v57 = vrot.slane %v4030_v59, 4 }
 0x2b6   : > { %v6552_v51 = vmax.f32 %v6232_v19, %v14554_v30  ;;  %v4702_v9 = vrot.slane %v4571_v16, 7  ;;  %v14561_v15 = vrot.slane %v12775_v44, 2  ;;  %v14559_v49 = vrot.slane %v12775_v44, 3  ;;  %v10043_v30 = vld [vmem:[#allocation3 + $0x68] sm:$0xff]  }
 0x2b7   : > { %v4700_v45 = vsel %vm11012_vm10, %v12598_v40, %v4699_v5  ;;  %v4701_v60 = vrot.slane %v4699_v5, 4  ;;  %v4436_v31 = vsel %vm1992_vm7, %v4434_v17, %v4435_v10  ;;  %v4438_v52 = vsel %vm1992_vm7, %v4435_v10, %v4437_v57 }
 0x2b8   : > { %4801 = vst.msk [vmem:[#allocation3 + $0x50] sm:$0xf] %vm313_vm2, %v4700_v45  ;;  %v3889_v59 = vmax.f32 %v3649_v21, %v14561_v15  ;;  %v4536_v19 = vmax.f32 %v4216_v46, %v4434_v17  ;;  %v4537_v26 = vmax.f32 %v4217_v47, %v4436_v31  ;;  %v4538_v16 = vmax.f32 %v4218_v0, %v4438_v52  ;;  %v14788_v0 = vld [vmem:[#allocation34_spill] sm:$0xff] }
 0x2b9   : > { %v12817_v29 = vrot.slane %v6708_v14, 4  ;;  %v4422_v40 = vrot.slane %v4027_v22, 4  ;;  %v4703_v61 = vsel %vm11012_vm10, %v4701_v60, %v4702_v9  ;;  %v14785_v63 = vmax.f32 %v12562_v36, %v14738_v32 }
 0x2ba   : > { %4802 = vst.msk [vmem:[#allocation3 + $0x54] sm:$0xf] %vm313_vm2, %v4703_v61  ;;  %v4584_v20 = vpack.c.bf16 %v4536_v19, %v4536_v19  ;;  %v4585_v10 = vpack.c.bf16 %v4537_v26, %v4537_v26  ;;  %v4586_v21 = vpack.c.bf16 %v4538_v16, %v4538_v16  ;;  %v4103_v14 = vsel %vm1671_vm6, %v14559_v49, %v12769_v42 }
 0x2bb   : > { %v5117_v54 = vmax.f32 %v14785_v63, %v12537_v6  ;;  %v6872_v2 = vmax.f32 %v6552_v51, %v12817_v29  ;;  %v14556_v55 = vrot.slane %v12775_v44, 4  ;;  %v14786_v22 = vunpack.c.l.bf16 %v12399_v1 }
 0x2bc   : > { %v14787_v6 = vmax.f32 %v12592_v11, %v14739_v37  ;;  %v4209_v46 = vmax.f32 %v3889_v59, %v4103_v14  ;;  %v8774_v47 = vrot.slane %v4584_v20, 11  ;;  %v4734_v5 = vrot.slane %v4585_v10, 7  ;;  %v12860_v59 = vld [vmem:[#allocation3 + $0x70] sm:$0xff]   ;;  %v12880_v20 = vld [vmem:[#allocation3 + $0x68] sm:$0xff]  }
 0x2bd   : > { %v2592_v33 = vmax.f32 %v14786_v22, %v12291_v25  ;;  %v6918_v24 = vpack.c.bf16 %v12569_v23, %v12569_v23  ;;  %v6919_v42 = vpack.c.bf16 %v12523_v38, %v12523_v38  ;;  %v4574_v1 = vpack.c.bf16 %v12722_v7, %v12722_v7  ;;  %v14789_v23 = vld [vmem:[#allocation35_spill] sm:$0xff]  ;;  %v12882_v10 = vld [vmem:[#allocation2 + $0xd0] sm:$0x8] }
 0x2be   : > { %v5118_v32 = vmax.f32 %v14787_v6, %v12539_v50  ;;  %v4735_v57 = vsel %vm11012_vm10, %v8774_v47, %v4734_v5  ;;  %v4736_v51 = vrot.slane %v4734_v5, 4  ;;  %v4737_v37 = vrot.slane %v4586_v21, 7  ;;  %v12888_v22 = vld [vmem:[#allocation2 + $0x90] sm:$0x8] }
 0x2bf   : > { %v2752_v17 = vmax.f32 %v2592_v33, %v14788_v0  ;;  %v5277_v50 = vmax.f32 %v5117_v54, %v12666_v8  ;;  %v4423_v9 = vsel %vm1992_vm7, %v14556_v55, %v4422_v40  ;;  %4811 = vst.msk [vmem:[#allocation3 + $0x78] sm:$0xf] %vm313_vm2, %v4735_v57  ;;  %v9234_v45 = vunpack.c.l.bf16 %v12411_v48  ;;  %v12862_v8 = vld [vmem:[#allocation3 + $0x20] sm:$0xff]  }
 0x2c0   : > { %v6920_v60 = vpack.c.bf16 %v6872_v2, %v6872_v2  ;;  %v5278_v7 = vmax.f32 %v5118_v32, %v12668_v62  ;;  %v4529_v31 = vmax.f32 %v4209_v46, %v4423_v9  ;;  %v4738_v52 = vsel %vm11012_vm10, %v4736_v51, %v4737_v37  ;;  %v10191_v37 = vld [vmem:[#allocation3 + $0x18] sm:$0xff]  }
 0x2c1   : > { %v2913_v38 = vmax.f32 %v2752_v17, %v14789_v23  ;;  %v14790_v19 = vpack.c.bf16 %v12471_v41, %v12471_v41  ;;  %v12869_v16 = vrot.slane %v6918_v24, 7  ;;  %v12871_v40 = vrot.slane %v6919_v42, 7  ;;  %v10026_v48 = vld [vmem:[#allocation3 + $0x50] sm:$0xff]   ;;  %4812 = vst.msk [vmem:[#allocation3 + $0x7c] sm:$0xf] %vm313_vm2, %v4738_v52  ;;  %v12884_v41 = vld [vmem:[#allocation3 + $0x18] sm:$0xff]  }
 0x2c2   : > { %v12874_v61 = vrot.slane %v4574_v1, 7  ;;  %v12876_v63 = vunpack.c.l.bf16 %v10026_v48  ;;  %v12878_v54 = vunpack.c.h.bf16 %v10026_v48  ;;  %v9238_v21 = vunpack.c.l.bf16 %v12576_v27  ;;  %v12897_v24 = vld [vmem:[#allocation3 + $0x80] sm:$0xff]   ;;  %v12900_v42 = vld [vmem:[#allocation3 + $0x88] sm:$0xff]  }
 0x2c3   : > { %v12867_v26 = vrot.slane %v14790_v19, 11  ;;  %v3074_v62 = vmax.f32 %v2913_v38, %v9234_v45  ;;  %v9378_v2 = vunpack.c.l.bf16 %v12860_v59  ;;  %v9338_v33 = vunpack.c.l.bf16 %v12862_v8  ;;  %v10192_v19 = vld [vmem:[#allocation3 + $0x20] sm:$0xff]  }
 0x2c4   : > { %v2594_v6 = vmax.f32 %v12291_v25, %v14788_v0  ;;  %v12893_v32 = vrot.slane %v6920_v60, 11  ;;  %v5437_v46 = vmax.f32 %v5277_v50, %v12876_v63  ;;  %v5438_v47 = vmax.f32 %v5278_v7, %v12878_v54 }
 0x2c5   : > { %v3106_v14 = vpack.c.bf16 %v3074_v62, %v3074_v62  ;;  %v4577_v5 = vpack.c.bf16 %v4529_v31, %v4529_v31  ;;  %v9314_v27 = vunpack.c.l.bf16 %v12880_v20  ;;  %v14558_v17 = vunpack.c.l.bf16 %v12882_v10 }
 0x2c6   : > { %v9274_v25 = vunpack.c.l.bf16 %v12884_v41  ;;  %v2754_v0 = vmax.f32 %v2594_v6, %v14789_v23  ;;  %v12907_v1 = vpack.c.bf16 %v5437_v46, %v5437_v46  ;;  %v12909_v57 = vpack.c.bf16 %v5438_v47, %v5438_v47  ;;  %v12931_v46 = vld [vmem:[#allocation3 + $0x38] sm:$0xff]   ;;  %v14793_v47 = vld [vmem:[#allocation14_spill] sm:$0xff] }
 0x2c7   : > { %3188 = vrot.lane.b32.xlu0 %v3106_v14, %s10260_s20  ;;  %3299 = vst.msk [vmem:[#allocation2 + $0x94] sm:$0xf] %vm313_vm2, %v3106_v14  ;;  %v3404_v51 = vunpack.c.l.bf16 %v12888_v22  ;;  %v9335_v50 = vunpack.c.h.bf16 %v10191_v37  ;;  %v4971_v9 = vmax.f32 %v9314_v27, %v9378_v2  ;;  %v9506_v38 = vunpack.c.l.bf16 %v12897_v24  ;;  %v12939_v37 = vld [vmem:[#allocation2 + $0x30] sm:$0x8] }
 0x2c8   : > { %14791 = vst [vmem:[#allocation40_spill] sm:$0xff] %v12907_v1  ;;  %v4951_v60 = vmax.f32 %v9274_v25, %v9338_v33  ;;  %v2915_v7 = vmax.f32 %v2754_v0, %v9234_v45  ;;  %v12917_v31 = vrot.slane %v4577_v5, 7  ;;  %v12919_v23 = vld [vmem:[#allocation3 + $0x78] sm:$0xff]   ;;  %v9570_v52 = vunpack.c.l.bf16 %v12900_v42 }
 0x2c9   : > { %14792 = vst [vmem:[#allocation21_spill] sm:$0xff] %v12909_v57  ;;  %v9399_v48 = vunpack.c.h.bf16 %v10192_v19  ;;  %v14557_v62 = vunpack.c.l.bf16 %v12919_v23  ;;  %v14563_v45 = vunpack.c.h.bf16 %v12862_v8  ;;  %v12929_v22 = vrot.slane %v14558_v17, 1  ;;  %v3157_v19 = vpop.permute.xlu0 %3156 }
 0x2ca   : > { %5662 = vst.msk [vmem:[#allocation2 + $0x64] sm:$0xf] %vm313_vm2, %v12907_v1  ;;  %v5111_v2 = vmax.f32 %v4951_v60, %v12535_v28  ;;  %v3076_v14 = vmax.f32 %v2915_v7, %v9238_v21  ;;  %v3534_v6 = vrot.slane %v3404_v51, 1  ;;  %v4950_v5 = vmax.f32 %v14793_v47, %v9335_v50  ;;  %v3159_v7 = vpop.permute.xlu1 %3158 }
 0x2cb   : > { %5663 = vst.msk [vmem:[#allocation2 + $0x68] sm:$0xf] %vm313_vm2, %v12909_v57  ;;  %v9275_v27 = vunpack.c.h.bf16 %v12884_v41  ;;  %v5131_v25 = vmax.f32 %v4971_v9, %v14557_v62  ;;  %v14560_v21 = vunpack.c.l.bf16 %v12931_v46  ;;  %v12943_v41 = vunpack.c.h.bf16 %v12530_v18  ;;  %v12947_v62 = vld [vmem:[#allocation2 + $0xa0] sm:$0x8] }
 0x2cc   : > { %v5271_v0 = vmax.f32 %v5111_v2, %v12562_v36  ;;  %v3108_v60 = vpack.c.bf16 %v3076_v14, %v3076_v14  ;;  %3252 = vst.msk [vmem:[#allocation4 + $0xc] sm:$0xf] %vm3248_vm11, %v3159_v7  ;;  %v5110_v50 = vmax.f32 %v4950_v5, %v9399_v48  ;;  %v6324_v14 = vld [vmem:[#allocation2 + $0x2c] sm:$0x1]  ;;  %v14564_v7 = vunpack.c.l.bf16 %v12939_v37 }
 0x2cd   : > { %v5291_v47 = vmax.f32 %v5131_v25, %v9506_v38  ;;  %v12953_v17 = vmax.f32 %v9275_v27, %v14563_v45  ;;  %3251 = vst.msk [vmem:[#allocation4 + $0x8] sm:$0xf] %vm3248_vm11, %v3157_v19  ;;  %v12958_v38 = vunpack.c.l.bf16 %v10043_v30  ;;  %v3407_v49 = vunpack.c.l.bf16 %v12947_v62 }
 0x2ce   : > { %v3341_v56 = vld [vmem:[#allocation2 + $0x94] sm:$0xf]  ;;  %v5431_v2 = vmax.f32 %v5271_v0, %v14560_v21  ;;  %3301 = vst.msk [vmem:[#allocation2 + $0xa4] sm:$0xf] %vm313_vm2, %v3108_v60  ;;  %v5270_v18 = vmax.f32 %v5110_v50, %v12943_v41  ;;  %v6388_v21 = vunpack.c.l.bf16 %v6324_v14  ;;  %v14794_v50 = vrot.slane %v12557_v12, 1 }
 0x2cf   : > { %v4282_v55 = vld [vmem:[#allocation2 + $0x94] sm:$0xe]  ;;  %v3405_v9 = vunpack.c.l.bf16 %v3341_v56  ;;  %3192 = vrot.lane.b32.xlu0 %v3108_v60, %s10260_s20  ;;  %v5451_v5 = vmax.f32 %v5291_v47, %v9570_v52  ;;  %v9379_v62 = vunpack.c.h.bf16 %v12860_v59  ;;  %v14799_v59 = vrot.slane %v12775_v44, 1 }
 0x2d0   : > { %v4346_v48 = vunpack.c.l.bf16 %v4282_v55  ;;  %v5463_v60 = vpack.c.bf16 %v5431_v2, %v5431_v2  ;;  %v5430_v27 = vmax.f32 %v5270_v18, %v12592_v11  ;;  %v12977_v18 = vunpack.c.h.bf16 %v10043_v30 }
 0x2d1   : > { %v3535_v25 = vrot.slane %v3405_v9, 1  ;;  %v3788_v0 = vrot.slane %v3405_v9, 2  ;;  %v5483_v55 = vpack.c.bf16 %v5451_v5, %v5451_v5  ;;  %v4094_v56 = vrot.slane %v3405_v9, 3 }
 0x2d2   : > { %v4414_v45 = vrot.slane %v4346_v48, 4  ;;  %5656 = vst.msk [vmem:[#allocation2 + $0x34] sm:$0xf] %vm313_vm2, %v5463_v60  ;;  %v5462_v14 = vpack.c.bf16 %v5430_v27, %v5430_v27  ;;  %v12989_v30 = vrot.slane %v6388_v21, 4  ;;  %v14797_v27 = vrot.slane %v12557_v12, 4 }
 0x2d3   : > { %v3536_v19 = vsel %vm1109_vm4, %v3534_v6, %v3535_v25  ;;  %v3538_v15 = vsel %vm1109_vm4, %v3535_v25, %v14794_v50  ;;  %5676 = vst.msk [vmem:[#allocation2 + $0xd4] sm:$0xf] %vm313_vm2, %v5483_v55  ;;  %5573 = vrot.lane.b32.xlu2 %v5483_v55, %s10261_s8  ;;  %v14795_v6 = vrot.slane %v12557_v12, 2  ;;  %v14796_v25 = vrot.slane %v12557_v12, 3 }
 0x2d4   : > { %v3644_v47 = vmax.f32 %v3404_v51, %v3536_v19  ;;  %v3645_v35 = vmax.f32 %v3405_v9, %v3538_v15  ;;  %v5873_v15 = vrot.slane %v14564_v7, 1  ;;  %v3539_v9 = vrot.slane %v3407_v49, 1  ;;  %5655 = vst.msk [vmem:[#allocation2 + $0x28] sm:$0xf] %vm313_vm2, %v5462_v14 }
 0x2d5   : > { %v3790_v2 = vsel %vm1382_vm5, %v3788_v0, %v14795_v6  ;;  %v3344_v48 = vld [vmem:[#allocation2 + $0xa4] sm:$0xf]  ;;  %v4096_v19 = vsel %vm1671_vm6, %v4094_v56, %v14796_v25  ;;  %v12987_v6 = vrot.slane %v6388_v21, 3  ;;  %v14801_v58 = vrot.slane %v12775_v44, 2 }
 0x2d6   : > { %v3884_v5 = vmax.f32 %v3644_v47, %v3788_v0  ;;  %v3885_v51 = vmax.f32 %v3645_v35, %v3790_v2  ;;  %v12984_v50 = vunpack.c.l.bf16 %v3344_v48  ;;  %v4283_v55 = vld [vmem:[#allocation2 + $0xa4] sm:$0xe]  ;;  %v4416_v47 = vsel %vm1992_vm7, %v4414_v45, %v14797_v27 }
 0x2d7   : > { %5531 = vrot.lane.b32.xlu0 %v5462_v14, %s10261_s8  ;;  %v4953_v2 = vmax.f32 %v9338_v33, %v12535_v28  ;;  %v12998_v48 = vld [vmem:[#allocation3 + $0x40] sm:$0xff]  }
 0x2d8   : > { %v4204_v35 = vmax.f32 %v3884_v5, %v4094_v56  ;;  %v4205_v0 = vmax.f32 %v3885_v51, %v4096_v19  ;;  %v3540_v25 = vrot.slane %v12984_v50, 1  ;;  %v14798_v56 = vunpack.c.h.bf16 %v12862_v8  ;;  %v13010_v28 = vld [vmem:[#allocation2 + $0x40] sm:$0x8] }
 0x2d9   : > { %v4347_v51 = vunpack.c.l.bf16 %v4283_v55  ;;  %v5113_v19 = vmax.f32 %v4953_v2, %v12562_v36  ;;  %v5692_v33 = vld [vmem:[#allocation2 + $0x34] sm:$0xf]  ;;  %v3791_v21 = vrot.slane %v12984_v50, 2  ;;  %v4099_v36 = vrot.slane %v12984_v50, 3 }
 0x2da   : > { %v13007_v14 = vmax.f32 %v14798_v56, %v12943_v41  ;;  %v4524_v12 = vmax.f32 %v4204_v35, %v4414_v45  ;;  %v4525_v5 = vmax.f32 %v4205_v0, %v4416_v47  ;;  %v3541_v27 = vsel %vm1109_vm4, %v3539_v9, %v3540_v25  ;;  %v5722_v56 = vld [vmem:[#allocation2 + $0xd4] sm:$0xf] }
 0x2db   : > { %v3543_v52 = vsel %vm1109_vm4, %v3540_v25, %v14799_v59  ;;  %v13018_v35 = vunpack.c.l.bf16 %v5692_v33  ;;  %v13021_v55 = vunpack.c.l.bf16 %v5722_v56  ;;  %v6655_v0 = vld [vmem:[#allocation2 + $0xd4] sm:$0xe]  ;;  %5533 = vrot.lane.b32.xlu2 %v5463_v60, %s10261_s8  ;;  %v3647_v9 = vmax.f32 %v3407_v49, %v3541_v27  ;;  %v5690_v1 = vld [vmem:[#allocation2 + $0x28] sm:$0x7] }
 0x2dc   : > { %v4572_v7 = vpack.c.bf16 %v4524_v12, %v4524_v12  ;;  %v4573_v45 = vpack.c.bf16 %v4525_v5, %v4525_v5  ;;  %v14800_v2 = vunpack.c.h.bf16 %v12880_v20  ;;  %v3648_v5 = vmax.f32 %v12984_v50, %v3543_v52  ;;  %v6645_v56 = vld [vmem:[#allocation2 + $0x34] sm:$0xe] }
 0x2dd   : > { %v14566_v12 = vrot.slane %v13018_v35, 1  ;;  %v14569_v33 = vrot.slane %v13021_v55, 1  ;;  %v3793_v49 = vsel %vm1382_vm5, %v3791_v21, %v14801_v58  ;;  %v4419_v60 = vrot.slane %v4347_v51, 4 }
 0x2de   : > { %v13027_v25 = vmax.f32 %v14800_v2, %v9379_v62  ;;  %v8770_v59 = vrot.slane %v4572_v7, 11  ;;  %v13029_v8 = vrot.slane %v4573_v45, 7  ;;  %v14802_v27 = vunpack.c.l.bf16 %v12931_v46  ;;  %v5732_v2 = vld [vmem:[#allocation2 + $0x28] sm:$0xf] }
 0x2df   : > { %v6719_v62 = vunpack.c.l.bf16 %v6655_v0  ;;  %v5875_v52 = vsel %vm1109_vm4, %v5873_v15, %v14566_v12  ;;  %v14803_v50 = vrot.slane %v12775_v44, 3  ;;  %v5925_v58 = vsel %vm1109_vm4, %v12929_v22, %v14569_v33 }
 0x2e0   : > { %v5273_v20 = vmax.f32 %v5113_v19, %v14802_v27  ;;  %v4707_v7 = vsel %vm11012_vm10, %v8770_v59, %v13029_v8  ;;  %v14804_v51 = vunpack.c.l.bf16 %v12939_v37  ;;  %v6139_v0 = vrot.slane %v13018_v35, 2 }
 0x2e1   : > { %v4101_v45 = vsel %vm1671_vm6, %v4099_v36, %v14803_v50  ;;  %4803 = vst.msk [vmem:[#allocation3 + $0x58] sm:$0xf] %vm313_vm2, %v4707_v7  ;;  %v3887_v59 = vmax.f32 %v3647_v9, %v3791_v21  ;;  %v14805_v15 = vunpack.c.l.bf16 %v12882_v10  ;;  %v6169_v12 = vrot.slane %v13021_v55, 2 }
 0x2e2   : > { %v5995_v19 = vmax.f32 %v14804_v51, %v5875_v52  ;;  %v6709_v50 = vunpack.c.l.bf16 %v6645_v56  ;;  %v3888_v47 = vmax.f32 %v3648_v5, %v3793_v49  ;;  %v6483_v39 = vrot.slane %v13021_v55, 3 }
 0x2e3   : > { %v6025_v27 = vmax.f32 %v14805_v15, %v5925_v58  ;;  %v4207_v7 = vmax.f32 %v3887_v59, %v4099_v36  ;;  %v5796_v33 = vunpack.c.l.bf16 %v5732_v2  ;;  %v13062_v37 = vrot.slane %v6719_v62, 4 }
 0x2e4   : > { %v6235_v22 = vmax.f32 %v5995_v19, %v6139_v0  ;;  %v14577_v52 = vrot.slane %v13018_v35, 3  ;;  %v4208_v21 = vmax.f32 %v3888_v47, %v4101_v45  ;;  %v14806_v10 = vrot.slane %v12775_v44, 4 }
 0x2e5   : > { %v4527_v58 = vmax.f32 %v4207_v7, %v4419_v60  ;;  %v5754_v56 = vunpack.c.l.bf16 %v5690_v1  ;;  %v5871_v5 = vrot.slane %v5796_v33, 1  ;;  %v6137_v49 = vrot.slane %v5796_v33, 2 }
 0x2e6   : > { %v4421_v9 = vsel %vm1992_vm7, %v4419_v60, %v14806_v10  ;;  %v6265_v51 = vmax.f32 %v6025_v27, %v6169_v12  ;;  %v13070_v15 = vrot.slane %v6709_v50, 4  ;;  %v6429_v2 = vrot.slane %v5796_v33, 3 }
 0x2e7   : > { %v4528_v36 = vmax.f32 %v4208_v21, %v4421_v9  ;;  %v6555_v62 = vmax.f32 %v6235_v22, %v14577_v52  ;;  %v4575_v19 = vpack.c.bf16 %v4527_v58, %v4527_v58  ;;  %v14807_v47 = vrot.slane %v12708_v43, 1 }
 0x2e8   : > { %v5994_v45 = vmax.f32 %v5754_v56, %v5871_v5  ;;  %v6749_v59 = vrot.slane %v5796_v33, 4  ;;  %v14808_v7 = vunpack.c.l.bf16 %v12998_v48  ;;  %v14809_v21 = vrot.slane %v12708_v43, 2 }
 0x2e9   : > { %v5872_v44 = vsel %vm1109_vm4, %v14807_v47, %v5871_v5  ;;  %v4576_v60 = vpack.c.bf16 %v4528_v36, %v4528_v36  ;;  %v8771_v50 = vrot.slane %v4575_v19, 11  ;;  %v14570_v22 = vunpack.c.h.bf16 %v12919_v23 }
 0x2ea   : > { %v5993_v1 = vmax.f32 %v12708_v43, %v5872_v44  ;;  %v5433_v27 = vmax.f32 %v5273_v20, %v14808_v7  ;;  %v6138_v10 = vsel %vm1382_vm5, %v14809_v21, %v6137_v49  ;;  %v6234_v9 = vmax.f32 %v5994_v45, %v6137_v49 }
 0x2eb   : > { %v6585_v58 = vmax.f32 %v6265_v51, %v6483_v39  ;;  %v4713_v47 = vrot.slane %v4576_v60, 7  ;;  %v6432_v5 = vsel %vm1671_vm6, %v6429_v2, %v12987_v6  ;;  %v4708_v33 = vrot.slane %v13029_v8, 4  ;;  %v13101_v60 = vld [vmem:[#allocation3 + $0x70] sm:$0xff]  }
 0x2ec   : > { %v6233_v56 = vmax.f32 %v5993_v1, %v6138_v10  ;;  %v13090_v20 = vmax.f32 %v6555_v62, %v13070_v15  ;;  %v14810_v36 = vrot.slane %v12708_v43, 3  ;;  %v6554_v49 = vmax.f32 %v6234_v9, %v6432_v5  ;;  %v3161_v5 = vpop.permute.xlu0 %3160 }
 0x2ed   : > { %v4714_v44 = vsel %vm11012_vm10, %v8771_v50, %v4713_v47  ;;  %v6750_v51 = vsel %vm1992_vm7, %v12817_v29, %v6749_v59  ;;  %v6752_v6 = vsel %vm1992_vm7, %v6749_v59, %v12989_v30  ;;  %v5465_v62 = vpack.c.bf16 %v5433_v27, %v5433_v27  ;;  %v13114_v59 = vld [vmem:[#allocation3] sm:$0xff]   ;;  %v13116_v50 = vld [vmem:[#allocation3 + $0x8] sm:$0xff]   ;;  %3253 = vst.msk [vmem:[#allocation4 + $0x10] sm:$0xf] %vm3248_vm11, %v3161_v5 }
 0x2ee   : > { %v6430_v19 = vsel %vm1671_vm6, %v14810_v36, %v6429_v2  ;;  %4805 = vst.msk [vmem:[#allocation3 + $0x60] sm:$0xf] %vm313_vm2, %v4714_v44  ;;  %v6874_v8 = vmax.f32 %v6554_v49, %v6752_v6  ;;  %v5132_v43 = vmax.f32 %v13027_v25, %v14570_v22  ;;  %v9507_v2 = vunpack.c.h.bf16 %v12897_v24  ;;  %v13132_v49 = vld [vmem:[#allocation2 + $0x80] sm:$0x8] }
 0x2ef   : > { %v6553_v45 = vmax.f32 %v6233_v56, %v6430_v19  ;;  %v6905_v1 = vmax.f32 %v6585_v58, %v13062_v37  ;;  %v9571_v29 = vunpack.c.h.bf16 %v12900_v42  ;;  %v7020_v30 = vsel %vm11012_vm10, %v12867_v26, %v12869_v16  ;;  %5537 = vrot.lane.b32.xlu2 %v5465_v62, %s10261_s8  ;;  %5658 = vst.msk [vmem:[#allocation2 + $0x44] sm:$0xf] %vm313_vm2, %v5465_v62  ;;  %v6335_v58 = vld [vmem:[#allocation2 + $0xdc] sm:$0x1]  ;;  %v13130_v19 = vld [vmem:[#allocation3 + $0x48] sm:$0xff]  }
 0x2f0   : > { %v4715_v27 = vrot.slane %v4713_v47, 4  ;;  %v6922_v21 = vpack.c.bf16 %v6874_v8, %v6874_v8  ;;  %v5292_v24 = vmax.f32 %v5132_v43, %v9507_v2  ;;  %v13121_v25 = vunpack.c.l.bf16 %v13101_v60  ;;  %7156 = vst.msk [vmem:[#allocation3 + $0x18] sm:$0xf] %vm313_vm2, %v7020_v30  ;;  %v3163_v47 = vpop.permute.xlu1 %3162  ;;  %v9709_v2 = vld [vmem:[#allocation3 + $0x10] sm:$0xff]  }
 0x2f1   : > { %v6873_v7 = vmax.f32 %v6553_v45, %v6750_v51  ;;  %v14811_v10 = vunpack.c.l.bf16 %v13010_v28  ;;  %v7021_v26 = vrot.slane %v12869_v16, 4  ;;  %v4710_v36 = vsel %vm11012_vm10, %v4708_v33, %v12874_v61  ;;  %3254 = vst.msk [vmem:[#allocation4 + $0x14] sm:$0xf] %vm3248_vm11, %v3163_v47 }
 0x2f2   : > { %v5452_v56 = vmax.f32 %v5292_v24, %v9571_v29  ;;  %v9583_v44 = vunpack.c.h.bf16 %v13114_v59  ;;  %v14571_v45 = vunpack.c.h.bf16 %v13116_v50  ;;  %v6953_v51 = vpack.c.bf16 %v6905_v1, %v6905_v1  ;;  %4804 = vst.msk [vmem:[#allocation3 + $0x5c] sm:$0xf] %vm313_vm2, %v4710_v36 }
 0x2f3   : > { %v6921_v42 = vpack.c.bf16 %v6873_v7, %v6873_v7  ;;  %v5878_v9 = vrot.slane %v14811_v10, 1  ;;  %v6923_v16 = vpack.c.bf16 %v13090_v20, %v13090_v20  ;;  %v14575_v8 = vunpack.c.l.bf16 %v13130_v19 }
 0x2f4   : > { %v7029_v62 = vrot.slane %v6922_v21, 7  ;;  %v5484_v43 = vpack.c.bf16 %v5452_v56, %v5452_v56  ;;  %v6399_v61 = vunpack.c.l.bf16 %v6335_v58  ;;  %v4717_v33 = vsel %vm11012_vm10, %v4715_v27, %v12917_v31 }
 0x2f5   : > { %v7026_v6 = vrot.slane %v6921_v42, 7  ;;  %v14576_v7 = vunpack.c.l.bf16 %v13132_v49  ;;  %v7023_v29 = vsel %vm11012_vm10, %v7021_v26, %v12871_v40  ;;  %v13156_v31 = vmax.f32 %v9583_v44, %v14571_v45  ;;  %4806 = vst.msk [vmem:[#allocation3 + $0x64] sm:$0xf] %vm313_vm2, %v4717_v33 }
 0x2f6   : > { %5575 = vrot.lane.b32.xlu0 %v5484_v43, %s10261_s8  ;;  %v9531_v27 = vunpack.c.h.bf16 %v12931_v46  ;;  %v9582_v21 = vunpack.c.l.bf16 %v13114_v59  ;;  %v5695_v24 = vld [vmem:[#allocation2 + $0x44] sm:$0xf]  ;;  %5677 = vst.msk [vmem:[#allocation2 + $0xd8] sm:$0xf] %vm313_vm2, %v5484_v43  ;;  %v14813_v10 = vunpack.c.l.bf16 %v12998_v48  ;;  %v13171_v26 = vunpack.c.h.bf16 %v9709_v2 }
 0x2f7   : > { %v7027_v1 = vsel %vm11012_vm10, %v12893_v32, %v7026_v6  ;;  %v7028_v20 = vrot.slane %v7026_v6, 4  ;;  %v14812_v32 = vmax.f32 %v12953_v17, %v12943_v41  ;;  %v6646_v42 = vld [vmem:[#allocation2 + $0x44] sm:$0xe]  ;;  %v9646_v17 = vunpack.c.l.bf16 %v13116_v50  ;;  %7157 = vst.msk [vmem:[#allocation3 + $0x1c] sm:$0xf] %vm313_vm2, %v7023_v29 }
 0x2f8   : > { %7158 = vst.msk [vmem:[#allocation3 + $0x20] sm:$0xf] %vm313_vm2, %v7027_v1  ;;  %v4961_v58 = vmax.f32 %v14813_v10, %v14575_v8  ;;  %v13174_v41 = vrot.slane %v6923_v16, 11  ;;  %v13176_v46 = vunpack.c.l.bf16 %v5695_v24  ;;  %v13179_v56 = vunpack.c.l.bf16 %v9709_v2  ;;  %v13190_v16 = vld [vmem:[#allocation3 + $0x78] sm:$0xff]  }
 0x2f9   : > { %v5272_v30 = vmax.f32 %v14812_v32, %v12592_v11  ;;  %v7030_v40 = vsel %vm11012_vm10, %v7028_v20, %v7029_v62  ;;  %v13181_v47 = vrot.slane %v6953_v51, 11  ;;  %v13183_v5 = vrot.slane %v6399_v61, 3  ;;  %v10027_v20 = vld [vmem:[#allocation3 + $0x58] sm:$0xff]  }
 0x2fa   : > { %7159 = vst.msk [vmem:[#allocation3 + $0x24] sm:$0xf] %vm313_vm2, %v7030_v40  ;;  %v13185_v36 = vrot.slane %v6399_v61, 4  ;;  %v5114_v44 = vmax.f32 %v13007_v14, %v12592_v11  ;;  %v14572_v6 = vrot.slane %v13176_v46, 1  ;;  %v6710_v62 = vunpack.c.l.bf16 %v6646_v42  ;;  %v6325_v32 = vld [vmem:[#allocation2 + $0x3c] sm:$0x1] }
 0x2fb   : > { %v5432_v59 = vmax.f32 %v5272_v30, %v9531_v27  ;;  %v13195_v43 = vrot.slane %v14576_v7, 1  ;;  %v13198_v51 = vmax.f32 %v9582_v21, %v9646_v17  ;;  %v5121_v61 = vmax.f32 %v4961_v58, %v12876_v63  ;;  %v13213_v21 = vld [vmem:[#allocation3 + $0x80] sm:$0xff]  }
 0x2fc   : > { %v7475_v33 = vmax.f32 %v13156_v31, %v13171_v26  ;;  %v13203_v11 = vmax.f32 %v5114_v44, %v9531_v27  ;;  %v5880_v14 = vsel %vm1109_vm4, %v5878_v9, %v14572_v6  ;;  %v14573_v1 = vrot.slane %v13176_v46, 2  ;;  %v13235_v22 = vld [vmem:[#allocation3 + $0x60] sm:$0xff]  }
 0x2fd   : > { %v5464_v2 = vpack.c.bf16 %v5432_v59, %v5432_v59  ;;  %v13211_v30 = vmax.f32 %v9646_v17, %v13179_v56  ;;  %v14814_v40 = vunpack.c.l.bf16 %v13010_v28  ;;  %v13217_v27 = vunpack.c.l.bf16 %v10027_v20  ;;  %v5723_v59 = vld [vmem:[#allocation2 + $0xd8] sm:$0x7] }
 0x2fe   : > { %v13219_v42 = vunpack.c.h.bf16 %v10027_v20  ;;  %v6389_v9 = vunpack.c.l.bf16 %v6325_v32  ;;  %v14574_v10 = vrot.slane %v13176_v46, 3  ;;  %v13223_v58 = vrot.slane %v6710_v62, 4  ;;  %v5743_v44 = vld [vmem:[#allocation2 + $0xd8] sm:$0xf] }
 0x2ff   : > { %v5998_v24 = vmax.f32 %v14814_v40, %v5880_v14  ;;  %5657 = vst.msk [vmem:[#allocation2 + $0x38] sm:$0xf] %vm313_vm2, %v5464_v2  ;;  %5535 = vrot.lane.b32.xlu0 %v5464_v2, %s10261_s8  ;;  %v13229_v28 = vunpack.c.h.bf16 %v13101_v60  ;;  %v5787_v20 = vunpack.c.l.bf16 %v5723_v59  ;;  %v5807_v40 = vunpack.c.l.bf16 %v5743_v44  ;;  %v3197_v59 = vpop.permute.xlu0 %3196 }
 0x300   : > { %v5281_v62 = vmax.f32 %v5121_v61, %v13217_v27  ;;  %v14815_v2 = vmax.f32 %v12680_v4, %v12876_v63  ;;  %v14816_v60 = vmax.f32 %v12686_v3, %v12878_v54  ;;  %v13245_v6 = vrot.slane %v6389_v9, 3  ;;  %3271 = vst.msk [vmem:[#allocation4 + $0x58] sm:$0xf] %vm3248_vm11, %v3197_v59 }
 0x301   : > { %v6238_v14 = vmax.f32 %v5998_v24, %v14573_v1  ;;  %v3199_v24 = vpop.permute.xlu1 %3198  ;;  %v5926_v61 = vrot.slane %v5807_v40, 1  ;;  %v6170_v32 = vrot.slane %v5807_v40, 2  ;;  %v6484_v1 = vrot.slane %v5807_v40, 3 }
 0x302   : > { %v5439_v45 = vmax.f32 %v14815_v2, %v13217_v27  ;;  %v5440_v29 = vmax.f32 %v14816_v60, %v13219_v42  ;;  %3272 = vst.msk [vmem:[#allocation4 + $0x5c] sm:$0xf] %vm3248_vm11, %v3199_v24  ;;  %v6804_v17 = vrot.slane %v5807_v40, 4  ;;  %v13254_v2 = vrot.slane %v6389_v9, 4  ;;  %v13264_v24 = vld [vmem:[#allocation3 + $0x18] sm:$0xff]  }
 0x303   : > { %v6558_v44 = vmax.f32 %v6238_v14, %v14574_v10  ;;  %v14819_v60 = vrot.slane %v13021_v55, 1  ;;  %v6027_v10 = vmax.f32 %v5787_v20, %v5926_v61  ;;  %v13262_v8 = vunpack.c.l.bf16 %v13235_v22 }
 0x304   : > { %v13250_v4 = vpack.c.bf16 %v5439_v45, %v5439_v45  ;;  %v13252_v63 = vpack.c.bf16 %v5440_v29, %v5440_v29  ;;  %v13266_v45 = vld [vmem:[#allocation3 + $0x20] sm:$0xff]   ;;  %v6171_v9 = vsel %vm1382_vm5, %v6169_v12, %v6170_v32  ;;  %v6485_v40 = vsel %vm1671_vm6, %v6483_v39, %v6484_v1 }
 0x305   : > { %v6878_v3 = vmax.f32 %v6558_v44, %v13223_v58  ;;  %v5927_v14 = vsel %vm1109_vm4, %v14819_v60, %v5926_v61  ;;  %v6487_v20 = vsel %vm1671_vm6, %v6484_v1, %v13183_v5  ;;  %v6267_v60 = vmax.f32 %v6027_v10, %v6170_v32 }
 0x306   : > { %14817 = vst [vmem:[#allocation38_spill] sm:$0xff] %v13250_v4  ;;  %v6026_v29 = vmax.f32 %v13021_v55, %v5927_v14  ;;  %v5693_v59 = vld [vmem:[#allocation2 + $0x38] sm:$0x7]  ;;  %v6805_v14 = vsel %vm1992_vm7, %v13062_v37, %v6804_v17  ;;  %v5441_v7 = vmax.f32 %v5281_v62, %v13262_v8  ;;  %v6807_v39 = vsel %vm1992_vm7, %v6804_v17, %v13185_v36 }
 0x307   : > { %14818 = vst [vmem:[#allocation15_spill] sm:$0xff] %v13252_v63  ;;  %v5733_v44 = vld [vmem:[#allocation2 + $0x38] sm:$0xf]  ;;  %v6926_v61 = vpack.c.bf16 %v6878_v3, %v6878_v3  ;;  %v13287_v12 = vunpack.c.h.bf16 %v13264_v24  ;;  %v14578_v5 = vunpack.c.h.bf16 %v13266_v45  ;;  %v6587_v1 = vmax.f32 %v6267_v60, %v6487_v20 }
 0x308   : > { %5664 = vst.msk [vmem:[#allocation2 + $0x74] sm:$0xf] %vm313_vm2, %v13250_v4  ;;  %v6266_v55 = vmax.f32 %v6026_v29, %v6171_v9  ;;  %v5473_v3 = vpack.c.bf16 %v5441_v7, %v5441_v7  ;;  %v5757_v10 = vunpack.c.l.bf16 %v5693_v59  ;;  %v5797_v32 = vunpack.c.l.bf16 %v5733_v44 }
 0x309   : > { %5665 = vst.msk [vmem:[#allocation2 + $0x78] sm:$0xf] %vm313_vm2, %v13252_v63  ;;  %v7635_v37 = vmax.f32 %v7475_v33, %v13287_v12  ;;  %v9295_v62 = vunpack.c.h.bf16 %v12998_v48  ;;  %v9359_v29 = vunpack.c.h.bf16 %v13130_v19  ;;  %v6907_v36 = vmax.f32 %v6587_v1, %v6807_v39 }
 0x30a   : > { %v6586_v52 = vmax.f32 %v6266_v55, %v6485_v40  ;;  %5553 = vrot.lane.b32.xlu1 %v5473_v3, %s10261_s8  ;;  %5666 = vst.msk [vmem:[#allocation2 + $0x84] sm:$0xf] %vm313_vm2, %v5473_v3  ;;  %v5876_v17 = vrot.slane %v5797_v32, 1  ;;  %v6140_v9 = vrot.slane %v5797_v32, 2  ;;  %v6434_v7 = vrot.slane %v5797_v32, 3 }
 0x30b   : > { %v7795_v40 = vmax.f32 %v7635_v37, %v14578_v5  ;;  %v6754_v59 = vrot.slane %v5797_v32, 4  ;;  %v4962_v31 = vmax.f32 %v9295_v62, %v9359_v29  ;;  %v13302_v33 = vrot.slane %v6926_v61, 11 }
 0x30c   : > { %v6906_v20 = vmax.f32 %v6586_v52, %v6805_v14  ;;  %v6955_v48 = vpack.c.bf16 %v6907_v36, %v6907_v36  ;;  %v14820_v44 = vrot.slane %v13018_v35, 1  ;;  %v5997_v55 = vmax.f32 %v5757_v10, %v5876_v17  ;;  %v6330_v14 = vld [vmem:[#allocation2 + $0x8c] sm:$0x1] }
 0x30d   : > { %v7827_v1 = vpack.c.bf16 %v7795_v40, %v7795_v40  ;;  %v6141_v52 = vsel %vm1382_vm5, %v6139_v0, %v6140_v9  ;;  %v14821_v61 = vrot.slane %v13018_v35, 3  ;;  %v6437_v5 = vsel %vm1671_vm6, %v6434_v7, %v13245_v6 }
 0x30e   : > { %v5877_v60 = vsel %vm1109_vm4, %v14820_v44, %v5876_v17  ;;  %v6954_v39 = vpack.c.bf16 %v6906_v20, %v6906_v20  ;;  %v7106_v32 = vrot.slane %v6955_v48, 7  ;;  %v6237_v37 = vmax.f32 %v5997_v55, %v6140_v9 }
 0x30f   : > { %v5996_v3 = vmax.f32 %v13018_v35, %v5877_v60  ;;  %v6435_v36 = vsel %vm1671_vm6, %v14821_v61, %v6434_v7  ;;  %7892 = vrot.lane.b32.xlu2 %v7827_v1, %s10262_s9  ;;  %v6755_v17 = vsel %vm1992_vm7, %v13070_v15, %v6754_v59  ;;  %v5122_v0 = vmax.f32 %v4962_v31, %v12878_v54 }
 0x310   : > { %v13316_v44 = vrot.slane %v6954_v39, 7  ;;  %v6557_v20 = vmax.f32 %v6237_v37, %v6437_v5  ;;  %v6757_v35 = vsel %vm1992_vm7, %v6754_v59, %v13254_v2  ;;  %v13325_v9 = vunpack.c.h.bf16 %v13235_v22 }
 0x311   : > { %v6236_v10 = vmax.f32 %v5996_v3, %v6141_v52  ;;  %v6394_v40 = vunpack.c.l.bf16 %v6330_v14  ;;  %v5707_v7 = vld [vmem:[#allocation2 + $0x84] sm:$0xf]  ;;  %v5282_v55 = vmax.f32 %v5122_v0, %v13219_v42  ;;  %v5434_v39 = vmax.f32 %v13203_v11, %v9295_v62  ;;  %v6326_v3 = vld [vmem:[#allocation2 + $0x4c] sm:$0x1]  ;;  %v13343_v11 = vld [vmem:[#allocation3 + $0x50] sm:$0xff]  }
 0x312   : > { %v7105_v6 = vrot.slane %v13316_v44, 4  ;;  %v6650_v48 = vld [vmem:[#allocation2 + $0x84] sm:$0xe]  ;;  %v13334_v15 = vunpack.c.l.bf16 %v5707_v7  ;;  %v6877_v22 = vmax.f32 %v6557_v20, %v6757_v35  ;;  %v6390_v35 = vunpack.c.l.bf16 %v6326_v3 }
 0x313   : > { %v6556_v60 = vmax.f32 %v6236_v10, %v6435_v36  ;;  %v6714_v2 = vunpack.c.l.bf16 %v6650_v48  ;;  %v5442_v31 = vmax.f32 %v5282_v55, %v13325_v9  ;;  %v13341_v1 = vrot.slane %v6394_v40, 3 }
 0x314   : > { %v13338_v5 = vsel %vm11012_vm10, %v7105_v6, %v7106_v32  ;;  %v14583_v62 = vrot.slane %v13334_v15, 1  ;;  %v14582_v52 = vrot.slane %v13334_v15, 2  ;;  %v14581_v14 = vrot.slane %v13334_v15, 3 }
 0x315   : > { %v6876_v59 = vmax.f32 %v6556_v60, %v6755_v17  ;;  %v13348_v37 = vrot.slane %v6394_v40, 4  ;;  %v6925_v36 = vpack.c.bf16 %v6877_v22, %v6877_v22  ;;  %v5474_v32 = vpack.c.bf16 %v5442_v31, %v5442_v31  ;;  %v13350_v17 = vld [vmem:[#allocation2 + $0x90] sm:$0x8] }
 0x316   : > { %v5466_v10 = vpack.c.bf16 %v5434_v39, %v5434_v39  ;;  %v5900_v0 = vsel %vm1109_vm4, %v13195_v43, %v14583_v62  ;;  %v13356_v20 = vrot.slane %v6714_v2, 4  ;;  %v9362_v6 = vunpack.c.l.bf16 %v13343_v11 }
 0x317   : > { %v6924_v61 = vpack.c.bf16 %v6876_v59, %v6876_v59  ;;  %v14822_v7 = vunpack.c.l.bf16 %v13132_v49  ;;  %v7036_v60 = vrot.slane %v6925_v36, 7  ;;  %5667 = vst.msk [vmem:[#allocation2 + $0x88] sm:$0xf] %vm313_vm2, %v5474_v32  ;;  %5555 = vrot.lane.b32.xlu1 %v5474_v32, %s10261_s8  ;;  %v13365_v55 = vunpack.c.l.bf16 %v13264_v24  ;;  %v6331_v59 = vld [vmem:[#allocation2 + $0x9c] sm:$0x1] }
 0x318   : > { %5539 = vrot.lane.b32.xlu0 %v5466_v10, %s10261_s8  ;;  %5659 = vst.msk [vmem:[#allocation2 + $0x48] sm:$0xf] %vm313_vm2, %v5466_v10  ;;  %v13368_v43 = vrot.slane %v6390_v35, 3  ;;  %v13370_v39 = vrot.slane %v6390_v35, 4  ;;  %v14823_v49 = vunpack.c.l.bf16 %v13130_v19  ;;  %v14580_v22 = vunpack.c.l.bf16 %v13350_v17 }
 0x319   : > { %v6010_v40 = vmax.f32 %v14822_v7, %v5900_v0  ;;  %v7033_v48 = vrot.slane %v6924_v61, 7  ;;  %v3167_v61 = vpop.permute.xlu1 %3166  ;;  %v14824_v36 = vmax.f32 %v13198_v51, %v13179_v56  ;;  %v3165_v0 = vpop.permute.xlu0 %3164  ;;  %v13387_v35 = vunpack.c.l.bf16 %v13266_v45 }
 0x31a   : > { %v4963_v2 = vmax.f32 %v14823_v49, %v9362_v6  ;;  %v14579_v7 = vunpack.c.h.bf16 %v13343_v11  ;;  %3256 = vst.msk [vmem:[#allocation4 + $0x1c] sm:$0xf] %vm3248_vm11, %v3167_v61  ;;  %v5522_v51 = vpop.permute.xlu2 %5521  ;;  %v4965_v49 = vmax.f32 %v9362_v6, %v13217_v27  ;;  %v14827_v63 = vrot.slane %v13334_v15, 3 }
 0x31b   : > { %v6250_v31 = vmax.f32 %v6010_v40, %v14582_v52  ;;  %v7034_v24 = vsel %vm11012_vm10, %v13174_v41, %v7033_v48  ;;  %v7035_v3 = vrot.slane %v7033_v48, 4  ;;  %v7634_v32 = vmax.f32 %v14824_v36, %v13365_v55  ;;  %3255 = vst.msk [vmem:[#allocation4 + $0x18] sm:$0xf] %vm3248_vm11, %v3165_v0 }
 0x31c   : > { %7160 = vst.msk [vmem:[#allocation3 + $0x28] sm:$0xf] %vm313_vm2, %v7034_v24  ;;  %v5123_v10 = vmax.f32 %v4963_v2, %v13217_v27  ;;  %v6395_v48 = vunpack.c.l.bf16 %v6331_v59  ;;  %v13396_v2 = vld [vmem:[#allocation2 + $0xa0] sm:$0x8]  ;;  %v13402_v36 = vrot.slane %v14580_v22, 1  ;;  %v5125_v61 = vmax.f32 %v4965_v49, %v13262_v8 }
 0x31d   : > { %v6570_v41 = vmax.f32 %v6250_v31, %v14581_v14  ;;  %v7037_v40 = vsel %vm11012_vm10, %v7035_v3, %v7036_v60  ;;  %v7794_v31 = vmax.f32 %v7634_v32, %v13387_v35  ;;  %v4964_v60 = vmax.f32 %v9359_v29, %v14579_v7  ;;  %5618 = vst.msk [vmem:[#allocation4] sm:$0xf] %vm5617_vm12, %v5522_v51 }
 0x31e   : > { %7161 = vst.msk [vmem:[#allocation3 + $0x2c] sm:$0xf] %vm313_vm2, %v7037_v40  ;;  %v5283_v24 = vmax.f32 %v5123_v10, %v13262_v8  ;;  %v13411_v6 = vrot.slane %v6395_v48, 3  ;;  %v13413_v3 = vrot.slane %v6395_v48, 4  ;;  %v5708_v10 = vld [vmem:[#allocation2 + $0x88] sm:$0x7] }
 0x31f   : > { %v6890_v59 = vmax.f32 %v6570_v41, %v13356_v20  ;;  %v5738_v40 = vld [vmem:[#allocation2 + $0x88] sm:$0xf]  ;;  %v7826_v32 = vpack.c.bf16 %v7794_v31, %v7794_v31  ;;  %v5124_v19 = vmax.f32 %v4964_v60, %v13219_v42  ;;  %v5772_v7 = vunpack.c.l.bf16 %v5708_v10 }
 0x320   : > { %v5443_v54 = vmax.f32 %v5283_v24, %v12958_v38  ;;  %v5802_v0 = vunpack.c.l.bf16 %v5738_v40  ;;  %v5696_v22 = vld [vmem:[#allocation2 + $0x48] sm:$0x7]  ;;  %v5285_v24 = vmax.f32 %v5125_v61, %v12958_v38  ;;  %v14828_v34 = vrot.slane %v13176_v46, 1 }
 0x321   : > { %v6938_v41 = vpack.c.bf16 %v6890_v59, %v6890_v59  ;;  %v5734_v14 = vld [vmem:[#allocation2 + $0x48] sm:$0xf]  ;;  %v5760_v49 = vunpack.c.l.bf16 %v5696_v22  ;;  %7890 = vrot.lane.b32.xlu1 %v7826_v32, %s10262_s9  ;;  %v5284_v29 = vmax.f32 %v5124_v19, %v13325_v9  ;;  %v14826_v32 = vrot.slane %v13334_v15, 2 }
 0x322   : > { %v5798_v52 = vunpack.c.l.bf16 %v5734_v14  ;;  %v5475_v62 = vpack.c.bf16 %v5443_v54, %v5443_v54  ;;  %v5901_v51 = vrot.slane %v5802_v0, 1  ;;  %v6155_v31 = vrot.slane %v5802_v0, 2 }
 0x323   : > { %v6459_v60 = vrot.slane %v5802_v0, 3  ;;  %v6779_v59 = vrot.slane %v5802_v0, 4  ;;  %v14825_v14 = vrot.slane %v13334_v15, 1 }
 0x324   : > { %v5881_v10 = vrot.slane %v5798_v52, 1  ;;  %v6143_v40 = vrot.slane %v5798_v52, 2  ;;  %v6439_v4 = vrot.slane %v5798_v52, 3  ;;  %5557 = vrot.lane.b32.xlu2 %v5475_v62, %s10261_s8  ;;  %5668 = vst.msk [vmem:[#allocation2 + $0x94] sm:$0xf] %vm313_vm2, %v5475_v62  ;;  %v6012_v22 = vmax.f32 %v5772_v7, %v5901_v51 }
 0x325   : > { %v6462_v54 = vsel %vm1671_vm6, %v6459_v60, %v13341_v1  ;;  %v5902_v61 = vsel %vm1109_vm4, %v14825_v14, %v5901_v51  ;;  %v6156_v19 = vsel %vm1382_vm5, %v14826_v32, %v6155_v31  ;;  %v6782_v0 = vsel %vm1992_vm7, %v6779_v59, %v13348_v37 }
 0x326   : > { %v6011_v48 = vmax.f32 %v13334_v15, %v5902_v61  ;;  %v6460_v62 = vsel %vm1671_vm6, %v14827_v63, %v6459_v60  ;;  %v6780_v1 = vsel %vm1992_vm7, %v13356_v20, %v6779_v59  ;;  %v6252_v7 = vmax.f32 %v6012_v22, %v6155_v31  ;;  %v3203_v31 = vpop.permute.xlu1 %3202  ;;  %v3201_v60 = vpop.permute.xlu0 %3200 }
 0x327   : > { %v5882_v51 = vsel %vm1109_vm4, %v14828_v34, %v5881_v10  ;;  %v6000_v14 = vmax.f32 %v5760_v49, %v5881_v10  ;;  %v14829_v32 = vrot.slane %v13176_v46, 2  ;;  %v14830_v15 = vrot.slane %v13176_v46, 3  ;;  %3274 = vst.msk [vmem:[#allocation4 + $0x64] sm:$0xf] %vm3248_vm11, %v3203_v31 }
 0x328   : > { %v6251_v37 = vmax.f32 %v6011_v48, %v6156_v19  ;;  %v5999_v61 = vmax.f32 %v13176_v46, %v5882_v51  ;;  %v6442_v20 = vsel %vm1671_vm6, %v6439_v4, %v13368_v43  ;;  %v6572_v59 = vmax.f32 %v6252_v7, %v6462_v54  ;;  %3273 = vst.msk [vmem:[#allocation4 + $0x60] sm:$0xf] %vm3248_vm11, %v3201_v60  ;;  %v14831_v46 = vld [vmem:[#allocation10_spill] sm:$0xff] }
 0x329   : > { %v6144_v57 = vsel %vm1382_vm5, %v14829_v32, %v6143_v40  ;;  %v6440_v63 = vsel %vm1671_vm6, %v14830_v15, %v6439_v4  ;;  %v6240_v22 = vmax.f32 %v6000_v14, %v6143_v40  ;;  %v6759_v34 = vrot.slane %v5798_v52, 4  ;;  %3174 = vrot.lane.b32.xlu1 %v14831_v46, %s10260_s20  ;;  %v13488_v46 = vld [vmem:[#allocation3 + $0x28] sm:$0xff]  }
 0x32a   : > { %v5444_v49 = vmax.f32 %v5284_v29, %v12977_v18  ;;  %v8785_v10 = vrot.slane %v6938_v41, 11  ;;  %v6571_v48 = vmax.f32 %v6251_v37, %v6460_v62  ;;  %v6239_v19 = vmax.f32 %v5999_v61, %v6144_v57 }
 0x32b   : > { %v5445_v51 = vmax.f32 %v5285_v24, %v13121_v25  ;;  %v6892_v4 = vmax.f32 %v6572_v59, %v6782_v0  ;;  %v6560_v43 = vmax.f32 %v6240_v22, %v6442_v20  ;;  %v6760_v40 = vsel %vm1992_vm7, %v13223_v58, %v6759_v34  ;;  %v5710_v29 = vld [vmem:[#allocation2 + $0x94] sm:$0xf] }
 0x32c   : > { %v6762_v52 = vsel %vm1992_vm7, %v6759_v34, %v13370_v39  ;;  %v6651_v54 = vld [vmem:[#allocation2 + $0x94] sm:$0xe]  ;;  %v6891_v41 = vmax.f32 %v6571_v48, %v6780_v1  ;;  %v6559_v62 = vmax.f32 %v6239_v19, %v6440_v63  ;;  %v13465_v57 = vunpack.c.l.bf16 %v5710_v29  ;;  %v13472_v39 = vld [vmem:[#allocation2 + $0xb0] sm:$0x8]  ;;  %v5526_v29 = vpop.permute.xlu2 %5525 }
 0x32d   : > { %v6715_v24 = vunpack.c.l.bf16 %v6651_v54  ;;  %v6940_v7 = vpack.c.bf16 %v6892_v4, %v6892_v4  ;;  %v6880_v14 = vmax.f32 %v6560_v43, %v6762_v52  ;;  %v5476_v32 = vpack.c.bf16 %v5444_v49, %v5444_v49  ;;  %5620 = vst.msk [vmem:[#allocation4 + $0x8] sm:$0xf] %vm5617_vm12, %v5526_v29 }
 0x32e   : > { %v5477_v37 = vpack.c.bf16 %v5445_v51, %v5445_v51  ;;  %v6939_v61 = vpack.c.bf16 %v6891_v41, %v6891_v41  ;;  %v6879_v0 = vmax.f32 %v6559_v62, %v6760_v40  ;;  %v5904_v15 = vrot.slane %v13465_v57, 1  ;;  %v3171_v19 = vpop.permute.xlu1 %3170  ;;  %v3169_v51 = vpop.permute.xlu0 %3168 }
 0x32f   : > { %v14832_v58 = vunpack.c.l.bf16 %v13396_v2  ;;  %v7071_v31 = vrot.slane %v6940_v7, 7  ;;  %v6928_v1 = vpack.c.bf16 %v6880_v14, %v6880_v14  ;;  %v6157_v63 = vrot.slane %v13465_v57, 2  ;;  %5559 = vrot.lane.b32.xlu0 %v5476_v32, %s10261_s8  ;;  %5669 = vst.msk [vmem:[#allocation2 + $0x98] sm:$0xf] %vm313_vm2, %v5476_v32  ;;  %v6332_v14 = vld [vmem:[#allocation2 + $0xac] sm:$0x1] }
 0x330   : > { %v6463_v60 = vrot.slane %v13465_v57, 3  ;;  %5561 = vrot.lane.b32.xlu2 %v5477_v37, %s10261_s8  ;;  %v7068_v59 = vrot.slane %v6939_v61, 7  ;;  %v6927_v22 = vpack.c.bf16 %v6879_v0, %v6879_v0  ;;  %v5905_v34 = vsel %vm1109_vm4, %v13402_v36, %v5904_v15  ;;  %5670 = vst.msk [vmem:[#allocation2 + $0xa4] sm:$0xf] %vm313_vm2, %v5477_v37 }
 0x331   : > { %v13470_v20 = vrot.slane %v14832_v58, 1  ;;  %v14833_v49 = vmax.f32 %v13217_v27, %v13262_v8  ;;  %v14834_v4 = vunpack.c.l.bf16 %v13350_v17  ;;  %v13492_v40 = vrot.slane %v6715_v24, 4  ;;  %3258 = vst.msk [vmem:[#allocation4 + $0x24] sm:$0xf] %vm3248_vm11, %v3171_v19  ;;  %v13517_v58 = vld [vmem:[#allocation2 + $0xc0] sm:$0x8] }
 0x332   : > { %v5779_v52 = vunpack.c.l.bf16 %v13472_v39  ;;  %v7476_v36 = vmax.f32 %v13211_v30, %v13365_v55  ;;  %v7069_v27 = vsel %vm11012_vm10, %v8785_v10, %v7068_v59  ;;  %v7070_v54 = vrot.slane %v7068_v59, 4  ;;  %3257 = vst.msk [vmem:[#allocation4 + $0x20] sm:$0xf] %vm3248_vm11, %v3169_v51 }
 0x333   : > { %v5127_v48 = vmax.f32 %v14833_v49, %v12958_v38  ;;  %v6013_v43 = vmax.f32 %v14834_v4, %v5905_v34  ;;  %v7040_v41 = vrot.slane %v6927_v22, 7  ;;  %v7043_v17 = vrot.slane %v6928_v1, 7  ;;  %7170 = vst.msk [vmem:[#allocation3 + $0x50] sm:$0xf] %vm313_vm2, %v7069_v27  ;;  %v14837_v27 = vld [vmem:[#allocation12_spill] sm:$0xff] }
 0x334   : > { %v7636_v7 = vmax.f32 %v7476_v36, %v13387_v35  ;;  %v13507_v30 = vunpack.c.l.bf16 %v13488_v46  ;;  %v7072_v10 = vsel %vm11012_vm10, %v7070_v54, %v7071_v31  ;;  %v14835_v61 = vunpack.c.l.bf16 %v13190_v16 }
 0x335   : > { %v5287_v62 = vmax.f32 %v5127_v48, %v13121_v25  ;;  %v6253_v24 = vmax.f32 %v6013_v43, %v6157_v63  ;;  %v7041_v32 = vsel %vm11012_vm10, %v13302_v33, %v7040_v41  ;;  %v7042_v37 = vrot.slane %v7040_v41, 4  ;;  %7171 = vst.msk [vmem:[#allocation3 + $0x54] sm:$0xf] %vm313_vm2, %v7072_v10 }
 0x336   : > { %7162 = vst.msk [vmem:[#allocation3 + $0x30] sm:$0xf] %vm313_vm2, %v7041_v32  ;;  %v13524_v31 = vrot.slane %v5779_v52, 1  ;;  %v7796_v59 = vmax.f32 %v7636_v7, %v13507_v30  ;;  %v14836_v33 = vunpack.c.h.bf16 %v13343_v11  ;;  %v5711_v49 = vld [vmem:[#allocation2 + $0x98] sm:$0x7]  ;;  %v6396_v51 = vunpack.c.l.bf16 %v6332_v14 }
 0x337   : > { %v5447_v0 = vmax.f32 %v5287_v62, %v14835_v61  ;;  %v6573_v1 = vmax.f32 %v6253_v24, %v6463_v60  ;;  %v7044_v34 = vsel %vm11012_vm10, %v7042_v37, %v7043_v17  ;;  %v5739_v48 = vld [vmem:[#allocation2 + $0x98] sm:$0xf]  ;;  %v4969_v4 = vmax.f32 %v13262_v8, %v12958_v38  ;;  %v5713_v29 = vld [vmem:[#allocation2 + $0xa4] sm:$0xf]  ;;  %3172 = vrot.lane.b32.xlu0 %v14837_v27, %s10260_s20 }
 0x338   : > { %v4966_v22 = vmax.f32 %v14836_v33, %v13219_v42  ;;  %7163 = vst.msk [vmem:[#allocation3 + $0x34] sm:$0xf] %vm313_vm2, %v7044_v34  ;;  %v5803_v36 = vunpack.c.l.bf16 %v5739_v48  ;;  %v6652_v11 = vld [vmem:[#allocation2 + $0xa4] sm:$0xe]  ;;  %v7828_v54 = vpack.c.bf16 %v7796_v59, %v7796_v59  ;;  %v5782_v41 = vunpack.c.l.bf16 %v13517_v58 }
 0x339   : > { %v5479_v19 = vpack.c.bf16 %v5447_v0, %v5447_v0  ;;  %v6893_v43 = vmax.f32 %v6573_v1, %v13492_v40  ;;  %v5775_v62 = vunpack.c.l.bf16 %v5711_v49  ;;  %v13540_v17 = vunpack.c.l.bf16 %v5713_v29 }
 0x33a   : > { %v6716_v24 = vunpack.c.l.bf16 %v6652_v11  ;;  %v5126_v38 = vmax.f32 %v4966_v22, %v13325_v9  ;;  %v5906_v7 = vrot.slane %v5803_v36, 1  ;;  %v6158_v14 = vrot.slane %v5803_v36, 2  ;;  %7894 = vrot.lane.b32.xlu1 %v7828_v54, %s10262_s9 }
 0x33b   : > { %5565 = vrot.lane.b32.xlu2 %v5479_v19, %s10261_s8  ;;  %5672 = vst.msk [vmem:[#allocation2 + $0xb4] sm:$0xf] %vm313_vm2, %v5479_v19  ;;  %v6941_v8 = vpack.c.bf16 %v6893_v43, %v6893_v43  ;;  %v6464_v10 = vrot.slane %v5803_v36, 3  ;;  %v6784_v32 = vrot.slane %v5803_v36, 4  ;;  %v5909_v37 = vrot.slane %v13540_v17, 1 }
 0x33c   : > { %v6160_v61 = vrot.slane %v13540_v17, 2  ;;  %v13548_v0 = vrot.slane %v6396_v51, 3  ;;  %v5907_v59 = vsel %vm1109_vm4, %v5904_v15, %v5906_v7  ;;  %v6015_v33 = vmax.f32 %v5775_v62, %v5906_v7 }
 0x33d   : > { %v13550_v1 = vrot.slane %v6941_v8, 11  ;;  %v6468_v22 = vrot.slane %v13540_v17, 3  ;;  %v6014_v34 = vmax.f32 %v13465_v57, %v5907_v59  ;;  %v6159_v49 = vsel %vm1382_vm5, %v6157_v63, %v6158_v14 }
 0x33e   : > { %v6465_v48 = vsel %vm1671_vm6, %v6463_v60, %v6464_v10  ;;  %v6467_v19 = vsel %vm1671_vm6, %v6464_v10, %v13411_v6  ;;  %v6255_v43 = vmax.f32 %v6015_v33, %v6158_v14  ;;  %v6785_v15 = vsel %vm1992_vm7, %v13492_v40, %v6784_v32 }
 0x33f   : > { %v6787_v36 = vsel %vm1992_vm7, %v6784_v32, %v13413_v3  ;;  %v5910_v29 = vsel %vm1109_vm4, %v13470_v20, %v5909_v37  ;;  %v6254_v63 = vmax.f32 %v6014_v34, %v6159_v49  ;;  %v14838_v57 = vunpack.c.l.bf16 %v13396_v2  ;;  %v3205_v32 = vpop.permute.xlu0 %3204 }
 0x340   : > { %v13575_v60 = vrot.slane %v6716_v24, 4  ;;  %v5286_v6 = vmax.f32 %v5126_v38, %v12977_v18  ;;  %v6575_v27 = vmax.f32 %v6255_v43, %v6467_v19  ;;  %v13578_v40 = vrot.slane %v6396_v51, 4  ;;  %3275 = vst.msk [vmem:[#allocation4 + $0x68] sm:$0xf] %vm3248_vm11, %v3205_v32 }
 0x341   : > { %v6016_v11 = vmax.f32 %v14838_v57, %v5910_v29  ;;  %v5129_v3 = vmax.f32 %v4969_v4, %v13121_v25  ;;  %v13583_v8 = vrot.slane %v5782_v41, 1  ;;  %v6574_v20 = vmax.f32 %v6254_v63, %v6465_v48  ;;  %v3207_v4 = vpop.permute.xlu1 %3206  ;;  %v6333_v57 = vld [vmem:[#allocation2 + $0xbc] sm:$0x1] }
 0x342   : > { %v5716_v54 = vld [vmem:[#allocation2 + $0xb4] sm:$0xf]  ;;  %v7318_v24 = vmax.f32 %v13179_v56, %v13365_v55  ;;  %v6895_v38 = vmax.f32 %v6575_v27, %v6787_v36  ;;  %v5446_v51 = vmax.f32 %v5286_v6, %v13229_v28  ;;  %v14839_v10 = vunpack.c.l.bf16 %v13190_v16  ;;  %3276 = vst.msk [vmem:[#allocation4 + $0x6c] sm:$0xf] %vm3248_vm11, %v3207_v4 }
 0x343   : > { %v6653_v62 = vld [vmem:[#allocation2 + $0xb4] sm:$0xe]  ;;  %v6256_v2 = vmax.f32 %v6016_v11, %v6160_v61  ;;  %v13587_v7 = vunpack.c.l.bf16 %v5716_v54  ;;  %v6894_v59 = vmax.f32 %v6574_v20, %v6785_v15  ;;  %v4968_v20 = vmax.f32 %v13219_v42, %v13325_v9 }
 0x344   : > { %v6717_v14 = vunpack.c.l.bf16 %v6653_v62  ;;  %v5289_v25 = vmax.f32 %v5129_v3, %v14839_v10  ;;  %v7478_v49 = vmax.f32 %v7318_v24, %v13387_v35  ;;  %v13599_v56 = vld [vmem:[#allocation3 + $0x30] sm:$0xff]   ;;  %v6943_v55 = vpack.c.bf16 %v6895_v38, %v6895_v38  ;;  %v13633_v10 = vld [vmem:[#allocation3 + $0x18] sm:$0xff]  }
 0x345   : > { %v6576_v33 = vmax.f32 %v6256_v2, %v6468_v22  ;;  %v5914_v34 = vrot.slane %v13587_v7, 1  ;;  %v6163_v48 = vrot.slane %v13587_v7, 2  ;;  %v6473_v19 = vrot.slane %v13587_v7, 3 }
 0x346   : > { %v5478_v43 = vpack.c.bf16 %v5446_v51, %v5446_v51  ;;  %v6942_v15 = vpack.c.bf16 %v6894_v59, %v6894_v59  ;;  %v14840_v35 = vunpack.c.l.bf16 %v13213_v21  ;;  %v13613_v6 = vrot.slane %v6717_v14, 4 }
 0x347   : > { %v6896_v36 = vmax.f32 %v6576_v33, %v13575_v60  ;;  %v5915_v29 = vsel %vm1109_vm4, %v13524_v31, %v5914_v34  ;;  %v7638_v27 = vmax.f32 %v7478_v49, %v13507_v30  ;;  %v13619_v54 = vunpack.c.l.bf16 %v13599_v56 }
 0x348   : > { %v5449_v63 = vmax.f32 %v5289_v25, %v14840_v35  ;;  %v6019_v11 = vmax.f32 %v5779_v52, %v5915_v29  ;;  %5563 = vrot.lane.b32.xlu0 %v5478_v43, %s10261_s8  ;;  %5671 = vst.msk [vmem:[#allocation2 + $0xa8] sm:$0xf] %vm313_vm2, %v5478_v43  ;;  %v7075_v62 = vrot.slane %v6942_v15, 7  ;;  %v7078_v2 = vrot.slane %v6943_v55, 7  ;;  %v13650_v15 = vld [vmem:[#allocation3 + $0x20] sm:$0xff]  }
 0x349   : > { %v6944_v31 = vpack.c.bf16 %v6896_v36, %v6896_v36  ;;  %v7798_v52 = vmax.f32 %v7638_v27, %v13619_v54  ;;  %v6397_v24 = vunpack.c.l.bf16 %v6333_v57  ;;  %v5128_v51 = vmax.f32 %v4968_v20, %v12977_v18 }
 0x34a   : > { %v5481_v3 = vpack.c.bf16 %v5449_v63, %v5449_v63  ;;  %v6259_v39 = vmax.f32 %v6019_v11, %v6163_v48  ;;  %v7076_v38 = vsel %vm11012_vm10, %v13550_v1, %v7075_v62  ;;  %v7077_v14 = vrot.slane %v7075_v62, 4  ;;  %v5524_v62 = vpop.permute.xlu0 %5523 }
 0x34b   : > { %v9563_v42 = vunpack.c.h.bf16 %v13190_v16  ;;  %v13635_v25 = vrot.slane %v6944_v31, 11  ;;  %7172 = vst.msk [vmem:[#allocation3 + $0x58] sm:$0xf] %vm313_vm2, %v7076_v38  ;;  %v7830_v32 = vpack.c.bf16 %v7798_v52, %v7798_v52  ;;  %v13640_v1 = vrot.slane %v6397_v24, 3  ;;  %v5697_v31 = vld [vmem:[#allocation2 + $0x50] sm:$0x8] }
 0x34c   : > { %5569 = vrot.lane.b32.xlu2 %v5481_v3, %s10261_s8  ;;  %5674 = vst.msk [vmem:[#allocation2 + $0xc4] sm:$0xf] %vm313_vm2, %v5481_v3  ;;  %v6579_v4 = vmax.f32 %v6259_v39, %v6473_v19  ;;  %v7079_v59 = vsel %vm11012_vm10, %v7077_v14, %v7078_v2  ;;  %v5288_v33 = vmax.f32 %v5128_v51, %v13229_v28  ;;  %v13645_v49 = vrot.slane %v6397_v24, 4  ;;  %v5698_v52 = vld [vmem:[#allocation2 + $0x54] sm:$0xff]  }
 0x34d   : > { %v14841_v55 = vunpack.c.h.bf16 %v13116_v50  ;;  %7173 = vst.msk [vmem:[#allocation3 + $0x5c] sm:$0xf] %vm313_vm2, %v7079_v59  ;;  %7898 = vrot.lane.b32.xlu1 %v7830_v32, %s10262_s9  ;;  %v9594_v29 = vunpack.c.l.bf16 %v13633_v10  ;;  %v9658_v35 = vunpack.c.l.bf16 %v13650_v15  ;;  %v13661_v27 = vunpack.c.h.bf16 %v13488_v46  ;;  %v5699_v24 = vld [vmem:[#allocation2 + $0x58] sm:$0x7] }
 0x34e   : > { %v6899_v36 = vmax.f32 %v6579_v4, %v13613_v6  ;;  %v5448_v11 = vmax.f32 %v5288_v33, %v9563_v42  ;;  %5619 = vst.msk [vmem:[#allocation4 + $0x4] sm:$0xf] %vm5617_vm12, %v5524_v62  ;;  %v14842_v14 = vunpack.c.h.bf16 %v13266_v45  ;;  %v5761_v4 = vunpack.c.l.bf16 %v5697_v31 }
 0x34f   : > { %v7317_v43 = vmax.f32 %v14841_v55, %v13171_v26  ;;  %v5714_v63 = vld [vmem:[#allocation2 + $0xa8] sm:$0x7]  ;;  %v13667_v32 = vunpack.c.l.bf16 %v5698_v52  ;;  %v13682_v31 = vunpack.c.h.bf16 %v5698_v52 }
 0x350   : > { %v5740_v57 = vld [vmem:[#allocation2 + $0xa8] sm:$0xf]  ;;  %v6947_v20 = vpack.c.bf16 %v6899_v36, %v6899_v36  ;;  %v5778_v2 = vunpack.c.l.bf16 %v5714_v63  ;;  %v5480_v38 = vpack.c.bf16 %v5448_v11, %v5448_v11 }
 0x351   : > { %v7477_v50 = vmax.f32 %v7317_v43, %v13287_v12  ;;  %v5804_v39 = vunpack.c.l.bf16 %v5740_v57  ;;  %v5763_v43 = vunpack.c.l.bf16 %v5699_v24 }
 0x352   : > { %v13669_v3 = vrot.slane %v6947_v20, 11  ;;  %5567 = vrot.lane.b32.xlu0 %v5480_v38, %s10261_s8  ;;  %5673 = vst.msk [vmem:[#allocation2 + $0xb8] sm:$0xf] %vm313_vm2, %v5480_v38 }
 0x353   : > { %v7637_v51 = vmax.f32 %v7477_v50, %v14842_v14  ;;  %v5911_v46 = vrot.slane %v5804_v39, 1  ;;  %v6161_v59 = vrot.slane %v5804_v39, 2  ;;  %v6469_v33 = vrot.slane %v5804_v39, 3  ;;  %v5719_v55 = vld [vmem:[#allocation2 + $0xc4] sm:$0xf] }
 0x354   : > { %v6789_v36 = vrot.slane %v5804_v39, 4  ;;  %v13671_v63 = vunpack.c.l.bf16 %v5719_v55  ;;  %v6654_v62 = vld [vmem:[#allocation2 + $0xc4] sm:$0xe] }
 0x355   : > { %v7797_v45 = vmax.f32 %v7637_v51, %v13661_v27  ;;  %v5912_v57 = vsel %vm1109_vm4, %v5909_v37, %v5911_v46  ;;  %v6018_v11 = vmax.f32 %v5778_v2, %v5911_v46  ;;  %v6162_v50 = vsel %vm1382_vm5, %v6160_v61, %v6161_v59 }
 0x356   : > { %v6017_v20 = vmax.f32 %v13540_v17, %v5912_v57  ;;  %v6470_v39 = vsel %vm1671_vm6, %v6468_v22, %v6469_v33  ;;  %v6472_v24 = vsel %vm1671_vm6, %v6469_v33, %v13548_v0  ;;  %v6790_v37 = vsel %vm1992_vm7, %v13575_v60, %v6789_v36 }
 0x357   : > { %v6258_v2 = vmax.f32 %v6018_v11, %v6161_v59  ;;  %v6792_v38 = vsel %vm1992_vm7, %v6789_v36, %v13578_v40  ;;  %v14588_v61 = vrot.slane %v13671_v63, 1  ;;  %v6166_v52 = vrot.slane %v13671_v63, 2 }
 0x358   : > { %v6257_v14 = vmax.f32 %v6017_v20, %v6162_v50  ;;  %v6718_v51 = vunpack.c.l.bf16 %v6654_v62  ;;  %v7829_v46 = vpack.c.bf16 %v7797_v45, %v7797_v45  ;;  %v5883_v17 = vrot.slane %v5761_v4, 1 }
 0x359   : > { %v6578_v55 = vmax.f32 %v6258_v2, %v6472_v24  ;;  %v5920_v0 = vsel %vm1109_vm4, %v13583_v8, %v14588_v61  ;;  %v5884_v22 = vrot.slane %v13667_v32, 1  ;;  %v5886_v60 = vrot.slane %v13682_v31, 1  ;;  %v5717_v57 = vld [vmem:[#allocation2 + $0xb8] sm:$0x7] }
 0x35a   : > { %v6577_v59 = vmax.f32 %v6257_v14, %v6470_v39  ;;  %v6022_v40 = vmax.f32 %v5782_v41, %v5920_v0  ;;  %v6478_v33 = vrot.slane %v13671_v63, 3  ;;  %v13705_v36 = vrot.slane %v6718_v51, 4  ;;  %7896 = vrot.lane.b32.xlu2 %v7829_v46, %s10262_s9  ;;  %v5741_v11 = vld [vmem:[#allocation2 + $0xb8] sm:$0xf] }
 0x35b   : > { %v6898_v45 = vmax.f32 %v6578_v55, %v6792_v38  ;;  %v5885_v50 = vsel %vm1109_vm4, %v5883_v17, %v5884_v22  ;;  %v5887_v8 = vsel %vm1109_vm4, %v5884_v22, %v5886_v60  ;;  %v6145_v62 = vrot.slane %v13667_v32, 2 }
 0x35c   : > { %v6897_v20 = vmax.f32 %v6577_v59, %v6790_v37  ;;  %v6262_v58 = vmax.f32 %v6022_v40, %v6166_v52  ;;  %v5805_v41 = vunpack.c.l.bf16 %v5741_v11  ;;  %v6003_v39 = vmax.f32 %v5763_v43, %v5886_v60 }
 0x35d   : > { %v6946_v24 = vpack.c.bf16 %v6898_v45, %v6898_v45  ;;  %v5781_v2 = vunpack.c.l.bf16 %v5717_v57  ;;  %v6001_v14 = vmax.f32 %v5761_v4, %v5885_v50  ;;  %v6146_v51 = vrot.slane %v13682_v31, 2 }
 0x35e   : > { %v6945_v38 = vpack.c.bf16 %v6897_v20, %v6897_v20  ;;  %v6582_v46 = vmax.f32 %v6262_v58, %v6478_v33  ;;  %v5916_v17 = vrot.slane %v5805_v41, 1  ;;  %v6164_v55 = vrot.slane %v5805_v41, 2  ;;  %v6327_v58 = vld [vmem:[#allocation2 + $0x5c] sm:$0x1] }
 0x35f   : > { %v7085_v0 = vrot.slane %v6946_v24, 7  ;;  %v6474_v22 = vrot.slane %v5805_v41, 3  ;;  %v6794_v61 = vrot.slane %v5805_v41, 4  ;;  %v6002_v37 = vmax.f32 %v13667_v32, %v5887_v8  ;;  %v5530_v41 = vpop.permute.xlu2 %5529 }
 0x360   : > { %v7082_v59 = vrot.slane %v6945_v38, 7  ;;  %v6902_v40 = vmax.f32 %v6582_v46, %v13705_v36  ;;  %v5917_v4 = vsel %vm1109_vm4, %v5914_v34, %v5916_v17  ;;  %v6021_v43 = vmax.f32 %v5781_v2, %v5916_v17  ;;  %v6647_v2 = vld [vmem:[#allocation2 + $0x54] sm:$0xe]  ;;  %5622 = vst.msk [vmem:[#allocation4 + $0x10] sm:$0xf] %vm5617_vm12, %v5530_v41 }
 0x361   : > { %v6020_v60 = vmax.f32 %v13587_v7, %v5917_v4  ;;  %v6165_v45 = vsel %vm1382_vm5, %v6163_v48, %v6164_v55  ;;  %v6475_v57 = vsel %vm1671_vm6, %v6473_v19, %v6474_v22  ;;  %v6147_v11 = vsel %vm1382_vm5, %v6145_v62, %v6146_v51 }
 0x362   : > { %v7083_v50 = vsel %vm11012_vm10, %v13635_v25, %v7082_v59  ;;  %v7084_v8 = vrot.slane %v7082_v59, 4  ;;  %v6261_v20 = vmax.f32 %v6021_v43, %v6164_v55  ;;  %v6477_v34 = vsel %vm1671_vm6, %v6474_v22, %v13640_v1 }
 0x363   : > { %v6950_v24 = vpack.c.bf16 %v6902_v40, %v6902_v40  ;;  %7174 = vst.msk [vmem:[#allocation3 + $0x60] sm:$0xf] %vm313_vm2, %v7083_v50  ;;  %v6260_v48 = vmax.f32 %v6020_v60, %v6165_v45  ;;  %v6795_v7 = vsel %vm1992_vm7, %v13613_v6, %v6794_v61  ;;  %v6241_v19 = vmax.f32 %v6001_v14, %v6145_v62 }
 0x364   : > { %v7086_v38 = vsel %vm11012_vm10, %v7084_v8, %v7085_v0  ;;  %v6581_v25 = vmax.f32 %v6261_v20, %v6477_v34  ;;  %v6797_v46 = vsel %vm1992_vm7, %v6794_v61, %v13645_v49  ;;  %v6242_v17 = vmax.f32 %v6002_v37, %v6147_v11 }
 0x365   : > { %7175 = vst.msk [vmem:[#allocation3 + $0x64] sm:$0xf] %vm313_vm2, %v7086_v38  ;;  %v6580_v1 = vmax.f32 %v6260_v48, %v6475_v57  ;;  %v6243_v55 = vmax.f32 %v6003_v39, %v6146_v51  ;;  %v6391_v22 = vunpack.c.l.bf16 %v6327_v58  ;;  %v6443_v59 = vrot.slane %v13667_v32, 3 }
 0x366   : > { %v6901_v6 = vmax.f32 %v6581_v25, %v6797_v46  ;;  %v6444_v62 = vrot.slane %v13682_v31, 3  ;;  %v6711_v14 = vunpack.c.l.bf16 %v6647_v2  ;;  %v6764_v0 = vrot.slane %v13682_v31, 4  ;;  %v13754_v31 = vld [vmem:[#allocation2 + $0xcc] sm:$0x1]  ;;  %v5700_v46 = vld [vmem:[#allocation2 + $0x60] sm:$0x8] }
 0x367   : > { %v6900_v40 = vmax.f32 %v6580_v1, %v6795_v7  ;;  %v6446_v4 = vrot.slane %v6391_v22, 3  ;;  %v6561_v43 = vmax.f32 %v6241_v19, %v6443_v59  ;;  %v6766_v49 = vrot.slane %v6391_v22, 4 }
 0x368   : > { %v13746_v61 = vrot.slane %v6950_v24, 11  ;;  %v6949_v37 = vpack.c.bf16 %v6901_v6, %v6901_v6  ;;  %v6445_v60 = vsel %vm1671_vm6, %v6443_v59, %v6444_v62  ;;  %v6763_v45 = vrot.slane %v6711_v14, 4 }
 0x369   : > { %v6948_v39 = vpack.c.bf16 %v6900_v40, %v6900_v40  ;;  %v6447_v51 = vsel %vm1671_vm6, %v6444_v62, %v6446_v4  ;;  %v6562_v32 = vmax.f32 %v6242_v17, %v6445_v60  ;;  %v7320_v57 = vmax.f32 %v9594_v29, %v9658_v35  ;;  %v5702_v62 = vld [vmem:[#allocation2 + $0x68] sm:$0x7]  ;;  %v10193_v40 = vld [vmem:[#allocation3 + $0x20] sm:$0xff]  }
 0x36a   : > { %v6563_v11 = vmax.f32 %v6243_v55, %v6447_v51  ;;  %v6765_v50 = vsel %vm1992_vm7, %v6763_v45, %v6764_v0  ;;  %v6767_v8 = vsel %vm1992_vm7, %v6764_v0, %v6766_v49  ;;  %v6881_v20 = vmax.f32 %v6561_v43, %v6763_v45 }
 0x36b   : > { %v7089_v34 = vrot.slane %v6948_v39, 7  ;;  %v6882_v58 = vmax.f32 %v6562_v32, %v6765_v50  ;;  %v7480_v41 = vmax.f32 %v7320_v57, %v13507_v30  ;;  %v4970_v24 = vmax.f32 %v13325_v9, %v12977_v18  ;;  %v5701_v9 = vld [vmem:[#allocation2 + $0x64] sm:$0xff]  }
 0x36c   : > { %v6883_v48 = vmax.f32 %v6563_v11, %v6767_v8  ;;  %v6929_v7 = vpack.c.bf16 %v6881_v20, %v6881_v20  ;;  %v6398_v19 = vunpack.c.l.bf16 %v13754_v31  ;;  %v7092_v38 = vrot.slane %v6949_v37, 7  ;;  %v6648_v11 = vld [vmem:[#allocation2 + $0x64] sm:$0xe] }
 0x36d   : > { %v7090_v29 = vsel %vm11012_vm10, %v13669_v3, %v7089_v34  ;;  %v7091_v2 = vrot.slane %v7089_v34, 4  ;;  %v6930_v25 = vpack.c.bf16 %v6882_v58, %v6882_v58  ;;  %v13767_v55 = vmax.f32 %v7480_v41, %v13619_v54 }
 0x36e   : > { %7176 = vst.msk [vmem:[#allocation3 + $0x68] sm:$0xf] %vm313_vm2, %v7090_v29  ;;  %v6931_v17 = vpack.c.bf16 %v6883_v48, %v6883_v48  ;;  %v8782_v1 = vrot.slane %v6929_v7, 11  ;;  %v5130_v18 = vmax.f32 %v4970_v24, %v13229_v28  ;;  %v13772_v6 = vrot.slane %v6398_v19, 3  ;;  %v5528_v48 = vpop.permute.xlu0 %5527  ;;  %v5574_v7 = vpop.permute.xlu2 %5573 }
 0x36f   : > { %v7093_v22 = vsel %vm11012_vm10, %v7091_v2, %v7092_v38  ;;  %v7047_v59 = vrot.slane %v6930_v25, 7  ;;  %v7319_v3 = vmax.f32 %v13171_v26, %v13287_v12  ;;  %v9719_v4 = vunpack.c.h.bf16 %v10193_v40  ;;  %5621 = vst.msk [vmem:[#allocation4 + $0xc] sm:$0xf] %vm5617_vm12, %v5528_v48 }
 0x370   : > { %7177 = vst.msk [vmem:[#allocation3 + $0x6c] sm:$0xf] %vm313_vm2, %v7093_v22  ;;  %v7050_v14 = vrot.slane %v6931_v17, 7  ;;  %v5290_v0 = vmax.f32 %v5130_v18, %v9563_v42  ;;  %v5764_v28 = vunpack.c.l.bf16 %v5700_v46  ;;  %v13782_v37 = vunpack.c.h.bf16 %v13599_v56  ;;  %v6328_v42 = vld [vmem:[#allocation2 + $0x6c] sm:$0x1] }
 0x371   : > { %v7048_v43 = vsel %vm11012_vm10, %v8782_v1, %v7047_v59  ;;  %v7049_v49 = vrot.slane %v7047_v59, 4  ;;  %v5765_v60 = vunpack.c.l.bf16 %v5701_v9  ;;  %v14843_v26 = vunpack.c.h.bf16 %v13213_v21  ;;  %5644 = vst.msk [vmem:[#allocation4 + $0x68] sm:$0xf] %vm5617_vm12, %v5574_v7 }
 0x372   : > { %7164 = vst.msk [vmem:[#allocation3 + $0x38] sm:$0xf] %vm313_vm2, %v7048_v43  ;;  %v7479_v45 = vmax.f32 %v7319_v3, %v9719_v4  ;;  %v5766_v39 = vunpack.c.l.bf16 %v5702_v62  ;;  %v5800_v16 = vunpack.c.h.bf16 %v5701_v9  ;;  %v5888_v32 = vrot.slane %v5764_v28, 1 }
 0x373   : > { %v5450_v12 = vmax.f32 %v5290_v0, %v14843_v26  ;;  %v7051_v51 = vsel %vm11012_vm10, %v7049_v49, %v7050_v14  ;;  %v5889_v57 = vrot.slane %v5765_v60, 1  ;;  %v6148_v31 = vrot.slane %v5765_v60, 2 }
 0x374   : > { %7165 = vst.msk [vmem:[#allocation3 + $0x3c] sm:$0xf] %vm313_vm2, %v7051_v51  ;;  %v7639_v50 = vmax.f32 %v7479_v45, %v13661_v27  ;;  %v5891_v8 = vrot.slane %v5800_v16, 1  ;;  %v6149_v20 = vrot.slane %v5800_v16, 2  ;;  %v6392_v58 = vunpack.c.l.bf16 %v6328_v42 }
 0x375   : > { %v5482_v56 = vpack.c.bf16 %v5450_v12, %v5450_v12  ;;  %v5890_v34 = vsel %vm1109_vm4, %v5888_v32, %v5889_v57  ;;  %v6448_v41 = vrot.slane %v5765_v60, 3  ;;  %v6449_v24 = vrot.slane %v5800_v16, 3 }
 0x376   : > { %v7799_v29 = vmax.f32 %v7639_v50, %v13782_v37  ;;  %v5892_v2 = vsel %vm1109_vm4, %v5889_v57, %v5891_v8  ;;  %v6004_v38 = vmax.f32 %v5764_v28, %v5890_v34  ;;  %v6712_v25 = vunpack.c.l.bf16 %v6648_v11 }
 0x377   : > { %5571 = vrot.lane.b32.xlu0 %v5482_v56, %s10261_s8  ;;  %5675 = vst.msk [vmem:[#allocation2 + $0xc8] sm:$0xf] %vm313_vm2, %v5482_v56  ;;  %v13796_v46 = vrot.slane %v6398_v19, 4  ;;  %v6005_v17 = vmax.f32 %v5765_v60, %v5892_v2  ;;  %v6006_v1 = vmax.f32 %v5766_v39, %v5891_v8  ;;  %v6150_v18 = vsel %vm1382_vm5, %v6148_v31, %v6149_v20  ;;  %v13811_v39 = vld [vmem:[#allocation2 + $0x70] sm:$0x8] }
 0x378   : > { %v7831_v9 = vpack.c.bf16 %v7799_v29, %v7799_v29  ;;  %v6244_v22 = vmax.f32 %v6004_v38, %v6148_v31  ;;  %v6451_v59 = vrot.slane %v6392_v58, 3  ;;  %v6768_v3 = vrot.slane %v6712_v25, 4 }
 0x379   : > { %v6245_v62 = vmax.f32 %v6005_v17, %v6150_v18  ;;  %v6246_v14 = vmax.f32 %v6006_v1, %v6149_v20  ;;  %v6769_v0 = vrot.slane %v5800_v16, 4  ;;  %v6771_v40 = vrot.slane %v6392_v58, 4 }
 0x37a   : > { %7900 = vrot.lane.b32.xlu2 %v7831_v9, %s10262_s9  ;;  %v6450_v19 = vsel %vm1671_vm6, %v6448_v41, %v6449_v24  ;;  %v6452_v4 = vsel %vm1671_vm6, %v6449_v24, %v6451_v59  ;;  %v6564_v28 = vmax.f32 %v6244_v22, %v6448_v41  ;;  %v13807_v43 = vmax.f32 %v9658_v35, %v13507_v30 }
 0x37b   : > { %v10112_v49 = vld [vmem:[#allocation3 + $0x38] sm:$0xff]   ;;  %v6565_v60 = vmax.f32 %v6245_v62, %v6450_v19  ;;  %v6566_v26 = vmax.f32 %v6246_v14, %v6452_v4  ;;  %v6770_v12 = vsel %vm1992_vm7, %v6768_v3, %v6769_v0  ;;  %v9595_v45 = vunpack.c.h.bf16 %v13633_v10 }
 0x37c   : > { %v13813_v16 = vunpack.c.l.bf16 %v10112_v49  ;;  %v6772_v42 = vsel %vm1992_vm7, %v6769_v0, %v6771_v40  ;;  %v6884_v51 = vmax.f32 %v6564_v28, %v6768_v3  ;;  %v9659_v32 = vunpack.c.h.bf16 %v13650_v15  ;;  %v5704_v3 = vld [vmem:[#allocation2 + $0x74] sm:$0xff]  }
 0x37d   : > { %v6885_v35 = vmax.f32 %v6565_v60, %v6770_v12  ;;  %v6886_v11 = vmax.f32 %v6566_v26, %v6772_v42  ;;  %v7482_v56 = vmax.f32 %v13807_v43, %v13619_v54  ;;  %v13819_v50 = vunpack.c.h.bf16 %v10112_v49  ;;  %v5705_v62 = vld [vmem:[#allocation2 + $0x78] sm:$0x7]  ;;  %v10048_v15 = vld [vmem:[#allocation3 + $0x90] sm:$0xff]  }
 0x37e   : > { %v5720_v57 = vld [vmem:[#allocation2 + $0xc8] sm:$0x7]  ;;  %v7800_v10 = vmax.f32 %v13767_v55, %v13813_v16  ;;  %v6932_v20 = vpack.c.bf16 %v6884_v51, %v6884_v51  ;;  %v5767_v34 = vunpack.c.l.bf16 %v13811_v39  ;;  %v7321_v48 = vmax.f32 %v9595_v45, %v9659_v32  ;;  %v13851_v12 = vld [vmem:[#allocation3 + $0x78] sm:$0xff]  }
 0x37f   : > { %v5742_v31 = vld [vmem:[#allocation2 + $0xc8] sm:$0xf]  ;;  %5543 = vrot.lane.b32.xlu0 %v12701_v53, %s10261_s8  ;;  %v5784_v58 = vunpack.c.l.bf16 %v5720_v57  ;;  %v6933_v41 = vpack.c.bf16 %v6885_v35, %v6885_v35  ;;  %v6934_v24 = vpack.c.bf16 %v6886_v11, %v6886_v11  ;;  %v14844_v53 = vrot.slane %v13671_v63, 1  ;;  %v14845_v42 = vld [vmem:[#allocation11_spill] sm:$0xff]  ;;  %7181 = vst.msk [vmem:[#allocation3 + $0x7c] sm:$0xf] %vm313_vm2, %v13338_v5 }
 0x380   : > { %v5806_v8 = vunpack.c.l.bf16 %v5742_v31  ;;  %v7832_v7 = vpack.c.bf16 %v7800_v10, %v7800_v10  ;;  %v8783_v17 = vrot.slane %v6932_v20, 11  ;;  %v5769_v60 = vunpack.c.l.bf16 %v5705_v62 }
 0x381   : > { %v7054_v55 = vrot.slane %v6933_v41, 7  ;;  %v7057_v1 = vrot.slane %v6934_v24, 7  ;;  %v13849_v26 = vunpack.c.h.bf16 %v5704_v3  ;;  %v5893_v39 = vrot.slane %v5767_v34, 1 }
 0x382   : > { %v5921_v29 = vrot.slane %v5806_v8, 1  ;;  %v6167_v2 = vrot.slane %v5806_v8, 2  ;;  %v6479_v38 = vrot.slane %v5806_v8, 3  ;;  %v6799_v25 = vrot.slane %v5806_v8, 4  ;;  %7902 = vrot.lane.b32.xlu1 %v7832_v7, %s10262_s9 }
 0x383   : > { %v7056_v28 = vrot.slane %v7054_v55, 4  ;;  %v14846_v51 = vsel %vm11012_vm10, %v13181_v47, %v13316_v44  ;;  %v5896_v35 = vrot.slane %v13849_v26, 1  ;;  %v6152_v20 = vrot.slane %v13849_v26, 2 }
 0x384   : > { %v5922_v18 = vsel %vm1109_vm4, %v14844_v53, %v5921_v29  ;;  %v6024_v9 = vmax.f32 %v5784_v58, %v5921_v29  ;;  %v6168_v22 = vsel %vm1382_vm5, %v6166_v52, %v6167_v2  ;;  %v6480_v59 = vsel %vm1671_vm6, %v6478_v33, %v6479_v38  ;;  %7180 = vst.msk [vmem:[#allocation3 + $0x78] sm:$0xf] %vm313_vm2, %v14846_v51 }
 0x385   : > { %v6023_v14 = vmax.f32 %v13671_v63, %v5922_v18  ;;  %v6482_v0 = vsel %vm1671_vm6, %v6479_v38, %v13772_v6  ;;  %v6800_v40 = vsel %vm1992_vm7, %v13705_v36, %v6799_v25  ;;  %v6802_v19 = vsel %vm1992_vm7, %v6799_v25, %v13796_v46  ;;  %v6329_v6 = vld [vmem:[#allocation2 + $0x7c] sm:$0x1]  ;;  %v6649_v38 = vld [vmem:[#allocation2 + $0x74] sm:$0xe] }
 0x386   : > { %v6264_v4 = vmax.f32 %v6024_v9, %v6167_v2  ;;  %v7055_v52 = vsel %vm11012_vm10, %v8783_v17, %v7054_v55  ;;  %v7481_v33 = vmax.f32 %v7321_v48, %v13661_v27  ;;  %v5768_v63 = vunpack.c.l.bf16 %v5704_v3 }
 0x387   : > { %v6263_v49 = vmax.f32 %v6023_v14, %v6168_v22  ;;  %7166 = vst.msk [vmem:[#allocation3 + $0x40] sm:$0xf] %vm313_vm2, %v7055_v52  ;;  %v7058_v46 = vsel %vm11012_vm10, %v7056_v28, %v7057_v1  ;;  %3208 = vrot.lane.b32.xlu0 %v14845_v42, %s10260_s20  ;;  %v6393_v58 = vunpack.c.l.bf16 %v6329_v6  ;;  %v6009_v24 = vmax.f32 %v5769_v60, %v5896_v35  ;;  %v9988_v28 = vld [vmem:[#allocation3 + $0x70] sm:$0xff]   ;;  %v5534_v60 = vpop.permute.xlu2 %5533 }
 0x388   : > { %v6584_v36 = vmax.f32 %v6264_v4, %v6482_v0  ;;  %v7641_v45 = vmax.f32 %v7481_v33, %v13782_v37  ;;  %7167 = vst.msk [vmem:[#allocation3 + $0x44] sm:$0xf] %vm313_vm2, %v7058_v46  ;;  %v5894_v31 = vrot.slane %v5768_v63, 1  ;;  %v6151_v11 = vrot.slane %v5768_v63, 2  ;;  %v3191_v46 = vpop.permute.xlu1 %3190 }
 0x389   : > { %v6583_v57 = vmax.f32 %v6263_v49, %v6480_v59  ;;  %v7642_v17 = vmax.f32 %v7482_v56, %v13813_v16  ;;  %v6453_v5 = vrot.slane %v5768_v63, 3  ;;  %v6249_v18 = vmax.f32 %v6009_v24, %v6152_v20  ;;  %5624 = vst.msk [vmem:[#allocation4 + $0x18] sm:$0xf] %vm5617_vm12, %v5534_v60 }
 0x38a   : > { %v6904_v10 = vmax.f32 %v6584_v36, %v6802_v19  ;;  %v7801_v8 = vmax.f32 %v7641_v45, %v13819_v50  ;;  %v5895_v47 = vsel %vm1109_vm4, %v5893_v39, %v5894_v31  ;;  %v5897_v44 = vsel %vm1109_vm4, %v5894_v31, %v5896_v35  ;;  %3268 = vst.msk [vmem:[#allocation4 + $0x4c] sm:$0xf] %vm3248_vm11, %v3191_v46 }
 0x38b   : > { %v6903_v41 = vmax.f32 %v6583_v57, %v6800_v40  ;;  %v6007_v29 = vmax.f32 %v5767_v34, %v5895_v47  ;;  %v6008_v2 = vmax.f32 %v5768_v63, %v5897_v44  ;;  %v6153_v55 = vsel %vm1382_vm5, %v6151_v11, %v6152_v20 }
 0x38c   : > { %v6952_v48 = vpack.c.bf16 %v6904_v10, %v6904_v10  ;;  %v7833_v7 = vpack.c.bf16 %v7801_v8, %v7801_v8  ;;  %v6454_v9 = vrot.slane %v13849_v26, 3  ;;  %v6456_v34 = vrot.slane %v6393_v58, 3  ;;  %v13901_v8 = vld [vmem:[#allocation3 + $0x88] sm:$0xff]  }
 0x38d   : > { %v6951_v25 = vpack.c.bf16 %v6903_v41, %v6903_v41  ;;  %v6247_v1 = vmax.f32 %v6007_v29, %v6151_v11  ;;  %v6248_v53 = vmax.f32 %v6008_v2, %v6153_v55  ;;  %v6713_v59 = vunpack.c.l.bf16 %v6649_v38 }
 0x38e   : > { %7904 = vrot.lane.b32.xlu2 %v7833_v7, %s10262_s9  ;;  %v6774_v3 = vrot.slane %v13849_v26, 4  ;;  %v7099_v62 = vrot.slane %v6952_v48, 7  ;;  %v6455_v43 = vsel %vm1671_vm6, %v6453_v5, %v6454_v9  ;;  %v6776_v0 = vrot.slane %v6393_v58, 4  ;;  %v3185_v26 = vpop.permute.xlu0 %3184 }
 0x38f   : > { %v7096_v22 = vrot.slane %v6951_v25, 7  ;;  %v10113_v14 = vld [vmem:[#allocation3 + $0x40] sm:$0xff]   ;;  %v6567_v56 = vmax.f32 %v6247_v1, %v6453_v5  ;;  %v6457_v52 = vsel %vm1671_vm6, %v6454_v9, %v6456_v34  ;;  %v6568_v33 = vmax.f32 %v6248_v53, %v6455_v43  ;;  %3265 = vst.msk [vmem:[#allocation4 + $0x40] sm:$0xf] %vm3248_vm11, %v3185_v26 }
 0x390   : > { %v13884_v4 = vunpack.c.l.bf16 %v10113_v14  ;;  %v6569_v49 = vmax.f32 %v6249_v18, %v6457_v52  ;;  %v6773_v63 = vrot.slane %v6713_v59, 4  ;;  %v7323_v31 = vmax.f32 %v9659_v32, %v13661_v27  ;;  %v3195_v59 = vpop.permute.xlu1 %3194  ;;  %v10004_v43 = vld [vmem:[#allocation3 + $0x80] sm:$0xff]  }
 0x391   : > { %v7097_v40 = vsel %vm11012_vm10, %v13746_v61, %v7096_v22  ;;  %v7098_v19 = vrot.slane %v7096_v22, 4  ;;  %v6777_v61 = vsel %vm1992_vm7, %v6774_v3, %v6776_v0  ;;  %v13899_v10 = vunpack.c.h.bf16 %v10113_v14  ;;  %v10088_v0 = vld [vmem:[#allocation3 + $0x58] sm:$0xff]   ;;  %3270 = vst.msk [vmem:[#allocation4 + $0x54] sm:$0xf] %vm3248_vm11, %v3195_v59 }
 0x392   : > { %7178 = vst.msk [vmem:[#allocation3 + $0x70] sm:$0xf] %vm313_vm2, %v7097_v40  ;;  %v7802_v36 = vmax.f32 %v7642_v17, %v13884_v4  ;;  %v6775_v45 = vsel %vm1992_vm7, %v6773_v63, %v6774_v3  ;;  %v6887_v39 = vmax.f32 %v6567_v56, %v6773_v63  ;;  %v6889_v42 = vmax.f32 %v6569_v49, %v6777_v61  ;;  %v13935_v63 = vld [vmem:[#allocation2 + $0xe0] sm:$0x8] }
 0x393   : > { %v7100_v6 = vsel %vm11012_vm10, %v7098_v19, %v7099_v62  ;;  %v6888_v57 = vmax.f32 %v6568_v33, %v6775_v45  ;;  %v7483_v58 = vmax.f32 %v7323_v31, %v13782_v37  ;;  %v9318_v41 = vunpack.c.l.bf16 %v9988_v28  ;;  %v10073_v33 = vld [vmem:[#allocation3 + $0x50] sm:$0xff]   ;;  %v13939_v61 = vld [vmem:[#allocation3 + $0x60] sm:$0xff]  }
 0x394   : > { %v7834_v51 = vpack.c.bf16 %v7802_v36, %v7802_v36  ;;  %v6935_v35 = vpack.c.bf16 %v6887_v39, %v6887_v39  ;;  %v6937_v11 = vpack.c.bf16 %v6889_v42, %v6889_v42  ;;  %7179 = vst.msk [vmem:[#allocation3 + $0x74] sm:$0xf] %vm313_vm2, %v7100_v6  ;;  %v9382_v47 = vunpack.c.l.bf16 %v13851_v12  ;;  %v6336_v6 = vld [vmem:[#allocation2 + $0xec] sm:$0x1]  ;;  %v5538_v36 = vpop.permute.xlu2 %5537 }
 0x395   : > { %v6936_v20 = vpack.c.bf16 %v6888_v57, %v6888_v57  ;;  %v9319_v32 = vunpack.c.h.bf16 %v9988_v28  ;;  %v9383_v44 = vunpack.c.h.bf16 %v13851_v12  ;;  %v7643_v48 = vmax.f32 %v7483_v58, %v13819_v50  ;;  %v13948_v42 = vld [vmem:[#allocation3 + $0x68] sm:$0xff]   ;;  %5626 = vst.msk [vmem:[#allocation4 + $0x20] sm:$0xf] %vm5617_vm12, %v5538_v36 }
 0x396   : > { %7906 = vrot.lane.b32.xlu1 %v7834_v51, %s10262_s9  ;;  %v8784_v27 = vrot.slane %v6935_v35, 11  ;;  %v4973_v7 = vmax.f32 %v9318_v41, %v9382_v47  ;;  %v9510_v29 = vunpack.c.l.bf16 %v13901_v8  ;;  %v7064_v2 = vrot.slane %v6937_v11, 7  ;;  %v3187_v18 = vpop.permute.xlu0 %3186 }
 0x397   : > { %v7061_v24 = vrot.slane %v6936_v20, 7  ;;  %v4974_v38 = vmax.f32 %v9319_v32, %v9383_v44  ;;  %v9511_v25 = vunpack.c.h.bf16 %v13901_v8  ;;  %v13911_v17 = vunpack.c.l.bf16 %v10048_v15  ;;  %3266 = vst.msk [vmem:[#allocation4 + $0x44] sm:$0xf] %vm3248_vm11, %v3187_v18 }
 0x398   : > { %v7803_v1 = vmax.f32 %v7643_v48, %v13899_v10  ;;  %v14847_v12 = vunpack.c.l.bf16 %v13213_v21  ;;  %v14848_v9 = vunpack.c.h.bf16 %v13213_v21  ;;  %v13921_v34 = vunpack.c.h.bf16 %v10048_v15  ;;  %v13970_v15 = vld [vmem:[#allocation3 + $0x98] sm:$0xff]  }
 0x399   : > { %v7062_v55 = vsel %vm11012_vm10, %v8784_v27, %v7061_v24  ;;  %v7063_v5 = vrot.slane %v7061_v24, 4  ;;  %v7324_v21 = vmax.f32 %v13507_v30, %v13619_v54  ;;  %v9386_v52 = vunpack.c.l.bf16 %v10004_v43 }
 0x39a   : > { %v5133_v53 = vmax.f32 %v4973_v7, %v14847_v12  ;;  %7168 = vst.msk [vmem:[#allocation3 + $0x48] sm:$0xf] %vm313_vm2, %v7062_v55  ;;  %v5134_v22 = vmax.f32 %v4974_v38, %v14848_v9  ;;  %v7835_v62 = vpack.c.bf16 %v7803_v1, %v7803_v1  ;;  %v9387_v28 = vunpack.c.h.bf16 %v10004_v43 }
 0x39b   : > { %v7065_v3 = vsel %vm11012_vm10, %v7063_v5, %v7064_v2  ;;  %v13937_v60 = vunpack.c.l.bf16 %v10088_v0  ;;  %v7484_v30 = vmax.f32 %v7324_v21, %v13813_v16  ;;  %v14849_v46 = vunpack.c.l.bf16 %v12919_v23 }
 0x39c   : > { %v5293_v14 = vmax.f32 %v5133_v53, %v9510_v29  ;;  %7169 = vst.msk [vmem:[#allocation3 + $0x4c] sm:$0xf] %vm313_vm2, %v7065_v3  ;;  %v5294_v56 = vmax.f32 %v5134_v22, %v9511_v25  ;;  %7908 = vrot.lane.b32.xlu2 %v7835_v62, %s10262_s9  ;;  %v13946_v39 = vunpack.c.l.bf16 %v10073_v33  ;;  %v5788_v51 = vunpack.c.l.bf16 %v13935_v63  ;;  %v7893_v1 = vpop.permute.xlu2 %7892 }
 0x39d   : > { %v4975_v45 = vmax.f32 %v14849_v46, %v9386_v52  ;;  %v14850_v57 = vunpack.c.h.bf16 %v12919_v23  ;;  %v6400_v35 = vunpack.c.l.bf16 %v6336_v6  ;;  %v13959_v8 = vunpack.c.l.bf16 %v13939_v61  ;;  %7988 = vst.msk [vmem:[#allocation4 + $0x4] sm:$0xf] %vm7986_vm13, %v7893_v1 }
 0x39e   : > { %v5453_v40 = vmax.f32 %v5293_v14, %v13911_v17  ;;  %v5454_v19 = vmax.f32 %v5294_v56, %v13921_v34  ;;  %v3189_v54 = vpop.permute.xlu0 %3188  ;;  %v7334_v20 = vmax.f32 %v13946_v39, %v13937_v60  ;;  %v13967_v41 = vunpack.c.l.bf16 %v13948_v42  ;;  %v14851_v56 = vld [vmem:[#allocation36_spill] sm:$0xff] }
 0x39f   : > { %v4976_v16 = vmax.f32 %v14850_v57, %v9387_v28  ;;  %3267 = vst.msk [vmem:[#allocation4 + $0x48] sm:$0xf] %vm3248_vm11, %v3189_v54  ;;  %v7644_v23 = vmax.f32 %v7484_v30, %v13884_v4  ;;  %v5135_v47 = vmax.f32 %v4975_v45, %v9510_v29  ;;  %v5928_v32 = vrot.slane %v5788_v51, 1 }
 0x3a0   : > { %v13933_v49 = vpack.c.bf16 %v5453_v40, %v5453_v40  ;;  %v5486_v26 = vpack.c.bf16 %v5454_v19, %v5454_v19  ;;  %v6491_v48 = vrot.slane %v6400_v35, 3  ;;  %v13976_v7 = vrot.slane %v6400_v35, 4 }
 0x3a1   : > { %v5136_v24 = vmax.f32 %v4976_v16, %v9511_v25  ;;  %v13980_v38 = vunpack.c.h.bf16 %v10073_v33  ;;  %v13984_v5 = vmax.f32 %v7334_v20, %v13959_v8  ;;  %v9578_v12 = vunpack.c.l.bf16 %v13970_v15 }
 0x3a2   : > { %5678 = vst.msk [vmem:[#allocation2 + $0xe4] sm:$0xf] %vm313_vm2, %v13933_v49  ;;  %5579 = vrot.lane.b32.xlu0 %v5486_v26, %s10261_s8  ;;  %v9579_v53 = vunpack.c.h.bf16 %v13970_v15  ;;  %v13989_v22 = vunpack.c.h.bf16 %v10088_v0  ;;  %v5295_v3 = vmax.f32 %v5135_v47, %v13911_v17 }
 0x3a3   : > { %5679 = vst.msk [vmem:[#allocation2 + $0xe8] sm:$0xf] %vm313_vm2, %v5486_v26  ;;  %v10058_v31 = vld [vmem:[#allocation3 + $0x48] sm:$0xff]   ;;  %v5296_v21 = vmax.f32 %v5136_v24, %v13921_v34 }
 0x3a4   : > { %v13956_v11 = vunpack.c.l.bf16 %v10058_v31  ;;  %v13963_v58 = vunpack.c.h.bf16 %v10058_v31  ;;  %v5558_v24 = vpop.permute.xlu2 %5557 }
 0x3a5   : > { %5636 = vst.msk [vmem:[#allocation4 + $0x48] sm:$0xf] %vm5617_vm12, %v5558_v24 }
 0x3a6   : > { %v7332_v27 = vmax.f32 %v13956_v11, %v13946_v39  ;;  %v7330_v44 = vmax.f32 %v13884_v4, %v13956_v11  ;;  %v7331_v2 = vmax.f32 %v13899_v10, %v13963_v58  ;;  %v3193_v59 = vpop.permute.xlu0 %3192  ;;  %v7804_v40 = vmax.f32 %v7644_v23, %v13956_v11 }
 0x3a7   : > { %3269 = vst.msk [vmem:[#allocation4 + $0x50] sm:$0xf] %vm3248_vm11, %v3193_v59  ;;  %v5455_v23 = vmax.f32 %v5295_v3, %v9578_v12  ;;  %v14016_v59 = vunpack.c.h.bf16 %v13939_v61  ;;  %v14852_v3 = vld [vmem:[#allocation21_spill] sm:$0xff]  ;;  %v14027_v61 = vld [vmem:[#allocation3 + $0x70] sm:$0xff]  }
 0x3a8   : > { %v7492_v29 = vmax.f32 %v7332_v27, %v13937_v60  ;;  %v7490_v9 = vmax.f32 %v7330_v44, %v13946_v39  ;;  %v7491_v52 = vmax.f32 %v7331_v2, %v13980_v38  ;;  %v5456_v2 = vmax.f32 %v5296_v21, %v9579_v53 }
 0x3a9   : > { %v6656_v55 = vld [vmem:[#allocation2 + $0xe4] sm:$0xe] }
 0x3aa   : > { %v5725_v25 = vld [vmem:[#allocation2 + $0xe4] sm:$0xff]   ;;  %v7652_v62 = vmax.f32 %v7492_v29, %v13959_v8  ;;  %3176 = vrot.lane.b32.xlu0 %v14851_v56, %s10260_s20  ;;  %v6720_v0 = vunpack.c.l.bf16 %v6656_v55  ;;  %v7650_v54 = vmax.f32 %v7490_v9, %v13937_v60  ;;  %v7651_v9 = vmax.f32 %v7491_v52, %v13989_v22 }
 0x3ab   : > { %v5726_v18 = vld [vmem:[#allocation2 + $0xe8] sm:$0x7]  ;;  %v5789_v14 = vunpack.c.l.bf16 %v5725_v25  ;;  %v5808_v43 = vunpack.c.h.bf16 %v5725_v25 }
 0x3ac   : > { %v5790_v19 = vunpack.c.l.bf16 %v5726_v18  ;;  %v7812_v28 = vmax.f32 %v7652_v62, %v13967_v41  ;;  %v6808_v44 = vrot.slane %v6720_v0, 4 }
 0x3ad   : > { %v5929_v33 = vrot.slane %v5789_v14, 1  ;;  %v5931_v63 = vrot.slane %v5808_v43, 1  ;;  %v6172_v26 = vrot.slane %v5789_v14, 2  ;;  %v6173_v6 = vrot.slane %v5808_v43, 2 }
 0x3ae   : > { %v6488_v36 = vrot.slane %v5789_v14, 3  ;;  %v6489_v30 = vrot.slane %v5808_v43, 3  ;;  %v7844_v46 = vpack.c.bf16 %v7812_v28, %v7812_v28  ;;  %v6809_v20 = vrot.slane %v5808_v43, 4  ;;  %v5532_v1 = vpop.permute.xlu0 %5531 }
 0x3af   : > { %v5930_v45 = vsel %vm1109_vm4, %v5928_v32, %v5929_v33  ;;  %v5932_v57 = vsel %vm1109_vm4, %v5929_v33, %v5931_v63  ;;  %v6030_v16 = vmax.f32 %v5790_v19, %v5931_v63  ;;  %v6174_v47 = vsel %vm1382_vm5, %v6172_v26, %v6173_v6  ;;  %5623 = vst.msk [vmem:[#allocation4 + $0x14] sm:$0xf] %vm5617_vm12, %v5532_v1 }
 0x3b0   : > { %v6028_v31 = vmax.f32 %v5788_v51, %v5930_v45  ;;  %v6029_v35 = vmax.f32 %v5789_v14, %v5932_v57  ;;  %7926 = vrot.lane.b32.xlu1 %v7844_v46, %s10262_s9  ;;  %v6492_v55 = vsel %vm1671_vm6, %v6489_v30, %v6491_v48  ;;  %v7810_v51 = vmax.f32 %v7650_v54, %v13959_v8 }
 0x3b1   : > { %v6270_v27 = vmax.f32 %v6030_v16, %v6173_v6  ;;  %v6490_v25 = vsel %vm1671_vm6, %v6488_v36, %v6489_v30  ;;  %v6812_v14 = vsel %vm1992_vm7, %v6809_v20, %v13976_v7  ;;  %v6810_v56 = vsel %vm1992_vm7, %v6808_v44, %v6809_v20  ;;  %v14035_v30 = vld [vmem:[#allocation2 + $0xf0] sm:$0x8] }
 0x3b2   : > { %v6268_v32 = vmax.f32 %v6028_v31, %v6172_v26  ;;  %v6269_v29 = vmax.f32 %v6029_v35, %v6174_v47  ;;  %5547 = vrot.lane.b32.xlu0 %v14852_v3, %s10261_s8  ;;  %v7842_v43 = vpack.c.bf16 %v7810_v51, %v7810_v51  ;;  %v14024_v19 = vpack.c.bf16 %v5455_v23, %v5455_v23  ;;  %v14853_v31 = vld [vmem:[#allocation9_spill] sm:$0xff] }
 0x3b3   : > { %v6590_v18 = vmax.f32 %v6270_v27, %v6492_v55  ;;  %v5488_v28 = vpack.c.bf16 %v5456_v2, %v5456_v2  ;;  %v7836_v33 = vpack.c.bf16 %v7804_v40, %v7804_v40  ;;  %v7654_v63 = vmax.f32 %v13984_v5, %v13967_v41  ;;  %v5562_v40 = vpop.permute.xlu2 %5561  ;;  %v8938_v5 = vld [vmem:[%s14454_s4 + $0x38] sm:$0xff] }
 0x3b4   : > { %v6588_v62 = vmax.f32 %v6268_v32, %v6488_v36  ;;  %v6589_v48 = vmax.f32 %v6269_v29, %v6490_v25  ;;  %7922 = vrot.lane.b32.xlu2 %v7842_v43, %s10262_s9  ;;  %5680 = vst.msk [vmem:[#allocation2 + $0xf4] sm:$0xf] %vm313_vm2, %v14024_v19  ;;  %v7811_v36 = vmax.f32 %v7651_v9, %v14016_v59  ;;  %v14039_v54 = vunpack.c.l.bf16 %v14027_v61  ;;  %v6337_v27 = vld [vmem:[#allocation2 + $0xfc] sm:$0x1]  ;;  %v10194_v43 = vld [vmem:[#allocation3 + $0x28] sm:$0xff]  }
 0x3b5   : > { %v6910_v21 = vmax.f32 %v6590_v18, %v6812_v14  ;;  %5681 = vst.msk [vmem:[#allocation2 + $0xf8] sm:$0xf] %vm313_vm2, %v5488_v28  ;;  %v7333_v35 = vmax.f32 %v13963_v58, %v13980_v38  ;;  %v5791_v20 = vunpack.c.l.bf16 %v14035_v30  ;;  %8211 = vmatpush.bf16.msra.mxu1 %v8938_v5  ;;  %10129 = vmatpush.bf16.msra.mxu2 %v8938_v5  ;;  %v6401_v18 = vunpack.c.l.bf16 %v6337_v27  ;;  %v14080_v27 = vld [vmem:[#allocation3 + $0x78] sm:$0xff]  }
 0x3b6   : > { %v6908_v0 = vmax.f32 %v6588_v62, %v6808_v44  ;;  %v6909_v52 = vmax.f32 %v6589_v48, %v6810_v56  ;;  %v5576_v45 = vpop.permute.xlu0 %5575  ;;  %5638 = vst.msk [vmem:[#allocation4 + $0x50] sm:$0xf] %vm5617_vm12, %v5562_v40  ;;  %v7814_v16 = vmax.f32 %v7654_v63, %v14039_v54  ;;  %v7843_v47 = vpack.c.bf16 %v7811_v36, %v7811_v36 }
 0x3b7   : > { %v6958_v6 = vpack.c.bf16 %v6910_v21, %v6910_v21  ;;  %5645 = vst.msk [vmem:[#allocation4 + $0x6c] sm:$0xf] %vm5617_vm12, %v5576_v45  ;;  %v7336_v2 = vmax.f32 %v13937_v60, %v13959_v8  ;;  %v7493_v51 = vmax.f32 %v7333_v35, %v13989_v22  ;;  %v5933_v62 = vrot.slane %v5791_v20, 1  ;;  %v8937_v21 = vld [vmem:[%s14454_s4 + $0x30] sm:$0xff] }
 0x3b8   : > { %v6956_v7 = vpack.c.bf16 %v6908_v0, %v6908_v0  ;;  %v6957_v26 = vpack.c.bf16 %v6909_v52, %v6909_v52  ;;  %7910 = vrot.lane.b32.xlu1 %v7836_v33, %s10262_s9  ;;  %v7846_v55 = vpack.c.bf16 %v7814_v16, %v7814_v16  ;;  %v9603_v56 = vunpack.c.h.bf16 %v10194_v43  ;;  %v5554_v0 = vpop.permute.xlu1 %5553 }
 0x3b9   : > { %v7113_v23 = vrot.slane %v6958_v6, 7  ;;  %v7496_v60 = vmax.f32 %v7336_v2, %v13967_v41  ;;  %5634 = vst.msk [vmem:[#allocation4 + $0x40] sm:$0xf] %vm5617_vm12, %v5554_v0  ;;  %v7653_v36 = vmax.f32 %v7493_v51, %v14016_v59  ;;  %v6496_v40 = vrot.slane %v6401_v18, 3  ;;  %8212 = vmatpush.bf16.msra.mxu1 %v8937_v21  ;;  %10130 = vmatpush.bf16.msra.mxu2 %v8937_v21 }
 0x3ba   : > { %v8791_v46 = vrot.slane %v6956_v7, 11  ;;  %v7110_v57 = vrot.slane %v6957_v26, 7  ;;  %3212 = vrot.lane.b32.xlu0 %v14853_v31, %s10260_s20  ;;  %v7325_v5 = vmax.f32 %v9603_v56, %v13782_v37  ;;  %v14854_v37 = vld [vmem:[#allocation39_spill] sm:$0xff] }
 0x3bb   : > { %v6657_v32 = vld [vmem:[#allocation2 + $0xf4] sm:$0xe]  ;;  %v5566_v52 = vpop.permute.xlu2 %5565 }
 0x3bc   : > { %v7111_v44 = vsel %vm11012_vm10, %v8791_v46, %v7110_v57  ;;  %v7112_v24 = vrot.slane %v7110_v57, 4  ;;  %7924 = vrot.lane.b32.xlu2 %v7843_v47, %s10262_s9  ;;  %v5728_v1 = vld [vmem:[#allocation2 + $0xf4] sm:$0xff]   ;;  %v6721_v14 = vunpack.c.l.bf16 %v6657_v32  ;;  %v8936_v46 = vld [vmem:[%s14454_s4 + $0x28] sm:$0xff]  ;;  %5640 = vst.msk [vmem:[#allocation4 + $0x58] sm:$0xf] %vm5617_vm12, %v5566_v52  ;;  %v6816_v47 = vrot.slane %v6401_v18, 4 }
 0x3bd   : > { %7182 = vst.msk [vmem:[#allocation3 + $0x80] sm:$0xf] %vm313_vm2, %v7111_v44  ;;  %v5729_v25 = vld [vmem:[#allocation2 + $0xf8] sm:$0x7]  ;;  %v5792_v9 = vunpack.c.l.bf16 %v5728_v1  ;;  %v5809_v3 = vunpack.c.h.bf16 %v5728_v1  ;;  %v14083_v44 = vunpack.c.h.bf16 %v13948_v42  ;;  %8213 = vmatpush.bf16.msra.mxu1 %v8936_v46  ;;  %v14855_v42 = vld [vmem:[#allocation13_spill] sm:$0xff]  ;;  %10131 = vmatpush.bf16.msra.mxu2 %v8936_v46 }
 0x3be   : > { %v7114_v29 = vsel %vm11012_vm10, %v7112_v24, %v7113_v23  ;;  %v5793_v48 = vunpack.c.l.bf16 %v5729_v25  ;;  %v5536_v6 = vpop.permute.xlu0 %5535  ;;  %v6813_v32 = vrot.slane %v6721_v14, 4  ;;  %v8935_v14 = vld [vmem:[%s14454_s4 + $0x20] sm:$0xff] }
 0x3bf   : > { %7183 = vst.msk [vmem:[#allocation3 + $0x84] sm:$0xf] %vm313_vm2, %v7114_v29  ;;  %v5934_v33 = vrot.slane %v5792_v9, 1  ;;  %v5936_v63 = vrot.slane %v5809_v3, 1  ;;  %v6175_v7 = vrot.slane %v5792_v9, 2  ;;  %v6176_v26 = vrot.slane %v5809_v3, 2 }
 0x3c0   : > { %7930 = vrot.lane.b32.xlu1 %v7846_v55, %s10262_s9  ;;  %v6494_v30 = vrot.slane %v5809_v3, 3  ;;  %5625 = vst.msk [vmem:[#allocation4 + $0x1c] sm:$0xf] %vm5617_vm12, %v5536_v6  ;;  %v6493_v31 = vrot.slane %v5792_v9, 3  ;;  %v7656_v29 = vmax.f32 %v7496_v60, %v14039_v54  ;;  %v7813_v1 = vmax.f32 %v7653_v36, %v14083_v44  ;;  %v5556_v43 = vpop.permute.xlu1 %5555 }
 0x3c1   : > { %v5935_v45 = vsel %vm1109_vm4, %v5933_v62, %v5934_v33  ;;  %v5937_v57 = vsel %vm1109_vm4, %v5934_v33, %v5936_v63  ;;  %v6033_v16 = vmax.f32 %v5793_v48, %v5936_v63  ;;  %v6177_v24 = vsel %vm1382_vm5, %v6175_v7, %v6176_v26  ;;  %5635 = vst.msk [vmem:[#allocation4 + $0x44] sm:$0xf] %vm5617_vm12, %v5556_v43 }
 0x3c2   : > { %5583 = vrot.lane.b32.xlu0 %v5488_v28, %s10261_s8  ;;  %v6031_v35 = vmax.f32 %v5791_v20, %v5935_v45  ;;  %v6032_v23 = vmax.f32 %v5792_v9, %v5937_v57  ;;  %v6814_v28 = vrot.slane %v5809_v3, 4  ;;  %v6497_v51 = vsel %vm1671_vm6, %v6494_v30, %v6496_v40  ;;  %8214 = vmatpush.bf16.msra.mxu1 %v8935_v14 }
 0x3c3   : > { %v6273_v2 = vmax.f32 %v6033_v16, %v6176_v26  ;;  %v6495_v25 = vsel %vm1671_vm6, %v6493_v31, %v6494_v30  ;;  %v7485_v9 = vmax.f32 %v7325_v5, %v13819_v50  ;;  %v14094_v3 = vunpack.c.l.bf16 %v14080_v27  ;;  %v5570_v56 = vpop.permute.xlu2 %5569  ;;  %v8934_v26 = vld [vmem:[%s14454_s4 + $0x18] sm:$0xff]  ;;  %10132 = vmatpush.bf16.msra.mxu2 %v8935_v14 }
 0x3c4   : > { %5541 = vrot.lane.b32.xlu2 %v14854_v37, %s10261_s8  ;;  %v6271_v55 = vmax.f32 %v6031_v35, %v6175_v7  ;;  %v6272_v20 = vmax.f32 %v6032_v23, %v6177_v24  ;;  %v6817_v48 = vsel %vm1992_vm7, %v6814_v28, %v6816_v47  ;;  %v6815_v21 = vsel %vm1992_vm7, %v6813_v32, %v6814_v28  ;;  %v14856_v7 = vld [vmem:[#allocation42_spill] sm:$0xff]  ;;  %v14116_v28 = vld [vmem:[#allocation3 + $0x38] sm:$0xff]  }
 0x3c5   : > { %v6593_v18 = vmax.f32 %v6273_v2, %v6497_v51  ;;  %v7816_v52 = vmax.f32 %v7656_v29, %v14094_v3  ;;  %v7845_v6 = vpack.c.bf16 %v7813_v1, %v7813_v1  ;;  %v7645_v36 = vmax.f32 %v7485_v9, %v13899_v10  ;;  %5642 = vst.msk [vmem:[#allocation4 + $0x60] sm:$0xf] %vm5617_vm12, %v5570_v56  ;;  %v10055_v23 = vld [vmem:[#allocation3 + $0x30] sm:$0xff]   ;;  %v14857_v9 = vld [vmem:[#allocation15_spill] sm:$0xff] }
 0x3c6   : > { %v6591_v62 = vmax.f32 %v6271_v55, %v6493_v31  ;;  %v6592_v60 = vmax.f32 %v6272_v20, %v6495_v25  ;;  %v5540_v50 = vpop.permute.xlu0 %5539  ;;  %v7335_v30 = vmax.f32 %v13980_v38, %v13989_v22  ;;  %v7338_v35 = vmax.f32 %v13959_v8, %v13967_v41  ;;  %8215 = vmatpush.bf16.msra.mxu1 %v8934_v26 }
 0x3c7   : > { %v6913_v0 = vmax.f32 %v6593_v18, %v6817_v48  ;;  %5627 = vst.msk [vmem:[#allocation4 + $0x24] sm:$0xf] %vm5617_vm12, %v5540_v50  ;;  %v7848_v57 = vpack.c.bf16 %v7816_v52, %v7816_v52  ;;  %v7805_v47 = vmax.f32 %v7645_v36, %v13963_v58  ;;  %v9607_v20 = vunpack.c.h.bf16 %v10055_v23  ;;  %v10121_v48 = vld [vmem:[#allocation3 + $0x80] sm:$0xff]   ;;  %10133 = vmatpush.bf16.msra.mxu2 %v8934_v26 }
 0x3c8   : > { %3210 = vrot.lane.b32.xlu1 %v14855_v42, %s10260_s20  ;;  %v6911_v33 = vmax.f32 %v6591_v62, %v6813_v32  ;;  %v6912_v63 = vmax.f32 %v6592_v60, %v6815_v21  ;;  %v7495_v37 = vmax.f32 %v7335_v30, %v14016_v59  ;;  %v8933_v32 = vld [vmem:[%s14454_s4 + $0x10] sm:$0xff]  ;;  %v7891_v8 = vpop.permute.xlu1 %7890  ;;  %v9671_v51 = vunpack.c.h.bf16 %v14116_v28  ;;  %v8932_v42 = vld [vmem:[%s14454_s4 + $0x8] sm:$0xff] }
 0x3c9   : > { %v6961_v45 = vpack.c.bf16 %v6913_v0, %v6913_v0  ;;  %v7498_v25 = vmax.f32 %v7338_v35, %v14039_v54  ;;  %v9670_v18 = vunpack.c.l.bf16 %v14116_v28  ;;  %7987 = vst.msk [vmem:[#allocation4] sm:$0xf] %vm7986_vm13, %v7891_v8  ;;  %v7837_v62 = vpack.c.bf16 %v7805_v47, %v7805_v47 }
 0x3ca   : > { %3180 = vrot.lane.b32.xlu0 %v14856_v7, %s10260_s20  ;;  %v6959_v40 = vpack.c.bf16 %v6911_v33, %v6911_v33  ;;  %v6960_v5 = vpack.c.bf16 %v6912_v63, %v6912_v63  ;;  %8216 = vmatpush.bf16.msra.mxu1 %v8933_v32  ;;  %v7655_v13 = vmax.f32 %v7495_v37, %v14083_v44  ;;  %v9606_v14 = vunpack.c.l.bf16 %v10055_v23  ;;  %v14858_v63 = vld [vmem:[#allocation37_spill] sm:$0xff] }
 0x3cb   : > { %v7120_v2 = vrot.slane %v6961_v45, 7  ;;  %v7897_v29 = vpop.permute.xlu2 %7896  ;;  %v7327_v60 = vmax.f32 %v9607_v20, %v9671_v51  ;;  %v14145_v43 = vunpack.c.h.bf16 %v14027_v61  ;;  %v7658_v21 = vmax.f32 %v7498_v25, %v14094_v3  ;;  %10134 = vmatpush.bf16.msra.mxu2 %v8933_v32 }
 0x3cc   : > { %7928 = vrot.lane.b32.xlu2 %v7845_v6, %s10262_s9  ;;  %v8792_v16 = vrot.slane %v6959_v40, 11  ;;  %v7117_v31 = vrot.slane %v6960_v5, 7  ;;  %7990 = vst.msk [vmem:[#allocation4 + $0xc] sm:$0xf] %vm7986_vm13, %v7897_v29  ;;  %v7326_v0 = vmax.f32 %v9606_v14, %v9670_v18  ;;  %v14153_v52 = vunpack.c.h.bf16 %v10121_v48 }
 0x3cd   : > { %v7487_v56 = vmax.f32 %v7327_v60, %v13899_v10  ;;  %v7815_v50 = vmax.f32 %v7655_v13, %v14145_v43  ;;  %v14158_v61 = vunpack.c.l.bf16 %v10121_v48  ;;  %v8931_v10 = vld [vmem:[%s14454_s4] sm:$0xff]  ;;  %v14164_v6 = vunpack.c.h.bf16 %v14080_v27 }
 0x3ce   : > { %v7118_v46 = vsel %vm11012_vm10, %v8792_v16, %v7117_v31  ;;  %v7119_v24 = vrot.slane %v7117_v31, 4  ;;  %v5560_v55 = vpop.permute.xlu0 %5559  ;;  %8217 = vmatpush.bf16.msra.mxu1 %v8932_v42  ;;  %v7486_v5 = vmax.f32 %v7326_v0, %v13884_v4  ;;  %v7337_v27 = vmax.f32 %v13989_v22, %v14016_v59 }
 0x3cf   : > { %7184 = vst.msk [vmem:[#allocation3 + $0x88] sm:$0xf] %vm313_vm2, %v7118_v46  ;;  %v7647_v33 = vmax.f32 %v7487_v56, %v13963_v58  ;;  %v7818_v40 = vmax.f32 %v7658_v21, %v14158_v61  ;;  %10135 = vmatpush.bf16.msra.mxu2 %v8932_v42  ;;  %v7340_v35 = vmax.f32 %v13967_v41, %v14039_v54 }
 0x3d0   : > { %7934 = vrot.lane.b32.xlu1 %v7848_v57, %s10262_s9  ;;  %v7121_v1 = vsel %vm11012_vm10, %v7119_v24, %v7120_v2  ;;  %5637 = vst.msk [vmem:[#allocation4 + $0x4c] sm:$0xf] %vm5617_vm12, %v5560_v55  ;;  %v3175_v7 = vpop.permute.xlu1 %3174  ;;  %v8915_v30 = vld [vmem:[#allocation4] sm:$0xff]  ;;  %v7847_v57 = vpack.c.bf16 %v7815_v50, %v7815_v50  ;;  %v7646_v31 = vmax.f32 %v7486_v5, %v13956_v11 }
 0x3d1   : > { %7185 = vst.msk [vmem:[#allocation3 + $0x8c] sm:$0xf] %vm313_vm2, %v7121_v1  ;;  %v14168_v58 = vmax.f32 %v7647_v33, %v13980_v38  ;;  %v7345_v38 = vmax.f32 %v14164_v6, %v14153_v52  ;;  %v7850_v4 = vpack.c.bf16 %v7818_v40, %v7818_v40  ;;  %v7497_v23 = vmax.f32 %v7337_v27, %v14083_v44  ;;  %v14860_v33 = vld [vmem:[#allocation8_spill] sm:$0xff] }
 0x3d2   : > { %5551 = vrot.lane.b32.xlu0 %v14857_v9, %s10261_s8  ;;  %3260 = vst.msk [vmem:[#allocation4 + $0x2c] sm:$0xf] %vm3248_vm11, %v3175_v7  ;;  %8218 = vmatpush.bf16.msra.mxu1 %v8931_v10  ;;  %v7806_v24 = vmax.f32 %v7646_v31, %v13946_v39  ;;  %v7500_v11 = vmax.f32 %v7340_v35, %v14094_v3  ;;  %v10071_v5 = vld [vmem:[#allocation3 + $0x40] sm:$0xff]  }
 0x3d3   : > { %10136 = vmatpush.bf16.msra.mxu2 %v8931_v10  ;;  %v7657_v41 = vmax.f32 %v7497_v23, %v14145_v43  ;;  %v7339_v9 = vmax.f32 %v14016_v59, %v14083_v44  ;;  %v14859_v59 = vld [vmem:[#allocation40_spill] sm:$0xff]  ;;  %v7839_v27 = vpack.c.bf16 %v14168_v58, %v14168_v58 }
 0x3d4   : > { %7912 = vrot.lane.b32.xlu2 %v7837_v62, %s10262_s9  ;;  %v7901_v26 = vpop.permute.xlu2 %7900  ;;  %v7838_v32 = vpack.c.bf16 %v7806_v24, %v7806_v24  ;;  %v7660_v8 = vmax.f32 %v7500_v11, %v14158_v61  ;;  %v7342_v62 = vmax.f32 %v14039_v54, %v14094_v3  ;;  %v7344_v54 = vmax.f32 %v14094_v3, %v14158_v61 }
 0x3d5   : > { %7992 = vst.msk [vmem:[#allocation4 + $0x14] sm:$0xf] %vm7986_vm13, %v7901_v26  ;;  %8219 = vmatmul.bf16.vlgmr.msra.gmra.mxu1 %v8915_v30  ;;  %v7817_v55 = vmax.f32 %v7657_v41, %v14164_v6  ;;  %v7499_v13 = vmax.f32 %v7339_v9, %v14145_v43 }
 0x3d6   : > { %v3173_v36 = vpop.permute.xlu0 %3172  ;;  %v7502_v48 = vmax.f32 %v7342_v62, %v14158_v61 }
 0x3d7   : > { %3259 = vst.msk [vmem:[#allocation4 + $0x28] sm:$0xf] %vm3248_vm11, %v3173_v36  ;;  %v7659_v14 = vmax.f32 %v7499_v13, %v14164_v6  ;;  %v7341_v36 = vmax.f32 %v14083_v44, %v14145_v43 }
 0x3d8   : > { %3178 = vrot.lane.b32.xlu1 %v14858_v63, %s10260_s20  ;;  %v10122_v45 = vld [vmem:[#allocation3 + $0x88] sm:$0xff]   ;;  %v7895_v47 = vpop.permute.xlu1 %7894 }
 0x3d9   : > { %v14176_v16 = vunpack.c.h.bf16 %v10122_v45  ;;  %7989 = vst.msk [vmem:[#allocation4 + $0x8] sm:$0xf] %vm7986_vm13, %v7895_v47  ;;  %v9890_v39 = vunpack.c.l.bf16 %v10122_v45  ;;  %v7819_v0 = vmax.f32 %v7659_v14, %v14153_v52  ;;  %v7501_v40 = vmax.f32 %v7341_v36, %v14164_v6 }
 0x3db   : > { %v7505_v22 = vmax.f32 %v7345_v38, %v14176_v16  ;;  %v7820_v25 = vmax.f32 %v7660_v8, %v9890_v39  ;;  %v7662_v21 = vmax.f32 %v7502_v48, %v9890_v39  ;;  %v7504_v7 = vmax.f32 %v7344_v54, %v9890_v39  ;;  %v10086_v38 = vld [vmem:[#allocation3 + $0x48] sm:$0xff]   ;;  %v14861_v8 = vld [vmem:[#allocation43_spill] sm:$0xff] }
 0x3dc   : > { %7932 = vrot.lane.b32.xlu2 %v7847_v57, %s10262_s9  ;;  %v7851_v26 = vpack.c.bf16 %v7819_v0, %v7819_v0  ;;  %v9674_v57 = vunpack.c.l.bf16 %v10071_v5  ;;  %v7661_v44 = vmax.f32 %v7501_v40, %v14153_v52  ;;  %v9738_v35 = vunpack.c.l.bf16 %v10086_v38 }
 0x3dd   : > { %v7665_v46 = vmax.f32 %v7505_v22, %v13921_v34  ;;  %v7852_v42 = vpack.c.bf16 %v7820_v25, %v7820_v25  ;;  %v7822_v10 = vmax.f32 %v7662_v21, %v13911_v17  ;;  %v7664_v61 = vmax.f32 %v7504_v7, %v13911_v17 }
 0x3de   : > { %v5564_v37 = vpop.permute.xlu0 %5563  ;;  %v7328_v31 = vmax.f32 %v9670_v18, %v9674_v57  ;;  %v7821_v15 = vmax.f32 %v7661_v44, %v14176_v16  ;;  %v14290_v44 = vld [vmem:[%s14455_s5] ss:$0 sm:$0xff] }
 0x3df   : > { %5639 = vst.msk [vmem:[#allocation4 + $0x54] sm:$0xf] %vm5617_vm12, %v5564_v37  ;;  %v14195_v2 = vmax.f32 %v7665_v46, %v9579_v53  ;;  %v7854_v3 = vpack.c.bf16 %v7822_v10, %v7822_v10  ;;  %v7824_v45 = vmax.f32 %v7664_v61, %v9578_v12  ;;  %v10101_v12 = vld [vmem:[#allocation3 + $0x50] sm:$0xff]   ;;  %v10116_v37 = vld [vmem:[#allocation3 + $0x58] sm:$0xff]   ;;  %v7343_v46 = vmax.f32 %v14145_v43, %v14164_v6 }
 0x3e0   : > { %7938 = vrot.lane.b32.xlu1 %v7850_v4, %s10262_s9  ;;  %v7899_v20 = vpop.permute.xlu1 %7898  ;;  %v8916_v53 = vld [vmem:[#allocation4 + $0x8] sm:$0xff]  ;;  %v7488_v58 = vmax.f32 %v7328_v31, %v9738_v35  ;;  %v9802_v22 = vunpack.c.l.bf16 %v10101_v12  ;;  %v7853_v47 = vpack.c.bf16 %v7821_v15, %v7821_v15  ;;  %v9866_v11 = vunpack.c.l.bf16 %v10116_v37 }
 0x3e1   : > { %7991 = vst.msk [vmem:[#allocation4 + $0x10] sm:$0xf] %vm7986_vm13, %v7899_v20  ;;  %v7856_v17 = vpack.c.bf16 %v7824_v45, %v7824_v45  ;;  %v9803_v48 = vunpack.c.h.bf16 %v10101_v12 }
 0x3e2   : > { %v7648_v18 = vmax.f32 %v7488_v58, %v9802_v22 }
 0x3e4   : > { %5577 = vrot.lane.b32.xlu2 %v13933_v49, %s10261_s8  ;;  %v7849_v49 = vpack.c.bf16 %v7817_v55, %v7817_v55 }
 0x3e5   : > { %8224 = vmatmul.bf16.gmra.mxu1 %v8916_v53 }
 0x3e6   : > { %v5568_v1 = vpop.permute.xlu0 %5567 }
 0x3e7   : > { %5641 = vst.msk [vmem:[#allocation4 + $0x5c] sm:$0xf] %vm5617_vm12, %v5568_v1 }
 0x3e8   : > { %v7905_v29 = vpop.permute.xlu2 %7904  ;;  %7914 = vrot.lane.b32.xlu1 %v7838_v32, %s10262_s9  ;;  %v8917_v30 = vld [vmem:[#allocation4 + $0x10] sm:$0xff]  ;;  %v7503_v32 = vmax.f32 %v7343_v46, %v14153_v52 }
 0x3e9   : > { %7994 = vst.msk [vmem:[#allocation4 + $0x1c] sm:$0xf] %vm7986_vm13, %v7905_v29  ;;  %v7808_v29 = vmax.f32 %v7648_v18, %v9866_v11 }
 0x3ea   : > { %v7663_v55 = vmax.f32 %v7503_v32, %v14176_v16 }
 0x3eb   : > { %v7840_v43 = vpack.c.bf16 %v7808_v29, %v7808_v29 }
 0x3ec   : > { %7936 = vrot.lane.b32.xlu2 %v7849_v49, %s10262_s9  ;;  %v7823_v20 = vmax.f32 %v7663_v55, %v13921_v34  ;;  %v9675_v49 = vunpack.c.h.bf16 %v10071_v5  ;;  %v7857_v34 = vpack.c.bf16 %v14195_v2, %v14195_v2  ;;  %v14862_v2 = vld [vmem:[#allocation38_spill] sm:$0xff] }
 0x3ee   : > { %v5572_v60 = vpop.permute.xlu0 %5571  ;;  %v7855_v52 = vpack.c.bf16 %v7823_v20, %v7823_v20  ;;  %v7329_v9 = vmax.f32 %v9671_v51, %v9675_v49 }
 0x3ef   : > { %5643 = vst.msk [vmem:[#allocation4 + $0x64] sm:$0xf] %vm5617_vm12, %v5572_v60 }
 0x3f0   : > { %7942 = vrot.lane.b32.xlu1 %v7852_v42, %s10262_s9  ;;  %v9739_v42 = vunpack.c.h.bf16 %v10086_v38  ;;  %v14296_v38 = vld [vmem:[%s14456_s6] ss:$0 sm:$0xff] }
 0x3f2   : > { %v7489_v60 = vmax.f32 %v7329_v9, %v9739_v42 }
 0x3f4   : > { %v7903_v56 = vpop.permute.xlu1 %7902  ;;  %5545 = vrot.lane.b32.xlu2 %v14859_v59, %s10261_s8  ;;  %v9867_v59 = vunpack.c.h.bf16 %v10116_v37 }
 0x3f5   : > { %7993 = vst.msk [vmem:[#allocation4 + $0x18] sm:$0xf] %vm7986_vm13, %v7903_v56  ;;  %8229 = vmatmul.bf16.gmra.mxu1 %v8917_v30  ;;  %v7649_v56 = vmax.f32 %v7489_v60, %v9803_v48 }
 0x3f6   : > { %v7909_v50 = vpop.permute.xlu2 %7908  ;;  %v5544_v63 = vpop.permute.xlu0 %5543 }
 0x3f7   : > { %7996 = vst.msk [vmem:[#allocation4 + $0x24] sm:$0xf] %vm7986_vm13, %v7909_v50  ;;  %v7809_v54 = vmax.f32 %v7649_v56, %v9867_v59 }
 0x3f8   : > { %3214 = vrot.lane.b32.xlu1 %v14860_v33, %s10260_s20  ;;  %5629 = vst.msk [vmem:[#allocation4 + $0x2c] sm:$0xf] %vm5617_vm12, %v5544_v63 }
 0x3f9   : > { %v7841_v50 = vpack.c.bf16 %v7809_v54, %v7809_v54 }
 0x3fc   : > { %7940 = vrot.lane.b32.xlu2 %v7851_v26, %s10262_s9  ;;  %v8918_v24 = vld [vmem:[#allocation4 + $0x18] sm:$0xff] }
 0x3fe   : > { %v3209_v4 = vpop.permute.xlu0 %3208 }
 0x3ff   : > { %3277 = vst.msk [vmem:[#allocation4 + $0x70] sm:$0xf] %vm3248_vm11, %v3209_v4 }
 0x400   : > { %7946 = vrot.lane.b32.xlu1 %v7854_v3, %s10262_s9 }
 0x404   : > { %7916 = vrot.lane.b32.xlu2 %v7839_v27, %s10262_s9 }
 0x405   : > { %8234 = vmatmul.bf16.gmra.mxu1 %v8918_v24 }
 0x408   : > { %v7907_v23 = vpop.permute.xlu1 %7906  ;;  %7950 = vrot.lane.b32.xlu1 %v7856_v17, %s10262_s9 }
 0x409   : > { %7995 = vst.msk [vmem:[#allocation4 + $0x20] sm:$0xf] %vm7986_vm13, %v7907_v23 }
 0x40c   : > { %7944 = vrot.lane.b32.xlu2 %v7853_v47, %s10262_s9 }
 0x40e   : > { %v7923_v41 = vpop.permute.xlu2 %7922 }
 0x40f   : > { %8003 = vst.msk [vmem:[#allocation4 + $0x40] sm:$0xf] %vm7986_vm13, %v7923_v41 }
 0x410   : > { %3182 = vrot.lane.b32.xlu1 %v14861_v8, %s10260_s20  ;;  %v8919_v53 = vld [vmem:[#allocation4 + $0x20] sm:$0xff]  ;;  %s10211_s20 = scalar_lea.hbm %s10210_s17, 256 }
 0x411   : > { %p10212_p11 = scmp.ne.s32.totalorder %s10210_s17, %s10211_s20  ;;  %p10217_p1 = scmp.lt.s32.totalorder %s10215_s18, %s10211_s20 }
 0x413   : > { %p10213_p12 = pnand %p10212_p11, %p10343_p5  ;;  %p10218_p2 = por %p10217_p1, %p10216_p0 }
 0x414   : > { %v5580_v39 = vpop.permute.xlu0 %5579  ;;  %5581 = vrot.lane.b32.xlu2 %v14024_v19, %s10261_s8 }
 0x415   : > { %8239 = vmatmul.bf16.gmra.mxu1 %v8919_v53  ;;  %p10214_p13 = pneg %p10213_p12 }
 0x416   : > { %v7925_v6 = vpop.permute.xlu2 %7924 }
 0x417   : > { %8004 = vst.msk [vmem:[#allocation4 + $0x44] sm:$0xf] %vm7986_vm13, %v7925_v6  ;;  %p10219_p3 = pnand %p10218_p2, %p10214_p13 }
 0x418   : > { %7918 = vrot.lane.b32.xlu1 %v7840_v43, %s10262_s9 }
 0x41c   : > { %v3177_v1 = vpop.permute.xlu0 %3176  ;;  %7948 = vrot.lane.b32.xlu2 %v7855_v52, %s10262_s9 }
 0x41d   : > { %3261 = vst.msk [vmem:[#allocation4 + $0x30] sm:$0xf] %vm3248_vm11, %v3177_v1 }
 0x41e   : > { %v5542_v16 = vpop.permute.xlu2 %5541  ;;  %v8923_v25 = vld [vmem:[#allocation4 + $0x40] sm:$0xff] }
 0x41f   : > { %5628 = vst.msk [vmem:[#allocation4 + $0x28] sm:$0xf] %vm5617_vm12, %v5542_v16  ;;  %8259 = vmatmul.bf16.vlgmr.msra.gmra.mxu2 %v8923_v25 }
 0x422   : > { %v7927_v19 = vpop.permute.xlu1 %7926 }
 0x423   : > { %8005 = vst.msk [vmem:[#allocation4 + $0x48] sm:$0xf] %vm7986_vm13, %v7927_v19 }
 0x424   : > { %v5548_v62 = vpop.permute.xlu0 %5547  ;;  %7952 = vrot.lane.b32.xlu2 %v7857_v34, %s10262_s9 }
 0x426   : > { %v7929_v13 = vpop.permute.xlu2 %7928 }
 0x427   : > { %8006 = vst.msk [vmem:[#allocation4 + $0x4c] sm:$0xf] %vm7986_vm13, %v7929_v13 }
 0x42a   : > { %v7911_v14 = vpop.permute.xlu1 %7910 }
 0x42b   : > { %7997 = vst.msk [vmem:[#allocation4 + $0x28] sm:$0xf] %vm7986_vm13, %v7911_v14 }
 0x42c   : > { %v3213_v21 = vpop.permute.xlu0 %3212  ;;  %5549 = vrot.lane.b32.xlu2 %v14862_v2, %s10261_s8 }
 0x42d   : > { %3279 = vst.msk [vmem:[#allocation4 + $0x78] sm:$0xf] %vm3248_vm11, %v3213_v21 }
 0x42e   : > { %v7913_v28 = vpop.permute.xlu2 %7912  ;;  %v8924_v51 = vld [vmem:[#allocation4 + $0x48] sm:$0xff] }
 0x42f   : > { %7998 = vst.msk [vmem:[#allocation4 + $0x2c] sm:$0xf] %vm7986_vm13, %v7913_v28  ;;  %8264 = vmatmul.bf16.gmra.mxu2 %v8924_v51 }
 0x432   : > { %v7931_v0 = vpop.permute.xlu1 %7930 }
 0x433   : > { %8007 = vst.msk [vmem:[#allocation4 + $0x50] sm:$0xf] %vm7986_vm13, %v7931_v0 }
 0x434   : > { %v14273_v33 = vpop.permute.xlu0 %5583  ;;  %7920 = vrot.lane.b32.xlu2 %v7841_v50, %s10262_s9 }
 0x436   : > { %v7933_v63 = vpop.permute.xlu2 %7932  ;;  %v8920_v10 = vld [vmem:[#allocation4 + $0x28] sm:$0xff] }
 0x437   : > { %8008 = vst.msk [vmem:[#allocation4 + $0x54] sm:$0xf] %vm7986_vm13, %v7933_v63  ;;  %8244 = vmatmul.bf16.gmra.mxu1 %v8920_v10 }
 0x43a   : > { %v3211_v7 = vpop.permute.xlu1 %3210 }
 0x43b   : > { %3278 = vst.msk [vmem:[#allocation4 + $0x74] sm:$0xf] %vm3248_vm11, %v3211_v7 }
 0x43c   : > { %5647 = vst.msk [vmem:[#allocation4 + $0x74] sm:$0xf] %vm5617_vm12, %v5580_v39  ;;  %v3181_v26 = vpop.permute.xlu0 %3180 }
 0x43d   : > { %3263 = vst.msk [vmem:[#allocation4 + $0x38] sm:$0xf] %vm3248_vm11, %v3181_v26 }
 0x43e   : > { %v5578_v36 = vpop.permute.xlu2 %5577  ;;  %v8925_v30 = vld [vmem:[#allocation4 + $0x50] sm:$0xff] }
 0x43f   : > { %5646 = vst.msk [vmem:[#allocation4 + $0x70] sm:$0xf] %vm5617_vm12, %v5578_v36  ;;  %8269 = vmatmul.bf16.gmra.mxu2 %v8925_v30 }
 0x442   : > { %v7935_v3 = vpop.permute.xlu1 %7934 }
 0x443   : > { %8009 = vst.msk [vmem:[#allocation4 + $0x58] sm:$0xf] %vm7986_vm13, %v7935_v3 }
 0x444   : > { %v5552_v36 = vpop.permute.xlu0 %5551 }
 0x446   : > { %v7937_v61 = vpop.permute.xlu2 %7936 }
 0x447   : > { %8010 = vst.msk [vmem:[#allocation4 + $0x5c] sm:$0xf] %vm7986_vm13, %v7937_v61 }
 0x44a   : > { %v3179_v40 = vpop.permute.xlu1 %3178 }
 0x44b   : > { %3262 = vst.msk [vmem:[#allocation4 + $0x34] sm:$0xf] %vm3248_vm11, %v3179_v40 }
 0x44c   : > { %5631 = vst.msk [vmem:[#allocation4 + $0x34] sm:$0xf] %vm5617_vm12, %v5548_v62 }
 0x44e   : > { %v5546_v5 = vpop.permute.xlu2 %5545  ;;  %v8926_v45 = vld [vmem:[#allocation4 + $0x58] sm:$0xff] }
 0x44f   : > { %5630 = vst.msk [vmem:[#allocation4 + $0x30] sm:$0xf] %vm5617_vm12, %v5546_v5  ;;  %8274 = vmatmul.bf16.gmra.mxu2 %v8926_v45 }
 0x452   : > { %v7939_v57 = vpop.permute.xlu1 %7938  ;;  %v8220_v17 = vpop.f32.mrf.mxu1 }
 0x453   : > { %8011 = vst.msk [vmem:[#allocation4 + $0x60] sm:$0xf] %vm7986_vm13, %v7939_v57  ;;  %v8304_v31 = vmul.f32 %v14290_v44, %v8220_v17 }
 0x455   : > { %v8340_v35 = vadd.f32 %v14296_v38, %v8304_v31 }
 0x456   : > { %v7941_v27 = vpop.permute.xlu2 %7940 }
 0x457   : > { %8012 = vst.msk [vmem:[#allocation4 + $0x64] sm:$0xf] %vm7986_vm13, %v7941_v27  ;;  %v8372_v23 = vadd.f32 3.0, %v8340_v35 }
 0x459   : > { %v8404_v58 = vmax.f32 %v8372_v23, 0.0 }
 0x45a   : > { %v7915_v4 = vpop.permute.xlu1 %7914  ;;  %v8222_v47 = vpop.f32.mrf.mxu1 }
 0x45b   : > { %7999 = vst.msk [vmem:[#allocation4 + $0x30] sm:$0xf] %vm7986_vm13, %v7915_v4  ;;  %v8436_v37 = vmin.f32 %v8404_v58, 6.0  ;;  %v8305_v46 = vmul.f32 %v14290_v44, %v8222_v47 }
 0x45d   : > { %v8468_v24 = vmul.f32 %v8436_v37, %v8340_v35  ;;  %v8341_v18 = vadd.f32 %v14296_v38, %v8305_v46 }
 0x45e   : > { %v7917_v15 = vpop.permute.xlu2 %7916  ;;  %v8927_v12 = vld [vmem:[#allocation4 + $0x60] sm:$0xff] }
 0x45f   : > { %8000 = vst.msk [vmem:[#allocation4 + $0x34] sm:$0xf] %vm7986_vm13, %v7917_v15  ;;  %8279 = vmatmul.bf16.gmra.mxu2 %v8927_v12  ;;  %v8500_v32 = vmul.f32 0.16666667, %v8468_v24  ;;  %v8373_v8 = vadd.f32 3.0, %v8341_v18 }
 0x461   : > { %8532 = vst [vmem:[%s14309_s22] sm:$0xff] %v8500_v32  ;;  %v8405_v29 = vmax.f32 %v8373_v8, 0.0 }
 0x462   : > { %v7943_v22 = vpop.permute.xlu1 %7942  ;;  %v8225_v39 = vpop.f32.mrf.mxu1 }
 0x463   : > { %8013 = vst.msk [vmem:[#allocation4 + $0x68] sm:$0xf] %vm7986_vm13, %v7943_v22  ;;  %v8437_v43 = vmin.f32 %v8405_v29, 6.0  ;;  %v8306_v6 = vmul.f32 %v14290_v44, %v8225_v39 }
 0x465   : > { %v8469_v20 = vmul.f32 %v8437_v43, %v8341_v18  ;;  %v8342_v52 = vadd.f32 %v14296_v38, %v8306_v6 }
 0x466   : > { %v7945_v11 = vpop.permute.xlu2 %7944  ;;  %v8921_v41 = vld [vmem:[#allocation4 + $0x30] sm:$0xff] }
 0x467   : > { %8014 = vst.msk [vmem:[#allocation4 + $0x6c] sm:$0xf] %vm7986_vm13, %v7945_v11  ;;  %8249 = vmatmul.bf16.gmra.mxu1 %v8921_v41  ;;  %v8501_v16 = vmul.f32 0.16666667, %v8469_v20  ;;  %v8374_v25 = vadd.f32 3.0, %v8342_v52 }
 0x469   : > { %8533 = vst [vmem:[%s14309_s22 + $0x8] sm:$0xff] %v8501_v16  ;;  %v8406_v49 = vmax.f32 %v8374_v25, 0.0 }
 0x46a   : > { %v3215_v55 = vpop.permute.xlu1 %3214  ;;  %v8227_v34 = vpop.f32.mrf.mxu1 }
 0x46b   : > { %3280 = vst.msk [vmem:[#allocation4 + $0x7c] sm:$0xf] %vm3248_vm11, %v3215_v55  ;;  %v8438_v9 = vmin.f32 %v8406_v49, 6.0  ;;  %v8307_v42 = vmul.f32 %v14290_v44, %v8227_v34 }
 0x46c   : > { %5649 = vst.msk [vmem:[#allocation4 + $0x7c] sm:$0xf] %vm5617_vm12, %v14273_v33 }
 0x46d   : > { %v8470_v62 = vmul.f32 %v8438_v9, %v8342_v52  ;;  %v8343_v13 = vadd.f32 %v14296_v38, %v8307_v42 }
 0x46e   : > { %v5582_v1 = vpop.permute.xlu2 %5581  ;;  %v8928_v53 = vld [vmem:[#allocation4 + $0x68] sm:$0xff] }
 0x46f   : > { %5648 = vst.msk [vmem:[#allocation4 + $0x78] sm:$0xf] %vm5617_vm12, %v5582_v1  ;;  %8284 = vmatmul.bf16.gmra.mxu2 %v8928_v53  ;;  %v8502_v48 = vmul.f32 0.16666667, %v8470_v62  ;;  %v8375_v14 = vadd.f32 3.0, %v8343_v13 }
 0x471   : > { %8534 = vst [vmem:[%s14309_s22 + $0x10] sm:$0xff] %v8502_v48  ;;  %v8407_v56 = vmax.f32 %v8375_v14, 0.0 }
 0x472   : > { %v7947_v19 = vpop.permute.xlu1 %7946  ;;  %v8230_v21 = vpop.f32.mrf.mxu1 }
 0x473   : > { %8015 = vst.msk [vmem:[#allocation4 + $0x70] sm:$0xf] %vm7986_vm13, %v7947_v19  ;;  %v8439_v2 = vmin.f32 %v8407_v56, 6.0  ;;  %v8308_v28 = vmul.f32 %v14290_v44, %v8230_v21 }
 0x475   : > { %v8471_v51 = vmul.f32 %v8439_v2, %v8343_v13  ;;  %v8344_v54 = vadd.f32 %v14296_v38, %v8308_v28 }
 0x476   : > { %v7949_v60 = vpop.permute.xlu2 %7948 }
 0x477   : > { %8016 = vst.msk [vmem:[#allocation4 + $0x74] sm:$0xf] %vm7986_vm13, %v7949_v60  ;;  %v8503_v33 = vmul.f32 0.16666667, %v8471_v51  ;;  %v8376_v63 = vadd.f32 3.0, %v8344_v54 }
 0x479   : > { %8535 = vst [vmem:[%s14309_s22 + $0x18] sm:$0xff] %v8503_v33  ;;  %v8408_v10 = vmax.f32 %v8376_v63, 0.0 }
 0x47a   : > { %v7951_v59 = vpop.permute.xlu1 %7950  ;;  %v8232_v26 = vpop.f32.mrf.mxu1 }
 0x47b   : > { %8017 = vst.msk [vmem:[#allocation4 + $0x78] sm:$0xf] %vm7986_vm13, %v7951_v59  ;;  %v8440_v30 = vmin.f32 %v8408_v10, 6.0  ;;  %v8309_v3 = vmul.f32 %v14290_v44, %v8232_v26 }
 0x47d   : > { %v8472_v61 = vmul.f32 %v8440_v30, %v8344_v54  ;;  %v8345_v40 = vadd.f32 %v14296_v38, %v8309_v3 }
 0x47e   : > { %v7953_v0 = vpop.permute.xlu2 %7952  ;;  %v8929_v50 = vld [vmem:[#allocation4 + $0x70] sm:$0xff] }
 0x47f   : > { %8018 = vst.msk [vmem:[#allocation4 + $0x7c] sm:$0xf] %vm7986_vm13, %v7953_v0  ;;  %8289 = vmatmul.bf16.gmra.mxu2 %v8929_v50  ;;  %v8504_v45 = vmul.f32 0.16666667, %v8472_v61  ;;  %v8377_v57 = vadd.f32 3.0, %v8345_v40 }
 0x481   : > { %8536 = vst [vmem:[%s14309_s22 + $0x20] sm:$0xff] %v8504_v45  ;;  %v8409_v27 = vmax.f32 %v8377_v57, 0.0 }
 0x482   : > { %v3183_v7 = vpop.permute.xlu1 %3182  ;;  %v8235_v17 = vpop.f32.mrf.mxu1 }
 0x483   : > { %3264 = vst.msk [vmem:[#allocation4 + $0x3c] sm:$0xf] %vm3248_vm11, %v3183_v7  ;;  %v8441_v31 = vmin.f32 %v8409_v27, 6.0  ;;  %v8310_v35 = vmul.f32 %v14290_v44, %v8235_v17 }
 0x484   : > { %5633 = vst.msk [vmem:[#allocation4 + $0x3c] sm:$0xf] %vm5617_vm12, %v5552_v36 }
 0x485   : > { %v8473_v15 = vmul.f32 %v8441_v31, %v8345_v40  ;;  %v8346_v12 = vadd.f32 %v14296_v38, %v8310_v35 }
 0x486   : > { %v5550_v5 = vpop.permute.xlu2 %5549  ;;  %v8930_v58 = vld [vmem:[#allocation4 + $0x78] sm:$0xff] }
 0x487   : > { %5632 = vst.msk [vmem:[#allocation4 + $0x38] sm:$0xf] %vm5617_vm12, %v5550_v5  ;;  %v8505_v22 = vmul.f32 0.16666667, %v8473_v15  ;;  %v8378_v47 = vadd.f32 3.0, %v8346_v12 }
 0x489   : > { %8537 = vst [vmem:[%s14309_s22 + $0x28] sm:$0xff] %v8505_v22  ;;  %v8410_v37 = vmax.f32 %v8378_v47, 0.0 }
 0x48a   : > { %v7919_v4 = vpop.permute.xlu1 %7918  ;;  %v8237_v24 = vpop.f32.mrf.mxu1 }
 0x48b   : > { %8001 = vst.msk [vmem:[#allocation4 + $0x38] sm:$0xf] %vm7986_vm13, %v7919_v4  ;;  %v8442_v46 = vmin.f32 %v8410_v37, 6.0  ;;  %v8311_v18 = vmul.f32 %v14290_v44, %v8237_v24 }
 0x48d   : > { %v8474_v11 = vmul.f32 %v8442_v46, %v8346_v12  ;;  %v8347_v41 = vadd.f32 %v14296_v38, %v8311_v18 }
 0x48e   : > { %v7921_v23 = vpop.permute.xlu2 %7920 }
 0x48f   : > { %8002 = vst.msk [vmem:[#allocation4 + $0x3c] sm:$0xf] %vm7986_vm13, %v7921_v23  ;;  %8294 = vmatmul.bf16.gmra.mxu2 %v8930_v58  ;;  %v8506_v8 = vmul.f32 0.16666667, %v8474_v11  ;;  %v8379_v29 = vadd.f32 3.0, %v8347_v41 }
 0x491   : > { %8538 = vst [vmem:[%s14309_s22 + $0x30] sm:$0xff] %v8506_v8  ;;  %v8411_v55 = vmax.f32 %v8379_v29, 0.0 }
 0x492   : > { %v8240_v39 = vpop.f32.mrf.mxu1 }
 0x493   : > { %v8443_v43 = vmin.f32 %v8411_v55, 6.0  ;;  %v8312_v6 = vmul.f32 %v14290_v44, %v8240_v39 }
 0x495   : > { %v8475_v20 = vmul.f32 %v8443_v43, %v8347_v41  ;;  %v8348_v52 = vadd.f32 %v14296_v38, %v8312_v6 }
 0x496   : > { %v8922_v32 = vld [vmem:[#allocation4 + $0x38] sm:$0xff] }
 0x497   : > { %8254 = vmatmul.bf16.gmra.mxu1 %v8922_v32  ;;  %v8507_v1 = vmul.f32 0.16666667, %v8475_v20  ;;  %v8380_v53 = vadd.f32 3.0, %v8348_v52 }
 0x499   : > { %8539 = vst [vmem:[%s14309_s22 + $0x38] sm:$0xff] %v8507_v1  ;;  %v8412_v16 = vmax.f32 %v8380_v53, 0.0 }
 0x49a   : > { %v8242_v25 = vpop.f32.mrf.mxu1 }
 0x49b   : > { %v8444_v19 = vmin.f32 %v8412_v16, 6.0  ;;  %v8313_v34 = vmul.f32 %v14290_v44, %v8242_v25 }
 0x49d   : > { %v8476_v42 = vmul.f32 %v8444_v19, %v8348_v52  ;;  %v8349_v62 = vadd.f32 %v14296_v38, %v8313_v34 }
 0x49f   : > { %v8508_v60 = vmul.f32 0.16666667, %v8476_v42  ;;  %v8381_v48 = vadd.f32 3.0, %v8349_v62 }
 0x4a1   : > { %8540 = vst [vmem:[%s14309_s22 + $0x40] sm:$0xff] %v8508_v60  ;;  %v8413_v56 = vmax.f32 %v8381_v48, 0.0 }
 0x4a2   : > { %v8260_v49 = vpop.f32.mrf.mxu2 }
 0x4a3   : > { %v8320_v9 = vmul.f32 %v14290_v44, %v8260_v49  ;;  %v8445_v2 = vmin.f32 %v8413_v56, 6.0 }
 0x4a5   : > { %v8356_v13 = vadd.f32 %v14296_v38, %v8320_v9  ;;  %v8477_v54 = vmul.f32 %v8445_v2, %v8349_v62 }
 0x4a7   : > { %v8388_v14 = vadd.f32 3.0, %v8356_v13  ;;  %v8509_v33 = vmul.f32 0.16666667, %v8477_v54 }
 0x4a9   : > { %v8420_v59 = vmax.f32 %v8388_v14, 0.0  ;;  %8541 = vst [vmem:[%s14309_s22 + $0x48] sm:$0xff] %v8509_v33 }
 0x4aa   : > { %v8262_v21 = vpop.f32.mrf.mxu2 }
 0x4ab   : > { %v8452_v28 = vmin.f32 %v8420_v59, 6.0  ;;  %v8321_v51 = vmul.f32 %v14290_v44, %v8262_v21 }
 0x4ad   : > { %v8484_v0 = vmul.f32 %v8452_v28, %v8356_v13  ;;  %v8357_v50 = vadd.f32 %v14296_v38, %v8321_v51 }
 0x4af   : > { %v8516_v63 = vmul.f32 0.16666667, %v8484_v0  ;;  %v8389_v10 = vadd.f32 3.0, %v8357_v50 }
 0x4b1   : > { %8548 = vst [vmem:[%s14309_s22 + $0x80] sm:$0xff] %v8516_v63  ;;  %v8421_v7 = vmax.f32 %v8389_v10, 0.0 }
 0x4b2   : > { %v8265_v26 = vpop.f32.mrf.mxu2 }
 0x4b3   : > { %v8453_v36 = vmin.f32 %v8421_v7, 6.0  ;;  %v8322_v30 = vmul.f32 %v14290_v44, %v8265_v26 }
 0x4b4   : > { %v8245_v3 = vpop.f32.mrf.mxu1 }
 0x4b5   : > { %v8485_v61 = vmul.f32 %v8453_v36, %v8357_v50  ;;  %v8358_v40 = vadd.f32 %v14296_v38, %v8322_v30  ;;  %v8314_v5 = vmul.f32 %v14290_v44, %v8245_v3 }
 0x4b7   : > { %v8517_v45 = vmul.f32 0.16666667, %v8485_v61  ;;  %v8390_v57 = vadd.f32 3.0, %v8358_v40  ;;  %v8350_v27 = vadd.f32 %v14296_v38, %v8314_v5 }
 0x4b9   : > { %8549 = vst [vmem:[%s14309_s22 + $0x88] sm:$0xff] %v8517_v45  ;;  %v8422_v4 = vmax.f32 %v8390_v57, 0.0  ;;  %v8382_v17 = vadd.f32 3.0, %v8350_v27 }
 0x4ba   : > { %v8267_v31 = vpop.f32.mrf.mxu2 }
 0x4bb   : > { %v8454_v35 = vmin.f32 %v8422_v4, 6.0  ;;  %v8323_v15 = vmul.f32 %v14290_v44, %v8267_v31  ;;  %v8414_v12 = vmax.f32 %v8382_v17, 0.0 }
 0x4bc   : > { %v8247_v23 = vpop.f32.mrf.mxu1 }
 0x4bd   : > { %v8486_v58 = vmul.f32 %v8454_v35, %v8358_v40  ;;  %v8359_v22 = vadd.f32 %v14296_v38, %v8323_v15  ;;  %v8446_v47 = vmin.f32 %v8414_v12, 6.0  ;;  %v8315_v37 = vmul.f32 %v14290_v44, %v8247_v23 }
 0x4bf   : > { %v8518_v46 = vmul.f32 0.16666667, %v8486_v58  ;;  %v8391_v24 = vadd.f32 3.0, %v8359_v22  ;;  %v8478_v18 = vmul.f32 %v8446_v47, %v8350_v27  ;;  %v8351_v11 = vadd.f32 %v14296_v38, %v8315_v37 }
 0x4c1   : > { %8550 = vst [vmem:[%s14309_s22 + $0x90] sm:$0xff] %v8518_v46  ;;  %v8423_v41 = vmax.f32 %v8391_v24, 0.0  ;;  %v8510_v32 = vmul.f32 0.16666667, %v8478_v18  ;;  %v8383_v8 = vadd.f32 3.0, %v8351_v11 }
 0x4c2   : > { %v8270_v29 = vpop.f32.mrf.mxu2 }
 0x4c3   : > { %v8455_v55 = vmin.f32 %v8423_v41, 6.0  ;;  %8542 = vst [vmem:[%s14309_s22 + $0x50] sm:$0xff] %v8510_v32  ;;  %v8324_v39 = vmul.f32 %v14290_v44, %v8270_v29  ;;  %v8415_v43 = vmax.f32 %v8383_v8, 0.0 }
 0x4c5   : > { %v8487_v6 = vmul.f32 %v8455_v55, %v8359_v22  ;;  %v8360_v20 = vadd.f32 %v14296_v38, %v8324_v39  ;;  %v8447_v52 = vmin.f32 %v8415_v43, 6.0 }
 0x4c7   : > { %v8519_v1 = vmul.f32 0.16666667, %v8487_v6  ;;  %v8392_v53 = vadd.f32 3.0, %v8360_v20  ;;  %v8479_v16 = vmul.f32 %v8447_v52, %v8351_v11 }
 0x4c9   : > { %8551 = vst [vmem:[%s14309_s22 + $0x98] sm:$0xff] %v8519_v1  ;;  %v8424_v25 = vmax.f32 %v8392_v53, 0.0  ;;  %v8511_v49 = vmul.f32 0.16666667, %v8479_v16 }
 0x4ca   : > { %v8272_v19 = vpop.f32.mrf.mxu2 }
 0x4cb   : > { %v8456_v34 = vmin.f32 %v8424_v25, 6.0  ;;  %8543 = vst [vmem:[%s14309_s22 + $0x58] sm:$0xff] %v8511_v49  ;;  %v8325_v9 = vmul.f32 %v14290_v44, %v8272_v19 }
 0x4cd   : > { %v8488_v42 = vmul.f32 %v8456_v34, %v8360_v20  ;;  %v8361_v62 = vadd.f32 %v14296_v38, %v8325_v9 }
 0x4cf   : > { %v8520_v13 = vmul.f32 0.16666667, %v8488_v42  ;;  %v8393_v60 = vadd.f32 3.0, %v8361_v62 }
 0x4d1   : > { %8552 = vst [vmem:[%s14309_s22 + $0xa0] sm:$0xff] %v8520_v13  ;;  %v8425_v48 = vmax.f32 %v8393_v60, 0.0 }
 0x4d2   : > { %v8275_v14 = vpop.f32.mrf.mxu2 }
 0x4d3   : > { %v8457_v56 = vmin.f32 %v8425_v48, 6.0  ;;  %v8326_v59 = vmul.f32 %v14290_v44, %v8275_v14 }
 0x4d5   : > { %v8489_v21 = vmul.f32 %v8457_v56, %v8361_v62  ;;  %v8362_v2 = vadd.f32 %v14296_v38, %v8326_v59 }
 0x4d7   : > { %v8521_v28 = vmul.f32 0.16666667, %v8489_v21  ;;  %v8394_v51 = vadd.f32 3.0, %v8362_v2 }
 0x4d9   : > { %8553 = vst [vmem:[%s14309_s22 + $0xa8] sm:$0xff] %v8521_v28  ;;  %v8426_v54 = vmax.f32 %v8394_v51, 0.0 }
 0x4da   : > { %v8277_v0 = vpop.f32.mrf.mxu2 }
 0x4db   : > { %v8458_v50 = vmin.f32 %v8426_v54, 6.0  ;;  %v8327_v33 = vmul.f32 %v14290_v44, %v8277_v0 }
 0x4dd   : > { %v8490_v63 = vmul.f32 %v8458_v50, %v8362_v2  ;;  %v8363_v10 = vadd.f32 %v14296_v38, %v8327_v33 }
 0x4df   : > { %v8522_v7 = vmul.f32 0.16666667, %v8490_v63  ;;  %v8395_v26 = vadd.f32 3.0, %v8363_v10 }
 0x4e1   : > { %8554 = vst [vmem:[%s14309_s22 + $0xb0] sm:$0xff] %v8522_v7  ;;  %v8427_v36 = vmax.f32 %v8395_v26, 0.0 }
 0x4e2   : > { %v8280_v30 = vpop.f32.mrf.mxu2 }
 0x4e3   : > { %v8459_v3 = vmin.f32 %v8427_v36, 6.0  ;;  %v8328_v61 = vmul.f32 %v14290_v44, %v8280_v30 }
 0x4e4   : > { %v8250_v40 = vpop.f32.mrf.mxu1 }
 0x4e5   : > { %v8491_v5 = vmul.f32 %v8459_v3, %v8363_v10  ;;  %v8364_v45 = vadd.f32 %v14296_v38, %v8328_v61  ;;  %v8316_v57 = vmul.f32 %v14290_v44, %v8250_v40 }
 0x4e7   : > { %v8523_v27 = vmul.f32 0.16666667, %v8491_v5  ;;  %v8396_v4 = vadd.f32 3.0, %v8364_v45  ;;  %v8352_v17 = vadd.f32 %v14296_v38, %v8316_v57 }
 0x4e9   : > { %8555 = vst [vmem:[%s14309_s22 + $0xb8] sm:$0xff] %v8523_v27  ;;  %v8428_v31 = vmax.f32 %v8396_v4, 0.0  ;;  %v8384_v35 = vadd.f32 3.0, %v8352_v17 }
 0x4ea   : > { %v8282_v15 = vpop.f32.mrf.mxu2 }
 0x4eb   : > { %v8460_v12 = vmin.f32 %v8428_v31, 6.0  ;;  %v8416_v23 = vmax.f32 %v8384_v35, 0.0  ;;  %v8329_v58 = vmul.f32 %v14290_v44, %v8282_v15 }
 0x4ec   : > { %v8252_v22 = vpop.f32.mrf.mxu1 }
 0x4ed   : > { %v8492_v47 = vmul.f32 %v8460_v12, %v8364_v45  ;;  %v8448_v37 = vmin.f32 %v8416_v23, 6.0  ;;  %v8365_v46 = vadd.f32 %v14296_v38, %v8329_v58  ;;  %v8317_v24 = vmul.f32 %v14290_v44, %v8252_v22 }
 0x4ef   : > { %v8524_v18 = vmul.f32 0.16666667, %v8492_v47  ;;  %v8480_v11 = vmul.f32 %v8448_v37, %v8352_v17  ;;  %v8397_v41 = vadd.f32 3.0, %v8365_v46  ;;  %v8353_v32 = vadd.f32 %v14296_v38, %v8317_v24 }
 0x4f1   : > { %8556 = vst [vmem:[%s14309_s22 + $0xc0] sm:$0xff] %v8524_v18  ;;  %v8512_v8 = vmul.f32 0.16666667, %v8480_v11  ;;  %v8429_v29 = vmax.f32 %v8397_v41, 0.0  ;;  %v8385_v55 = vadd.f32 3.0, %v8353_v32 }
 0x4f2   : > { %v8285_v39 = vpop.f32.mrf.mxu2 }
 0x4f3   : > { %8544 = vst [vmem:[%s14309_s22 + $0x60] sm:$0xff] %v8512_v8  ;;  %v8461_v43 = vmin.f32 %v8429_v29, 6.0  ;;  %v8417_v6 = vmax.f32 %v8385_v55, 0.0  ;;  %v8330_v20 = vmul.f32 %v14290_v44, %v8285_v39 }
 0x4f5   : > { %v8493_v52 = vmul.f32 %v8461_v43, %v8365_v46  ;;  %v8449_v1 = vmin.f32 %v8417_v6, 6.0  ;;  %v8366_v53 = vadd.f32 %v14296_v38, %v8330_v20 }
 0x4f7   : > { %v8525_v16 = vmul.f32 0.16666667, %v8493_v52  ;;  %v8481_v25 = vmul.f32 %v8449_v1, %v8353_v32  ;;  %v8398_v49 = vadd.f32 3.0, %v8366_v53 }
 0x4f9   : > { %8557 = vst [vmem:[%s14309_s22 + $0xc8] sm:$0xff] %v8525_v16  ;;  %v8513_v19 = vmul.f32 0.16666667, %v8481_v25  ;;  %v8430_v34 = vmax.f32 %v8398_v49, 0.0 }
 0x4fa   : > { %v8287_v9 = vpop.f32.mrf.mxu2 }
 0x4fb   : > { %8545 = vst [vmem:[%s14309_s22 + $0x68] sm:$0xff] %v8513_v19  ;;  %v8462_v42 = vmin.f32 %v8430_v34, 6.0  ;;  %v8331_v62 = vmul.f32 %v14290_v44, %v8287_v9 }
 0x4fd   : > { %v8494_v13 = vmul.f32 %v8462_v42, %v8366_v53  ;;  %v8367_v60 = vadd.f32 %v14296_v38, %v8331_v62 }
 0x4ff   : > { %v8526_v48 = vmul.f32 0.16666667, %v8494_v13  ;;  %v8399_v14 = vadd.f32 3.0, %v8367_v60 }
 0x501   : > { %8558 = vst [vmem:[%s14309_s22 + $0xd0] sm:$0xff] %v8526_v48  ;;  %v8431_v56 = vmax.f32 %v8399_v14, 0.0 }
 0x502   : > { %v8290_v59 = vpop.f32.mrf.mxu2 }
 0x503   : > { %v8463_v21 = vmin.f32 %v8431_v56, 6.0  ;;  %v8332_v2 = vmul.f32 %v14290_v44, %v8290_v59 }
 0x505   : > { %v8495_v28 = vmul.f32 %v8463_v21, %v8367_v60  ;;  %v8368_v51 = vadd.f32 %v14296_v38, %v8332_v2 }
 0x507   : > { %v8527_v54 = vmul.f32 0.16666667, %v8495_v28  ;;  %v8400_v0 = vadd.f32 3.0, %v8368_v51 }
 0x509   : > { %8559 = vst [vmem:[%s14309_s22 + $0xd8] sm:$0xff] %v8527_v54  ;;  %v8432_v50 = vmax.f32 %v8400_v0, 0.0 }
 0x50a   : > { %v8292_v33 = vpop.f32.mrf.mxu2 }
 0x50b   : > { %v8464_v63 = vmin.f32 %v8432_v50, 6.0  ;;  %v8333_v10 = vmul.f32 %v14290_v44, %v8292_v33 }
 0x50d   : > { %v8496_v7 = vmul.f32 %v8464_v63, %v8368_v51  ;;  %v8369_v26 = vadd.f32 %v14296_v38, %v8333_v10 }
 0x50f   : > { %v8528_v36 = vmul.f32 0.16666667, %v8496_v7  ;;  %v8401_v30 = vadd.f32 3.0, %v8369_v26 }
 0x511   : > { %8560 = vst [vmem:[%s14309_s22 + $0xe0] sm:$0xff] %v8528_v36  ;;  %v8433_v3 = vmax.f32 %v8401_v30, 0.0 }
 0x512   : > { %v8295_v61 = vpop.f32.mrf.mxu2 }
 0x513   : > { %v8465_v40 = vmin.f32 %v8433_v3, 6.0  ;;  %v8334_v5 = vmul.f32 %v14290_v44, %v8295_v61 }
 0x514   : > { %v8255_v45 = vpop.f32.mrf.mxu1 }
 0x515   : > { %v8497_v57 = vmul.f32 %v8465_v40, %v8369_v26  ;;  %v8370_v27 = vadd.f32 %v14296_v38, %v8334_v5  ;;  %v8318_v4 = vmul.f32 %v14290_v44, %v8255_v45 }
 0x517   : > { %v8529_v17 = vmul.f32 0.16666667, %v8497_v57  ;;  %v8402_v31 = vadd.f32 3.0, %v8370_v27  ;;  %v8354_v35 = vadd.f32 %v14296_v38, %v8318_v4 }
 0x519   : > { %8561 = vst [vmem:[%s14309_s22 + $0xe8] sm:$0xff] %v8529_v17  ;;  %v8434_v15 = vmax.f32 %v8402_v31, 0.0  ;;  %v8386_v12 = vadd.f32 3.0, %v8354_v35 }
 0x51a   : > { %v8297_v23 = vpop.f32.mrf.mxu2 }
 0x51b   : > { %v8466_v58 = vmin.f32 %v8434_v15, 6.0  ;;  %v8418_v22 = vmax.f32 %v8386_v12, 0.0  ;;  %v8335_v47 = vmul.f32 %v14290_v44, %v8297_v23 }
 0x51c   : > { %v8257_v37 = vpop.f32.mrf.mxu1 }
 0x51d   : > { %v8498_v46 = vmul.f32 %v8466_v58, %v8370_v27  ;;  %v8450_v24 = vmin.f32 %v8418_v22, 6.0  ;;  %v8371_v18 = vadd.f32 %v14296_v38, %v8335_v47  ;;  %v8319_v11 = vmul.f32 %v14290_v44, %v8257_v37 }
 0x51f   : > { %v8530_v41 = vmul.f32 0.16666667, %v8498_v46  ;;  %v8482_v32 = vmul.f32 %v8450_v24, %v8354_v35  ;;  %v8403_v8 = vadd.f32 3.0, %v8371_v18  ;;  %v8355_v29 = vadd.f32 %v14296_v38, %v8319_v11 }
 0x521   : > { %8562 = vst [vmem:[%s14309_s22 + $0xf0] sm:$0xff] %v8530_v41  ;;  %v8514_v55 = vmul.f32 0.16666667, %v8482_v32  ;;  %v8435_v39 = vmax.f32 %v8403_v8, 0.0  ;;  %v8387_v43 = vadd.f32 3.0, %v8355_v29 }
 0x523   : > { %8546 = vst [vmem:[%s14309_s22 + $0x70] sm:$0xff] %v8514_v55  ;;  %v8467_v44 = vmin.f32 %v8435_v39, 6.0  ;;  %v8419_v6 = vmax.f32 %v8387_v43, 0.0 }
 0x525   : > { %v8499_v20 = vmul.f32 %v8467_v44, %v8371_v18  ;;  %v8451_v52 = vmin.f32 %v8419_v6, 6.0 }
 0x527   : > { %v8531_v38 = vmul.f32 0.16666667, %v8499_v20  ;;  %v8483_v1 = vmul.f32 %v8451_v52, %v8355_v29 }
 0x529   : > { %8563 = vst [vmem:[%s14309_s22 + $0xf8] sm:$0xff] %v8531_v38  ;;  %v8515_v53 = vmul.f32 0.16666667, %v8483_v1 }
 0x52b   : > { %8547 = vst [vmem:[%s14309_s22 + $0x78] sm:$0xff] %v8515_v53 }
 0x52c   : > { %10222 = shalt.err (!%p10219_p3)
}
 0x52d   : > { %s10263_s19 = smov 128   ;;  %s10264_s22 = smov 8  }
 0x52e   : > { %10137 = dma.vmem_to_hbm [thread:$0]  (%p10343_p5), %s8578_s15, 4096, %s8580_s16, %s8565_s28, %s10263_s19, %s10263_s19, %s10264_s22  }
 0x52f PF: > { %p10143_p4 = scmp.ge.s32.totalorder %s10257_s27, 2  ;;  %s8594_s29 = sand.u32 1, %s10245_s24  }
 0x530   : > { %s8595_s13 = scalar_lea.sflag [#allocation6], %s8594_s29 }
 0x531   : > { %p10140_p7 = pnand %p10143_p4, %p10347_p6 }
 0x533   : > { %p10141_p8 = pneg %p10140_p7 }
 0x535   : > { %10240 = dma.done.wait (%p10141_p8), %s8595_s13, 4096  }
 0x536   : > { %10242 = vsyncadd (%p10141_p8), %s8595_s13, 4294963200  ;;  %p17_p9 = scmp.ge.s32.totalorder %s10330_s30, 4   ;;  %s14863_s24 = smov %s10249_s25 }
 0x537   : > { %s14864_s25 = smov %s10253_s26  ;;  %s14865_s26 = smov %s10341_s10 }
 0x538   : > { %s14866_s27 = smov %s10330_s30  ;;  %19 = sbr.rel (!%p17_p9) target bundleno = 3 (0x3), region = 88 }
 0x53d   :  { %8601 = vsyncpa [#allocation6], 1 }
 0x53e   :  { %8603 = vsyncpa [#allocation6 + $0x1], 1 }

</bundles_post_ra>
